<compile_context>
chip_gen: v5e
topology: v5e:2x2
jax: 0.10.0
libtpu: 0.0.40
codegen_flags: <defaults>
</compile_context>

<pallas_src>
import jax
import jax.numpy as jnp
from jax.experimental import pallas as pl
from jax.experimental.pallas import tpu as pltpu


def gru_block_kernel(x_ref, w_ih_ref, w_hh_ref, bias_ref, b_hn_ref,
                     out_ref, h_ref):
    """One (batch block, time block) grid step of the GRU.

    x_ref   : (B_blk, T_blk, D)  bf16  input slab (batch-first, natural layout)
    w_ih_ref: (D, 3H)            bf16  resident transposed input-proj weight
    w_hh_ref: (H, 3H)            bf16  resident transposed recurrent weight
    bias_ref: (1, 3H)            f32   b_ih + [b_hh_r, b_hh_z, 0]
    b_hn_ref: (1, H)             f32   n-gate slice of b_hh (stays inside r*(.))
    out_ref : (B_blk, T_blk, H)  f32   batch-first output slab
    h_ref   : (B_blk, H)         f32   hidden state carried across time blocks
    """
    H = h_ref.shape[-1]
    T = x_ref.shape[1]

    @pl.when(pl.program_id(1) == 0)          # start of this batch block's time sweep
    def _():
        # h0 is a zero Parameter in the PyTorch module -> zeros at forward time.
        h_ref[...] = jnp.zeros_like(h_ref)

    h = h_ref[...]                                        # (B_blk, H) f32 carry
    # Weights are streamed/resident in bf16; widen ONCE per block so every dot
    # below is f32 x f32 (safe on every backend, fixes the DotThunk failure).
    w_ih = w_ih_ref[...].astype(jnp.float32)              # (D, 3H)
    w_hh = w_hh_ref[...].astype(jnp.float32)              # (H, 3H)
    bias = bias_ref[...]                                  # (1, 3H)
    b_hn = b_hn_ref[...]                                  # (1, H)

    # Static unroll over the time block; PyTorch gate order is r, z, n.
    # TODO(synk): for t_block >> 16, switch to a two-level loop (fori_loop over
    # statically-unrolled chunks) to bound vreg/icache pressure.
    for i in range(T):
        x_t = x_ref[:, i, :].astype(jnp.float32)                          # (B_blk, D)
        # Input projection fused into the kernel (W_ih^T resident in VMEM).
        gx = jnp.dot(x_t, w_ih, preferred_element_type=jnp.float32) + bias
        # Recurrent projection: the only op on the serial critical path.
        gh = jnp.dot(h, w_hh, preferred_element_type=jnp.float32)

        r = jax.nn.sigmoid(gx[:, 0:H] + gh[:, 0:H])
        z = jax.nn.sigmoid(gx[:, H:2 * H] + gh[:, H:2 * H])
        # torch.nn.GRU: n = tanh(W_in x + b_in + r * (W_hn h + b_hn))
        n = jnp.tanh(gx[:, 2 * H:] + r * (gh[:, 2 * H:] + b_hn))
        h = (1.0 - z) * n + z * h                         # f32 gate math / carry

        # Batch-first store; last dim is H (lane-dense multiple of 128).
        out_ref[:, i, :] = h.astype(out_ref.dtype)

    h_ref[...] = h


def basebone_forward(img, w_ih, w_hh, b_ih, b_hh, *, t_block=16, b_block=None):
    """img: (B, S, D) float32, batch-first (same as the torch module's input).

    w_ih: (3H, D), w_hh: (3H, H), b_ih/b_hh: (3H,)  -- PyTorch GRU layout.
    Returns (B, S, H) float32, matching BaseboneModel.forward.
    """
    B, S, D = img.shape
    H = w_hh.shape[1]
    assert w_ih.shape == (3 * H, D) and w_hh.shape == (3 * H, H)
    assert D % 128 == 0 and H % 128 == 0, "D, H must be lane-aligned (x128)"
    assert t_block % 8 == 0, "t_block must be a multiple of the sublane group"

    # Remainder handling: pad batch to a full sublane group (>= 8) and the
    # sequence to a multiple of the time block; padded rows/steps are computed
    # but sliced off below (padded time steps come after the real ones, so the
    # real outputs are unaffected).
    B_pad = max(8, ((B + 7) // 8) * 8)
    S_pad = ((S + t_block - 1) // t_block) * t_block
    if b_block is None:
        b_block = B_pad          # single batch block; use B_pad // 2 etc. on v7x
    assert B_pad % b_block == 0 and b_block % 8 == 0

    x = img.astype(jnp.bfloat16)                     # stream the input in bf16
    if (B_pad, S_pad) != (B, S):
        x = jnp.pad(x, ((0, B_pad - B), (0, S_pad - S), (0, 0)))

    w_ih_t = jnp.transpose(w_ih).astype(jnp.bfloat16)    # (D, 3H) resident
    w_hh_t = jnp.transpose(w_hh).astype(jnp.bfloat16)    # (H, 3H) resident
    # Fold b_ih fully and the r/z slices of b_hh (purely additive there); the
    # n-gate slice of b_hh must stay inside r * (.) and is passed separately.
    bias = (b_ih + jnp.concatenate([b_hh[:2 * H], jnp.zeros((H,), b_hh.dtype)])
            ).reshape(1, 3 * H).astype(jnp.float32)
    b_hn = b_hh[2 * H:].reshape(1, H).astype(jnp.float32)

    nb = B_pad // b_block
    nt = S_pad // t_block

    out = pl.pallas_call(
        gru_block_kernel,
        out_shape=jax.ShapeDtypeStruct((B_pad, S_pad, H), jnp.float32),
        grid_spec=pltpu.PrefetchScalarGridSpec(
            num_scalar_prefetch=0,
            # Batch blocks are independent recurrences (parallel -> both v7x
            # TensorCores); the time axis is the serial recurrence (arbitrary).
            grid=(nb, nt),
            in_specs=[
                pl.BlockSpec((b_block, t_block, D), lambda b, t: (b, t, 0)),  # x
                # Constant-index blocks: fetched once for the whole grid.
                # (If VMEM gets tight at larger tiles on v7x, mark these
                # pipeline_mode=pl.Buffered(1) to drop the second buffer.)
                pl.BlockSpec((D, 3 * H), lambda b, t: (0, 0)),                # W_ih^T
                pl.BlockSpec((H, 3 * H), lambda b, t: (0, 0)),                # W_hh^T
                pl.BlockSpec((1, 3 * H), lambda b, t: (0, 0)),                # bias
                pl.BlockSpec((1, H), lambda b, t: (0, 0)),                    # b_hn
            ],
            # Batch-first output written directly from the kernel -> no wrapper
            # transpose.  (Could be bf16 if downstream consumers tolerate it.)
            out_specs=pl.BlockSpec((b_block, t_block, H), lambda b, t: (b, t, 0)),
            scratch_shapes=[pltpu.VMEM((b_block, H), jnp.float32)],  # carried h
        ),
        compiler_params=pltpu.CompilerParams(
            dimension_semantics=("parallel", "arbitrary"),
        ),
    )(x, w_ih_t, w_hh_t, bias, b_hn)

    if (B_pad, S_pad) != (B, S):
        out = out[:B, :S, :]
    return out


def gru_reference(img, w_ih, w_hh, b_ih, b_hh):
    """Pure-JAX reference with torch.nn.GRU gate semantics and zero h0.

    Mirrors the kernel's operand rounding: x and weights pass through bf16,
    all matmuls are f32 x f32, gate math and the carried hidden state are f32.
    """
    B, S, D = img.shape
    H = w_hh.shape[1]
    x_tm = jnp.transpose(img, (1, 0, 2)).astype(jnp.bfloat16).astype(jnp.float32)
    w_ih_t = jnp.transpose(w_ih).astype(jnp.bfloat16).astype(jnp.float32)
    w_hh_t = jnp.transpose(w_hh).astype(jnp.bfloat16).astype(jnp.float32)

    def step(h, x_t):
        gx = jnp.dot(x_t, w_ih_t) + b_ih
        gh = jnp.dot(h, w_hh_t) + b_hh
        r = jax.nn.sigmoid(gx[:, :H] + gh[:, :H])
        z = jax.nn.sigmoid(gx[:, H:2 * H] + gh[:, H:2 * H])
        n = jnp.tanh(gx[:, 2 * H:] + r * gh[:, 2 * H:])
        h_new = (1.0 - z) * n + z * h
        return h_new, h_new

    h0 = jnp.zeros((B, H), jnp.float32)
    _, ys = jax.lax.scan(step, h0, x_tm)
    return jnp.transpose(ys, (1, 0, 2))


if __name__ == "__main__":
    # Small stand-in for nn.GRU(768, 768): D = H = 128.  B=4 and S=24 exercise
    # the batch padding (to a sublane group of 8), the time padding and the
    # cross-block hidden-state carry (S_pad = 32 -> two time blocks of 16).
    B, S, D, H = 4, 24, 128, 128

    key = jax.random.PRNGKey(0)
    k_img, k_wih, k_whh, k_bih, k_bhh = jax.random.split(key, 5)

    # PyTorch-style GRU init: U(-1/sqrt(H), 1/sqrt(H)), deterministic from seed 0.
    bound = 1.0 / (H ** 0.5)
    img = jax.random.normal(k_img, (B, S, D), dtype=jnp.float32)
    w_ih = jax.random.uniform(k_wih, (3 * H, D), jnp.float32, -bound, bound)
    w_hh = jax.random.uniform(k_whh, (3 * H, H), jnp.float32, -bound, bound)
    b_ih = jax.random.uniform(k_bih, (3 * H,), jnp.float32, -bound, bound)
    b_hh = jax.random.uniform(k_bhh, (3 * H,), jnp.float32, -bound, bound)

    out = basebone_forward(img, w_ih, w_hh, b_ih, b_hh, t_block=16)
    out = jax.block_until_ready(out)
    assert out.shape == (B, S, H)

    ref = gru_reference(img, w_ih, w_hh, b_ih, b_hh)
    err = float(jnp.max(jnp.abs(out - ref)))
    assert err < 2e-3, f"mismatch vs JAX GRU reference: max abs err {err}"

    print("KERNEL_OK")
</pallas_src>

<mosaic_0001>
module attributes {stable_mosaic.version = 11 : i64} {
  func.func @gru_block_kernel(%arg0: i32, %arg1: i32, %arg2: memref<8x16x128xbf16, #tpu.memory_space<vmem>>, %arg3: memref<128x384xbf16, #tpu.memory_space<vmem>>, %arg4: memref<128x384xbf16, #tpu.memory_space<vmem>>, %arg5: memref<1x384xf32, #tpu.memory_space<vmem>>, %arg6: memref<1x128xf32, #tpu.memory_space<vmem>>, %arg7: memref<8x16x128xf32, #tpu.memory_space<vmem>>, %arg8: memref<8x128xf32, #tpu.memory_space<vmem>>) attributes {dimension_semantics = [#tpu.dimension_semantics<parallel>, #tpu.dimension_semantics<arbitrary>], iteration_bounds = array<i64: 1, 2>, scalar_prefetch = 0 : i64, scratch_operands = 1 : i64, tpu.core_type = #tpu.core_type<tc>, window_params = [{transform_indices = @transform_0, window_bounds = array<i64: 8, 16, 128>}, {pipeline_mode = #tpu.pipeline_mode<synchronous>, transform_indices = @transform_1, window_bounds = array<i64: 128, 384>}, {pipeline_mode = #tpu.pipeline_mode<synchronous>, transform_indices = @transform_2, window_bounds = array<i64: 128, 384>}, {pipeline_mode = #tpu.pipeline_mode<synchronous>, transform_indices = @transform_3, window_bounds = array<i64: 1, 384>}, {pipeline_mode = #tpu.pipeline_mode<synchronous>, transform_indices = @transform_4, window_bounds = array<i64: 1, 128>}, {transform_indices = @transform_5, window_bounds = array<i64: 8, 16, 128>}]} {
    %c0_i32 = arith.constant 0 : i32
    %0 = arith.cmpi eq, %arg1, %c0_i32 : i32
    %1 = arith.extui %0 : i1 to i32
    %c0_i32_0 = arith.constant 0 : i32
    %2 = arith.cmpi ne, %1, %c0_i32_0 : i32
    scf.if %2 {
      %cst_172 = arith.constant 0.000000e+00 : f32
      %619 = vector.broadcast %cst_172 : f32 to vector<8x128xf32>
      %c0_173 = arith.constant 0 : index
      %c0_174 = arith.constant 0 : index
      %620 = vector.load %arg8[%c0_173, %c0_174] : memref<8x128xf32, #tpu.memory_space<vmem>>, vector<8x128xf32>
      tpu.vector_store %arg8[%c0_173, %c0_174], %619 {strides = array<i32>} : memref<8x128xf32, #tpu.memory_space<vmem>>, vector<8x128xf32>,
    } else {
    }
    %c0 = arith.constant 0 : index
    %c0_1 = arith.constant 0 : index
    %3 = vector.load %arg8[%c0, %c0_1] : memref<8x128xf32, #tpu.memory_space<vmem>>, vector<8x128xf32>
    %c0_2 = arith.constant 0 : index
    %c0_3 = arith.constant 0 : index
    %4 = vector.load %arg3[%c0_2, %c0_3] : memref<128x384xbf16, #tpu.memory_space<vmem>>, vector<128x384xbf16>
    %5 = arith.extf %4 : vector<128x384xbf16> to vector<128x384xf32>
    %c0_4 = arith.constant 0 : index
    %c0_5 = arith.constant 0 : index
    %6 = vector.load %arg4[%c0_4, %c0_5] : memref<128x384xbf16, #tpu.memory_space<vmem>>, vector<128x384xbf16>
    %7 = arith.extf %6 : vector<128x384xbf16> to vector<128x384xf32>
    %c0_6 = arith.constant 0 : index
    %c0_7 = arith.constant 0 : index
    %8 = vector.load %arg5[%c0_6, %c0_7] : memref<1x384xf32, #tpu.memory_space<vmem>>, vector<1x384xf32>
    %c0_8 = arith.constant 0 : index
    %c0_9 = arith.constant 0 : index
    %9 = vector.load %arg6[%c0_8, %c0_9] : memref<1x128xf32, #tpu.memory_space<vmem>>, vector<1x128xf32>
    %c0_10 = arith.constant 0 : index
    %c0_11 = arith.constant 0 : index
    %c0_12 = arith.constant 0 : index
    %10 = vector.load %arg2[%c0_10, %c0_11, %c0_12] : memref<8x16x128xbf16, #tpu.memory_space<vmem>>, vector<8x1x128xbf16>
    %11 = vector.shape_cast %10 : vector<8x1x128xbf16> to vector<8x128xbf16>
    %12 = arith.extf %11 : vector<8x128xbf16> to vector<8x128xf32>
    %cst = arith.constant dense<0.000000e+00> : vector<8x384xf32>
    %13 = tpu.matmul %12, %5, %cst {dimension_numbers = #tpu.dot_dimension_numbers<[1], [0], [0], [1], [0, 0, 1, 1], [], []>} : vector<8x128xf32>, vector<128x384xf32>, vector<8x384xf32> -> vector<8x384xf32>
    %14 = vector.broadcast %8 : vector<1x384xf32> to vector<8x384xf32>
    %15 = arith.addf %13, %14 : vector<8x384xf32>
    %cst_13 = arith.constant dense<0.000000e+00> : vector<8x384xf32>
    %16 = tpu.matmul %3, %7, %cst_13 {dimension_numbers = #tpu.dot_dimension_numbers<[1], [0], [0], [1], [0, 0, 1, 1], [], []>} : vector<8x128xf32>, vector<128x384xf32>, vector<8x384xf32> -> vector<8x384xf32>
    %17 = vector.extract_strided_slice %15 {offsets = [0, 0], sizes = [8, 128], strides = [1, 1]} : vector<8x384xf32> to vector<8x128xf32>
    %18 = vector.extract_strided_slice %16 {offsets = [0, 0], sizes = [8, 128], strides = [1, 1]} : vector<8x384xf32> to vector<8x128xf32>
    %19 = arith.addf %17, %18 : vector<8x128xf32>
    %20 = arith.negf %19 : vector<8x128xf32>
    %21 = math.exp %20 : vector<8x128xf32>
    %cst_14 = arith.constant 1.000000e+00 : f32
    %22 = vector.broadcast %cst_14 : f32 to vector<8x128xf32>
    %23 = arith.addf %22, %21 : vector<8x128xf32>
    %24 = arith.divf %22, %23 : vector<8x128xf32>
    %25 = vector.extract_strided_slice %15 {offsets = [0, 128], sizes = [8, 128], strides = [1, 1]} : vector<8x384xf32> to vector<8x128xf32>
    %26 = vector.extract_strided_slice %16 {offsets = [0, 128], sizes = [8, 128], strides = [1, 1]} : vector<8x384xf32> to vector<8x128xf32>
    %27 = arith.addf %25, %26 : vector<8x128xf32>
    %28 = arith.negf %27 : vector<8x128xf32>
    %29 = math.exp %28 : vector<8x128xf32>
    %cst_15 = arith.constant 1.000000e+00 : f32
    %30 = vector.broadcast %cst_15 : f32 to vector<8x128xf32>
    %31 = arith.addf %30, %29 : vector<8x128xf32>
    %32 = arith.divf %30, %31 : vector<8x128xf32>
    %33 = vector.extract_strided_slice %15 {offsets = [0, 256], sizes = [8, 128], strides = [1, 1]} : vector<8x384xf32> to vector<8x128xf32>
    %34 = vector.extract_strided_slice %16 {offsets = [0, 256], sizes = [8, 128], strides = [1, 1]} : vector<8x384xf32> to vector<8x128xf32>
    %35 = vector.broadcast %9 : vector<1x128xf32> to vector<8x128xf32>
    %36 = arith.addf %34, %35 : vector<8x128xf32>
    %37 = arith.mulf %24, %36 : vector<8x128xf32>
    %38 = arith.addf %33, %37 : vector<8x128xf32>
    %39 = math.tanh %38 : vector<8x128xf32>
    %cst_16 = arith.constant 1.000000e+00 : f32
    %40 = vector.broadcast %cst_16 : f32 to vector<8x128xf32>
    %41 = arith.subf %40, %32 : vector<8x128xf32>
    %42 = arith.mulf %41, %39 : vector<8x128xf32>
    %43 = arith.mulf %32, %3 : vector<8x128xf32>
    %44 = arith.addf %42, %43 : vector<8x128xf32>
    %c0_17 = arith.constant 0 : index
    %c0_18 = arith.constant 0 : index
    %c0_19 = arith.constant 0 : index
    %45 = vector.load %arg7[%c0_17, %c0_18, %c0_19] : memref<8x16x128xf32, #tpu.memory_space<vmem>>, vector<8x1x128xf32>
    %46 = vector.shape_cast %45 : vector<8x1x128xf32> to vector<8x128xf32>
    %47 = vector.shape_cast %44 : vector<8x128xf32> to vector<8x1x128xf32>
    tpu.vector_store %arg7[%c0_17, %c0_18, %c0_19], %47 {strides = array<i32>} : memref<8x16x128xf32, #tpu.memory_space<vmem>>, vector<8x1x128xf32>,
    %c0_20 = arith.constant 0 : index
    %c1 = arith.constant 1 : index
    %c0_21 = arith.constant 0 : index
    %48 = vector.load %arg2[%c0_20, %c1, %c0_21] : memref<8x16x128xbf16, #tpu.memory_space<vmem>>, vector<8x1x128xbf16>
    %49 = vector.shape_cast %48 : vector<8x1x128xbf16> to vector<8x128xbf16>
    %50 = arith.extf %49 : vector<8x128xbf16> to vector<8x128xf32>
    %cst_22 = arith.constant dense<0.000000e+00> : vector<8x384xf32>
    %51 = tpu.matmul %50, %5, %cst_22 {dimension_numbers = #tpu.dot_dimension_numbers<[1], [0], [0], [1], [0, 0, 1, 1], [], []>} : vector<8x128xf32>, vector<128x384xf32>, vector<8x384xf32> -> vector<8x384xf32>
    %52 = vector.broadcast %8 : vector<1x384xf32> to vector<8x384xf32>
    %53 = arith.addf %51, %52 : vector<8x384xf32>
    %cst_23 = arith.constant dense<0.000000e+00> : vector<8x384xf32>
    %54 = tpu.matmul %44, %7, %cst_23 {dimension_numbers = #tpu.dot_dimension_numbers<[1], [0], [0], [1], [0, 0, 1, 1], [], []>} : vector<8x128xf32>, vector<128x384xf32>, vector<8x384xf32> -> vector<8x384xf32>
    %55 = vector.extract_strided_slice %53 {offsets = [0, 0], sizes = [8, 128], strides = [1, 1]} : vector<8x384xf32> to vector<8x128xf32>
    %56 = vector.extract_strided_slice %54 {offsets = [0, 0], sizes = [8, 128], strides = [1, 1]} : vector<8x384xf32> to vector<8x128xf32>
    %57 = arith.addf %55, %56 : vector<8x128xf32>
    %58 = arith.negf %57 : vector<8x128xf32>
    %59 = math.exp %58 : vector<8x128xf32>
    %cst_24 = arith.constant 1.000000e+00 : f32
    %60 = vector.broadcast %cst_24 : f32 to vector<8x128xf32>
    %61 = arith.addf %60, %59 : vector<8x128xf32>
    %62 = arith.divf %60, %61 : vector<8x128xf32>
    %63 = vector.extract_strided_slice %53 {offsets = [0, 128], sizes = [8, 128], strides = [1, 1]} : vector<8x384xf32> to vector<8x128xf32>
    %64 = vector.extract_strided_slice %54 {offsets = [0, 128], sizes = [8, 128], strides = [1, 1]} : vector<8x384xf32> to vector<8x128xf32>
    %65 = arith.addf %63, %64 : vector<8x128xf32>
    %66 = arith.negf %65 : vector<8x128xf32>
    %67 = math.exp %66 : vector<8x128xf32>
    %cst_25 = arith.constant 1.000000e+00 : f32
    %68 = vector.broadcast %cst_25 : f32 to vector<8x128xf32>
    %69 = arith.addf %68, %67 : vector<8x128xf32>
    %70 = arith.divf %68, %69 : vector<8x128xf32>
    %71 = vector.extract_strided_slice %53 {offsets = [0, 256], sizes = [8, 128], strides = [1, 1]} : vector<8x384xf32> to vector<8x128xf32>
    %72 = vector.extract_strided_slice %54 {offsets = [0, 256], sizes = [8, 128], strides = [1, 1]} : vector<8x384xf32> to vector<8x128xf32>
    %73 = vector.broadcast %9 : vector<1x128xf32> to vector<8x128xf32>
    %74 = arith.addf %72, %73 : vector<8x128xf32>
    %75 = arith.mulf %62, %74 : vector<8x128xf32>
    %76 = arith.addf %71, %75 : vector<8x128xf32>
    %77 = math.tanh %76 : vector<8x128xf32>
    %cst_26 = arith.constant 1.000000e+00 : f32
    %78 = vector.broadcast %cst_26 : f32 to vector<8x128xf32>
    %79 = arith.subf %78, %70 : vector<8x128xf32>
    %80 = arith.mulf %79, %77 : vector<8x128xf32>
    %81 = arith.mulf %70, %44 : vector<8x128xf32>
    %82 = arith.addf %80, %81 : vector<8x128xf32>
    %c0_27 = arith.constant 0 : index
    %c1_28 = arith.constant 1 : index
    %c0_29 = arith.constant 0 : index
    %83 = vector.load %arg7[%c0_27, %c1_28, %c0_29] : memref<8x16x128xf32, #tpu.memory_space<vmem>>, vector<8x1x128xf32>
    %84 = vector.shape_cast %83 : vector<8x1x128xf32> to vector<8x128xf32>
    %85 = vector.shape_cast %82 : vector<8x128xf32> to vector<8x1x128xf32>
    tpu.vector_store %arg7[%c0_27, %c1_28, %c0_29], %85 {strides = array<i32>} : memref<8x16x128xf32, #tpu.memory_space<vmem>>, vector<8x1x128xf32>,
    %c0_30 = arith.constant 0 : index
    %c2 = arith.constant 2 : index
    %c0_31 = arith.constant 0 : index
    %86 = vector.load %arg2[%c0_30, %c2, %c0_31] : memref<8x16x128xbf16, #tpu.memory_space<vmem>>, vector<8x1x128xbf16>
    %87 = vector.shape_cast %86 : vector<8x1x128xbf16> to vector<8x128xbf16>
    %88 = arith.extf %87 : vector<8x128xbf16> to vector<8x128xf32>
    %cst_32 = arith.constant dense<0.000000e+00> : vector<8x384xf32>
    %89 = tpu.matmul %88, %5, %cst_32 {dimension_numbers = #tpu.dot_dimension_numbers<[1], [0], [0], [1], [0, 0, 1, 1], [], []>} : vector<8x128xf32>, vector<128x384xf32>, vector<8x384xf32> -> vector<8x384xf32>
    %90 = vector.broadcast %8 : vector<1x384xf32> to vector<8x384xf32>
    %91 = arith.addf %89, %90 : vector<8x384xf32>
    %cst_33 = arith.constant dense<0.000000e+00> : vector<8x384xf32>
    %92 = tpu.matmul %82, %7, %cst_33 {dimension_numbers = #tpu.dot_dimension_numbers<[1], [0], [0], [1], [0, 0, 1, 1], [], []>} : vector<8x128xf32>, vector<128x384xf32>, vector<8x384xf32> -> vector<8x384xf32>
    %93 = vector.extract_strided_slice %91 {offsets = [0, 0], sizes = [8, 128], strides = [1, 1]} : vector<8x384xf32> to vector<8x128xf32>
    %94 = vector.extract_strided_slice %92 {offsets = [0, 0], sizes = [8, 128], strides = [1, 1]} : vector<8x384xf32> to vector<8x128xf32>
    %95 = arith.addf %93, %94 : vector<8x128xf32>
    %96 = arith.negf %95 : vector<8x128xf32>
    %97 = math.exp %96 : vector<8x128xf32>
    %cst_34 = arith.constant 1.000000e+00 : f32
    %98 = vector.broadcast %cst_34 : f32 to vector<8x128xf32>
    %99 = arith.addf %98, %97 : vector<8x128xf32>
    %100 = arith.divf %98, %99 : vector<8x128xf32>
    %101 = vector.extract_strided_slice %91 {offsets = [0, 128], sizes = [8, 128], strides = [1, 1]} : vector<8x384xf32> to vector<8x128xf32>
    %102 = vector.extract_strided_slice %92 {offsets = [0, 128], sizes = [8, 128], strides = [1, 1]} : vector<8x384xf32> to vector<8x128xf32>
    %103 = arith.addf %101, %102 : vector<8x128xf32>
    %104 = arith.negf %103 : vector<8x128xf32>
    %105 = math.exp %104 : vector<8x128xf32>
    %cst_35 = arith.constant 1.000000e+00 : f32
    %106 = vector.broadcast %cst_35 : f32 to vector<8x128xf32>
    %107 = arith.addf %106, %105 : vector<8x128xf32>
    %108 = arith.divf %106, %107 : vector<8x128xf32>
    %109 = vector.extract_strided_slice %91 {offsets = [0, 256], sizes = [8, 128], strides = [1, 1]} : vector<8x384xf32> to vector<8x128xf32>
    %110 = vector.extract_strided_slice %92 {offsets = [0, 256], sizes = [8, 128], strides = [1, 1]} : vector<8x384xf32> to vector<8x128xf32>
    %111 = vector.broadcast %9 : vector<1x128xf32> to vector<8x128xf32>
    %112 = arith.addf %110, %111 : vector<8x128xf32>
    %113 = arith.mulf %100, %112 : vector<8x128xf32>
    %114 = arith.addf %109, %113 : vector<8x128xf32>
    %115 = math.tanh %114 : vector<8x128xf32>
    %cst_36 = arith.constant 1.000000e+00 : f32
    %116 = vector.broadcast %cst_36 : f32 to vector<8x128xf32>
    %117 = arith.subf %116, %108 : vector<8x128xf32>
    %118 = arith.mulf %117, %115 : vector<8x128xf32>
    %119 = arith.mulf %108, %82 : vector<8x128xf32>
    %120 = arith.addf %118, %119 : vector<8x128xf32>
    %c0_37 = arith.constant 0 : index
    %c2_38 = arith.constant 2 : index
    %c0_39 = arith.constant 0 : index
    %121 = vector.load %arg7[%c0_37, %c2_38, %c0_39] : memref<8x16x128xf32, #tpu.memory_space<vmem>>, vector<8x1x128xf32>
    %122 = vector.shape_cast %121 : vector<8x1x128xf32> to vector<8x128xf32>
    %123 = vector.shape_cast %120 : vector<8x128xf32> to vector<8x1x128xf32>
    tpu.vector_store %arg7[%c0_37, %c2_38, %c0_39], %123 {strides = array<i32>} : memref<8x16x128xf32, #tpu.memory_space<vmem>>, vector<8x1x128xf32>,
    %c0_40 = arith.constant 0 : index
    %c3 = arith.constant 3 : index
    %c0_41 = arith.constant 0 : index
    %124 = vector.load %arg2[%c0_40, %c3, %c0_41] : memref<8x16x128xbf16, #tpu.memory_space<vmem>>, vector<8x1x128xbf16>
    %125 = vector.shape_cast %124 : vector<8x1x128xbf16> to vector<8x128xbf16>
    %126 = arith.extf %125 : vector<8x128xbf16> to vector<8x128xf32>
    %cst_42 = arith.constant dense<0.000000e+00> : vector<8x384xf32>
    %127 = tpu.matmul %126, %5, %cst_42 {dimension_numbers = #tpu.dot_dimension_numbers<[1], [0], [0], [1], [0, 0, 1, 1], [], []>} : vector<8x128xf32>, vector<128x384xf32>, vector<8x384xf32> -> vector<8x384xf32>
    %128 = vector.broadcast %8 : vector<1x384xf32> to vector<8x384xf32>
    %129 = arith.addf %127, %128 : vector<8x384xf32>
    %cst_43 = arith.constant dense<0.000000e+00> : vector<8x384xf32>
    %130 = tpu.matmul %120, %7, %cst_43 {dimension_numbers = #tpu.dot_dimension_numbers<[1], [0], [0], [1], [0, 0, 1, 1], [], []>} : vector<8x128xf32>, vector<128x384xf32>, vector<8x384xf32> -> vector<8x384xf32>
    %131 = vector.extract_strided_slice %129 {offsets = [0, 0], sizes = [8, 128], strides = [1, 1]} : vector<8x384xf32> to vector<8x128xf32>
    %132 = vector.extract_strided_slice %130 {offsets = [0, 0], sizes = [8, 128], strides = [1, 1]} : vector<8x384xf32> to vector<8x128xf32>
    %133 = arith.addf %131, %132 : vector<8x128xf32>
    %134 = arith.negf %133 : vector<8x128xf32>
    %135 = math.exp %134 : vector<8x128xf32>
    %cst_44 = arith.constant 1.000000e+00 : f32
    %136 = vector.broadcast %cst_44 : f32 to vector<8x128xf32>
    %137 = arith.addf %136, %135 : vector<8x128xf32>
    %138 = arith.divf %136, %137 : vector<8x128xf32>
    %139 = vector.extract_strided_slice %129 {offsets = [0, 128], sizes = [8, 128], strides = [1, 1]} : vector<8x384xf32> to vector<8x128xf32>
    %140 = vector.extract_strided_slice %130 {offsets = [0, 128], sizes = [8, 128], strides = [1, 1]} : vector<8x384xf32> to vector<8x128xf32>
    %141 = arith.addf %139, %140 : vector<8x128xf32>
    %142 = arith.negf %141 : vector<8x128xf32>
    %143 = math.exp %142 : vector<8x128xf32>
    %cst_45 = arith.constant 1.000000e+00 : f32
    %144 = vector.broadcast %cst_45 : f32 to vector<8x128xf32>
    %145 = arith.addf %144, %143 : vector<8x128xf32>
    %146 = arith.divf %144, %145 : vector<8x128xf32>
    %147 = vector.extract_strided_slice %129 {offsets = [0, 256], sizes = [8, 128], strides = [1, 1]} : vector<8x384xf32> to vector<8x128xf32>
    %148 = vector.extract_strided_slice %130 {offsets = [0, 256], sizes = [8, 128], strides = [1, 1]} : vector<8x384xf32> to vector<8x128xf32>
    %149 = vector.broadcast %9 : vector<1x128xf32> to vector<8x128xf32>
    %150 = arith.addf %148, %149 : vector<8x128xf32>
    %151 = arith.mulf %138, %150 : vector<8x128xf32>
    %152 = arith.addf %147, %151 : vector<8x128xf32>
    %153 = math.tanh %152 : vector<8x128xf32>
    %cst_46 = arith.constant 1.000000e+00 : f32
    %154 = vector.broadcast %cst_46 : f32 to vector<8x128xf32>
    %155 = arith.subf %154, %146 : vector<8x128xf32>
    %156 = arith.mulf %155, %153 : vector<8x128xf32>
    %157 = arith.mulf %146, %120 : vector<8x128xf32>
    %158 = arith.addf %156, %157 : vector<8x128xf32>
    %c0_47 = arith.constant 0 : index
    %c3_48 = arith.constant 3 : index
    %c0_49 = arith.constant 0 : index
    %159 = vector.load %arg7[%c0_47, %c3_48, %c0_49] : memref<8x16x128xf32, #tpu.memory_space<vmem>>, vector<8x1x128xf32>
    %160 = vector.shape_cast %159 : vector<8x1x128xf32> to vector<8x128xf32>
    %161 = vector.shape_cast %158 : vector<8x128xf32> to vector<8x1x128xf32>
    tpu.vector_store %arg7[%c0_47, %c3_48, %c0_49], %161 {strides = array<i32>} : memref<8x16x128xf32, #tpu.memory_space<vmem>>, vector<8x1x128xf32>,
    %c0_50 = arith.constant 0 : index
    %c4 = arith.constant 4 : index
    %c0_51 = arith.constant 0 : index
    %162 = vector.load %arg2[%c0_50, %c4, %c0_51] : memref<8x16x128xbf16, #tpu.memory_space<vmem>>, vector<8x1x128xbf16>
    %163 = vector.shape_cast %162 : vector<8x1x128xbf16> to vector<8x128xbf16>
    %164 = arith.extf %163 : vector<8x128xbf16> to vector<8x128xf32>
    %cst_52 = arith.constant dense<0.000000e+00> : vector<8x384xf32>
    %165 = tpu.matmul %164, %5, %cst_52 {dimension_numbers = #tpu.dot_dimension_numbers<[1], [0], [0], [1], [0, 0, 1, 1], [], []>} : vector<8x128xf32>, vector<128x384xf32>, vector<8x384xf32> -> vector<8x384xf32>
    %166 = vector.broadcast %8 : vector<1x384xf32> to vector<8x384xf32>
    %167 = arith.addf %165, %166 : vector<8x384xf32>
    %cst_53 = arith.constant dense<0.000000e+00> : vector<8x384xf32>
    %168 = tpu.matmul %158, %7, %cst_53 {dimension_numbers = #tpu.dot_dimension_numbers<[1], [0], [0], [1], [0, 0, 1, 1], [], []>} : vector<8x128xf32>, vector<128x384xf32>, vector<8x384xf32> -> vector<8x384xf32>
    %169 = vector.extract_strided_slice %167 {offsets = [0, 0], sizes = [8, 128], strides = [1, 1]} : vector<8x384xf32> to vector<8x128xf32>
    %170 = vector.extract_strided_slice %168 {offsets = [0, 0], sizes = [8, 128], strides = [1, 1]} : vector<8x384xf32> to vector<8x128xf32>
    %171 = arith.addf %169, %170 : vector<8x128xf32>
    %172 = arith.negf %171 : vector<8x128xf32>
    %173 = math.exp %172 : vector<8x128xf32>
    %cst_54 = arith.constant 1.000000e+00 : f32
    %174 = vector.broadcast %cst_54 : f32 to vector<8x128xf32>
    %175 = arith.addf %174, %173 : vector<8x128xf32>
    %176 = arith.divf %174, %175 : vector<8x128xf32>
    %177 = vector.extract_strided_slice %167 {offsets = [0, 128], sizes = [8, 128], strides = [1, 1]} : vector<8x384xf32> to vector<8x128xf32>
    %178 = vector.extract_strided_slice %168 {offsets = [0, 128], sizes = [8, 128], strides = [1, 1]} : vector<8x384xf32> to vector<8x128xf32>
    %179 = arith.addf %177, %178 : vector<8x128xf32>
    %180 = arith.negf %179 : vector<8x128xf32>
    %181 = math.exp %180 : vector<8x128xf32>
    %cst_55 = arith.constant 1.000000e+00 : f32
    %182 = vector.broadcast %cst_55 : f32 to vector<8x128xf32>
    %183 = arith.addf %182, %181 : vector<8x128xf32>
    %184 = arith.divf %182, %183 : vector<8x128xf32>
    %185 = vector.extract_strided_slice %167 {offsets = [0, 256], sizes = [8, 128], strides = [1, 1]} : vector<8x384xf32> to vector<8x128xf32>
    %186 = vector.extract_strided_slice %168 {offsets = [0, 256], sizes = [8, 128], strides = [1, 1]} : vector<8x384xf32> to vector<8x128xf32>
    %187 = vector.broadcast %9 : vector<1x128xf32> to vector<8x128xf32>
    %188 = arith.addf %186, %187 : vector<8x128xf32>
    %189 = arith.mulf %176, %188 : vector<8x128xf32>
    %190 = arith.addf %185, %189 : vector<8x128xf32>
    %191 = math.tanh %190 : vector<8x128xf32>
    %cst_56 = arith.constant 1.000000e+00 : f32
    %192 = vector.broadcast %cst_56 : f32 to vector<8x128xf32>
    %193 = arith.subf %192, %184 : vector<8x128xf32>
    %194 = arith.mulf %193, %191 : vector<8x128xf32>
    %195 = arith.mulf %184, %158 : vector<8x128xf32>
    %196 = arith.addf %194, %195 : vector<8x128xf32>
    %c0_57 = arith.constant 0 : index
    %c4_58 = arith.constant 4 : index
    %c0_59 = arith.constant 0 : index
    %197 = vector.load %arg7[%c0_57, %c4_58, %c0_59] : memref<8x16x128xf32, #tpu.memory_space<vmem>>, vector<8x1x128xf32>
    %198 = vector.shape_cast %197 : vector<8x1x128xf32> to vector<8x128xf32>
    %199 = vector.shape_cast %196 : vector<8x128xf32> to vector<8x1x128xf32>
    tpu.vector_store %arg7[%c0_57, %c4_58, %c0_59], %199 {strides = array<i32>} : memref<8x16x128xf32, #tpu.memory_space<vmem>>, vector<8x1x128xf32>,
    %c0_60 = arith.constant 0 : index
    %c5 = arith.constant 5 : index
    %c0_61 = arith.constant 0 : index
    %200 = vector.load %arg2[%c0_60, %c5, %c0_61] : memref<8x16x128xbf16, #tpu.memory_space<vmem>>, vector<8x1x128xbf16>
    %201 = vector.shape_cast %200 : vector<8x1x128xbf16> to vector<8x128xbf16>
    %202 = arith.extf %201 : vector<8x128xbf16> to vector<8x128xf32>
    %cst_62 = arith.constant dense<0.000000e+00> : vector<8x384xf32>
    %203 = tpu.matmul %202, %5, %cst_62 {dimension_numbers = #tpu.dot_dimension_numbers<[1], [0], [0], [1], [0, 0, 1, 1], [], []>} : vector<8x128xf32>, vector<128x384xf32>, vector<8x384xf32> -> vector<8x384xf32>
    %204 = vector.broadcast %8 : vector<1x384xf32> to vector<8x384xf32>
    %205 = arith.addf %203, %204 : vector<8x384xf32>
    %cst_63 = arith.constant dense<0.000000e+00> : vector<8x384xf32>
    %206 = tpu.matmul %196, %7, %cst_63 {dimension_numbers = #tpu.dot_dimension_numbers<[1], [0], [0], [1], [0, 0, 1, 1], [], []>} : vector<8x128xf32>, vector<128x384xf32>, vector<8x384xf32> -> vector<8x384xf32>
    %207 = vector.extract_strided_slice %205 {offsets = [0, 0], sizes = [8, 128], strides = [1, 1]} : vector<8x384xf32> to vector<8x128xf32>
    %208 = vector.extract_strided_slice %206 {offsets = [0, 0], sizes = [8, 128], strides = [1, 1]} : vector<8x384xf32> to vector<8x128xf32>
    %209 = arith.addf %207, %208 : vector<8x128xf32>
    %210 = arith.negf %209 : vector<8x128xf32>
    %211 = math.exp %210 : vector<8x128xf32>
    %cst_64 = arith.constant 1.000000e+00 : f32
    %212 = vector.broadcast %cst_64 : f32 to vector<8x128xf32>
    %213 = arith.addf %212, %211 : vector<8x128xf32>
    %214 = arith.divf %212, %213 : vector<8x128xf32>
    %215 = vector.extract_strided_slice %205 {offsets = [0, 128], sizes = [8, 128], strides = [1, 1]} : vector<8x384xf32> to vector<8x128xf32>
    %216 = vector.extract_strided_slice %206 {offsets = [0, 128], sizes = [8, 128], strides = [1, 1]} : vector<8x384xf32> to vector<8x128xf32>
    %217 = arith.addf %215, %216 : vector<8x128xf32>
    %218 = arith.negf %217 : vector<8x128xf32>
    %219 = math.exp %218 : vector<8x128xf32>
    %cst_65 = arith.constant 1.000000e+00 : f32
    %220 = vector.broadcast %cst_65 : f32 to vector<8x128xf32>
    %221 = arith.addf %220, %219 : vector<8x128xf32>
    %222 = arith.divf %220, %221 : vector<8x128xf32>
    %223 = vector.extract_strided_slice %205 {offsets = [0, 256], sizes = [8, 128], strides = [1, 1]} : vector<8x384xf32> to vector<8x128xf32>
    %224 = vector.extract_strided_slice %206 {offsets = [0, 256], sizes = [8, 128], strides = [1, 1]} : vector<8x384xf32> to vector<8x128xf32>
    %225 = vector.broadcast %9 : vector<1x128xf32> to vector<8x128xf32>
    %226 = arith.addf %224, %225 : vector<8x128xf32>
    %227 = arith.mulf %214, %226 : vector<8x128xf32>
    %228 = arith.addf %223, %227 : vector<8x128xf32>
    %229 = math.tanh %228 : vector<8x128xf32>
    %cst_66 = arith.constant 1.000000e+00 : f32
    %230 = vector.broadcast %cst_66 : f32 to vector<8x128xf32>
    %231 = arith.subf %230, %222 : vector<8x128xf32>
    %232 = arith.mulf %231, %229 : vector<8x128xf32>
    %233 = arith.mulf %222, %196 : vector<8x128xf32>
    %234 = arith.addf %232, %233 : vector<8x128xf32>
    %c0_67 = arith.constant 0 : index
    %c5_68 = arith.constant 5 : index
    %c0_69 = arith.constant 0 : index
    %235 = vector.load %arg7[%c0_67, %c5_68, %c0_69] : memref<8x16x128xf32, #tpu.memory_space<vmem>>, vector<8x1x128xf32>
    %236 = vector.shape_cast %235 : vector<8x1x128xf32> to vector<8x128xf32>
    %237 = vector.shape_cast %234 : vector<8x128xf32> to vector<8x1x128xf32>
    tpu.vector_store %arg7[%c0_67, %c5_68, %c0_69], %237 {strides = array<i32>} : memref<8x16x128xf32, #tpu.memory_space<vmem>>, vector<8x1x128xf32>,
    %c0_70 = arith.constant 0 : index
    %c6 = arith.constant 6 : index
    %c0_71 = arith.constant 0 : index
    %238 = vector.load %arg2[%c0_70, %c6, %c0_71] : memref<8x16x128xbf16, #tpu.memory_space<vmem>>, vector<8x1x128xbf16>
    %239 = vector.shape_cast %238 : vector<8x1x128xbf16> to vector<8x128xbf16>
    %240 = arith.extf %239 : vector<8x128xbf16> to vector<8x128xf32>
    %cst_72 = arith.constant dense<0.000000e+00> : vector<8x384xf32>
    %241 = tpu.matmul %240, %5, %cst_72 {dimension_numbers = #tpu.dot_dimension_numbers<[1], [0], [0], [1], [0, 0, 1, 1], [], []>} : vector<8x128xf32>, vector<128x384xf32>, vector<8x384xf32> -> vector<8x384xf32>
    %242 = vector.broadcast %8 : vector<1x384xf32> to vector<8x384xf32>
    %243 = arith.addf %241, %242 : vector<8x384xf32>
    %cst_73 = arith.constant dense<0.000000e+00> : vector<8x384xf32>
    %244 = tpu.matmul %234, %7, %cst_73 {dimension_numbers = #tpu.dot_dimension_numbers<[1], [0], [0], [1], [0, 0, 1, 1], [], []>} : vector<8x128xf32>, vector<128x384xf32>, vector<8x384xf32> -> vector<8x384xf32>
    %245 = vector.extract_strided_slice %243 {offsets = [0, 0], sizes = [8, 128], strides = [1, 1]} : vector<8x384xf32> to vector<8x128xf32>
    %246 = vector.extract_strided_slice %244 {offsets = [0, 0], sizes = [8, 128], strides = [1, 1]} : vector<8x384xf32> to vector<8x128xf32>
    %247 = arith.addf %245, %246 : vector<8x128xf32>
    %248 = arith.negf %247 : vector<8x128xf32>
    %249 = math.exp %248 : vector<8x128xf32>
    %cst_74 = arith.constant 1.000000e+00 : f32
    %250 = vector.broadcast %cst_74 : f32 to vector<8x128xf32>
    %251 = arith.addf %250, %249 : vector<8x128xf32>
    %252 = arith.divf %250, %251 : vector<8x128xf32>
    %253 = vector.extract_strided_slice %243 {offsets = [0, 128], sizes = [8, 128], strides = [1, 1]} : vector<8x384xf32> to vector<8x128xf32>
    %254 = vector.extract_strided_slice %244 {offsets = [0, 128], sizes = [8, 128], strides = [1, 1]} : vector<8x384xf32> to vector<8x128xf32>
    %255 = arith.addf %253, %254 : vector<8x128xf32>
    %256 = arith.negf %255 : vector<8x128xf32>
    %257 = math.exp %256 : vector<8x128xf32>
    %cst_75 = arith.constant 1.000000e+00 : f32
    %258 = vector.broadcast %cst_75 : f32 to vector<8x128xf32>
    %259 = arith.addf %258, %257 : vector<8x128xf32>
    %260 = arith.divf %258, %259 : vector<8x128xf32>
    %261 = vector.extract_strided_slice %243 {offsets = [0, 256], sizes = [8, 128], strides = [1, 1]} : vector<8x384xf32> to vector<8x128xf32>
    %262 = vector.extract_strided_slice %244 {offsets = [0, 256], sizes = [8, 128], strides = [1, 1]} : vector<8x384xf32> to vector<8x128xf32>
    %263 = vector.broadcast %9 : vector<1x128xf32> to vector<8x128xf32>
    %264 = arith.addf %262, %263 : vector<8x128xf32>
    %265 = arith.mulf %252, %264 : vector<8x128xf32>
    %266 = arith.addf %261, %265 : vector<8x128xf32>
    %267 = math.tanh %266 : vector<8x128xf32>
    %cst_76 = arith.constant 1.000000e+00 : f32
    %268 = vector.broadcast %cst_76 : f32 to vector<8x128xf32>
    %269 = arith.subf %268, %260 : vector<8x128xf32>
    %270 = arith.mulf %269, %267 : vector<8x128xf32>
    %271 = arith.mulf %260, %234 : vector<8x128xf32>
    %272 = arith.addf %270, %271 : vector<8x128xf32>
    %c0_77 = arith.constant 0 : index
    %c6_78 = arith.constant 6 : index
    %c0_79 = arith.constant 0 : index
    %273 = vector.load %arg7[%c0_77, %c6_78, %c0_79] : memref<8x16x128xf32, #tpu.memory_space<vmem>>, vector<8x1x128xf32>
    %274 = vector.shape_cast %273 : vector<8x1x128xf32> to vector<8x128xf32>
    %275 = vector.shape_cast %272 : vector<8x128xf32> to vector<8x1x128xf32>
    tpu.vector_store %arg7[%c0_77, %c6_78, %c0_79], %275 {strides = array<i32>} : memref<8x16x128xf32, #tpu.memory_space<vmem>>, vector<8x1x128xf32>,
    %c0_80 = arith.constant 0 : index
    %c7 = arith.constant 7 : index
    %c0_81 = arith.constant 0 : index
    %276 = vector.load %arg2[%c0_80, %c7, %c0_81] : memref<8x16x128xbf16, #tpu.memory_space<vmem>>, vector<8x1x128xbf16>
    %277 = vector.shape_cast %276 : vector<8x1x128xbf16> to vector<8x128xbf16>
    %278 = arith.extf %277 : vector<8x128xbf16> to vector<8x128xf32>
    %cst_82 = arith.constant dense<0.000000e+00> : vector<8x384xf32>
    %279 = tpu.matmul %278, %5, %cst_82 {dimension_numbers = #tpu.dot_dimension_numbers<[1], [0], [0], [1], [0, 0, 1, 1], [], []>} : vector<8x128xf32>, vector<128x384xf32>, vector<8x384xf32> -> vector<8x384xf32>
    %280 = vector.broadcast %8 : vector<1x384xf32> to vector<8x384xf32>
    %281 = arith.addf %279, %280 : vector<8x384xf32>
    %cst_83 = arith.constant dense<0.000000e+00> : vector<8x384xf32>
    %282 = tpu.matmul %272, %7, %cst_83 {dimension_numbers = #tpu.dot_dimension_numbers<[1], [0], [0], [1], [0, 0, 1, 1], [], []>} : vector<8x128xf32>, vector<128x384xf32>, vector<8x384xf32> -> vector<8x384xf32>
    %283 = vector.extract_strided_slice %281 {offsets = [0, 0], sizes = [8, 128], strides = [1, 1]} : vector<8x384xf32> to vector<8x128xf32>
    %284 = vector.extract_strided_slice %282 {offsets = [0, 0], sizes = [8, 128], strides = [1, 1]} : vector<8x384xf32> to vector<8x128xf32>
    %285 = arith.addf %283, %284 : vector<8x128xf32>
    %286 = arith.negf %285 : vector<8x128xf32>
    %287 = math.exp %286 : vector<8x128xf32>
    %cst_84 = arith.constant 1.000000e+00 : f32
    %288 = vector.broadcast %cst_84 : f32 to vector<8x128xf32>
    %289 = arith.addf %288, %287 : vector<8x128xf32>
    %290 = arith.divf %288, %289 : vector<8x128xf32>
    %291 = vector.extract_strided_slice %281 {offsets = [0, 128], sizes = [8, 128], strides = [1, 1]} : vector<8x384xf32> to vector<8x128xf32>
    %292 = vector.extract_strided_slice %282 {offsets = [0, 128], sizes = [8, 128], strides = [1, 1]} : vector<8x384xf32> to vector<8x128xf32>
    %293 = arith.addf %291, %292 : vector<8x128xf32>
    %294 = arith.negf %293 : vector<8x128xf32>
    %295 = math.exp %294 : vector<8x128xf32>
    %cst_85 = arith.constant 1.000000e+00 : f32
    %296 = vector.broadcast %cst_85 : f32 to vector<8x128xf32>
    %297 = arith.addf %296, %295 : vector<8x128xf32>
    %298 = arith.divf %296, %297 : vector<8x128xf32>
    %299 = vector.extract_strided_slice %281 {offsets = [0, 256], sizes = [8, 128], strides = [1, 1]} : vector<8x384xf32> to vector<8x128xf32>
    %300 = vector.extract_strided_slice %282 {offsets = [0, 256], sizes = [8, 128], strides = [1, 1]} : vector<8x384xf32> to vector<8x128xf32>
    %301 = vector.broadcast %9 : vector<1x128xf32> to vector<8x128xf32>
    %302 = arith.addf %300, %301 : vector<8x128xf32>
    %303 = arith.mulf %290, %302 : vector<8x128xf32>
    %304 = arith.addf %299, %303 : vector<8x128xf32>
    %305 = math.tanh %304 : vector<8x128xf32>
    %cst_86 = arith.constant 1.000000e+00 : f32
    %306 = vector.broadcast %cst_86 : f32 to vector<8x128xf32>
    %307 = arith.subf %306, %298 : vector<8x128xf32>
    %308 = arith.mulf %307, %305 : vector<8x128xf32>
    %309 = arith.mulf %298, %272 : vector<8x128xf32>
    %310 = arith.addf %308, %309 : vector<8x128xf32>
    %c0_87 = arith.constant 0 : index
    %c7_88 = arith.constant 7 : index
    %c0_89 = arith.constant 0 : index
    %311 = vector.load %arg7[%c0_87, %c7_88, %c0_89] : memref<8x16x128xf32, #tpu.memory_space<vmem>>, vector<8x1x128xf32>
    %312 = vector.shape_cast %311 : vector<8x1x128xf32> to vector<8x128xf32>
    %313 = vector.shape_cast %310 : vector<8x128xf32> to vector<8x1x128xf32>
    tpu.vector_store %arg7[%c0_87, %c7_88, %c0_89], %313 {strides = array<i32>} : memref<8x16x128xf32, #tpu.memory_space<vmem>>, vector<8x1x128xf32>,
    %c0_90 = arith.constant 0 : index
    %c8 = arith.constant 8 : index
    %c0_91 = arith.constant 0 : index
    %314 = vector.load %arg2[%c0_90, %c8, %c0_91] : memref<8x16x128xbf16, #tpu.memory_space<vmem>>, vector<8x1x128xbf16>
    %315 = vector.shape_cast %314 : vector<8x1x128xbf16> to vector<8x128xbf16>
    %316 = arith.extf %315 : vector<8x128xbf16> to vector<8x128xf32>
    %cst_92 = arith.constant dense<0.000000e+00> : vector<8x384xf32>
    %317 = tpu.matmul %316, %5, %cst_92 {dimension_numbers = #tpu.dot_dimension_numbers<[1], [0], [0], [1], [0, 0, 1, 1], [], []>} : vector<8x128xf32>, vector<128x384xf32>, vector<8x384xf32> -> vector<8x384xf32>
    %318 = vector.broadcast %8 : vector<1x384xf32> to vector<8x384xf32>
    %319 = arith.addf %317, %318 : vector<8x384xf32>
    %cst_93 = arith.constant dense<0.000000e+00> : vector<8x384xf32>
    %320 = tpu.matmul %310, %7, %cst_93 {dimension_numbers = #tpu.dot_dimension_numbers<[1], [0], [0], [1], [0, 0, 1, 1], [], []>} : vector<8x128xf32>, vector<128x384xf32>, vector<8x384xf32> -> vector<8x384xf32>
    %321 = vector.extract_strided_slice %319 {offsets = [0, 0], sizes = [8, 128], strides = [1, 1]} : vector<8x384xf32> to vector<8x128xf32>
    %322 = vector.extract_strided_slice %320 {offsets = [0, 0], sizes = [8, 128], strides = [1, 1]} : vector<8x384xf32> to vector<8x128xf32>
    %323 = arith.addf %321, %322 : vector<8x128xf32>
    %324 = arith.negf %323 : vector<8x128xf32>
    %325 = math.exp %324 : vector<8x128xf32>
    %cst_94 = arith.constant 1.000000e+00 : f32
    %326 = vector.broadcast %cst_94 : f32 to vector<8x128xf32>
    %327 = arith.addf %326, %325 : vector<8x128xf32>
    %328 = arith.divf %326, %327 : vector<8x128xf32>
    %329 = vector.extract_strided_slice %319 {offsets = [0, 128], sizes = [8, 128], strides = [1, 1]} : vector<8x384xf32> to vector<8x128xf32>
    %330 = vector.extract_strided_slice %320 {offsets = [0, 128], sizes = [8, 128], strides = [1, 1]} : vector<8x384xf32> to vector<8x128xf32>
    %331 = arith.addf %329, %330 : vector<8x128xf32>
    %332 = arith.negf %331 : vector<8x128xf32>
    %333 = math.exp %332 : vector<8x128xf32>
    %cst_95 = arith.constant 1.000000e+00 : f32
    %334 = vector.broadcast %cst_95 : f32 to vector<8x128xf32>
    %335 = arith.addf %334, %333 : vector<8x128xf32>
    %336 = arith.divf %334, %335 : vector<8x128xf32>
    %337 = vector.extract_strided_slice %319 {offsets = [0, 256], sizes = [8, 128], strides = [1, 1]} : vector<8x384xf32> to vector<8x128xf32>
    %338 = vector.extract_strided_slice %320 {offsets = [0, 256], sizes = [8, 128], strides = [1, 1]} : vector<8x384xf32> to vector<8x128xf32>
    %339 = vector.broadcast %9 : vector<1x128xf32> to vector<8x128xf32>
    %340 = arith.addf %338, %339 : vector<8x128xf32>
    %341 = arith.mulf %328, %340 : vector<8x128xf32>
    %342 = arith.addf %337, %341 : vector<8x128xf32>
    %343 = math.tanh %342 : vector<8x128xf32>
    %cst_96 = arith.constant 1.000000e+00 : f32
    %344 = vector.broadcast %cst_96 : f32 to vector<8x128xf32>
    %345 = arith.subf %344, %336 : vector<8x128xf32>
    %346 = arith.mulf %345, %343 : vector<8x128xf32>
    %347 = arith.mulf %336, %310 : vector<8x128xf32>
    %348 = arith.addf %346, %347 : vector<8x128xf32>
    %c0_97 = arith.constant 0 : index
    %c8_98 = arith.constant 8 : index
    %c0_99 = arith.constant 0 : index
    %349 = vector.load %arg7[%c0_97, %c8_98, %c0_99] : memref<8x16x128xf32, #tpu.memory_space<vmem>>, vector<8x1x128xf32>
    %350 = vector.shape_cast %349 : vector<8x1x128xf32> to vector<8x128xf32>
    %351 = vector.shape_cast %348 : vector<8x128xf32> to vector<8x1x128xf32>
    tpu.vector_store %arg7[%c0_97, %c8_98, %c0_99], %351 {strides = array<i32>} : memref<8x16x128xf32, #tpu.memory_space<vmem>>, vector<8x1x128xf32>,
    %c0_100 = arith.constant 0 : index
    %c9 = arith.constant 9 : index
    %c0_101 = arith.constant 0 : index
    %352 = vector.load %arg2[%c0_100, %c9, %c0_101] : memref<8x16x128xbf16, #tpu.memory_space<vmem>>, vector<8x1x128xbf16>
    %353 = vector.shape_cast %352 : vector<8x1x128xbf16> to vector<8x128xbf16>
    %354 = arith.extf %353 : vector<8x128xbf16> to vector<8x128xf32>
    %cst_102 = arith.constant dense<0.000000e+00> : vector<8x384xf32>
    %355 = tpu.matmul %354, %5, %cst_102 {dimension_numbers = #tpu.dot_dimension_numbers<[1], [0], [0], [1], [0, 0, 1, 1], [], []>} : vector<8x128xf32>, vector<128x384xf32>, vector<8x384xf32> -> vector<8x384xf32>
    %356 = vector.broadcast %8 : vector<1x384xf32> to vector<8x384xf32>
    %357 = arith.addf %355, %356 : vector<8x384xf32>
    %cst_103 = arith.constant dense<0.000000e+00> : vector<8x384xf32>
    %358 = tpu.matmul %348, %7, %cst_103 {dimension_numbers = #tpu.dot_dimension_numbers<[1], [0], [0], [1], [0, 0, 1, 1], [], []>} : vector<8x128xf32>, vector<128x384xf32>, vector<8x384xf32> -> vector<8x384xf32>
    %359 = vector.extract_strided_slice %357 {offsets = [0, 0], sizes = [8, 128], strides = [1, 1]} : vector<8x384xf32> to vector<8x128xf32>
    %360 = vector.extract_strided_slice %358 {offsets = [0, 0], sizes = [8, 128], strides = [1, 1]} : vector<8x384xf32> to vector<8x128xf32>
    %361 = arith.addf %359, %360 : vector<8x128xf32>
    %362 = arith.negf %361 : vector<8x128xf32>
    %363 = math.exp %362 : vector<8x128xf32>
    %cst_104 = arith.constant 1.000000e+00 : f32
    %364 = vector.broadcast %cst_104 : f32 to vector<8x128xf32>
    %365 = arith.addf %364, %363 : vector<8x128xf32>
    %366 = arith.divf %364, %365 : vector<8x128xf32>
    %367 = vector.extract_strided_slice %357 {offsets = [0, 128], sizes = [8, 128], strides = [1, 1]} : vector<8x384xf32> to vector<8x128xf32>
    %368 = vector.extract_strided_slice %358 {offsets = [0, 128], sizes = [8, 128], strides = [1, 1]} : vector<8x384xf32> to vector<8x128xf32>
    %369 = arith.addf %367, %368 : vector<8x128xf32>
    %370 = arith.negf %369 : vector<8x128xf32>
    %371 = math.exp %370 : vector<8x128xf32>
    %cst_105 = arith.constant 1.000000e+00 : f32
    %372 = vector.broadcast %cst_105 : f32 to vector<8x128xf32>
    %373 = arith.addf %372, %371 : vector<8x128xf32>
    %374 = arith.divf %372, %373 : vector<8x128xf32>
    %375 = vector.extract_strided_slice %357 {offsets = [0, 256], sizes = [8, 128], strides = [1, 1]} : vector<8x384xf32> to vector<8x128xf32>
    %376 = vector.extract_strided_slice %358 {offsets = [0, 256], sizes = [8, 128], strides = [1, 1]} : vector<8x384xf32> to vector<8x128xf32>
    %377 = vector.broadcast %9 : vector<1x128xf32> to vector<8x128xf32>
    %378 = arith.addf %376, %377 : vector<8x128xf32>
    %379 = arith.mulf %366, %378 : vector<8x128xf32>
    %380 = arith.addf %375, %379 : vector<8x128xf32>
    %381 = math.tanh %380 : vector<8x128xf32>
    %cst_106 = arith.constant 1.000000e+00 : f32
    %382 = vector.broadcast %cst_106 : f32 to vector<8x128xf32>
    %383 = arith.subf %382, %374 : vector<8x128xf32>
    %384 = arith.mulf %383, %381 : vector<8x128xf32>
    %385 = arith.mulf %374, %348 : vector<8x128xf32>
    %386 = arith.addf %384, %385 : vector<8x128xf32>
    %c0_107 = arith.constant 0 : index
    %c9_108 = arith.constant 9 : index
    %c0_109 = arith.constant 0 : index
    %387 = vector.load %arg7[%c0_107, %c9_108, %c0_109] : memref<8x16x128xf32, #tpu.memory_space<vmem>>, vector<8x1x128xf32>
    %388 = vector.shape_cast %387 : vector<8x1x128xf32> to vector<8x128xf32>
    %389 = vector.shape_cast %386 : vector<8x128xf32> to vector<8x1x128xf32>
    tpu.vector_store %arg7[%c0_107, %c9_108, %c0_109], %389 {strides = array<i32>} : memref<8x16x128xf32, #tpu.memory_space<vmem>>, vector<8x1x128xf32>,
    %c0_110 = arith.constant 0 : index
    %c10 = arith.constant 10 : index
    %c0_111 = arith.constant 0 : index
    %390 = vector.load %arg2[%c0_110, %c10, %c0_111] : memref<8x16x128xbf16, #tpu.memory_space<vmem>>, vector<8x1x128xbf16>
    %391 = vector.shape_cast %390 : vector<8x1x128xbf16> to vector<8x128xbf16>
    %392 = arith.extf %391 : vector<8x128xbf16> to vector<8x128xf32>
    %cst_112 = arith.constant dense<0.000000e+00> : vector<8x384xf32>
    %393 = tpu.matmul %392, %5, %cst_112 {dimension_numbers = #tpu.dot_dimension_numbers<[1], [0], [0], [1], [0, 0, 1, 1], [], []>} : vector<8x128xf32>, vector<128x384xf32>, vector<8x384xf32> -> vector<8x384xf32>
    %394 = vector.broadcast %8 : vector<1x384xf32> to vector<8x384xf32>
    %395 = arith.addf %393, %394 : vector<8x384xf32>
    %cst_113 = arith.constant dense<0.000000e+00> : vector<8x384xf32>
    %396 = tpu.matmul %386, %7, %cst_113 {dimension_numbers = #tpu.dot_dimension_numbers<[1], [0], [0], [1], [0, 0, 1, 1], [], []>} : vector<8x128xf32>, vector<128x384xf32>, vector<8x384xf32> -> vector<8x384xf32>
    %397 = vector.extract_strided_slice %395 {offsets = [0, 0], sizes = [8, 128], strides = [1, 1]} : vector<8x384xf32> to vector<8x128xf32>
    %398 = vector.extract_strided_slice %396 {offsets = [0, 0], sizes = [8, 128], strides = [1, 1]} : vector<8x384xf32> to vector<8x128xf32>
    %399 = arith.addf %397, %398 : vector<8x128xf32>
    %400 = arith.negf %399 : vector<8x128xf32>
    %401 = math.exp %400 : vector<8x128xf32>
    %cst_114 = arith.constant 1.000000e+00 : f32
    %402 = vector.broadcast %cst_114 : f32 to vector<8x128xf32>
    %403 = arith.addf %402, %401 : vector<8x128xf32>
    %404 = arith.divf %402, %403 : vector<8x128xf32>
    %405 = vector.extract_strided_slice %395 {offsets = [0, 128], sizes = [8, 128], strides = [1, 1]} : vector<8x384xf32> to vector<8x128xf32>
    %406 = vector.extract_strided_slice %396 {offsets = [0, 128], sizes = [8, 128], strides = [1, 1]} : vector<8x384xf32> to vector<8x128xf32>
    %407 = arith.addf %405, %406 : vector<8x128xf32>
    %408 = arith.negf %407 : vector<8x128xf32>
    %409 = math.exp %408 : vector<8x128xf32>
    %cst_115 = arith.constant 1.000000e+00 : f32
    %410 = vector.broadcast %cst_115 : f32 to vector<8x128xf32>
    %411 = arith.addf %410, %409 : vector<8x128xf32>
    %412 = arith.divf %410, %411 : vector<8x128xf32>
    %413 = vector.extract_strided_slice %395 {offsets = [0, 256], sizes = [8, 128], strides = [1, 1]} : vector<8x384xf32> to vector<8x128xf32>
    %414 = vector.extract_strided_slice %396 {offsets = [0, 256], sizes = [8, 128], strides = [1, 1]} : vector<8x384xf32> to vector<8x128xf32>
    %415 = vector.broadcast %9 : vector<1x128xf32> to vector<8x128xf32>
    %416 = arith.addf %414, %415 : vector<8x128xf32>
    %417 = arith.mulf %404, %416 : vector<8x128xf32>
    %418 = arith.addf %413, %417 : vector<8x128xf32>
    %419 = math.tanh %418 : vector<8x128xf32>
    %cst_116 = arith.constant 1.000000e+00 : f32
    %420 = vector.broadcast %cst_116 : f32 to vector<8x128xf32>
    %421 = arith.subf %420, %412 : vector<8x128xf32>
    %422 = arith.mulf %421, %419 : vector<8x128xf32>
    %423 = arith.mulf %412, %386 : vector<8x128xf32>
    %424 = arith.addf %422, %423 : vector<8x128xf32>
    %c0_117 = arith.constant 0 : index
    %c10_118 = arith.constant 10 : index
    %c0_119 = arith.constant 0 : index
    %425 = vector.load %arg7[%c0_117, %c10_118, %c0_119] : memref<8x16x128xf32, #tpu.memory_space<vmem>>, vector<8x1x128xf32>
    %426 = vector.shape_cast %425 : vector<8x1x128xf32> to vector<8x128xf32>
    %427 = vector.shape_cast %424 : vector<8x128xf32> to vector<8x1x128xf32>
    tpu.vector_store %arg7[%c0_117, %c10_118, %c0_119], %427 {strides = array<i32>} : memref<8x16x128xf32, #tpu.memory_space<vmem>>, vector<8x1x128xf32>,
    %c0_120 = arith.constant 0 : index
    %c11 = arith.constant 11 : index
    %c0_121 = arith.constant 0 : index
    %428 = vector.load %arg2[%c0_120, %c11, %c0_121] : memref<8x16x128xbf16, #tpu.memory_space<vmem>>, vector<8x1x128xbf16>
    %429 = vector.shape_cast %428 : vector<8x1x128xbf16> to vector<8x128xbf16>
    %430 = arith.extf %429 : vector<8x128xbf16> to vector<8x128xf32>
    %cst_122 = arith.constant dense<0.000000e+00> : vector<8x384xf32>
    %431 = tpu.matmul %430, %5, %cst_122 {dimension_numbers = #tpu.dot_dimension_numbers<[1], [0], [0], [1], [0, 0, 1, 1], [], []>} : vector<8x128xf32>, vector<128x384xf32>, vector<8x384xf32> -> vector<8x384xf32>
    %432 = vector.broadcast %8 : vector<1x384xf32> to vector<8x384xf32>
    %433 = arith.addf %431, %432 : vector<8x384xf32>
    %cst_123 = arith.constant dense<0.000000e+00> : vector<8x384xf32>
    %434 = tpu.matmul %424, %7, %cst_123 {dimension_numbers = #tpu.dot_dimension_numbers<[1], [0], [0], [1], [0, 0, 1, 1], [], []>} : vector<8x128xf32>, vector<128x384xf32>, vector<8x384xf32> -> vector<8x384xf32>
    %435 = vector.extract_strided_slice %433 {offsets = [0, 0], sizes = [8, 128], strides = [1, 1]} : vector<8x384xf32> to vector<8x128xf32>
    %436 = vector.extract_strided_slice %434 {offsets = [0, 0], sizes = [8, 128], strides = [1, 1]} : vector<8x384xf32> to vector<8x128xf32>
    %437 = arith.addf %435, %436 : vector<8x128xf32>
    %438 = arith.negf %437 : vector<8x128xf32>
    %439 = math.exp %438 : vector<8x128xf32>
    %cst_124 = arith.constant 1.000000e+00 : f32
    %440 = vector.broadcast %cst_124 : f32 to vector<8x128xf32>
    %441 = arith.addf %440, %439 : vector<8x128xf32>
    %442 = arith.divf %440, %441 : vector<8x128xf32>
    %443 = vector.extract_strided_slice %433 {offsets = [0, 128], sizes = [8, 128], strides = [1, 1]} : vector<8x384xf32> to vector<8x128xf32>
    %444 = vector.extract_strided_slice %434 {offsets = [0, 128], sizes = [8, 128], strides = [1, 1]} : vector<8x384xf32> to vector<8x128xf32>
    %445 = arith.addf %443, %444 : vector<8x128xf32>
    %446 = arith.negf %445 : vector<8x128xf32>
    %447 = math.exp %446 : vector<8x128xf32>
    %cst_125 = arith.constant 1.000000e+00 : f32
    %448 = vector.broadcast %cst_125 : f32 to vector<8x128xf32>
    %449 = arith.addf %448, %447 : vector<8x128xf32>
    %450 = arith.divf %448, %449 : vector<8x128xf32>
    %451 = vector.extract_strided_slice %433 {offsets = [0, 256], sizes = [8, 128], strides = [1, 1]} : vector<8x384xf32> to vector<8x128xf32>
    %452 = vector.extract_strided_slice %434 {offsets = [0, 256], sizes = [8, 128], strides = [1, 1]} : vector<8x384xf32> to vector<8x128xf32>
    %453 = vector.broadcast %9 : vector<1x128xf32> to vector<8x128xf32>
    %454 = arith.addf %452, %453 : vector<8x128xf32>
    %455 = arith.mulf %442, %454 : vector<8x128xf32>
    %456 = arith.addf %451, %455 : vector<8x128xf32>
    %457 = math.tanh %456 : vector<8x128xf32>
    %cst_126 = arith.constant 1.000000e+00 : f32
    %458 = vector.broadcast %cst_126 : f32 to vector<8x128xf32>
    %459 = arith.subf %458, %450 : vector<8x128xf32>
    %460 = arith.mulf %459, %457 : vector<8x128xf32>
    %461 = arith.mulf %450, %424 : vector<8x128xf32>
    %462 = arith.addf %460, %461 : vector<8x128xf32>
    %c0_127 = arith.constant 0 : index
    %c11_128 = arith.constant 11 : index
    %c0_129 = arith.constant 0 : index
    %463 = vector.load %arg7[%c0_127, %c11_128, %c0_129] : memref<8x16x128xf32, #tpu.memory_space<vmem>>, vector<8x1x128xf32>
    %464 = vector.shape_cast %463 : vector<8x1x128xf32> to vector<8x128xf32>
    %465 = vector.shape_cast %462 : vector<8x128xf32> to vector<8x1x128xf32>
    tpu.vector_store %arg7[%c0_127, %c11_128, %c0_129], %465 {strides = array<i32>} : memref<8x16x128xf32, #tpu.memory_space<vmem>>, vector<8x1x128xf32>,
    %c0_130 = arith.constant 0 : index
    %c12 = arith.constant 12 : index
    %c0_131 = arith.constant 0 : index
    %466 = vector.load %arg2[%c0_130, %c12, %c0_131] : memref<8x16x128xbf16, #tpu.memory_space<vmem>>, vector<8x1x128xbf16>
    %467 = vector.shape_cast %466 : vector<8x1x128xbf16> to vector<8x128xbf16>
    %468 = arith.extf %467 : vector<8x128xbf16> to vector<8x128xf32>
    %cst_132 = arith.constant dense<0.000000e+00> : vector<8x384xf32>
    %469 = tpu.matmul %468, %5, %cst_132 {dimension_numbers = #tpu.dot_dimension_numbers<[1], [0], [0], [1], [0, 0, 1, 1], [], []>} : vector<8x128xf32>, vector<128x384xf32>, vector<8x384xf32> -> vector<8x384xf32>
    %470 = vector.broadcast %8 : vector<1x384xf32> to vector<8x384xf32>
    %471 = arith.addf %469, %470 : vector<8x384xf32>
    %cst_133 = arith.constant dense<0.000000e+00> : vector<8x384xf32>
    %472 = tpu.matmul %462, %7, %cst_133 {dimension_numbers = #tpu.dot_dimension_numbers<[1], [0], [0], [1], [0, 0, 1, 1], [], []>} : vector<8x128xf32>, vector<128x384xf32>, vector<8x384xf32> -> vector<8x384xf32>
    %473 = vector.extract_strided_slice %471 {offsets = [0, 0], sizes = [8, 128], strides = [1, 1]} : vector<8x384xf32> to vector<8x128xf32>
    %474 = vector.extract_strided_slice %472 {offsets = [0, 0], sizes = [8, 128], strides = [1, 1]} : vector<8x384xf32> to vector<8x128xf32>
    %475 = arith.addf %473, %474 : vector<8x128xf32>
    %476 = arith.negf %475 : vector<8x128xf32>
    %477 = math.exp %476 : vector<8x128xf32>
    %cst_134 = arith.constant 1.000000e+00 : f32
    %478 = vector.broadcast %cst_134 : f32 to vector<8x128xf32>
    %479 = arith.addf %478, %477 : vector<8x128xf32>
    %480 = arith.divf %478, %479 : vector<8x128xf32>
    %481 = vector.extract_strided_slice %471 {offsets = [0, 128], sizes = [8, 128], strides = [1, 1]} : vector<8x384xf32> to vector<8x128xf32>
    %482 = vector.extract_strided_slice %472 {offsets = [0, 128], sizes = [8, 128], strides = [1, 1]} : vector<8x384xf32> to vector<8x128xf32>
    %483 = arith.addf %481, %482 : vector<8x128xf32>
    %484 = arith.negf %483 : vector<8x128xf32>
    %485 = math.exp %484 : vector<8x128xf32>
    %cst_135 = arith.constant 1.000000e+00 : f32
    %486 = vector.broadcast %cst_135 : f32 to vector<8x128xf32>
    %487 = arith.addf %486, %485 : vector<8x128xf32>
    %488 = arith.divf %486, %487 : vector<8x128xf32>
    %489 = vector.extract_strided_slice %471 {offsets = [0, 256], sizes = [8, 128], strides = [1, 1]} : vector<8x384xf32> to vector<8x128xf32>
    %490 = vector.extract_strided_slice %472 {offsets = [0, 256], sizes = [8, 128], strides = [1, 1]} : vector<8x384xf32> to vector<8x128xf32>
    %491 = vector.broadcast %9 : vector<1x128xf32> to vector<8x128xf32>
    %492 = arith.addf %490, %491 : vector<8x128xf32>
    %493 = arith.mulf %480, %492 : vector<8x128xf32>
    %494 = arith.addf %489, %493 : vector<8x128xf32>
    %495 = math.tanh %494 : vector<8x128xf32>
    %cst_136 = arith.constant 1.000000e+00 : f32
    %496 = vector.broadcast %cst_136 : f32 to vector<8x128xf32>
    %497 = arith.subf %496, %488 : vector<8x128xf32>
    %498 = arith.mulf %497, %495 : vector<8x128xf32>
    %499 = arith.mulf %488, %462 : vector<8x128xf32>
    %500 = arith.addf %498, %499 : vector<8x128xf32>
    %c0_137 = arith.constant 0 : index
    %c12_138 = arith.constant 12 : index
    %c0_139 = arith.constant 0 : index
    %501 = vector.load %arg7[%c0_137, %c12_138, %c0_139] : memref<8x16x128xf32, #tpu.memory_space<vmem>>, vector<8x1x128xf32>
    %502 = vector.shape_cast %501 : vector<8x1x128xf32> to vector<8x128xf32>
    %503 = vector.shape_cast %500 : vector<8x128xf32> to vector<8x1x128xf32>
    tpu.vector_store %arg7[%c0_137, %c12_138, %c0_139], %503 {strides = array<i32>} : memref<8x16x128xf32, #tpu.memory_space<vmem>>, vector<8x1x128xf32>,
    %c0_140 = arith.constant 0 : index
    %c13 = arith.constant 13 : index
    %c0_141 = arith.constant 0 : index
    %504 = vector.load %arg2[%c0_140, %c13, %c0_141] : memref<8x16x128xbf16, #tpu.memory_space<vmem>>, vector<8x1x128xbf16>
    %505 = vector.shape_cast %504 : vector<8x1x128xbf16> to vector<8x128xbf16>
    %506 = arith.extf %505 : vector<8x128xbf16> to vector<8x128xf32>
    %cst_142 = arith.constant dense<0.000000e+00> : vector<8x384xf32>
    %507 = tpu.matmul %506, %5, %cst_142 {dimension_numbers = #tpu.dot_dimension_numbers<[1], [0], [0], [1], [0, 0, 1, 1], [], []>} : vector<8x128xf32>, vector<128x384xf32>, vector<8x384xf32> -> vector<8x384xf32>
    %508 = vector.broadcast %8 : vector<1x384xf32> to vector<8x384xf32>
    %509 = arith.addf %507, %508 : vector<8x384xf32>
    %cst_143 = arith.constant dense<0.000000e+00> : vector<8x384xf32>
    %510 = tpu.matmul %500, %7, %cst_143 {dimension_numbers = #tpu.dot_dimension_numbers<[1], [0], [0], [1], [0, 0, 1, 1], [], []>} : vector<8x128xf32>, vector<128x384xf32>, vector<8x384xf32> -> vector<8x384xf32>
    %511 = vector.extract_strided_slice %509 {offsets = [0, 0], sizes = [8, 128], strides = [1, 1]} : vector<8x384xf32> to vector<8x128xf32>
    %512 = vector.extract_strided_slice %510 {offsets = [0, 0], sizes = [8, 128], strides = [1, 1]} : vector<8x384xf32> to vector<8x128xf32>
    %513 = arith.addf %511, %512 : vector<8x128xf32>
    %514 = arith.negf %513 : vector<8x128xf32>
    %515 = math.exp %514 : vector<8x128xf32>
    %cst_144 = arith.constant 1.000000e+00 : f32
    %516 = vector.broadcast %cst_144 : f32 to vector<8x128xf32>
    %517 = arith.addf %516, %515 : vector<8x128xf32>
    %518 = arith.divf %516, %517 : vector<8x128xf32>
    %519 = vector.extract_strided_slice %509 {offsets = [0, 128], sizes = [8, 128], strides = [1, 1]} : vector<8x384xf32> to vector<8x128xf32>
    %520 = vector.extract_strided_slice %510 {offsets = [0, 128], sizes = [8, 128], strides = [1, 1]} : vector<8x384xf32> to vector<8x128xf32>
    %521 = arith.addf %519, %520 : vector<8x128xf32>
    %522 = arith.negf %521 : vector<8x128xf32>
    %523 = math.exp %522 : vector<8x128xf32>
    %cst_145 = arith.constant 1.000000e+00 : f32
    %524 = vector.broadcast %cst_145 : f32 to vector<8x128xf32>
    %525 = arith.addf %524, %523 : vector<8x128xf32>
    %526 = arith.divf %524, %525 : vector<8x128xf32>
    %527 = vector.extract_strided_slice %509 {offsets = [0, 256], sizes = [8, 128], strides = [1, 1]} : vector<8x384xf32> to vector<8x128xf32>
    %528 = vector.extract_strided_slice %510 {offsets = [0, 256], sizes = [8, 128], strides = [1, 1]} : vector<8x384xf32> to vector<8x128xf32>
    %529 = vector.broadcast %9 : vector<1x128xf32> to vector<8x128xf32>
    %530 = arith.addf %528, %529 : vector<8x128xf32>
    %531 = arith.mulf %518, %530 : vector<8x128xf32>
    %532 = arith.addf %527, %531 : vector<8x128xf32>
    %533 = math.tanh %532 : vector<8x128xf32>
    %cst_146 = arith.constant 1.000000e+00 : f32
    %534 = vector.broadcast %cst_146 : f32 to vector<8x128xf32>
    %535 = arith.subf %534, %526 : vector<8x128xf32>
    %536 = arith.mulf %535, %533 : vector<8x128xf32>
    %537 = arith.mulf %526, %500 : vector<8x128xf32>
    %538 = arith.addf %536, %537 : vector<8x128xf32>
    %c0_147 = arith.constant 0 : index
    %c13_148 = arith.constant 13 : index
    %c0_149 = arith.constant 0 : index
    %539 = vector.load %arg7[%c0_147, %c13_148, %c0_149] : memref<8x16x128xf32, #tpu.memory_space<vmem>>, vector<8x1x128xf32>
    %540 = vector.shape_cast %539 : vector<8x1x128xf32> to vector<8x128xf32>
    %541 = vector.shape_cast %538 : vector<8x128xf32> to vector<8x1x128xf32>
    tpu.vector_store %arg7[%c0_147, %c13_148, %c0_149], %541 {strides = array<i32>} : memref<8x16x128xf32, #tpu.memory_space<vmem>>, vector<8x1x128xf32>,
    %c0_150 = arith.constant 0 : index
    %c14 = arith.constant 14 : index
    %c0_151 = arith.constant 0 : index
    %542 = vector.load %arg2[%c0_150, %c14, %c0_151] : memref<8x16x128xbf16, #tpu.memory_space<vmem>>, vector<8x1x128xbf16>
    %543 = vector.shape_cast %542 : vector<8x1x128xbf16> to vector<8x128xbf16>
    %544 = arith.extf %543 : vector<8x128xbf16> to vector<8x128xf32>
    %cst_152 = arith.constant dense<0.000000e+00> : vector<8x384xf32>
    %545 = tpu.matmul %544, %5, %cst_152 {dimension_numbers = #tpu.dot_dimension_numbers<[1], [0], [0], [1], [0, 0, 1, 1], [], []>} : vector<8x128xf32>, vector<128x384xf32>, vector<8x384xf32> -> vector<8x384xf32>
    %546 = vector.broadcast %8 : vector<1x384xf32> to vector<8x384xf32>
    %547 = arith.addf %545, %546 : vector<8x384xf32>
    %cst_153 = arith.constant dense<0.000000e+00> : vector<8x384xf32>
    %548 = tpu.matmul %538, %7, %cst_153 {dimension_numbers = #tpu.dot_dimension_numbers<[1], [0], [0], [1], [0, 0, 1, 1], [], []>} : vector<8x128xf32>, vector<128x384xf32>, vector<8x384xf32> -> vector<8x384xf32>
    %549 = vector.extract_strided_slice %547 {offsets = [0, 0], sizes = [8, 128], strides = [1, 1]} : vector<8x384xf32> to vector<8x128xf32>
    %550 = vector.extract_strided_slice %548 {offsets = [0, 0], sizes = [8, 128], strides = [1, 1]} : vector<8x384xf32> to vector<8x128xf32>
    %551 = arith.addf %549, %550 : vector<8x128xf32>
    %552 = arith.negf %551 : vector<8x128xf32>
    %553 = math.exp %552 : vector<8x128xf32>
    %cst_154 = arith.constant 1.000000e+00 : f32
    %554 = vector.broadcast %cst_154 : f32 to vector<8x128xf32>
    %555 = arith.addf %554, %553 : vector<8x128xf32>
    %556 = arith.divf %554, %555 : vector<8x128xf32>
    %557 = vector.extract_strided_slice %547 {offsets = [0, 128], sizes = [8, 128], strides = [1, 1]} : vector<8x384xf32> to vector<8x128xf32>
    %558 = vector.extract_strided_slice %548 {offsets = [0, 128], sizes = [8, 128], strides = [1, 1]} : vector<8x384xf32> to vector<8x128xf32>
    %559 = arith.addf %557, %558 : vector<8x128xf32>
    %560 = arith.negf %559 : vector<8x128xf32>
    %561 = math.exp %560 : vector<8x128xf32>
    %cst_155 = arith.constant 1.000000e+00 : f32
    %562 = vector.broadcast %cst_155 : f32 to vector<8x128xf32>
    %563 = arith.addf %562, %561 : vector<8x128xf32>
    %564 = arith.divf %562, %563 : vector<8x128xf32>
    %565 = vector.extract_strided_slice %547 {offsets = [0, 256], sizes = [8, 128], strides = [1, 1]} : vector<8x384xf32> to vector<8x128xf32>
    %566 = vector.extract_strided_slice %548 {offsets = [0, 256], sizes = [8, 128], strides = [1, 1]} : vector<8x384xf32> to vector<8x128xf32>
    %567 = vector.broadcast %9 : vector<1x128xf32> to vector<8x128xf32>
    %568 = arith.addf %566, %567 : vector<8x128xf32>
    %569 = arith.mulf %556, %568 : vector<8x128xf32>
    %570 = arith.addf %565, %569 : vector<8x128xf32>
    %571 = math.tanh %570 : vector<8x128xf32>
    %cst_156 = arith.constant 1.000000e+00 : f32
    %572 = vector.broadcast %cst_156 : f32 to vector<8x128xf32>
    %573 = arith.subf %572, %564 : vector<8x128xf32>
    %574 = arith.mulf %573, %571 : vector<8x128xf32>
    %575 = arith.mulf %564, %538 : vector<8x128xf32>
    %576 = arith.addf %574, %575 : vector<8x128xf32>
    %c0_157 = arith.constant 0 : index
    %c14_158 = arith.constant 14 : index
    %c0_159 = arith.constant 0 : index
    %577 = vector.load %arg7[%c0_157, %c14_158, %c0_159] : memref<8x16x128xf32, #tpu.memory_space<vmem>>, vector<8x1x128xf32>
    %578 = vector.shape_cast %577 : vector<8x1x128xf32> to vector<8x128xf32>
    %579 = vector.shape_cast %576 : vector<8x128xf32> to vector<8x1x128xf32>
    tpu.vector_store %arg7[%c0_157, %c14_158, %c0_159], %579 {strides = array<i32>} : memref<8x16x128xf32, #tpu.memory_space<vmem>>, vector<8x1x128xf32>,
    %c0_160 = arith.constant 0 : index
    %c15 = arith.constant 15 : index
    %c0_161 = arith.constant 0 : index
    %580 = vector.load %arg2[%c0_160, %c15, %c0_161] : memref<8x16x128xbf16, #tpu.memory_space<vmem>>, vector<8x1x128xbf16>
    %581 = vector.shape_cast %580 : vector<8x1x128xbf16> to vector<8x128xbf16>
    %582 = arith.extf %581 : vector<8x128xbf16> to vector<8x128xf32>
    %cst_162 = arith.constant dense<0.000000e+00> : vector<8x384xf32>
    %583 = tpu.matmul %582, %5, %cst_162 {dimension_numbers = #tpu.dot_dimension_numbers<[1], [0], [0], [1], [0, 0, 1, 1], [], []>} : vector<8x128xf32>, vector<128x384xf32>, vector<8x384xf32> -> vector<8x384xf32>
    %584 = vector.broadcast %8 : vector<1x384xf32> to vector<8x384xf32>
    %585 = arith.addf %583, %584 : vector<8x384xf32>
    %cst_163 = arith.constant dense<0.000000e+00> : vector<8x384xf32>
    %586 = tpu.matmul %576, %7, %cst_163 {dimension_numbers = #tpu.dot_dimension_numbers<[1], [0], [0], [1], [0, 0, 1, 1], [], []>} : vector<8x128xf32>, vector<128x384xf32>, vector<8x384xf32> -> vector<8x384xf32>
    %587 = vector.extract_strided_slice %585 {offsets = [0, 0], sizes = [8, 128], strides = [1, 1]} : vector<8x384xf32> to vector<8x128xf32>
    %588 = vector.extract_strided_slice %586 {offsets = [0, 0], sizes = [8, 128], strides = [1, 1]} : vector<8x384xf32> to vector<8x128xf32>
    %589 = arith.addf %587, %588 : vector<8x128xf32>
    %590 = arith.negf %589 : vector<8x128xf32>
    %591 = math.exp %590 : vector<8x128xf32>
    %cst_164 = arith.constant 1.000000e+00 : f32
    %592 = vector.broadcast %cst_164 : f32 to vector<8x128xf32>
    %593 = arith.addf %592, %591 : vector<8x128xf32>
    %594 = arith.divf %592, %593 : vector<8x128xf32>
    %595 = vector.extract_strided_slice %585 {offsets = [0, 128], sizes = [8, 128], strides = [1, 1]} : vector<8x384xf32> to vector<8x128xf32>
    %596 = vector.extract_strided_slice %586 {offsets = [0, 128], sizes = [8, 128], strides = [1, 1]} : vector<8x384xf32> to vector<8x128xf32>
    %597 = arith.addf %595, %596 : vector<8x128xf32>
    %598 = arith.negf %597 : vector<8x128xf32>
    %599 = math.exp %598 : vector<8x128xf32>
    %cst_165 = arith.constant 1.000000e+00 : f32
    %600 = vector.broadcast %cst_165 : f32 to vector<8x128xf32>
    %601 = arith.addf %600, %599 : vector<8x128xf32>
    %602 = arith.divf %600, %601 : vector<8x128xf32>
    %603 = vector.extract_strided_slice %585 {offsets = [0, 256], sizes = [8, 128], strides = [1, 1]} : vector<8x384xf32> to vector<8x128xf32>
    %604 = vector.extract_strided_slice %586 {offsets = [0, 256], sizes = [8, 128], strides = [1, 1]} : vector<8x384xf32> to vector<8x128xf32>
    %605 = vector.broadcast %9 : vector<1x128xf32> to vector<8x128xf32>
    %606 = arith.addf %604, %605 : vector<8x128xf32>
    %607 = arith.mulf %594, %606 : vector<8x128xf32>
    %608 = arith.addf %603, %607 : vector<8x128xf32>
    %609 = math.tanh %608 : vector<8x128xf32>
    %cst_166 = arith.constant 1.000000e+00 : f32
    %610 = vector.broadcast %cst_166 : f32 to vector<8x128xf32>
    %611 = arith.subf %610, %602 : vector<8x128xf32>
    %612 = arith.mulf %611, %609 : vector<8x128xf32>
    %613 = arith.mulf %602, %576 : vector<8x128xf32>
    %614 = arith.addf %612, %613 : vector<8x128xf32>
    %c0_167 = arith.constant 0 : index
    %c15_168 = arith.constant 15 : index
    %c0_169 = arith.constant 0 : index
    %615 = vector.load %arg7[%c0_167, %c15_168, %c0_169] : memref<8x16x128xf32, #tpu.memory_space<vmem>>, vector<8x1x128xf32>
    %616 = vector.shape_cast %615 : vector<8x1x128xf32> to vector<8x128xf32>
    %617 = vector.shape_cast %614 : vector<8x128xf32> to vector<8x1x128xf32>
    tpu.vector_store %arg7[%c0_167, %c15_168, %c0_169], %617 {strides = array<i32>} : memref<8x16x128xf32, #tpu.memory_space<vmem>>, vector<8x1x128xf32>,
    %c0_170 = arith.constant 0 : index
    %c0_171 = arith.constant 0 : index
    %618 = vector.load %arg8[%c0_170, %c0_171] : memref<8x128xf32, #tpu.memory_space<vmem>>, vector<8x128xf32>
    tpu.vector_store %arg8[%c0_170, %c0_171], %614 {strides = array<i32>} : memref<8x128xf32, #tpu.memory_space<vmem>>, vector<8x128xf32>,
    return
  }
  func.func @transform_0(%arg0: i32, %arg1: i32) -> (i32, i32, i32) {
    %c0_i32 = arith.constant 0 : i32
    %c0_i32_0 = arith.constant 0 : i32
    return %arg0, %arg1, %c0_i32 : i32, i32, i32
  }
  func.func @transform_1(%arg0: i32, %arg1: i32) -> (i32, i32) {
    %c0_i32 = arith.constant 0 : i32
    %c0_i32_0 = arith.constant 0 : i32
    %c0_i32_1 = arith.constant 0 : i32
    return %c0_i32, %c0_i32_0 : i32, i32
  }
  func.func @transform_2(%arg0: i32, %arg1: i32) -> (i32, i32) {
    %c0_i32 = arith.constant 0 : i32
    %c0_i32_0 = arith.constant 0 : i32
    %c0_i32_1 = arith.constant 0 : i32
    return %c0_i32, %c0_i32_0 : i32, i32
  }
  func.func @transform_3(%arg0: i32, %arg1: i32) -> (i32, i32) {
    %c0_i32 = arith.constant 0 : i32
    %c0_i32_0 = arith.constant 0 : i32
    %c0_i32_1 = arith.constant 0 : i32
    return %c0_i32, %c0_i32_0 : i32, i32
  }
  func.func @transform_4(%arg0: i32, %arg1: i32) -> (i32, i32) {
    %c0_i32 = arith.constant 0 : i32
    %c0_i32_0 = arith.constant 0 : i32
    %c0_i32_1 = arith.constant 0 : i32
    return %c0_i32, %c0_i32_0 : i32, i32
  }
  func.func @transform_5(%arg0: i32, %arg1: i32) -> (i32, i32, i32) {
    %c0_i32 = arith.constant 0 : i32
    %c0_i32_0 = arith.constant 0 : i32
    return %arg0, %arg1, %c0_i32 : i32, i32, i32
  }
}

</mosaic_0001>

<bundles_post_ra>
// kernel: tpu_custom_call.1
= control target key start
LH: loop header
LB: loop body
LE: loop exit
PB: predicated region body
PF: predicated region fallthrough
CT: control target
= control target key end

     0   :  { %s7696_s0 = inlined_call_operand.hbm [shape: bf16[8,32,128], index: 0, kind: input, shape index: {}]   ;;  %s7697_s1 = inlined_call_operand.hbm [shape: bf16[128,384], index: 1, kind: input, shape index: {}]   ;;  %s7698_s2 = inlined_call_operand.hbm [shape: bf16[128,384], index: 2, kind: input, shape index: {}]   ;;  %s7699_s3 = inlined_call_operand.hbm [shape: f32[1,384], index: 3, kind: input, shape index: {}]   ;;  %s7700_s4 = inlined_call_operand.vmem [shape: f32[1,128], index: 4, kind: input, shape index: {}]   ;;  %s7701_s5 = inlined_call_operand.hbm [shape: f32[8,32,128], index: 5, kind: output, shape index: {}]  }
   0x1   :  { %7906 = sst [smem:[#allocation105_spill]] %s7697_s1 }
   0x2   :  { %10 = vsyncpa [#allocation4], 0 }
   0x3   :  { %12 = vsyncpa [#allocation4 + $0x1], 0 }
   0x4   :  { %13 = vsyncpa [#allocation7], 0 }
   0x5   :  { %14 = vsyncpa [#allocation10], 0 }
   0x6   :  { %15 = vsyncpa [#allocation5], 0 }
   0x7   :  { %17 = vsyncpa [#allocation5 + $0x1], 0  ;;  %s4908_s18 = smov 0   ;;  %s4910_s19 = smov 0  }
   0x8   :  { %s4912_s20 = smov 0   ;;  %s4914_s21 = smov 0  }
   0x9   :  { %s4916_s22 = smov 0   ;;  %s4918_s23 = smov 0  }
   0xa LB: > { %s4365_s24 = sadd.s32 4294967295, %s4857_s23   ;;  %s4366_s25 = sadd.s32 4294967294, %s4857_s23   ;;  %s4857_s23 = sphi %s4918_s23, %s23_s23   ;;  %s4853_s22 = sphi %s4916_s22, %s8863_s22   ;;  %s4849_s21 = sphi %s4914_s21, %s8862_s21   ;;  %s4845_s20 = sphi %s4912_s20, %s8861_s20   ;;  %s4841_s19 = sphi %s4910_s19, %s8860_s19   ;;  %s4837_s18 = sphi %s4908_s18, %s8859_s18  }
   0xb   : > { %s32_s26 = sadd.s32 1, %s4853_s22  ;;  %s44_s27 = sadd.s32 1, %s4845_s20 }
   0xc   : > { %p33_p0 = scmp.ge.s32.totalorder %s32_s26, 2  ;;  %p51_p1 = scmp.ne.s32.totalorder %s4845_s20, %s4841_s19 }
   0xd   : > { %p52_p2 = scmp.eq.s32.totalorder %s4857_s23, 0  ;;  %p57_p3 = scmp.ne.s32.totalorder %s4841_s19, %s4837_s18 }
   0xe   : > { %s8865_s26 = smov (%p33_p0, %s32_s26), 0  ;;  %p4953_p5 = scmp.eq.s32.totalorder %s4365_s24, 0 }
   0xf   : > { %7907 = sst [smem:[#allocation21_spill]] %s8865_s26  ;;  %p4949_p4 = por %p52_p2, %p51_p1 }
  0x10   : > { %s40_s30 = ssub.s32 %s4853_s22, %s8865_s26  ;;  %p167_p6 = scmp.eq.s32.totalorder %s4365_s24, 1 }
  0x11   : > { %p42_p7 = scmp.eq.s32.totalorder %s40_s30, 0  ;;  %p4961_p8 = por %p4953_p5, %p57_p3 }
  0x12   : > { %p4965_p9 = por %p167_p6, %p51_p1  ;;  %p173_p10 = scmp.eq.s32.totalorder %s4366_s25, 1 }
  0x13   : > { %s4970_s8 = scalar_select %p42_p7, %s4845_s20, %s44_s27  }
  0x14   : > { %p4972_p11 = por %p173_p10, %p57_p3  ;;  %p4367_p12 = scmp.ge.s32.totalorder %s4857_s23, 1 }
  0x15   : > { %p180_p13 = scmp.lt.s32.totalorder %s4857_s23, 3  ;;  %s7913_s1 = sld [smem:[#allocation105_spill]] }
  0x16   : > { %s4859_s14 = smov [#allocation6]   ;;  %s205_s24 = sshll.u32 %s7698_s2, 4  ;;  %s206_s24 = int_to_ptr.hbm [resolvable:$true] %s205_s24 }
  0x17   : > { %p4981_p0 = pnand %p4367_p12, %p180_p13  ;;  %s193_s15 = sshll.u32 %s4859_s14, 4  ;;  %s194_s15 = int_to_ptr.vmem [resolvable:$true] %s193_s15 }
  0x18   : > { %s220_s10 = sshll.u32 %s7699_s3, 4  ;;  %s4860_s11 = smov [#allocation8]   ;;  %s221_s10 = int_to_ptr.hbm [resolvable:$true] %s220_s10 }
  0x19   : > { %p4452_p1 = pneg %p4981_p0  ;;  %s207_s14 = sshll.u32 %s4860_s11, 4  ;;  %s208_s14 = int_to_ptr.vmem [resolvable:$true] %s207_s14 }
  0x1a   : > { %s4862_s26 = smov 12   ;;  %s4863_s16 = smov [#allocation9]  }
  0x1b   : > { %s191_s12 = sshll.u32 %s7913_s1, 4  ;;  %p4992_p2 = pnand %p4452_p1, %p4953_p5  ;;  %s192_s12 = int_to_ptr.hbm [resolvable:$true] %s191_s12 }
  0x1c   : > { %s4861_s1 = smov 192   ;;  %s222_s17 = sshll.u32 %s4863_s16, 4  ;;  %s223_s17 = int_to_ptr.vmem [resolvable:$true] %s222_s17 }
  0x1d   : > { %4455 = dma.hbm_to_vmem [thread:$0]  (!%p4992_p2), %s192_s12, 3072, %s194_s15, [#allocation7], %s4861_s1, %s4861_s1, %s4862_s26  }
  0x1e   : > { %4458 = dma.hbm_to_vmem [thread:$0]  (!%p4992_p2), %s206_s24, 3072, %s208_s14, [#allocation7], %s4861_s1, %s4861_s1, %s4862_s26  }
  0x1f   : > { %4461 = dma.hbm_to_vmem [thread:$0]  (!%p4992_p2), %s221_s10, 48, %s223_s17, [#allocation10]  }
  0x20   : > { %p4371_p3 = scmp.ge.s32.totalorder %s4857_s23, 2 }
  0x22   : > { %232 = sbr.rel (%p4371_p3) target bundleno = 53 (0x35), region = 32 }
  0x27   : > { %s236_s12 = sand.u32 1, %s4845_s20   ;;  %s4421_s15 = sshll.u32 %s4853_s22, 3 }
  0x28   : > { %s4372_s1 = sshll.u32 %s236_s12, 6  ;;  %s248_s25 = scalar_lea.hbm %s7696_s0, %s4421_s15 }
  0x29   : > { %s4429_s27 = scalar_select %p4949_p4, [#allocation0], [#allocation16] }
  0x2a   : > { %s261_s30 = sshll.u32 %s248_s25, 4  ;;  %s240_s10 = scalar_lea.vmem [#allocation3], %s4372_s1  ;;  %s262_s30 = int_to_ptr.hbm [resolvable:$true] %s261_s30 }
  0x2b   : > { %s263_s11 = sshll.u32 %s240_s10, 4  ;;  %s253_s14 = sld [smem:[%s4429_s27]]   ;;  %s264_s11 = int_to_ptr.vmem [resolvable:$true] %s263_s11 }
  0x2c   : > { %s4864_s16 = smov 256   ;;  %s4865_s17 = smov 128  }
  0x2d   : > { %4430 = sst [smem:[#allocation13]] (%p4949_p4), %s4864_s16  ;;  %s4866_s26 = smov 2  }
  0x2e   : > { %4431 = sst [smem:[#allocation13 + $0x1]] (%p4949_p4), %s4865_s17  ;;  %s4867_s15 = smov 64  }
  0x2f   : > { %4432 = sst [smem:[#allocation13 + $0x2]] (%p4949_p4), %s4866_s26  ;;  %s4868_s25 = smov 4  }
  0x30   : > { %4433 = sst [smem:[#allocation13 + $0x3]] (%p4949_p4), %s4867_s15  ;;  %s237_s27 = scalar_lea.sflag [#allocation4], %s236_s12 }
  0x31   : > { %s4375_s24 = sshll.u32 %s253_s14, 26  ;;  %4434 = sst [smem:[#allocation13 + $0x4]] (%p4949_p4), %s4867_s15 }
  0x32   : > { %s4376_s1 = sadd.s32 134217728, %s4375_s24  ;;  %4435 = sst [smem:[#allocation13 + $0x5]] (%p4949_p4), %s4868_s25 }
  0x33   : > { %s4869_s10 = smov [#allocation12]  }
  0x34   : > { %4436 = dma.general (%p4949_p4), %s262_s30, 1024, %s264_s11, %s237_s27, %s4869_s10, [#allocation13], %s4376_s1, 0  }
  0x35 PF: > { %288 = sbr.rel (%p4981_p0) target bundleno = 2943 (0xb7f), region = 40 }
  0x3a   : > { %s5032_s16 = sand.u32 1, %s4841_s19  }
  0x3b   : > { %s4378_s14 = sshll.u32 %s5032_s16, 6  ;;  %s291_s17 = scalar_lea.sflag [#allocation4], %s5032_s16 }
  0x3c   : > { %s5036_s26 = scalar_lea.vmem [#allocation3], %s4378_s14 }
  0x3d   : > { %4820 = dma.done.wait (%p4961_p8), %s291_s17, 1024  }
  0x3e   : > { %4822 = vsyncadd (%p4961_p8), %s291_s17, 4294966272 }
  0x3f   : > { %4824 = dma.done.wait (%p4953_p5), [#allocation7], 6144  }
  0x40   : > { %4826 = vsyncadd (%p4953_p5), [#allocation7], 4294961152 }
  0x41   : > { %4828 = dma.done.wait (%p4953_p5), [#allocation10], 48  }
  0x42   : > { %4830 = vsyncadd (%p4953_p5), [#allocation10], 4294967248  ;;  %s4382_s28 = sshll.u32 %s5032_s16, 7  ;;  %p4383_p4 = scmp.ne.s32.totalorder %s4849_s21, 0 }
  0x43   : > { %s5051_s13 = scalar_lea.vmem [#allocation11], %s4382_s28 }
  0x44   : > { %344 = sbr.rel (%p4383_p4) target bundleno = 75 (0x4b), region = 60 }
  0x49   : > { %v4870_v0 = vmov 0.0  }
  0x4a   : > { %345 = vst [vmem:[#allocation2] sm:$0xff] %v4870_v0 }
  0x4b PF: > { %v377_v1 = vld [vmem:[#allocation6 + $0xb4] sm:$0xff]  ;;  %v375_v2 = vld [vmem:[#allocation6 + $0xa8] sm:$0xff]  ;;  %v373_v7 = vld [vmem:[#allocation6 + $0x9c] sm:$0xff]  ;;  %vm541_vm0 = vcmask 1041409   ;;  %vm544_vm1 = vcmask 1042434   ;;  %vm547_vm2 = vcmask 1043459  }
  0x4c   : > { %v5054_v3 = vld [vmem:[#allocation8 + $0xb4] sm:$0xff]  ;;  %v5056_v4 = vunpack.c.l.bf16 %v377_v1  ;;  %v5058_v5 = vunpack.c.l.bf16 %v375_v2  ;;  %v5063_v8 = vld [vmem:[#allocation8 + $0xa8] sm:$0xff]  ;;  %v5065_v9 = vunpack.c.h.bf16 %v377_v1  ;;  %v5070_v12 = vld [vmem:[#allocation8 + $0x9c] sm:$0xff]  ;;  %v5072_v13 = vunpack.c.h.bf16 %v375_v2  ;;  %s4208_s10 = scalar_lea.sflag [#allocation5], %s5032_s16 }
  0x4d   : > { %v5061_v6 = vunpack.c.l.bf16 %v5054_v3  ;;  %v5068_v10 = vunpack.c.l.bf16 %v5063_v8  ;;  %v371_v11 = vld [vmem:[#allocation6 + $0x90] sm:$0xff]  ;;  %v5078_v15 = vunpack.c.l.bf16 %v373_v7  ;;  %v5081_v16 = vunpack.c.l.bf16 %v5070_v12  ;;  %v369_v17 = vld [vmem:[#allocation6 + $0x84] sm:$0xff]  ;;  %v367_v22 = vld [vmem:[#allocation6 + $0x78] sm:$0xff] }
  0x4e   : > { %7916 = vst [vmem:[#allocation22_spill] sm:$0xff] %v5056_v4  ;;  %v5074_v14 = vld [vmem:[#allocation8 + $0x90] sm:$0xff]  ;;  %562 = vmatpush.msra.mxu0 %v5056_v4  ;;  %582 = vmatpush.msra.mxu1 %v5065_v9  ;;  %v5084_v18 = vunpack.c.h.bf16 %v373_v7  ;;  %v5086_v19 = vld [vmem:[#allocation8 + $0x84] sm:$0xff]  ;;  %v5090_v20 = vunpack.c.l.bf16 %v371_v11  ;;  %v5096_v23 = vunpack.c.h.bf16 %v371_v11  ;;  %v5098_v24 = vld [vmem:[#allocation8 + $0x78] sm:$0xff]  ;;  %v5102_v25 = vunpack.c.l.bf16 %v369_v17 }
  0x4f   : > { %7917 = vst [vmem:[#allocation23_spill] sm:$0xff] %v5058_v5  ;;  %622 = vmatpush.msra.mxu3 %v5061_v6  ;;  %v5093_v21 = vunpack.c.l.bf16 %v5074_v14  ;;  %v5105_v26 = vunpack.c.l.bf16 %v5086_v19  ;;  %v365_v27 = vld [vmem:[#allocation6 + $0x6c] sm:$0xff]  ;;  %v5108_v28 = vunpack.c.h.bf16 %v369_v17  ;;  %v5114_v30 = vunpack.c.l.bf16 %v367_v22  ;;  %v363_v32 = vld [vmem:[#allocation6 + $0x60] sm:$0xff]  ;;  %v361_v33 = vld [vmem:[#allocation6 + $0x54] sm:$0xff] }
  0x50   : > { %7918 = vst [vmem:[#allocation24_spill] sm:$0xff] %v5065_v9  ;;  %563 = vmatpush.msra.mxu0 %v5058_v5  ;;  %583 = vmatpush.msra.mxu1 %v5072_v13  ;;  %v5110_v29 = vld [vmem:[#allocation8 + $0x6c] sm:$0xff]  ;;  %v5117_v31 = vunpack.c.l.bf16 %v5098_v24  ;;  %v5120_v34 = vunpack.c.h.bf16 %v367_v22  ;;  %v5122_v35 = vld [vmem:[#allocation8 + $0x60] sm:$0xff]  ;;  %v378_v36 = vld [vmem:[#allocation6 + $0xbc] sm:$0xf]  ;;  %v5126_v37 = vunpack.c.l.bf16 %v365_v27  ;;  %v5134_v43 = vunpack.c.h.bf16 %v365_v27 }
  0x51   : > { %7919 = vst [vmem:[#allocation25_spill] sm:$0xff] %v5068_v10  ;;  %623 = vmatpush.msra.mxu3 %v5068_v10  ;;  %v5129_v38 = vunpack.c.l.bf16 %v5110_v29  ;;  %v359_v39 = vld [vmem:[#allocation6 + $0x48] sm:$0xff]  ;;  %v5131_v40 = vld [vmem:[#allocation8 + $0x54] sm:$0xff]  ;;  %v376_v41 = vld [vmem:[#allocation6 + $0xb0] sm:$0xf]  ;;  %v5138_v45 = vunpack.c.l.bf16 %v378_v36  ;;  %v5144_v48 = vunpack.c.l.bf16 %v363_v32  ;;  %v5147_v49 = vunpack.c.l.bf16 %v5122_v35 }
  0x52   : > { %7920 = vst [vmem:[#allocation26_spill] sm:$0xff] %v5072_v13  ;;  %564 = vmatpush.msra.mxu0 %v5078_v15  ;;  %584 = vmatpush.msra.mxu1 %v5084_v18  ;;  %v374_v42 = vld [vmem:[#allocation6 + $0xa4] sm:$0xf]  ;;  %v5136_v44 = vld [vmem:[#allocation8 + $0x48] sm:$0xff]  ;;  %v509_v46 = vld [vmem:[%s5036_s26] sm:$0x1]  ;;  %v5149_v50 = vunpack.c.l.bf16 %v376_v41  ;;  %v5154_v54 = vunpack.c.l.bf16 %v361_v33  ;;  %v5158_v55 = vunpack.c.l.bf16 %v5131_v40  ;;  %v5160_v56 = vunpack.c.h.bf16 %v363_v32 }
  0x53   : > { %7921 = vst [vmem:[#allocation27_spill] sm:$0xff] %v5078_v15  ;;  %624 = vmatpush.msra.mxu3 %v5081_v16  ;;  %v510_v47 = vld [vmem:[%s5036_s26 + $0x8] sm:$0x1]  ;;  %v511_v51 = vld [vmem:[%s5036_s26 + $0x10] sm:$0x1]  ;;  %602 = vmatpush.msra.mxu2 %v5138_v45  ;;  %v5163_v57 = vunpack.c.l.bf16 %v374_v42  ;;  %v517_v59 = vunpack.c.l.bf16 %v509_v46  ;;  %v5168_v63 = vunpack.c.l.bf16 %v359_v39  ;;  %v357_v0 = vld [vmem:[#allocation6 + $0x3c] sm:$0xff]  ;;  %v5172_v1 = vunpack.c.l.bf16 %v5136_v44 }
  0x54   : > { %7922 = vst [vmem:[#allocation28_spill] sm:$0xff] %v5081_v16  ;;  %565 = vmatpush.msra.mxu0 %v5090_v20  ;;  %585 = vmatpush.msra.mxu1 %v5096_v23  ;;  %v512_v52 = vld [vmem:[%s5036_s26 + $0x18] sm:$0x1]  ;;  %v513_v53 = vld [vmem:[%s5036_s26 + $0x20] sm:$0x1]  ;;  %v518_v60 = vunpack.c.l.bf16 %v510_v47  ;;  %v519_v61 = vunpack.c.l.bf16 %v511_v51  ;;  %v5174_v2 = vunpack.c.h.bf16 %v361_v33  ;;  %v355_v17 = vld [vmem:[#allocation6 + $0x30] sm:$0xff]  ;;  %v5184_v33 = vunpack.c.h.bf16 %v359_v39 }
  0x55   : > { %7923 = vst [vmem:[#allocation29_spill] sm:$0xff] %v5084_v18  ;;  %625 = vmatpush.msra.mxu3 %v5093_v21  ;;  %v514_v58 = vld [vmem:[%s5036_s26 + $0x28] sm:$0x1]  ;;  %v520_v62 = vunpack.c.l.bf16 %v512_v52  ;;  %v5176_v7 = vld [vmem:[#allocation8 + $0x3c] sm:$0xff]  ;;  %603 = vmatpush.msra.mxu2 %v5149_v50  ;;  %v521_v11 = vunpack.c.l.bf16 %v513_v53  ;;  %v5181_v22 = vld [vmem:[#allocation8 + $0x30] sm:$0xff]  ;;  %v5190_v47 = vunpack.c.l.bf16 %v357_v0  ;;  %vm550_vm3 = vcmask 1044484  }
  0x56   : > { %7924 = vst [vmem:[#allocation30_spill] sm:$0xff] %v5090_v20  ;;  %566 = vmatpush.msra.mxu0 %v5102_v25  ;;  %586 = vmatpush.msra.mxu1 %v5108_v28  ;;  %v540_v27 = vrot.slane %v518_v60, 7  ;;  %v543_v32 = vrot.slane %v519_v61, 6  ;;  %v515_v36 = vld [vmem:[%s5036_s26 + $0x30] sm:$0x1]  ;;  %v522_v41 = vunpack.c.l.bf16 %v514_v58  ;;  %v5193_v51 = vunpack.c.l.bf16 %v5176_v7  ;;  %v353_v58 = vld [vmem:[#allocation6 + $0x24] sm:$0xff] }
  0x57   : > { %7925 = vst [vmem:[#allocation31_spill] sm:$0xff] %v5093_v21  ;;  %626 = vmatpush.msra.mxu3 %v5105_v26  ;;  %604 = vmatpush.msra.mxu2 %v5163_v57  ;;  %v546_v42 = vrot.slane %v520_v62, 5  ;;  %v372_v46 = vld [vmem:[#allocation6 + $0x98] sm:$0xf]  ;;  %v549_v52 = vrot.slane %v521_v11, 4  ;;  %v5196_v60 = vunpack.c.l.bf16 %v355_v17  ;;  %v5199_v61 = vunpack.c.h.bf16 %v357_v0  ;;  %v5201_v62 = vld [vmem:[#allocation8 + $0x24] sm:$0xff] }
  0x58   : > { %7926 = vst [vmem:[#allocation32_spill] sm:$0xff] %v5096_v23  ;;  %567 = vmatpush.msra.mxu0 %v5114_v30  ;;  %587 = vmatpush.msra.mxu1 %v5120_v34  ;;  %v542_v39 = vsel %vm541_vm0, %v540_v27, %v517_v59  ;;  %v370_v53 = vld [vmem:[#allocation6 + $0x8c] sm:$0xf]  ;;  %v5207_v59 = vunpack.c.l.bf16 %v5181_v22  ;;  %v516_v11 = vld [vmem:[%s5036_s26 + $0x38] sm:$0x1]  ;;  %v523_v27 = vunpack.c.l.bf16 %v515_v36  ;;  %v5222_v36 = vunpack.c.l.bf16 %v353_v58 }
  0x59   : > { %7927 = vst [vmem:[#allocation33_spill] sm:$0xff] %v5102_v25  ;;  %627 = vmatpush.msra.mxu3 %v5117_v31  ;;  %v368_v0 = vld [vmem:[#allocation6 + $0x80] sm:$0xf]  ;;  %vm553_vm4 = vcmask 1045509   ;;  %v364_v21 = vld [vmem:[#allocation6 + $0x68] sm:$0xf] }
  0x5a   : > { %7928 = vst [vmem:[#allocation34_spill] sm:$0xff] %v5105_v26  ;;  %568 = vmatpush.msra.mxu0 %v5126_v37  ;;  %588 = vmatpush.msra.mxu1 %v5134_v43  ;;  %v5214_v26 = vunpack.c.h.bf16 %v355_v17  ;;  %v349_v17 = vld [vmem:[#allocation6 + $0xc] sm:$0xff]  ;;  %vm556_vm5 = vcmask 1046534   ;;  %vm559_vm6 = vcmask 1047559  }
  0x5b   : > { %7929 = vst [vmem:[#allocation35_spill] sm:$0xff] %v5108_v28  ;;  %628 = vmatpush.msra.mxu3 %v5129_v38 }
  0x5c   : > { %7930 = vst [vmem:[#allocation36_spill] sm:$0xff] %v5114_v30  ;;  %569 = vmatpush.msra.mxu0 %v5144_v48  ;;  %589 = vmatpush.msra.mxu1 %v5160_v56 }
  0x5d   : > { %7931 = vst [vmem:[#allocation37_spill] sm:$0xff] %v5117_v31  ;;  %629 = vmatpush.msra.mxu3 %v5147_v49  ;;  %v351_v31 = vld [vmem:[#allocation6 + $0x18] sm:$0xff] }
  0x5e   : > { %7932 = vst [vmem:[#allocation38_spill] sm:$0xff] %v5120_v34  ;;  %570 = vmatpush.msra.mxu0 %v5154_v54  ;;  %590 = vmatpush.msra.mxu1 %v5174_v2 }
  0x5f   : > { %7933 = vst [vmem:[#allocation39_spill] sm:$0xff] %v5126_v37  ;;  %630 = vmatpush.msra.mxu3 %v5158_v55 }
  0x60   : > { %7934 = vst [vmem:[#allocation40_spill] sm:$0xff] %v5129_v38  ;;  %571 = vmatpush.msra.mxu0 %v5168_v63  ;;  %v5211_v38 = vunpack.c.l.bf16 %v372_v46  ;;  %591 = vmatpush.msra.mxu1 %v5184_v33  ;;  %v366_v46 = vld [vmem:[#allocation6 + $0x74] sm:$0xf] }
  0x61   : > { %7935 = vst [vmem:[#allocation41_spill] sm:$0xff] %v5134_v43  ;;  %631 = vmatpush.msra.mxu3 %v5172_v1 }
  0x62   : > { %7936 = vst [vmem:[#allocation42_spill] sm:$0xff] %v5144_v48  ;;  %572 = vmatpush.msra.mxu0 %v5190_v47  ;;  %592 = vmatpush.msra.mxu1 %v5199_v61 }
  0x63   : > { %7937 = vst [vmem:[#allocation43_spill] sm:$0xff] %v5147_v49  ;;  %632 = vmatpush.msra.mxu3 %v5193_v51  ;;  %605 = vmatpush.msra.mxu2 %v5211_v38 }
  0x64   : > { %7938 = vst [vmem:[#allocation44_spill] sm:$0xff] %v5154_v54  ;;  %573 = vmatpush.msra.mxu0 %v5196_v60  ;;  %593 = vmatpush.msra.mxu1 %v5214_v26 }
  0x65   : > { %7939 = vst [vmem:[#allocation45_spill] sm:$0xff] %v5158_v55  ;;  %v545_v55 = vsel %vm544_vm1, %v543_v32, %v542_v39  ;;  %v5216_v32 = vld [vmem:[#allocation8 + $0x18] sm:$0xff]  ;;  %v552_v39 = vrot.slane %v522_v41, 3  ;;  %v5231_v41 = vld [vmem:[#allocation8 + $0xc] sm:$0xff]  ;;  %633 = vmatpush.msra.mxu3 %v5207_v59 }
  0x66   : > { %7940 = vst [vmem:[#allocation46_spill] sm:$0xff] %v5160_v56  ;;  %v548_v49 = vsel %vm547_vm2, %v546_v42, %v545_v55  ;;  %v5225_v55 = vunpack.c.l.bf16 %v5201_v62  ;;  %574 = vmatpush.msra.mxu0 %v5222_v36 }
  0x67   : > { %7941 = vst [vmem:[#allocation47_spill] sm:$0xff] %v5163_v57  ;;  %v5218_v57 = vunpack.c.l.bf16 %v370_v53  ;;  %v551_v42 = vsel %vm550_vm3, %v549_v52, %v548_v49  ;;  %v524_v53 = vunpack.c.l.bf16 %v516_v11  ;;  %v5241_v49 = vunpack.c.l.bf16 %v5216_v32  ;;  %v5246_v11 = vld [vmem:[#allocation8] sm:$0xff] }
  0x68   : > { %7942 = vst [vmem:[#allocation48_spill] sm:$0xff] %v5168_v63  ;;  %v555_v52 = vrot.slane %v523_v27, 2  ;;  %v5244_v63 = vunpack.c.h.bf16 %v351_v31  ;;  %634 = vmatpush.msra.mxu3 %v5225_v55  ;;  %v5254_v27 = vunpack.c.l.bf16 %v349_v17 }
  0x69   : > { %7943 = vst [vmem:[#allocation49_spill] sm:$0xff] %v5172_v1  ;;  %v5229_v1 = vunpack.c.h.bf16 %v353_v58  ;;  %v347_v58 = vld [vmem:[#allocation6] sm:$0xff]  ;;  %606 = vmatpush.msra.mxu2 %v5218_v57 }
  0x6a   : > { %7944 = vst [vmem:[#allocation50_spill] sm:$0xff] %v5174_v2  ;;  %635 = vmatpush.msra.mxu3 %v5241_v49 }
  0x6b   : > { %7945 = vst [vmem:[#allocation51_spill] sm:$0xff] %v5184_v33  ;;  %594 = vmatpush.msra.mxu1 %v5229_v1 }
  0x6c   : > { %7946 = vst [vmem:[#allocation52_spill] sm:$0xff] %v5190_v47  ;;  %v5238_v47 = vunpack.c.l.bf16 %v351_v31  ;;  %v5260_v31 = vunpack.c.h.bf16 %v349_v17  ;;  %v5274_v17 = vunpack.c.h.bf16 %v5054_v3 }
  0x6d   : > { %7947 = vst [vmem:[#allocation53_spill] sm:$0xff] %v5193_v51  ;;  %v5234_v51 = vunpack.c.l.bf16 %v368_v0  ;;  %v554_v0 = vsel %vm553_vm4, %v552_v39, %v551_v42  ;;  %v5263_v39 = vunpack.c.l.bf16 %v364_v21  ;;  %v5267_v42 = vunpack.c.l.bf16 %v347_v58  ;;  %595 = vmatpush.msra.mxu1 %v5244_v63  ;;  %v362_v21 = vld [vmem:[#allocation6 + $0x5c] sm:$0xf] }
  0x6e   : > { %7948 = vst [vmem:[#allocation54_spill] sm:$0xff] %v5196_v60  ;;  %v5257_v60 = vunpack.c.l.bf16 %v5231_v41  ;;  %575 = vmatpush.msra.mxu0 %v5238_v47 }
  0x6f   : > { %7949 = vst [vmem:[#allocation55_spill] sm:$0xff] %v5199_v61  ;;  %607 = vmatpush.msra.mxu2 %v5234_v51  ;;  %596 = vmatpush.msra.mxu1 %v5260_v31 }
  0x70   : > { %7950 = vst [vmem:[#allocation56_spill] sm:$0xff] %v5207_v59  ;;  %v5250_v59 = vunpack.c.l.bf16 %v366_v46  ;;  %v5270_v46 = vunpack.c.l.bf16 %v5246_v11  ;;  %576 = vmatpush.msra.mxu0 %v5254_v27  ;;  %636 = vmatpush.msra.mxu3 %v5257_v60 }
  0x71   : > { %7951 = vst [vmem:[#allocation57_spill] sm:$0xff] %v5211_v38  ;;  %v558_v38 = vrot.slane %v524_v53, 1  ;;  %v5280_v53 = vld [vmem:[#allocation2] sm:$0xff] }
  0x72   : > { %7952 = vst [vmem:[#allocation58_spill] sm:$0xff] %v5214_v26  ;;  %608 = vmatpush.msra.mxu2 %v5250_v59  ;;  %577 = vmatpush.msra.mxu0 %v5267_v42 }
  0x73   : > { %7953 = vst [vmem:[#allocation59_spill] sm:$0xff] %v5218_v57  ;;  %637 = vmatpush.msra.mxu3 %v5270_v46 }
  0x74   : > { %7954 = vst [vmem:[#allocation60_spill] sm:$0xff] %v5222_v36  ;;  %v557_v36 = vsel %vm556_vm5, %v555_v52, %v554_v0  ;;  %v5285_v52 = vunpack.c.h.bf16 %v5063_v8  ;;  %609 = vmatpush.msra.mxu2 %v5263_v39  ;;  %642 = vmatpush.msrb.mxu0 %v5274_v17  ;;  %v5301_v8 = vunpack.c.h.bf16 %v5070_v12  ;;  %v356_v12 = vld [vmem:[#allocation6 + $0x38] sm:$0xf] }
  0x75   : > { %7955 = vst [vmem:[#allocation61_spill] sm:$0xff] %v5225_v55  ;;  %v458_v55 = vld [vmem:[#allocation8 + $0xbc] sm:$0xf]  ;;  %v5291_v0 = vsel %vm559_vm6, %v558_v38, %v557_v36  ;;  %638 = vmatmul.f32.vlgmr.msra.gmra.mxu3 %v5280_v53  ;;  %v358_v38 = vld [vmem:[#allocation6 + $0x44] sm:$0xf] }
  0x76   : > { %7956 = vst [vmem:[#allocation62_spill] sm:$0xff] %v5229_v1  ;;  %v5288_v3 = vunpack.c.l.bf16 %v458_v55  ;;  %578 = vmatmul.f32.vlgmr.msra.gmra.mxu0 %v5291_v0  ;;  %v452_v36 = vld [vmem:[#allocation8 + $0x98] sm:$0xf]  ;;  %815 = vmatpush.msrb.mxu3 %v5065_v9  ;;  %v350_v9 = vld [vmem:[#allocation6 + $0x14] sm:$0xf] }
  0x77   : > { %7957 = vst [vmem:[#allocation63_spill] sm:$0xff] %v5234_v51  ;;  %643 = vmatpush.msrb.mxu0 %v5285_v52 }
  0x78   : > { %7958 = vst [vmem:[#allocation64_spill] sm:$0xff] %v5238_v47  ;;  %v456_v47 = vld [vmem:[#allocation8 + $0xb0] sm:$0xf]  ;;  %816 = vmatpush.msrb.mxu3 %v5072_v13  ;;  %v348_v13 = vld [vmem:[#allocation6 + $0x8] sm:$0xf] }
  0x79   : > { %7959 = vst [vmem:[#allocation65_spill] sm:$0xff] %v5241_v49  ;;  %v5282_v49 = vunpack.c.h.bf16 %v347_v58  ;;  %v454_v58 = vld [vmem:[#allocation8 + $0xa4] sm:$0xf]  ;;  %v5303_v55 = vunpack.c.l.bf16 %v456_v47  ;;  %v450_v47 = vld [vmem:[#allocation8 + $0x8c] sm:$0xf]  ;;  %644 = vmatpush.msrb.mxu0 %v5301_v8 }
  0x7a   : > { %7960 = vst [vmem:[#allocation66_spill] sm:$0xff] %v5244_v63  ;;  %817 = vmatpush.msrb.mxu3 %v5084_v18  ;;  %v440_v18 = vld [vmem:[#allocation8 + $0x50] sm:$0xf] }
  0x7b   : > { %7961 = vst [vmem:[#allocation67_spill] sm:$0xff] %v5250_v59  ;;  %597 = vmatpush.msra.mxu1 %v5282_v49 }
  0x7c   : > { %7962 = vst [vmem:[#allocation68_spill] sm:$0xff] %v5254_v27  ;;  %v360_v27 = vld [vmem:[#allocation6 + $0x50] sm:$0xf]  ;;  %598 = vmatmul.f32.vlgmr.msra.gmra.mxu1 %v5291_v0  ;;  %818 = vmatpush.msrb.mxu3 %v5096_v23  ;;  %v438_v23 = vld [vmem:[#allocation8 + $0x44] sm:$0xf] }
  0x7d   : > { %7963 = vst [vmem:[#allocation69_spill] sm:$0xff] %v5257_v60  ;;  %v5296_v60 = vunpack.c.l.bf16 %v362_v21  ;;  %v5311_v21 = vunpack.c.h.bf16 %v5074_v14  ;;  %662 = vmatpush.msrb.mxu1 %v5288_v3  ;;  %v5325_v14 = vunpack.c.l.bf16 %v452_v36  ;;  %v446_v36 = vld [vmem:[#allocation8 + $0x74] sm:$0xf] }
  0x7e   : > { %7964 = vst [vmem:[#allocation70_spill] sm:$0xff] %v5260_v31  ;;  %819 = vmatpush.msrb.mxu3 %v5108_v28 }
  0x7f   : > { %7965 = vst [vmem:[#allocation71_spill] sm:$0xff] %v5263_v39  ;;  %610 = vmatpush.msra.mxu2 %v5296_v60  ;;  %663 = vmatpush.msrb.mxu1 %v5303_v55  ;;  %v5328_v39 = vunpack.c.l.bf16 %v356_v12  ;;  %v5344_v12 = vunpack.c.h.bf16 %v5110_v29  ;;  %v5358_v29 = vunpack.c.l.bf16 %v446_v36  ;;  %v5372_v36 = vunpack.c.l.bf16 %v348_v13 }
  0x80   : > { %7966 = vst [vmem:[#allocation72_spill] sm:$0xff] %v5267_v42  ;;  %v5307_v42 = vunpack.c.l.bf16 %v360_v27  ;;  %v5322_v27 = vunpack.c.h.bf16 %v5086_v19  ;;  %645 = vmatpush.msrb.mxu0 %v5311_v21  ;;  %v5336_v19 = vunpack.c.l.bf16 %v450_v47  ;;  %v444_v47 = vld [vmem:[#allocation8 + $0x68] sm:$0xf]  ;;  %820 = vmatpush.msrb.mxu3 %v5120_v34  ;;  %v5386_v13 = vunpack.c.h.bf16 %v5176_v7  ;;  %v434_v7 = vld [vmem:[#allocation8 + $0x2c] sm:$0xf] }
  0x81   : > { %7967 = vst [vmem:[#allocation73_spill] sm:$0xff] %v5270_v46  ;;  %v5314_v46 = vunpack.c.l.bf16 %v454_v58  ;;  %v448_v58 = vld [vmem:[#allocation8 + $0x80] sm:$0xf]  ;;  %v5398_v34 = vunpack.c.l.bf16 %v438_v23  ;;  %v5413_v23 = vunpack.c.h.bf16 %v5216_v32  ;;  %v428_v32 = vld [vmem:[#allocation8 + $0x8] sm:$0xf] }
  0x82   : > { %7968 = vst [vmem:[#allocation74_spill] sm:$0xff] %v5274_v17  ;;  %v5317_v17 = vunpack.c.l.bf16 %v358_v38  ;;  %611 = vmatpush.msra.mxu2 %v5307_v42  ;;  %v5333_v38 = vunpack.c.h.bf16 %v5098_v24  ;;  %646 = vmatpush.msrb.mxu0 %v5322_v27  ;;  %v5347_v24 = vunpack.c.l.bf16 %v448_v58  ;;  %v442_v58 = vld [vmem:[#allocation8 + $0x5c] sm:$0xf] }
  0x83   : > { %7969 = vst [vmem:[#allocation75_spill] sm:$0xff] %v5280_v53  ;;  %664 = vmatpush.msrb.mxu1 %v5314_v46  ;;  %821 = vmatpush.msrb.mxu3 %v5134_v43 }
  0x84   : > { %7970 = vst [vmem:[#allocation76_spill] sm:$0xff] %v5282_v49  ;;  %612 = vmatpush.msra.mxu2 %v5317_v17  ;;  %647 = vmatpush.msrb.mxu0 %v5333_v38 }
  0x85   : > { %7971 = vst [vmem:[#allocation77_spill] sm:$0xff] %v5285_v52  ;;  %v354_v52 = vld [vmem:[#allocation6 + $0x2c] sm:$0xf]  ;;  %665 = vmatpush.msrb.mxu1 %v5325_v14  ;;  %822 = vmatpush.msrb.mxu3 %v5160_v56 }
  0x86   : > { %7972 = vst [vmem:[#allocation78_spill] sm:$0xff] %v5288_v3  ;;  %613 = vmatpush.msra.mxu2 %v5328_v39  ;;  %648 = vmatpush.msrb.mxu0 %v5344_v12 }
  0x87   : > { %7973 = vst [vmem:[#allocation79_spill] sm:$0xff] %v5296_v60  ;;  %v5339_v60 = vunpack.c.l.bf16 %v354_v52  ;;  %v5355_v52 = vunpack.c.h.bf16 %v5122_v35  ;;  %666 = vmatpush.msrb.mxu1 %v5336_v19  ;;  %v5369_v35 = vunpack.c.l.bf16 %v444_v47  ;;  %v5389_v47 = vunpack.c.l.bf16 %v440_v18  ;;  %823 = vmatpush.msrb.mxu3 %v5174_v2 }
  0x88   : > { %7974 = vst [vmem:[#allocation80_spill] sm:$0xff] %v5301_v8  ;;  %v352_v8 = vld [vmem:[#allocation6 + $0x20] sm:$0xf]  ;;  %v5404_v18 = vunpack.c.h.bf16 %v5201_v62  ;;  %v430_v62 = vld [vmem:[#allocation8 + $0x14] sm:$0xf] }
  0x89   : > { %7975 = vst [vmem:[#allocation81_spill] sm:$0xff] %v5303_v55  ;;  %614 = vmatpush.msra.mxu2 %v5339_v60  ;;  %667 = vmatpush.msrb.mxu1 %v5347_v24 }
  0x8a   : > { %7976 = vst [vmem:[#allocation82_spill] sm:$0xff] %v5311_v21  ;;  %v5350_v21 = vunpack.c.l.bf16 %v352_v8  ;;  %v5366_v8 = vunpack.c.h.bf16 %v5131_v40  ;;  %649 = vmatpush.msrb.mxu0 %v5355_v52  ;;  %v5380_v40 = vunpack.c.l.bf16 %v442_v58  ;;  %v5395_v58 = vunpack.c.h.bf16 %v5181_v22  ;;  %v432_v22 = vld [vmem:[#allocation8 + $0x20] sm:$0xf]  ;;  %824 = vmatpush.msrb.mxu3 %v5184_v33 }
  0x8b   : > { %7977 = vst [vmem:[#allocation83_spill] sm:$0xff] %v5314_v46  ;;  %668 = vmatpush.msrb.mxu1 %v5358_v29  ;;  %v5425_v2 = vunpack.c.l.bf16 %v432_v22  ;;  %v5434_v33 = vunpack.c.l.bf16 %v430_v62  ;;  %v8000_v22 = vld [vmem:[#allocation31_spill] sm:$0xff] }
  0x8c   : > { %7978 = vst [vmem:[#allocation84_spill] sm:$0xff] %v5322_v27  ;;  %v5361_v27 = vunpack.c.l.bf16 %v350_v9  ;;  %615 = vmatpush.msra.mxu2 %v5350_v21  ;;  %v5377_v9 = vunpack.c.h.bf16 %v5136_v44  ;;  %650 = vmatpush.msrb.mxu0 %v5366_v8  ;;  %v436_v44 = vld [vmem:[#allocation8 + $0x38] sm:$0xf]  ;;  %v8001_v62 = vld [vmem:[#allocation47_spill] sm:$0xff] }
  0x8d   : > { %7979 = vst [vmem:[#allocation85_spill] sm:$0xff] %v5325_v14  ;;  %669 = vmatpush.msrb.mxu1 %v5369_v35  ;;  %v5407_v43 = vunpack.c.l.bf16 %v436_v44  ;;  %v5422_v44 = vunpack.c.h.bf16 %v5231_v41  ;;  %825 = vmatpush.msrb.mxu3 %v5199_v61  ;;  %v5440_v41 = vunpack.c.l.bf16 %v428_v32  ;;  %v8002_v32 = vld [vmem:[#allocation52_spill] sm:$0xff] }
  0x8e   : > { %7980 = vst [vmem:[#allocation86_spill] sm:$0xff] %v5336_v19  ;;  %616 = vmatpush.msra.mxu2 %v5361_v27  ;;  %651 = vmatpush.msrb.mxu0 %v5377_v9 }
  0x8f   : > { %7981 = vst [vmem:[#allocation87_spill] sm:$0xff] %v5339_v60  ;;  %670 = vmatpush.msrb.mxu1 %v5380_v40  ;;  %826 = vmatpush.msrb.mxu3 %v5214_v26 }
  0x90   : > { %7982 = vst [vmem:[#allocation88_spill] sm:$0xff] %v5347_v24  ;;  %617 = vmatpush.msra.mxu2 %v5372_v36  ;;  %652 = vmatpush.msrb.mxu0 %v5386_v13 }
  0x91   : > { %7983 = vst [vmem:[#allocation89_spill] sm:$0xff] %v5350_v21  ;;  %618 = vmatmul.f32.vlgmr.msra.gmra.mxu2 %v5291_v0  ;;  %671 = vmatpush.msrb.mxu1 %v5389_v47  ;;  %v5416_v0 = vunpack.c.l.bf16 %v434_v7  ;;  %v5431_v7 = vunpack.c.h.bf16 %v5246_v11  ;;  %v7999_v11 = vld [vmem:[#allocation48_spill] sm:$0xff] }
  0x92   : > { %7984 = vst [vmem:[#allocation90_spill] sm:$0xff] %v5358_v29  ;;  %795 = vmatpush.msrb.mxu2 %v5056_v4  ;;  %653 = vmatpush.msrb.mxu0 %v5395_v58 }
  0x93   : > { %7985 = vst [vmem:[#allocation91_spill] sm:$0xff] %v5361_v27  ;;  %672 = vmatpush.msrb.mxu1 %v5398_v34  ;;  %827 = vmatpush.msrb.mxu3 %v5229_v1 }
  0x94   : > { %7986 = vst [vmem:[#allocation92_spill] sm:$0xff] %v5369_v35  ;;  %796 = vmatpush.msrb.mxu2 %v5058_v5  ;;  %654 = vmatpush.msrb.mxu0 %v5404_v18 }
  0x95   : > { %7987 = vst [vmem:[#allocation93_spill] sm:$0xff] %v5372_v36  ;;  %673 = vmatpush.msrb.mxu1 %v5407_v43  ;;  %828 = vmatpush.msrb.mxu3 %v5244_v63 }
  0x96   : > { %7988 = vst [vmem:[#allocation94_spill] sm:$0xff] %v5380_v40  ;;  %797 = vmatpush.msrb.mxu2 %v5078_v15  ;;  %655 = vmatpush.msrb.mxu0 %v5413_v23 }
  0x97   : > { %7989 = vst [vmem:[#allocation95_spill] sm:$0xff] %v5389_v47  ;;  %674 = vmatpush.msrb.mxu1 %v5416_v0  ;;  %829 = vmatpush.msrb.mxu3 %v5260_v31 }
  0x98   : > { %7990 = vst [vmem:[#allocation96_spill] sm:$0xff] %v5398_v34  ;;  %798 = vmatpush.msrb.mxu2 %v5090_v20  ;;  %656 = vmatpush.msrb.mxu0 %v5422_v44 }
  0x99   : > { %7991 = vst [vmem:[#allocation97_spill] sm:$0xff] %v5407_v43  ;;  %675 = vmatpush.msrb.mxu1 %v5425_v2  ;;  %830 = vmatpush.msrb.mxu3 %v5282_v49 }
  0x9a   : > { %7992 = vst [vmem:[#allocation98_spill] sm:$0xff] %v5413_v23  ;;  %799 = vmatpush.msrb.mxu2 %v5102_v25  ;;  %657 = vmatpush.msrb.mxu0 %v5431_v7 }
  0x9b   : > { %7993 = vst [vmem:[#allocation99_spill] sm:$0xff] %v5416_v0  ;;  %676 = vmatpush.msrb.mxu1 %v5434_v33  ;;  %658 = vmatmul.f32.vlgmr.msrb.gmra.mxu0 %v5280_v53 }
  0x9c   : > { %7994 = vst [vmem:[#allocation100_spill] sm:$0xff] %v5422_v44  ;;  %800 = vmatpush.msrb.mxu2 %v5114_v30  ;;  %835 = vmatpush.msra.mxu0 %v5138_v45 }
  0x9d   : > { %7995 = vst [vmem:[#allocation101_spill] sm:$0xff] %v5425_v2  ;;  %677 = vmatpush.msrb.mxu1 %v5440_v41  ;;  %895 = vmatpush.msra.mxu3 %v5288_v3  ;;  %v8005_v3 = vld [vmem:[#allocation54_spill] sm:$0xff] }
  0x9e   : > { %7996 = vst [vmem:[#allocation102_spill] sm:$0xff] %v5431_v7  ;;  %678 = vmatmul.f32.vlgmr.msrb.gmra.mxu1 %v5280_v53  ;;  %801 = vmatpush.msrb.mxu2 %v5126_v37  ;;  %v8003_v53 = vld [vmem:[#allocation34_spill] sm:$0xff] }
  0x9f   : > { %7997 = vst [vmem:[#allocation103_spill] sm:$0xff] %v5434_v33  ;;  %855 = vmatpush.msra.mxu1 %v5061_v6  ;;  %836 = vmatpush.msra.mxu0 %v5149_v50 }
  0xa0   : > { %7998 = vst [vmem:[#allocation104_spill] sm:$0xff] %v5440_v41  ;;  %802 = vmatpush.msrb.mxu2 %v5144_v48  ;;  %896 = vmatpush.msra.mxu3 %v5303_v55  ;;  %v8007_v55 = vld [vmem:[#allocation60_spill] sm:$0xff] }
  0xa1   : > { %856 = vmatpush.msra.mxu1 %v5068_v10  ;;  %837 = vmatpush.msra.mxu0 %v8001_v62  ;;  %v8004_v10 = vld [vmem:[#allocation57_spill] sm:$0xff] }
  0xa2   : > { %803 = vmatpush.msrb.mxu2 %v5154_v54  ;;  %897 = vmatpush.msra.mxu3 %v5314_v46  ;;  %v8009_v46 = vld [vmem:[#allocation64_spill] sm:$0xff] }
  0xa3   : > { %857 = vmatpush.msra.mxu1 %v5081_v16  ;;  %838 = vmatpush.msra.mxu0 %v8004_v10  ;;  %v8006_v16 = vld [vmem:[#allocation37_spill] sm:$0xff] }
  0xa4   : > { %804 = vmatpush.msrb.mxu2 %v7999_v11  ;;  %898 = vmatpush.msra.mxu3 %v5325_v14  ;;  %v8011_v14 = vld [vmem:[#allocation68_spill] sm:$0xff] }
  0xa5   : > { %858 = vmatpush.msra.mxu1 %v8000_v22  ;;  %839 = vmatpush.msra.mxu0 %v5218_v57  ;;  %v8008_v22 = vld [vmem:[#allocation40_spill] sm:$0xff]  ;;  %v8013_v57 = vld [vmem:[#allocation71_spill] sm:$0xff] }
  0xa6   : > { %805 = vmatpush.msrb.mxu2 %v8002_v32  ;;  %899 = vmatpush.msra.mxu3 %v5336_v19  ;;  %v8014_v19 = vld [vmem:[#allocation72_spill] sm:$0xff] }
  0xa7   : > { %859 = vmatpush.msra.mxu1 %v8003_v53  ;;  %840 = vmatpush.msra.mxu0 %v5234_v51  ;;  %v8010_v53 = vld [vmem:[#allocation43_spill] sm:$0xff]  ;;  %v8016_v51 = vld [vmem:[#allocation49_spill] sm:$0xff] }
  0xa8   : > { %806 = vmatpush.msrb.mxu2 %v8005_v3  ;;  %900 = vmatpush.msra.mxu3 %v5347_v24  ;;  %v8017_v24 = vld [vmem:[#allocation79_spill] sm:$0xff] }
  0xa9   : > { %860 = vmatpush.msra.mxu1 %v8006_v16  ;;  %841 = vmatpush.msra.mxu0 %v5250_v59  ;;  %v8012_v16 = vld [vmem:[#allocation45_spill] sm:$0xff] }
  0xaa   : > { %807 = vmatpush.msrb.mxu2 %v8007_v55  ;;  %901 = vmatpush.msra.mxu3 %v5358_v29  ;;  %v8019_v59 = vld [vmem:[#allocation53_spill] sm:$0xff]  ;;  %v8020_v29 = vld [vmem:[#allocation80_spill] sm:$0xff] }
  0xab   : > { %861 = vmatpush.msra.mxu1 %v8008_v22  ;;  %842 = vmatpush.msra.mxu0 %v8013_v57  ;;  %v8015_v22 = vld [vmem:[#allocation74_spill] sm:$0xff] }
  0xac   : > { %808 = vmatpush.msrb.mxu2 %v8009_v46  ;;  %902 = vmatpush.msra.mxu3 %v5369_v35  ;;  %v8022_v35 = vld [vmem:[#allocation82_spill] sm:$0xff] }
  0xad   : > { %862 = vmatpush.msra.mxu1 %v8010_v53  ;;  %843 = vmatpush.msra.mxu0 %v8017_v24  ;;  %v8018_v53 = vld [vmem:[#allocation77_spill] sm:$0xff] }
  0xae   : > { %809 = vmatpush.msrb.mxu2 %v8011_v14  ;;  %903 = vmatpush.msra.mxu3 %v5380_v40  ;;  %v8023_v40 = vld [vmem:[#allocation61_spill] sm:$0xff] }
  0xaf   : > { %863 = vmatpush.msra.mxu1 %v8012_v16  ;;  %844 = vmatpush.msra.mxu0 %v5307_v42  ;;  %v8021_v16 = vld [vmem:[#allocation56_spill] sm:$0xff] }
  0xb0   : > { %810 = vmatpush.msrb.mxu2 %v8014_v19  ;;  %904 = vmatpush.msra.mxu3 %v5389_v47  ;;  %v8025_v47 = vld [vmem:[#allocation65_spill] sm:$0xff] }
  0xb1   : > { %864 = vmatpush.msra.mxu1 %v8016_v51  ;;  %845 = vmatpush.msra.mxu0 %v5317_v17 }
  0xb2   : > { %875 = vmatpush.msra.mxu2 %v8015_v22  ;;  %905 = vmatpush.msra.mxu3 %v5398_v34  ;;  %v8026_v34 = vld [vmem:[#allocation69_spill] sm:$0xff] }
  0xb3   : > { %865 = vmatpush.msra.mxu1 %v8019_v59  ;;  %846 = vmatpush.msra.mxu0 %v5328_v39  ;;  %v8024_v59 = vld [vmem:[#allocation84_spill] sm:$0xff] }
  0xb4   : > { %876 = vmatpush.msra.mxu2 %v8018_v53  ;;  %906 = vmatpush.msra.mxu3 %v5407_v43  ;;  %v8027_v43 = vld [vmem:[#allocation73_spill] sm:$0xff] }
  0xb5   : > { %866 = vmatpush.msra.mxu1 %v8021_v16  ;;  %847 = vmatpush.msra.mxu0 %v5339_v60 }
  0xb6   : > { %877 = vmatpush.msra.mxu2 %v8020_v29  ;;  %907 = vmatpush.msra.mxu3 %v5416_v0  ;;  %v8028_v0 = vld [vmem:[#allocation24_spill] sm:$0xff] }
  0xb7   : > { %867 = vmatpush.msra.mxu1 %v8023_v40  ;;  %848 = vmatpush.msra.mxu0 %v5350_v21 }
  0xb8   : > { %878 = vmatpush.msra.mxu2 %v8022_v35  ;;  %908 = vmatpush.msra.mxu3 %v5425_v2  ;;  %v8029_v2 = vld [vmem:[#allocation26_spill] sm:$0xff] }
  0xb9   : > { %868 = vmatpush.msra.mxu1 %v8025_v47  ;;  %849 = vmatpush.msra.mxu0 %v5361_v27 }
  0xba   : > { %879 = vmatpush.msra.mxu2 %v8024_v59  ;;  %909 = vmatpush.msra.mxu3 %v5434_v33  ;;  %v8030_v33 = vld [vmem:[#allocation29_spill] sm:$0xff] }
  0xbb   : > { %869 = vmatpush.msra.mxu1 %v8026_v34  ;;  %850 = vmatpush.msra.mxu0 %v5372_v36 }
  0xbc   : > { %880 = vmatpush.msra.mxu2 %v5333_v38  ;;  %910 = vmatpush.msra.mxu3 %v5440_v41  ;;  %v8032_v41 = vld [vmem:[#allocation38_spill] sm:$0xff] }
  0xbd   : > { %870 = vmatpush.msra.mxu1 %v8027_v43  ;;  %1025 = vmatpush.msrb.mxu0 %v5056_v4 }
  0xbe   : > { %881 = vmatpush.msra.mxu2 %v5344_v12 }
  0xbf   : > { %1045 = vmatpush.msrb.mxu1 %v8028_v0  ;;  %1026 = vmatpush.msrb.mxu0 %v5058_v5  ;;  %v8031_v0 = vld [vmem:[#allocation32_spill] sm:$0xff] }
  0xc0   : > { %882 = vmatpush.msra.mxu2 %v5355_v52 }
  0xc1   : > { %1046 = vmatpush.msrb.mxu1 %v8029_v2  ;;  %1027 = vmatpush.msrb.mxu0 %v5078_v15 }
  0xc2   : > { %883 = vmatpush.msra.mxu2 %v5366_v8 }
  0xc3   : > { %1047 = vmatpush.msrb.mxu1 %v8030_v33  ;;  %1028 = vmatpush.msrb.mxu0 %v5090_v20  ;;  %v8033_v33 = vld [vmem:[#allocation41_spill] sm:$0xff] }
  0xc4   : > { %884 = vmatpush.msra.mxu2 %v5377_v9 }
  0xc5   : > { %1048 = vmatpush.msrb.mxu1 %v8031_v0  ;;  %1029 = vmatpush.msrb.mxu0 %v5102_v25  ;;  %v763_v0 = vld [vmem:[%s5036_s26 + $0x38] sm:$0x1] }
  0xc6   : > { %885 = vmatpush.msra.mxu2 %v5386_v13  ;;  %v771_v20 = vunpack.c.l.bf16 %v763_v0 }
  0xc7   : > { %1049 = vmatpush.msrb.mxu1 %v5108_v28  ;;  %1030 = vmatpush.msrb.mxu0 %v5114_v30  ;;  %v8034_v28 = vld [vmem:[#allocation50_spill] sm:$0xff] }
  0xc8   : > { %886 = vmatpush.msra.mxu2 %v5395_v58  ;;  %v792_v5 = vrot.slane %v771_v20, 2 }
  0xc9   : > { %1050 = vmatpush.msrb.mxu1 %v8032_v41  ;;  %1031 = vmatpush.msrb.mxu0 %v5126_v37  ;;  %v8035_v41 = vld [vmem:[#allocation51_spill] sm:$0xff] }
  0xca   : > { %887 = vmatpush.msra.mxu2 %v5404_v18 }
  0xcb   : > { %1051 = vmatpush.msrb.mxu1 %v8033_v33  ;;  %1032 = vmatpush.msrb.mxu0 %v5144_v48 }
  0xcc   : > { %888 = vmatpush.msra.mxu2 %v5413_v23 }
  0xcd   : > { %1052 = vmatpush.msrb.mxu1 %v5160_v56  ;;  %1033 = vmatpush.msrb.mxu0 %v5154_v54  ;;  %v761_v54 = vld [vmem:[%s5036_s26 + $0x28] sm:$0x1] }
  0xce   : > { %889 = vmatpush.msra.mxu2 %v5422_v44  ;;  %v769_v30 = vunpack.c.l.bf16 %v761_v54 }
  0xcf   : > { %1053 = vmatpush.msrb.mxu1 %v8034_v28  ;;  %1034 = vmatpush.msrb.mxu0 %v7999_v11 }
  0xd0   : > { %890 = vmatpush.msra.mxu2 %v5431_v7  ;;  %v788_v15 = vrot.slane %v769_v30, 4 }
  0xd1   : > { %1054 = vmatpush.msrb.mxu1 %v8035_v41  ;;  %1035 = vmatpush.msrb.mxu0 %v8002_v32  ;;  %v758_v32 = vld [vmem:[%s5036_s26 + $0x10] sm:$0x1] }
  0xd3   : > { %1055 = vmatpush.msrb.mxu1 %v5199_v61  ;;  %1036 = vmatpush.msrb.mxu0 %v8005_v3 }
  0xd5   : > { %1056 = vmatpush.msrb.mxu1 %v5214_v26  ;;  %1037 = vmatpush.msrb.mxu0 %v8007_v55  ;;  %v5559_v26 = vld [vmem:[#allocation9] sm:$0x7] }
  0xd6   : > { %v5570_v61 = vperm.slane %v5559_v26, 1 }
  0xd7   : > { %1057 = vmatpush.msrb.mxu1 %v5229_v1  ;;  %1038 = vmatpush.msrb.mxu0 %v8009_v46  ;;  %v5562_v1 = vperm.slane %v5559_v26, 0 }
  0xd8   : > { %8037 = vst [vmem:[#allocation57_spill] sm:$0xff] %v5570_v61 }
  0xd9   : > { %1058 = vmatpush.msrb.mxu1 %v5244_v63  ;;  %1039 = vmatpush.msrb.mxu0 %v8011_v14  ;;  %8036 = vst [vmem:[#allocation47_spill] sm:$0xff] %v5562_v1 }
  0xdb   : > { %1059 = vmatpush.msrb.mxu1 %v5260_v31  ;;  %1040 = vmatpush.msrb.mxu0 %v8014_v19  ;;  %v756_v19 = vld [vmem:[%s5036_s26] sm:$0x1] }
  0xdc   : > { %v764_v41 = vunpack.c.l.bf16 %v756_v19  ;;  %v762_v19 = vld [vmem:[%s5036_s26 + $0x30] sm:$0x1] }
  0xdd   : > { %1060 = vmatpush.msrb.mxu1 %v5282_v49 }
  0xde   : > { %v780_v28 = vrot.slane %v764_v41, 1 }
  0xf3   : > { %v579_v63 = vpop.f32.mrf.mxu0 }
  0xf4   : > { %v580_v46 = vadd.f32 %v579_v63, %v5562_v1  ;;  %v757_v63 = vld [vmem:[%s5036_s26 + $0x8] sm:$0x1]  ;;  %v759_v1 = vld [vmem:[%s5036_s26 + $0x18] sm:$0x1] }
  0xf8   : > { %v639_v55 = vpop.f32.mrf.mxu3 }
  0xf9   : > { %v682_v31 = vadd.f32 %v639_v55, %v580_v46  ;;  %v599_v11 = vpop.f32.mrf.mxu1  ;;  %v766_v46 = vunpack.c.l.bf16 %v758_v32  ;;  %v767_v55 = vunpack.c.l.bf16 %v759_v1  ;;  %v770_v32 = vunpack.c.l.bf16 %v762_v19  ;;  %v8043_v19 = vld [vmem:[#allocation34_spill] sm:$0xff] }
  0xfa   : > { %v600_v33 = vadd.f32 %v599_v11, %v5570_v61 }
  0xfb   : > { %v4384_v3 = vmul.f32 -1.442695, %v682_v31  ;;  %v760_v31 = vld [vmem:[%s5036_s26 + $0x20] sm:$0x1]  ;;  %v782_v48 = vrot.slane %v766_v46, 7  ;;  %v784_v1 = vrot.slane %v767_v55, 6 }
  0xfc   : > { %v768_v56 = vunpack.c.l.bf16 %v760_v31  ;;  %v790_v46 = vrot.slane %v770_v32, 3 }
  0xfd   : > { %4541 = vpow2.f32 %v4384_v3  ;;  %v765_v3 = vunpack.c.l.bf16 %v757_v63 }
  0xfe   : > { %v786_v41 = vrot.slane %v768_v56, 5  ;;  %v5611_v56 = vld [vmem:[%s7700_s4] ss:$0 sm:$0xff] }
  0xff   : > { %v781_v25 = vsel %vm541_vm0, %v765_v3, %v780_v28 }
 0x100   : > { %v783_v63 = vsel %vm544_vm1, %v782_v48, %v781_v25 }
 0x101   : > { %v785_v31 = vsel %vm547_vm2, %v784_v1, %v783_v63  ;;  %v5624_v63 = vperm.slane %v5559_v26, 2  ;;  %v8044_v1 = vld [vmem:[#allocation59_spill] sm:$0xff] }
 0x102   : > { %v787_v61 = vsel %vm550_vm3, %v786_v41, %v785_v31  ;;  %v8048_v26 = vld [vmem:[#allocation67_spill] sm:$0xff] }
 0x103   : > { %v4542_v14 = vpop.eup %4541  ;;  %v789_v54 = vsel %vm553_vm4, %v788_v15, %v787_v61  ;;  %v8038_v15 = vld [vmem:[#allocation25_spill] sm:$0xff] }
 0x104   : > { %v5565_v49 = vadd.f32 1.0, %v4542_v14  ;;  %v791_v28 = vsel %vm556_vm5, %v790_v46, %v789_v54  ;;  %v8046_v46 = vld [vmem:[#allocation63_spill] sm:$0xff] }
 0x105   : > { %v793_v25 = vsel %vm559_vm6, %v792_v5, %v791_v28 }
 0x106   : > { %4543 = vrcp.f32 %v5565_v49  ;;  %811 = vmatmul.f32.vlgmr.msrb.gmra.mxu2 %v793_v25  ;;  %831 = vmatmul.f32.vlgmr.msrb.gmra.mxu3 %v793_v25  ;;  %vm692_vm7 = vweird.f32 %v5565_v49  ;;  %v696_v20 = vand.u32 2147483647, %v5565_v49 }
 0x107   : > { %851 = vmatmul.f32.vlgmr.msra.gmra.mxu0 %v793_v25  ;;  %1085 = vmatpush.msrb.mxu3 %v5061_v6 }
 0x108   : > { %1105 = vmatpush.msra.mxu0 %v8015_v22  ;;  %1065 = vmatpush.msrb.mxu2 %v5138_v45  ;;  %vm697_vm10 = vcmp.eq.f32.partialorder %v696_v20, 8.507059e+37 }
 0x109   : > { %1086 = vmatpush.msrb.mxu3 %v8038_v15 }
 0x10a   : > { %1106 = vmatpush.msra.mxu0 %v8018_v53  ;;  %1066 = vmatpush.msrb.mxu2 %v5149_v50 }
 0x10c   : > { %v5576_v14 = vpop.eup %4543  ;;  %1107 = vmatpush.msra.mxu0 %v8020_v29  ;;  %1067 = vmatpush.msrb.mxu2 %v8001_v62 }
 0x10d   : > { %v688_v37 = vmul.f32 %v5576_v14, %v5565_v49  ;;  %vm693_vm8 = vweird.f32 %v5576_v14 }
 0x10e   : > { %vm5603_vm9 = vmor %vm692_vm7, %vm693_vm8  ;;  %1108 = vmatpush.msra.mxu0 %v8022_v35  ;;  %1068 = vmatpush.msrb.mxu2 %v8004_v10 }
 0x10f   : > { %v689_v11 = vsub.f32 1.0, %v688_v37  ;;  %v8041_v37 = vld [vmem:[#allocation28_spill] sm:$0xff] }
 0x110   : > { %1087 = vmatpush.msrb.mxu3 %v8041_v37  ;;  %1109 = vmatpush.msra.mxu0 %v8024_v59 }
 0x111   : > { %v690_v48 = vmul.f32 %v5576_v14, %v689_v11  ;;  %1069 = vmatpush.msrb.mxu2 %v8044_v1  ;;  %v8047_v11 = vld [vmem:[#allocation40_spill] sm:$0xff] }
 0x112   : > { %1110 = vmatpush.msra.mxu0 %v5333_v38 }
 0x113   : > { %v691_v5 = vadd.f32 %v5576_v14, %v690_v48  ;;  %1070 = vmatpush.msrb.mxu2 %v8046_v46 }
 0x114   : > { %v619_v31 = vpop.f32.mrf.mxu2  ;;  %1111 = vmatpush.msra.mxu0 %v5344_v12 }
 0x115   : > { %v695_v55 = vsel %vm5603_vm9, %v5576_v14, %v691_v5  ;;  %v8045_v14 = vld [vmem:[#allocation37_spill] sm:$0xff]  ;;  %v620_v28 = vadd.f32 %v619_v31, %v5624_v63  ;;  %1071 = vmatpush.msrb.mxu2 %v8048_v26 }
 0x116   : > { %1112 = vmatpush.msra.mxu0 %v5355_v52 }
 0x117   : > { %1072 = vmatpush.msrb.mxu2 %v8013_v57 }
 0x118   : > { %v659_v2 = vpop.f32.mrf.mxu0  ;;  %1113 = vmatpush.msra.mxu0 %v5366_v8 }
 0x119   : > { %v702_v4 = vadd.f32 %v659_v2, %v600_v33  ;;  %1073 = vmatpush.msrb.mxu2 %v8017_v24 }
 0x11a   : > { %1114 = vmatpush.msra.mxu0 %v5377_v9 }
 0x11b   : > { %v4385_v3 = vmul.f32 -1.442695, %v702_v4  ;;  %v698_v4 = vand.u32 2147483648, %v5565_v49  ;;  %v679_v33 = vpop.f32.mrf.mxu1  ;;  %v8042_v49 = vld [vmem:[#allocation31_spill] sm:$0xff]  ;;  %1074 = vmatpush.msrb.mxu2 %v5307_v42 }
 0x11c   : > { %1088 = vmatpush.msrb.mxu3 %v8042_v49  ;;  %v725_v32 = vadd.f32 %v5611_v56, %v679_v33  ;;  %1115 = vmatpush.msra.mxu0 %v5386_v13 }
 0x11d   : > { %4545 = vpow2.f32 %v4385_v3  ;;  %v699_v61 = vor.u32 1.1754944e-38, %v698_v4  ;;  %v8049_v3 = vld [vmem:[#allocation43_spill] sm:$0xff]  ;;  %v8050_v4 = vld [vmem:[#allocation45_spill] sm:$0xff]  ;;  %1075 = vmatpush.msrb.mxu2 %v5317_v17 }
 0x11e   : > { %1089 = vmatpush.msrb.mxu3 %v8043_v19  ;;  %1116 = vmatpush.msra.mxu0 %v5395_v58 }
 0x11f   : > { %v700_v41 = vsel %vm697_vm10, %v699_v61, %v695_v55  ;;  %v8051_v61 = vld [vmem:[#allocation53_spill] sm:$0xff]  ;;  %1076 = vmatpush.msrb.mxu2 %v5328_v39 }
 0x120   : > { %1090 = vmatpush.msrb.mxu3 %v8045_v14  ;;  %v726_v54 = vmul.f32 %v725_v32, %v700_v41  ;;  %1117 = vmatpush.msra.mxu0 %v5404_v18 }
 0x121   : > { %1077 = vmatpush.msrb.mxu2 %v5339_v60 }
 0x122   : > { %1091 = vmatpush.msrb.mxu3 %v8047_v11  ;;  %v727_v5 = vadd.f32 %v726_v54, %v620_v28  ;;  %1118 = vmatpush.msra.mxu0 %v5413_v23 }
 0x123   : > { %v4546_v2 = vpop.eup %4545  ;;  %1078 = vmatpush.msrb.mxu2 %v5350_v21  ;;  %v992_v21 = vld [vmem:[%s5036_s26 + $0x30] sm:$0x2] }
 0x124   : > { %v706_v0 = vadd.f32 1.0, %v4546_v2  ;;  %1092 = vmatpush.msrb.mxu3 %v8049_v3  ;;  %1119 = vmatpush.msra.mxu0 %v5422_v44  ;;  %v991_v44 = vld [vmem:[%s5036_s26 + $0x28] sm:$0x2]  ;;  %v1000_v23 = vunpack.c.l.bf16 %v992_v21 }
 0x125   : > { %1079 = vmatpush.msrb.mxu2 %v5361_v27  ;;  %v990_v27 = vld [vmem:[%s5036_s26 + $0x20] sm:$0x2] }
 0x126   : > { %4547 = vrcp.f32 %v706_v0  ;;  %1093 = vmatpush.msrb.mxu3 %v8050_v4  ;;  %v718_v30 = vand.u32 2147483648, %v706_v0  ;;  %v716_v33 = vand.u32 2147483647, %v706_v0  ;;  %vm712_vm12 = vweird.f32 %v706_v0  ;;  %1120 = vmatpush.msra.mxu0 %v5431_v7  ;;  %v8103_v7 = vld [vmem:[#allocation57_spill] sm:$0xff] }
 0x127   : > { %4549 = vtanh.f32 %v727_v5  ;;  %1080 = vmatpush.msrb.mxu2 %v5372_v36  ;;  %v989_v36 = vld [vmem:[%s5036_s26 + $0x18] sm:$0x2] }
 0x128   : > { %1094 = vmatpush.msrb.mxu3 %v8016_v51  ;;  %v719_v32 = vor.u32 1.1754944e-38, %v718_v30  ;;  %vm717_vm14 = vcmp.eq.f32.partialorder %v716_v33, 8.507059e+37 }
 0x12a   : > { %1095 = vmatpush.msrb.mxu3 %v8051_v61 }
 0x12c   : > { %v4548_v25 = vpop.eup %4547  ;;  %1096 = vmatpush.msrb.mxu3 %v8021_v16 }
 0x12d   : > { %v708_v48 = vmul.f32 %v4548_v25, %v706_v0  ;;  %vm713_vm11 = vweird.f32 %v4548_v25  ;;  %v4550_v0 = vpop.eup %4549 }
 0x12e   : > { %vm714_vm13 = vmor %vm712_vm12, %vm713_vm11  ;;  %1097 = vmatpush.msrb.mxu3 %v8023_v40 }
 0x12f   : > { %v709_v20 = vsub.f32 1.0, %v708_v48  ;;  %v8052_v48 = vld [vmem:[#allocation75_spill] sm:$0xff] }
 0x130   : > { %1098 = vmatpush.msrb.mxu3 %v8025_v47 }
 0x131   : > { %v710_v2 = vmul.f32 %v4548_v25, %v709_v20 }
 0x132   : > { %1099 = vmatpush.msrb.mxu3 %v8026_v34 }
 0x133   : > { %v711_v55 = vadd.f32 %v4548_v25, %v710_v2 }
 0x134   : > { %1100 = vmatpush.msrb.mxu3 %v8027_v43 }
 0x135   : > { %v715_v41 = vsel %vm714_vm13, %v4548_v25, %v711_v55  ;;  %v8054_v55 = vld [vmem:[#allocation78_spill] sm:$0xff] }
 0x136   : > { %v720_v31 = vsel %vm717_vm14, %v719_v32, %v715_v41  ;;  %v8055_v41 = vld [vmem:[#allocation22_spill] sm:$0xff] }
 0x137   : > { %v729_v54 = vsub.f32 1.0, %v720_v31  ;;  %v731_v25 = vmul.f32 %v720_v31, %v8052_v48  ;;  %v8056_v31 = vld [vmem:[#allocation24_spill] sm:$0xff]  ;;  %v8058_v48 = vld [vmem:[#allocation23_spill] sm:$0xff] }
 0x139   : > { %v730_v28 = vmul.f32 %v4550_v0, %v729_v54  ;;  %v8057_v0 = vld [vmem:[#allocation81_spill] sm:$0xff] }
 0x13b   : > { %v5660_v5 = vadd.f32 %v731_v25, %v730_v28  ;;  %v8059_v25 = vld [vmem:[#allocation26_spill] sm:$0xff] }
 0x13d   : > { %8053 = vst [vmem:[#allocation71_spill] sm:$0xff] %v5660_v5  ;;  %v734_v20 = vrot.slane %v5660_v5, 1  ;;  %v735_v30 = vrot.slane %v5660_v5, 2  ;;  %v736_v2 = vrot.slane %v5660_v5, 3  ;;  %871 = vmatmul.f32.vlgmr.msra.gmra.mxu1 %v5660_v5  ;;  %891 = vmatmul.f32.vlgmr.msra.gmra.mxu2 %v5660_v5  ;;  %v737_v33 = vrot.slane %v5660_v5, 4 }
 0x13e   : > { %748 = vst [vmem:[%s5051_s13] sm:$0x1] %v5660_v5  ;;  %911 = vmatmul.f32.vlgmr.msra.gmra.mxu3 %v5660_v5  ;;  %1125 = vmatpush.msra.mxu1 %v8054_v55  ;;  %v738_v32 = vrot.slane %v5660_v5, 5  ;;  %v739_v54 = vrot.slane %v5660_v5, 6  ;;  %v740_v28 = vrot.slane %v5660_v5, 7  ;;  %v8060_v55 = vld [vmem:[#allocation83_spill] sm:$0xff]  ;;  %v998_v5 = vunpack.c.l.bf16 %v990_v27 }
 0x13f   : > { %749 = vst [vmem:[%s5051_s13 + $0x10] sm:$0x1] %v734_v20  ;;  %1255 = vmatpush.msra.mxu2 %v8055_v41  ;;  %1275 = vmatpush.msra.mxu3 %v8056_v31  ;;  %v8061_v20 = vld [vmem:[#allocation27_spill] sm:$0xff]  ;;  %v8062_v41 = vld [vmem:[#allocation29_spill] sm:$0xff]  ;;  %v1020_v27 = vrot.slane %v1000_v23, 4 }
 0x140   : > { %750 = vst [vmem:[%s5051_s13 + $0x20] sm:$0x1] %v735_v30  ;;  %1126 = vmatpush.msra.mxu1 %v8057_v0  ;;  %v8063_v31 = vld [vmem:[#allocation85_spill] sm:$0xff]  ;;  %v8064_v30 = vld [vmem:[#allocation30_spill] sm:$0xff]  ;;  %v8065_v0 = vld [vmem:[#allocation32_spill] sm:$0xff]  ;;  %v1016_v60 = vrot.slane %v998_v5, 6 }
 0x141   : > { %751 = vst [vmem:[%s5051_s13 + $0x30] sm:$0x1] %v736_v2  ;;  %1256 = vmatpush.msra.mxu2 %v8058_v48  ;;  %1276 = vmatpush.msra.mxu3 %v8059_v25  ;;  %v8066_v2 = vld [vmem:[#allocation86_spill] sm:$0xff]  ;;  %v8067_v48 = vld [vmem:[#allocation33_spill] sm:$0xff] }
 0x142   : > { %752 = vst [vmem:[%s5051_s13 + $0x40] sm:$0x1] %v737_v33  ;;  %1127 = vmatpush.msra.mxu1 %v8060_v55  ;;  %v8068_v33 = vld [vmem:[#allocation35_spill] sm:$0xff]  ;;  %v8069_v55 = vld [vmem:[#allocation88_spill] sm:$0xff] }
 0x143   : > { %753 = vst [vmem:[%s5051_s13 + $0x50] sm:$0x1] %v738_v32  ;;  %1257 = vmatpush.msra.mxu2 %v8061_v20  ;;  %1277 = vmatpush.msra.mxu3 %v8062_v41  ;;  %v8070_v32 = vld [vmem:[#allocation36_spill] sm:$0xff]  ;;  %v8071_v20 = vld [vmem:[#allocation38_spill] sm:$0xff] }
 0x144   : > { %754 = vst [vmem:[%s5051_s13 + $0x60] sm:$0x1] %v739_v54  ;;  %1128 = vmatpush.msra.mxu1 %v8063_v31  ;;  %v8072_v54 = vld [vmem:[#allocation90_spill] sm:$0xff]  ;;  %v8073_v31 = vld [vmem:[#allocation39_spill] sm:$0xff] }
 0x145   : > { %755 = vst [vmem:[%s5051_s13 + $0x70] sm:$0x1] %v740_v28  ;;  %1258 = vmatpush.msra.mxu2 %v8064_v30  ;;  %1278 = vmatpush.msra.mxu3 %v8065_v0  ;;  %v8074_v28 = vld [vmem:[#allocation41_spill] sm:$0xff]  ;;  %v8075_v30 = vld [vmem:[#allocation92_spill] sm:$0xff]  ;;  %v8076_v0 = vld [vmem:[#allocation42_spill] sm:$0xff] }
 0x146   : > { %1129 = vmatpush.msra.mxu1 %v8066_v2  ;;  %v8077_v2 = vld [vmem:[#allocation46_spill] sm:$0xff] }
 0x147   : > { %1259 = vmatpush.msra.mxu2 %v8067_v48  ;;  %1279 = vmatpush.msra.mxu3 %v8068_v33  ;;  %v8078_v48 = vld [vmem:[#allocation94_spill] sm:$0xff]  ;;  %v8079_v33 = vld [vmem:[#allocation44_spill] sm:$0xff] }
 0x148   : > { %1130 = vmatpush.msra.mxu1 %v8069_v55  ;;  %v8080_v55 = vld [vmem:[#allocation50_spill] sm:$0xff] }
 0x149   : > { %1260 = vmatpush.msra.mxu2 %v8070_v32  ;;  %1280 = vmatpush.msra.mxu3 %v8071_v20  ;;  %v8081_v32 = vld [vmem:[#allocation95_spill] sm:$0xff]  ;;  %v8082_v20 = vld [vmem:[#allocation48_spill] sm:$0xff]  ;;  %v987_v41 = vld [vmem:[%s5036_s26 + $0x8] sm:$0x2] }
 0x14a   : > { %1131 = vmatpush.msra.mxu1 %v8072_v54  ;;  %v8083_v54 = vld [vmem:[#allocation51_spill] sm:$0xff]  ;;  %v995_v25 = vunpack.c.l.bf16 %v987_v41  ;;  %v993_v41 = vld [vmem:[%s5036_s26 + $0x38] sm:$0x2] }
 0x14b   : > { %1261 = vmatpush.msra.mxu2 %v8073_v31  ;;  %1281 = vmatpush.msra.mxu3 %v8074_v28  ;;  %v8084_v31 = vld [vmem:[#allocation96_spill] sm:$0xff] }
 0x14c   : > { %1132 = vmatpush.msra.mxu1 %v8075_v30  ;;  %v8085_v28 = vld [vmem:[#allocation52_spill] sm:$0xff]  ;;  %v8086_v30 = vld [vmem:[#allocation55_spill] sm:$0xff] }
 0x14d   : > { %1262 = vmatpush.msra.mxu2 %v8076_v0  ;;  %1282 = vmatpush.msra.mxu3 %v8077_v2  ;;  %v8087_v0 = vld [vmem:[#allocation97_spill] sm:$0xff]  ;;  %v8088_v2 = vld [vmem:[#allocation54_spill] sm:$0xff] }
 0x14e   : > { %1133 = vmatpush.msra.mxu1 %v8078_v48  ;;  %v8089_v48 = vld [vmem:[#allocation58_spill] sm:$0xff] }
 0x14f   : > { %1263 = vmatpush.msra.mxu2 %v8079_v33  ;;  %1283 = vmatpush.msra.mxu3 %v8080_v55  ;;  %v8090_v33 = vld [vmem:[#allocation99_spill] sm:$0xff]  ;;  %v986_v55 = vld [vmem:[%s5036_s26] sm:$0x2] }
 0x150   : > { %1134 = vmatpush.msra.mxu1 %v8081_v32  ;;  %v8091_v32 = vld [vmem:[#allocation60_spill] sm:$0xff] }
 0x151   : > { %1264 = vmatpush.msra.mxu2 %v8082_v20  ;;  %1284 = vmatpush.msra.mxu3 %v8083_v54  ;;  %v8092_v20 = vld [vmem:[#allocation62_spill] sm:$0xff]  ;;  %v8093_v54 = vld [vmem:[#allocation101_spill] sm:$0xff] }
 0x152   : > { %1135 = vmatpush.msra.mxu1 %v8084_v31  ;;  %v8094_v31 = vld [vmem:[#allocation64_spill] sm:$0xff] }
 0x153   : > { %1265 = vmatpush.msra.mxu2 %v8085_v28  ;;  %1285 = vmatpush.msra.mxu3 %v8086_v30  ;;  %v8095_v28 = vld [vmem:[#allocation66_spill] sm:$0xff]  ;;  %v8096_v30 = vld [vmem:[#allocation103_spill] sm:$0xff] }
 0x154   : > { %1136 = vmatpush.msra.mxu1 %v8087_v0  ;;  %v8099_v0 = vld [vmem:[#allocation104_spill] sm:$0xff] }
 0x155   : > { %1266 = vmatpush.msra.mxu2 %v8088_v2  ;;  %1286 = vmatpush.msra.mxu3 %v8089_v48  ;;  %v8097_v2 = vld [vmem:[#allocation68_spill] sm:$0xff]  ;;  %v8098_v48 = vld [vmem:[#allocation70_spill] sm:$0xff] }
 0x156   : > { %1137 = vmatpush.msra.mxu1 %v8090_v33  ;;  %v8100_v33 = vld [vmem:[#allocation72_spill] sm:$0xff] }
 0x157   : > { %1267 = vmatpush.msra.mxu2 %v8091_v32  ;;  %1287 = vmatpush.msra.mxu3 %v8092_v20  ;;  %v8101_v20 = vld [vmem:[#allocation76_spill] sm:$0xff] }
 0x158   : > { %1138 = vmatpush.msra.mxu1 %v8093_v54 }
 0x159   : > { %1268 = vmatpush.msra.mxu2 %v8094_v31  ;;  %1288 = vmatpush.msra.mxu3 %v8095_v28  ;;  %v8102_v31 = vld [vmem:[#allocation47_spill] sm:$0xff] }
 0x15a   : > { %1139 = vmatpush.msra.mxu1 %v8096_v30 }
 0x15b   : > { %1269 = vmatpush.msra.mxu2 %v8097_v2  ;;  %1289 = vmatpush.msra.mxu3 %v8098_v48  ;;  %v994_v2 = vunpack.c.l.bf16 %v986_v55 }
 0x15c   : > { %1140 = vmatpush.msra.mxu1 %v8099_v0 }
 0x15d   : > { %1270 = vmatpush.msra.mxu2 %v8100_v33  ;;  %1290 = vmatpush.msra.mxu3 %v8101_v20  ;;  %v988_v33 = vld [vmem:[%s5036_s26 + $0x10] sm:$0x2]  ;;  %v997_v20 = vunpack.c.l.bf16 %v989_v36 }
 0x15e   : > { %v996_v34 = vunpack.c.l.bf16 %v988_v33 }
 0x189   : > { %v812_v54 = vpop.f32.mrf.mxu2  ;;  %v832_v48 = vpop.f32.mrf.mxu3 }
 0x18a   : > { %v813_v32 = vadd.f32 %v812_v54, %v8102_v31  ;;  %v833_v0 = vadd.f32 %v832_v48, %v8103_v7  ;;  %v1010_v54 = vrot.slane %v994_v2, 2  ;;  %v1011_v31 = vrot.slane %v995_v25, 1 }
 0x18c   : > { %v1012_v47 = vsel %vm541_vm0, %v1011_v31, %v1010_v54 }
 0x18d   : > { %v1013_v7 = vsel %vm544_vm1, %v996_v34, %v1012_v47 }
 0x1ba   : > { %v872_v28 = vpop.f32.mrf.mxu1 }
 0x1bb   : > { %v915_v30 = vadd.f32 %v872_v28, %v813_v32  ;;  %v999_v32 = vunpack.c.l.bf16 %v991_v44  ;;  %v1014_v28 = vrot.slane %v997_v20, 7 }
 0x1bd   : > { %v4386_v43 = vmul.f32 -1.442695, %v915_v30  ;;  %v1001_v30 = vunpack.c.l.bf16 %v993_v41  ;;  %v1018_v36 = vrot.slane %v999_v32, 5  ;;  %v1015_v33 = vsel %vm547_vm2, %v1014_v28, %v1013_v7  ;;  %v852_v28 = vpop.f32.mrf.mxu0 }
 0x1bf   : > { %4551 = vpow2.f32 %v4386_v43  ;;  %v1017_v43 = vsel %vm550_vm3, %v1016_v60, %v1015_v33  ;;  %v1022_v25 = vrot.slane %v1001_v30, 3  ;;  %v853_v33 = vadd.f32 %v852_v28, %v5624_v63  ;;  %v8106_v28 = vld [vmem:[#allocation98_spill] sm:$0xff] }
 0x1c0   : > { %v892_v55 = vpop.f32.mrf.mxu2  ;;  %v1019_v44 = vsel %vm553_vm4, %v1018_v36, %v1017_v43 }
 0x1c1   : > { %v935_v48 = vadd.f32 %v892_v55, %v833_v0  ;;  %v1021_v21 = vsel %vm556_vm5, %v1020_v27, %v1019_v44  ;;  %v912_v41 = vpop.f32.mrf.mxu3 }
 0x1c2   : > { %v1023_v5 = vsel %vm559_vm6, %v1022_v25, %v1021_v21  ;;  %v955_v43 = vadd.f32 %v5611_v56, %v912_v41 }
 0x1c3   : > { %v4387_v2 = vmul.f32 -1.442695, %v935_v48  ;;  %1041 = vmatmul.f32.vlgmr.msrb.gmra.mxu0 %v1023_v5  ;;  %1061 = vmatmul.f32.vlgmr.msrb.gmra.mxu1 %v1023_v5 }
 0x1c4   : > { %1081 = vmatmul.f32.vlgmr.msrb.gmra.mxu2 %v1023_v5  ;;  %1315 = vmatpush.msrb.mxu1 %v5061_v6 }
 0x1c5   : > { %v4552_v20 = vpop.eup %4551  ;;  %4553 = vpow2.f32 %v4387_v2  ;;  %1335 = vmatpush.msrb.mxu2 %v8015_v22  ;;  %1295 = vmatpush.msrb.mxu0 %v5138_v45 }
 0x1c6   : > { %v919_v31 = vadd.f32 1.0, %v4552_v20  ;;  %1316 = vmatpush.msrb.mxu1 %v8038_v15 }
 0x1c7   : > { %1336 = vmatpush.msrb.mxu2 %v8018_v53  ;;  %1296 = vmatpush.msrb.mxu0 %v5149_v50 }
 0x1c8   : > { %4555 = vrcp.f32 %v919_v31  ;;  %1317 = vmatpush.msrb.mxu1 %v8041_v37  ;;  %v931_v0 = vand.u32 2147483648, %v919_v31  ;;  %v929_v32 = vand.u32 2147483647, %v919_v31  ;;  %vm925_vm7 = vweird.f32 %v919_v31 }
 0x1c9   : > { %1337 = vmatpush.msrb.mxu2 %v8020_v29  ;;  %1297 = vmatpush.msrb.mxu0 %v8001_v62 }
 0x1ca   : > { %1318 = vmatpush.msrb.mxu1 %v8042_v49  ;;  %v932_v36 = vor.u32 1.1754944e-38, %v931_v0  ;;  %vm930_vm9 = vcmp.eq.f32.partialorder %v929_v32, 8.507059e+37 }
 0x1cb   : > { %v4554_v34 = vpop.eup %4553  ;;  %1338 = vmatpush.msrb.mxu2 %v8022_v35  ;;  %1298 = vmatpush.msrb.mxu0 %v8004_v10 }
 0x1cc   : > { %v939_v60 = vadd.f32 1.0, %v4554_v34  ;;  %1319 = vmatpush.msrb.mxu1 %v8043_v19 }
 0x1cd   : > { %1339 = vmatpush.msrb.mxu2 %v8024_v59  ;;  %1299 = vmatpush.msrb.mxu0 %v8044_v1 }
 0x1ce   : > { %v4556_v47 = vpop.eup %4555  ;;  %4557 = vrcp.f32 %v939_v60  ;;  %1320 = vmatpush.msrb.mxu1 %v8045_v14  ;;  %v951_v20 = vand.u32 2147483648, %v939_v60  ;;  %vm945_vm11 = vweird.f32 %v939_v60 }
 0x1cf   : > { %v921_v23 = vmul.f32 %v4556_v47, %v919_v31  ;;  %vm926_vm15 = vweird.f32 %v4556_v47  ;;  %1340 = vmatpush.msrb.mxu2 %v5333_v38  ;;  %1300 = vmatpush.msrb.mxu0 %v8046_v46  ;;  %v949_v31 = vand.u32 2147483647, %v939_v60 }
 0x1d0   : > { %1321 = vmatpush.msrb.mxu1 %v8047_v11  ;;  %vm927_vm8 = vmor %vm925_vm7, %vm926_vm15 }
 0x1d1   : > { %v922_v7 = vsub.f32 1.0, %v921_v23  ;;  %1341 = vmatpush.msrb.mxu2 %v5344_v12  ;;  %1301 = vmatpush.msrb.mxu0 %v8048_v26  ;;  %vm950_vm13 = vcmp.eq.f32.partialorder %v949_v31, 8.507059e+37 }
 0x1d2   : > { %1322 = vmatpush.msrb.mxu1 %v8049_v3 }
 0x1d3   : > { %v923_v54 = vmul.f32 %v4556_v47, %v922_v7  ;;  %1342 = vmatpush.msrb.mxu2 %v5355_v52  ;;  %1302 = vmatpush.msrb.mxu0 %v8013_v57  ;;  %v8104_v7 = vld [vmem:[#allocation87_spill] sm:$0xff] }
 0x1d4   : > { %v4558_v55 = vpop.eup %4557  ;;  %1323 = vmatpush.msrb.mxu1 %v8050_v4 }
 0x1d5   : > { %v941_v48 = vmul.f32 %v4558_v55, %v939_v60  ;;  %v924_v30 = vadd.f32 %v4556_v47, %v923_v54  ;;  %vm946_vm10 = vweird.f32 %v4558_v55  ;;  %1343 = vmatpush.msrb.mxu2 %v5366_v8  ;;  %1303 = vmatpush.msrb.mxu0 %v8017_v24  ;;  %v8105_v54 = vld [vmem:[#allocation65_spill] sm:$0xff] }
 0x1d6   : > { %1324 = vmatpush.msrb.mxu1 %v8016_v51  ;;  %vm947_vm12 = vmor %vm945_vm11, %vm946_vm10 }
 0x1d7   : > { %v942_v27 = vsub.f32 1.0, %v941_v48  ;;  %v928_v2 = vsel %vm927_vm8, %v4556_v47, %v924_v30  ;;  %1344 = vmatpush.msrb.mxu2 %v5377_v9  ;;  %1304 = vmatpush.msrb.mxu0 %v5307_v42  ;;  %v952_v47 = vor.u32 1.1754944e-38, %v951_v20  ;;  %v8108_v48 = vld [vmem:[#allocation71_spill] sm:$0xff] }
 0x1d8   : > { %v933_v25 = vsel %vm930_vm9, %v932_v36, %v928_v2  ;;  %1325 = vmatpush.msrb.mxu1 %v8051_v61  ;;  %v8109_v36 = vld [vmem:[#allocation69_spill] sm:$0xff] }
 0x1d9   : > { %v943_v44 = vmul.f32 %v4558_v55, %v942_v27  ;;  %v956_v21 = vmul.f32 %v955_v43, %v933_v25  ;;  %1345 = vmatpush.msrb.mxu2 %v5386_v13  ;;  %1305 = vmatpush.msrb.mxu0 %v5317_v17  ;;  %v8111_v27 = vld [vmem:[#allocation91_spill] sm:$0xff]  ;;  %v8113_v43 = vld [vmem:[#allocation73_spill] sm:$0xff]  ;;  %v8114_v25 = vld [vmem:[#allocation102_spill] sm:$0xff] }
 0x1da   : > { %1326 = vmatpush.msrb.mxu1 %v8021_v16 }
 0x1db   : > { %v944_v5 = vadd.f32 %v4558_v55, %v943_v44  ;;  %v957_v34 = vadd.f32 %v956_v21, %v853_v33  ;;  %1346 = vmatpush.msrb.mxu2 %v5395_v58  ;;  %1306 = vmatpush.msrb.mxu0 %v5328_v39  ;;  %v8110_v33 = vld [vmem:[#allocation100_spill] sm:$0xff]  ;;  %v8115_v44 = vld [vmem:[#allocation93_spill] sm:$0xff] }
 0x1dc   : > { %1327 = vmatpush.msrb.mxu1 %v8023_v40 }
 0x1dd   : > { %v948_v23 = vsel %vm947_vm12, %v4558_v55, %v944_v5  ;;  %4559 = vtanh.f32 %v957_v34  ;;  %1347 = vmatpush.msrb.mxu2 %v5404_v18  ;;  %1307 = vmatpush.msrb.mxu0 %v8104_v7  ;;  %v8107_v55 = vld [vmem:[#allocation89_spill] sm:$0xff]  ;;  %v8116_v34 = vld [vmem:[#allocation78_spill] sm:$0xff] }
 0x1de   : > { %v953_v60 = vsel %vm950_vm13, %v952_v47, %v948_v23  ;;  %1328 = vmatpush.msrb.mxu1 %v8105_v54  ;;  %v8117_v23 = vld [vmem:[#allocation22_spill] sm:$0xff] }
 0x1df   : > { %v959_v0 = vsub.f32 1.0, %v953_v60  ;;  %1348 = vmatpush.msrb.mxu2 %v8106_v28  ;;  %1308 = vmatpush.msrb.mxu0 %v8107_v55  ;;  %v961_v30 = vmul.f32 %v953_v60, %v8108_v48  ;;  %v8118_v60 = vld [vmem:[#allocation24_spill] sm:$0xff]  ;;  %v8120_v48 = vld [vmem:[#allocation23_spill] sm:$0xff] }
 0x1e0   : > { %1329 = vmatpush.msrb.mxu1 %v8109_v36  ;;  %v1221_v36 = vld [vmem:[%s5036_s26 + $0x28] sm:$0x2] }
 0x1e1   : > { %1349 = vmatpush.msrb.mxu2 %v8110_v33  ;;  %1309 = vmatpush.msrb.mxu0 %v8111_v27  ;;  %v1229_v55 = vunpack.c.l.bf16 %v1221_v36 }
 0x1e2   : > { %1330 = vmatpush.msrb.mxu1 %v8113_v43 }
 0x1e3   : > { %v4560_v32 = vpop.eup %4559  ;;  %1350 = vmatpush.msrb.mxu2 %v8114_v25  ;;  %1310 = vmatpush.msrb.mxu0 %v8115_v44  ;;  %v1216_v44 = vld [vmem:[%s5036_s26] sm:$0x2]  ;;  %v1218_v25 = vld [vmem:[%s5036_s26 + $0x10] sm:$0x2]  ;;  %v1248_v28 = vrot.slane %v1229_v55, 6 }
 0x1e4   : > { %v960_v41 = vmul.f32 %v4560_v32, %v959_v0  ;;  %v8119_v32 = vld [vmem:[#allocation81_spill] sm:$0xff]  ;;  %v1226_v27 = vunpack.c.l.bf16 %v1218_v25 }
 0x1e6   : > { %v5797_v2 = vadd.f32 %v961_v30, %v960_v41  ;;  %v8121_v30 = vld [vmem:[#allocation26_spill] sm:$0xff] }
 0x1e8   : > { %8112 = vst [vmem:[#allocation74_spill] sm:$0xff] %v5797_v2  ;;  %v964_v20 = vrot.slane %v5797_v2, 1  ;;  %v965_v21 = vrot.slane %v5797_v2, 2  ;;  %v966_v31 = vrot.slane %v5797_v2, 3  ;;  %1101 = vmatmul.f32.vlgmr.msrb.gmra.mxu3 %v5797_v2  ;;  %1121 = vmatmul.f32.vlgmr.msra.gmra.mxu0 %v5797_v2  ;;  %v967_v5 = vrot.slane %v5797_v2, 4 }
 0x1e9   : > { %978 = vst [vmem:[%s5051_s13 + $0x1] sm:$0x1] %v5797_v2  ;;  %1141 = vmatmul.f32.vlgmr.msra.gmra.mxu1 %v5797_v2  ;;  %1355 = vmatpush.msrb.mxu3 %v8116_v34  ;;  %v968_v47 = vrot.slane %v5797_v2, 5  ;;  %v969_v0 = vrot.slane %v5797_v2, 6  ;;  %v970_v41 = vrot.slane %v5797_v2, 7  ;;  %v8122_v34 = vld [vmem:[#allocation83_spill] sm:$0xff] }
 0x1ea   : > { %979 = vst [vmem:[%s5051_s13 + $0x11] sm:$0x1] %v964_v20  ;;  %1485 = vmatpush.msra.mxu0 %v8117_v23  ;;  %1505 = vmatpush.msra.mxu1 %v8118_v60  ;;  %v8123_v20 = vld [vmem:[#allocation27_spill] sm:$0xff]  ;;  %v8124_v23 = vld [vmem:[#allocation29_spill] sm:$0xff] }
 0x1eb   : > { %980 = vst [vmem:[%s5051_s13 + $0x21] sm:$0x1] %v965_v21  ;;  %1356 = vmatpush.msrb.mxu3 %v8119_v32  ;;  %v8125_v60 = vld [vmem:[#allocation85_spill] sm:$0xff]  ;;  %v8126_v21 = vld [vmem:[#allocation30_spill] sm:$0xff]  ;;  %v8127_v32 = vld [vmem:[#allocation32_spill] sm:$0xff] }
 0x1ec   : > { %981 = vst [vmem:[%s5051_s13 + $0x31] sm:$0x1] %v966_v31  ;;  %1486 = vmatpush.msra.mxu0 %v8120_v48  ;;  %1506 = vmatpush.msra.mxu1 %v8121_v30  ;;  %v8128_v31 = vld [vmem:[#allocation86_spill] sm:$0xff]  ;;  %v8129_v48 = vld [vmem:[#allocation33_spill] sm:$0xff] }
 0x1ed   : > { %982 = vst [vmem:[%s5051_s13 + $0x41] sm:$0x1] %v967_v5  ;;  %1357 = vmatpush.msrb.mxu3 %v8122_v34  ;;  %v8130_v5 = vld [vmem:[#allocation35_spill] sm:$0xff]  ;;  %v8131_v34 = vld [vmem:[#allocation88_spill] sm:$0xff] }
 0x1ee   : > { %983 = vst [vmem:[%s5051_s13 + $0x51] sm:$0x1] %v968_v47  ;;  %1487 = vmatpush.msra.mxu0 %v8123_v20  ;;  %1507 = vmatpush.msra.mxu1 %v8124_v23  ;;  %v8132_v47 = vld [vmem:[#allocation36_spill] sm:$0xff]  ;;  %v8133_v20 = vld [vmem:[#allocation38_spill] sm:$0xff] }
 0x1ef   : > { %984 = vst [vmem:[%s5051_s13 + $0x61] sm:$0x1] %v969_v0  ;;  %1358 = vmatpush.msrb.mxu3 %v8125_v60  ;;  %v8134_v0 = vld [vmem:[#allocation90_spill] sm:$0xff]  ;;  %v8135_v60 = vld [vmem:[#allocation39_spill] sm:$0xff] }
 0x1f0   : > { %985 = vst [vmem:[%s5051_s13 + $0x71] sm:$0x1] %v970_v41  ;;  %1488 = vmatpush.msra.mxu0 %v8126_v21  ;;  %1508 = vmatpush.msra.mxu1 %v8127_v32  ;;  %v8136_v41 = vld [vmem:[#allocation41_spill] sm:$0xff]  ;;  %v8137_v21 = vld [vmem:[#allocation92_spill] sm:$0xff]  ;;  %v8138_v32 = vld [vmem:[#allocation42_spill] sm:$0xff] }
 0x1f1   : > { %1359 = vmatpush.msrb.mxu3 %v8128_v31  ;;  %v8139_v31 = vld [vmem:[#allocation46_spill] sm:$0xff] }
 0x1f2   : > { %1489 = vmatpush.msra.mxu0 %v8129_v48  ;;  %1509 = vmatpush.msra.mxu1 %v8130_v5  ;;  %v8140_v48 = vld [vmem:[#allocation94_spill] sm:$0xff]  ;;  %v8141_v5 = vld [vmem:[#allocation44_spill] sm:$0xff] }
 0x1f3   : > { %1360 = vmatpush.msrb.mxu3 %v8131_v34  ;;  %v8142_v34 = vld [vmem:[#allocation50_spill] sm:$0xff] }
 0x1f4   : > { %1490 = vmatpush.msra.mxu0 %v8132_v47  ;;  %1510 = vmatpush.msra.mxu1 %v8133_v20  ;;  %v8143_v47 = vld [vmem:[#allocation95_spill] sm:$0xff]  ;;  %v8144_v20 = vld [vmem:[#allocation48_spill] sm:$0xff] }
 0x1f5   : > { %1361 = vmatpush.msrb.mxu3 %v8134_v0  ;;  %v8145_v0 = vld [vmem:[#allocation51_spill] sm:$0xff] }
 0x1f6   : > { %1491 = vmatpush.msra.mxu0 %v8135_v60  ;;  %1511 = vmatpush.msra.mxu1 %v8136_v41  ;;  %v8146_v60 = vld [vmem:[#allocation96_spill] sm:$0xff] }
 0x1f7   : > { %1362 = vmatpush.msrb.mxu3 %v8137_v21  ;;  %v8147_v41 = vld [vmem:[#allocation52_spill] sm:$0xff]  ;;  %v8148_v21 = vld [vmem:[#allocation55_spill] sm:$0xff] }
 0x1f8   : > { %1492 = vmatpush.msra.mxu0 %v8138_v32  ;;  %1512 = vmatpush.msra.mxu1 %v8139_v31  ;;  %v8149_v32 = vld [vmem:[#allocation97_spill] sm:$0xff]  ;;  %v8150_v31 = vld [vmem:[#allocation54_spill] sm:$0xff] }
 0x1f9   : > { %1363 = vmatpush.msrb.mxu3 %v8140_v48  ;;  %v8151_v48 = vld [vmem:[#allocation58_spill] sm:$0xff] }
 0x1fa   : > { %1493 = vmatpush.msra.mxu0 %v8141_v5  ;;  %1513 = vmatpush.msra.mxu1 %v8142_v34  ;;  %v8152_v5 = vld [vmem:[#allocation99_spill] sm:$0xff]  ;;  %v8153_v34 = vld [vmem:[#allocation60_spill] sm:$0xff] }
 0x1fb   : > { %1364 = vmatpush.msrb.mxu3 %v8143_v47  ;;  %v8154_v47 = vld [vmem:[#allocation62_spill] sm:$0xff] }
 0x1fc   : > { %1494 = vmatpush.msra.mxu0 %v8144_v20  ;;  %1514 = vmatpush.msra.mxu1 %v8145_v0  ;;  %v8155_v20 = vld [vmem:[#allocation101_spill] sm:$0xff]  ;;  %v8156_v0 = vld [vmem:[#allocation64_spill] sm:$0xff] }
 0x1fd   : > { %1365 = vmatpush.msrb.mxu3 %v8146_v60  ;;  %v8157_v60 = vld [vmem:[#allocation66_spill] sm:$0xff] }
 0x1fe   : > { %1495 = vmatpush.msra.mxu0 %v8147_v41  ;;  %1515 = vmatpush.msra.mxu1 %v8148_v21  ;;  %v8158_v41 = vld [vmem:[#allocation103_spill] sm:$0xff] }
 0x1ff   : > { %1366 = vmatpush.msrb.mxu3 %v8149_v32  ;;  %v8159_v32 = vld [vmem:[#allocation68_spill] sm:$0xff] }
 0x200   : > { %1496 = vmatpush.msra.mxu0 %v8150_v31  ;;  %1516 = vmatpush.msra.mxu1 %v8151_v48  ;;  %v8160_v31 = vld [vmem:[#allocation70_spill] sm:$0xff]  ;;  %v8161_v48 = vld [vmem:[#allocation104_spill] sm:$0xff] }
 0x201   : > { %1367 = vmatpush.msrb.mxu3 %v8152_v5 }
 0x202   : > { %1497 = vmatpush.msra.mxu0 %v8153_v34  ;;  %1517 = vmatpush.msra.mxu1 %v8154_v47  ;;  %v8162_v34 = vld [vmem:[#allocation72_spill] sm:$0xff] }
 0x203   : > { %1368 = vmatpush.msrb.mxu3 %v8155_v20  ;;  %v8163_v47 = vld [vmem:[#allocation76_spill] sm:$0xff] }
 0x204   : > { %1498 = vmatpush.msra.mxu0 %v8156_v0  ;;  %1518 = vmatpush.msra.mxu1 %v8157_v60  ;;  %v8164_v0 = vld [vmem:[#allocation57_spill] sm:$0xff] }
 0x205   : > { %1369 = vmatpush.msrb.mxu3 %v8158_v41  ;;  %v8165_v41 = vld [vmem:[#allocation47_spill] sm:$0xff] }
 0x206   : > { %1499 = vmatpush.msra.mxu0 %v8159_v32  ;;  %1519 = vmatpush.msra.mxu1 %v8160_v31 }
 0x207   : > { %1370 = vmatpush.msrb.mxu3 %v8161_v48  ;;  %v1217_v48 = vld [vmem:[%s5036_s26 + $0x8] sm:$0x2] }
 0x208   : > { %1500 = vmatpush.msra.mxu0 %v8162_v34  ;;  %1520 = vmatpush.msra.mxu1 %v8163_v47  ;;  %v1224_v47 = vunpack.c.l.bf16 %v1216_v44  ;;  %v1225_v43 = vunpack.c.l.bf16 %v1217_v48  ;;  %v1223_v44 = vld [vmem:[%s5036_s26 + $0x38] sm:$0x2] }
 0x240   : > { %v1042_v20 = vpop.f32.mrf.mxu0  ;;  %v1062_v5 = vpop.f32.mrf.mxu1 }
 0x241   : > { %v1063_v60 = vadd.f32 %v1062_v5, %v8164_v0  ;;  %v1043_v30 = vadd.f32 %v1042_v20, %v8165_v41  ;;  %v1220_v5 = vld [vmem:[%s5036_s26 + $0x20] sm:$0x2]  ;;  %v1240_v0 = vrot.slane %v1224_v47, 3  ;;  %v1243_v41 = vrot.slane %v1226_v27, 1 }
 0x242   : > { %v1228_v20 = vunpack.c.l.bf16 %v1220_v5  ;;  %v1231_v47 = vunpack.c.l.bf16 %v1223_v44 }
 0x244   : > { %v1246_v48 = vrot.slane %v1228_v20, 7  ;;  %v1252_v5 = vrot.slane %v1231_v47, 4 }
 0x247   : > { %v1082_v47 = vpop.f32.mrf.mxu2 }
 0x265   : > { %v1122_v21 = vpop.f32.mrf.mxu0 }
 0x266   : > { %v1165_v23 = vadd.f32 %v1122_v21, %v1063_v60  ;;  %v1241_v60 = vrot.slane %v1225_v43, 2  ;;  %v1219_v21 = vld [vmem:[%s5036_s26 + $0x18] sm:$0x2] }
 0x267   : > { %v1227_v2 = vunpack.c.l.bf16 %v1219_v21 }
 0x268   : > { %v4389_v32 = vmul.f32 -1.442695, %v1165_v23 }
 0x26a   : > { %4561 = vpow2.f32 %v4389_v32  ;;  %v1222_v32 = vld [vmem:[%s5036_s26 + $0x30] sm:$0x2] }
 0x26b   : > { %v1102_v31 = vpop.f32.mrf.mxu3  ;;  %v1230_v25 = vunpack.c.l.bf16 %v1222_v32 }
 0x26c   : > { %v1145_v34 = vadd.f32 %v1102_v31, %v1043_v30  ;;  %v1242_v30 = vsel %vm541_vm0, %v1241_v60, %v1240_v0 }
 0x26d   : > { %v1250_v27 = vrot.slane %v1230_v25, 5 }
 0x26e   : > { %v4388_v33 = vmul.f32 -1.442695, %v1145_v34  ;;  %v1244_v34 = vsel %vm544_vm1, %v1243_v41, %v1242_v30 }
 0x26f   : > { %v1245_v43 = vsel %vm547_vm2, %v1227_v2, %v1244_v34 }
 0x270   : > { %v4562_v23 = vpop.eup %4561  ;;  %4563 = vpow2.f32 %v4388_v33  ;;  %v1247_v33 = vsel %vm550_vm3, %v1246_v48, %v1245_v43  ;;  %v1142_v48 = vpop.f32.mrf.mxu1 }
 0x271   : > { %v5879_v31 = vadd.f32 1.0, %v4562_v23  ;;  %v1249_v36 = vsel %vm553_vm4, %v1248_v28, %v1247_v33 }
 0x272   : > { %v1251_v60 = vsel %vm556_vm5, %v1250_v27, %v1249_v36  ;;  %v1185_v27 = vadd.f32 %v5611_v56, %v1142_v48  ;;  %v8169_v48 = vld [vmem:[#allocation69_spill] sm:$0xff] }
 0x273   : > { %4565 = vrcp.f32 %v5879_v31  ;;  %v1253_v23 = vsel %vm559_vm6, %v1252_v5, %v1251_v60  ;;  %v1083_v5 = vadd.f32 %v1082_v47, %v5624_v63  ;;  %vm1175_vm10 = vweird.f32 %v5879_v31  ;;  %v8170_v47 = vld [vmem:[#allocation100_spill] sm:$0xff] }
 0x274   : > { %1271 = vmatmul.f32.vlgmr.msra.gmra.mxu2 %v1253_v23  ;;  %1291 = vmatmul.f32.vlgmr.msra.gmra.mxu3 %v1253_v23  ;;  %v1179_v56 = vand.u32 2147483647, %v5879_v31 }
 0x275   : > { %1311 = vmatmul.f32.vlgmr.msrb.gmra.mxu0 %v1253_v23  ;;  %1545 = vmatpush.msra.mxu3 %v5061_v6 }
 0x276   : > { %v4564_v0 = vpop.eup %4563  ;;  %1565 = vmatpush.msrb.mxu0 %v8015_v22  ;;  %1525 = vmatpush.msra.mxu2 %v5138_v45  ;;  %vm1180_vm12 = vcmp.eq.f32.partialorder %v1179_v56, 8.507059e+37  ;;  %v8176_v56 = vld [vmem:[#allocation78_spill] sm:$0xff] }
 0x277   : > { %v1149_v21 = vadd.f32 1.0, %v4564_v0  ;;  %1546 = vmatpush.msra.mxu3 %v8038_v15 }
 0x278   : > { %1566 = vmatpush.msrb.mxu0 %v8018_v53  ;;  %1526 = vmatpush.msra.mxu2 %v5149_v50 }
 0x279   : > { %4567 = vrcp.f32 %v1149_v21  ;;  %v5890_v55 = vpop.eup %4565  ;;  %1547 = vmatpush.msra.mxu3 %v8041_v37  ;;  %v1161_v30 = vand.u32 2147483648, %v1149_v21  ;;  %v1159_v25 = vand.u32 2147483647, %v1149_v21  ;;  %vm1155_vm15 = vweird.f32 %v1149_v21 }
 0x27a   : > { %v1171_v28 = vmul.f32 %v5890_v55, %v5879_v31  ;;  %1567 = vmatpush.msrb.mxu0 %v8020_v29  ;;  %1527 = vmatpush.msra.mxu2 %v8001_v62  ;;  %vm1176_vm9 = vweird.f32 %v5890_v55 }
 0x27b   : > { %1548 = vmatpush.msra.mxu3 %v8042_v49  ;;  %v1162_v33 = vor.u32 1.1754944e-38, %v1161_v30  ;;  %vm1160_vm8 = vcmp.eq.f32.partialorder %v1159_v25, 8.507059e+37  ;;  %vm1177_vm11 = vmor %vm1175_vm10, %vm1176_vm9  ;;  %v8167_v30 = vld [vmem:[#allocation89_spill] sm:$0xff]  ;;  %v8168_v25 = vld [vmem:[#allocation74_spill] sm:$0xff] }
 0x27c   : > { %1568 = vmatpush.msrb.mxu0 %v8022_v35  ;;  %1528 = vmatpush.msra.mxu2 %v8004_v10  ;;  %v1172_v20 = vsub.f32 1.0, %v1171_v28 }
 0x27d   : > { %1549 = vmatpush.msra.mxu3 %v8043_v19 }
 0x27e   : > { %1569 = vmatpush.msrb.mxu0 %v8024_v59  ;;  %1529 = vmatpush.msra.mxu2 %v8044_v1  ;;  %v1173_v34 = vmul.f32 %v5890_v55, %v1172_v20 }
 0x27f   : > { %v4568_v2 = vpop.eup %4567  ;;  %1550 = vmatpush.msra.mxu3 %v8045_v14 }
 0x280   : > { %v1151_v41 = vmul.f32 %v4568_v2, %v1149_v21  ;;  %vm1156_vm14 = vweird.f32 %v4568_v2  ;;  %1570 = vmatpush.msrb.mxu0 %v5333_v38  ;;  %1530 = vmatpush.msra.mxu2 %v8046_v46  ;;  %v1174_v60 = vadd.f32 %v5890_v55, %v1173_v34  ;;  %v1181_v21 = vand.u32 2147483648, %v5879_v31 }
 0x281   : > { %1551 = vmatpush.msra.mxu3 %v8047_v11  ;;  %vm1157_vm7 = vmor %vm1155_vm15, %vm1156_vm14 }
 0x282   : > { %v1152_v32 = vsub.f32 1.0, %v1151_v41  ;;  %1571 = vmatpush.msrb.mxu0 %v5344_v12  ;;  %1531 = vmatpush.msra.mxu2 %v8048_v26  ;;  %v1182_v41 = vor.u32 1.1754944e-38, %v1181_v21 }
 0x283   : > { %1552 = vmatpush.msra.mxu3 %v8049_v3 }
 0x284   : > { %v1153_v44 = vmul.f32 %v4568_v2, %v1152_v32  ;;  %1572 = vmatpush.msrb.mxu0 %v5355_v52  ;;  %1532 = vmatpush.msra.mxu2 %v8013_v57  ;;  %v8166_v32 = vld [vmem:[#allocation98_spill] sm:$0xff] }
 0x285   : > { %1553 = vmatpush.msra.mxu3 %v8050_v4 }
 0x286   : > { %v1154_v43 = vadd.f32 %v4568_v2, %v1153_v44  ;;  %1573 = vmatpush.msrb.mxu0 %v5366_v8  ;;  %1533 = vmatpush.msra.mxu2 %v8017_v24 }
 0x287   : > { %1554 = vmatpush.msra.mxu3 %v8016_v51 }
 0x288   : > { %v1158_v36 = vsel %vm1157_vm7, %v4568_v2, %v1154_v43  ;;  %1574 = vmatpush.msrb.mxu0 %v5377_v9  ;;  %1534 = vmatpush.msra.mxu2 %v5307_v42  ;;  %v1178_v2 = vsel %vm1177_vm11, %v5890_v55, %v1174_v60  ;;  %v8171_v43 = vld [vmem:[#allocation91_spill] sm:$0xff] }
 0x289   : > { %v1163_v0 = vsel %vm1160_vm8, %v1162_v33, %v1158_v36  ;;  %1555 = vmatpush.msra.mxu3 %v8051_v61  ;;  %v1183_v31 = vsel %vm1180_vm12, %v1182_v41, %v1178_v2  ;;  %v8175_v36 = vld [vmem:[#allocation93_spill] sm:$0xff]  ;;  %v8177_v2 = vld [vmem:[#allocation22_spill] sm:$0xff]  ;;  %v8178_v41 = vld [vmem:[#allocation24_spill] sm:$0xff] }
 0x28a   : > { %v1186_v23 = vmul.f32 %v1185_v27, %v1163_v0  ;;  %1575 = vmatpush.msrb.mxu0 %v5386_v13  ;;  %1535 = vmatpush.msra.mxu2 %v5317_v17  ;;  %v1189_v55 = vsub.f32 1.0, %v1183_v31  ;;  %v1191_v34 = vmul.f32 %v1183_v31, %v8168_v25  ;;  %v8173_v27 = vld [vmem:[#allocation73_spill] sm:$0xff]  ;;  %v8181_v25 = vld [vmem:[#allocation26_spill] sm:$0xff] }
 0x28b   : > { %1556 = vmatpush.msra.mxu3 %v8021_v16 }
 0x28c   : > { %v1187_v28 = vadd.f32 %v1186_v23, %v1083_v5  ;;  %1576 = vmatpush.msrb.mxu0 %v5395_v58  ;;  %1536 = vmatpush.msra.mxu2 %v5328_v39  ;;  %v8174_v5 = vld [vmem:[#allocation102_spill] sm:$0xff] }
 0x28d   : > { %1557 = vmatpush.msra.mxu3 %v8023_v40 }
 0x28e   : > { %4569 = vtanh.f32 %v1187_v28  ;;  %1577 = vmatpush.msrb.mxu0 %v5404_v18  ;;  %1537 = vmatpush.msra.mxu2 %v8104_v7 }
 0x28f   : > { %1558 = vmatpush.msra.mxu3 %v8105_v54 }
 0x290   : > { %1578 = vmatpush.msrb.mxu0 %v8166_v32  ;;  %1538 = vmatpush.msra.mxu2 %v8167_v30 }
 0x291   : > { %1559 = vmatpush.msra.mxu3 %v8169_v48  ;;  %v1452_v48 = vld [vmem:[%s5036_s26 + $0x30] sm:$0x4] }
 0x292   : > { %1579 = vmatpush.msrb.mxu0 %v8170_v47  ;;  %1539 = vmatpush.msra.mxu2 %v8171_v43 }
 0x293   : > { %1560 = vmatpush.msra.mxu3 %v8173_v27 }
 0x294   : > { %v4570_v20 = vpop.eup %4569  ;;  %1580 = vmatpush.msrb.mxu0 %v8174_v5  ;;  %1540 = vmatpush.msra.mxu2 %v8175_v36  ;;  %v8225_v36 = vld [vmem:[#allocation57_spill] sm:$0xff] }
 0x295   : > { %v1190_v44 = vmul.f32 %v4570_v20, %v1189_v55  ;;  %v8179_v55 = vld [vmem:[#allocation81_spill] sm:$0xff] }
 0x297   : > { %v5948_v33 = vadd.f32 %v1191_v34, %v1190_v44  ;;  %v8180_v44 = vld [vmem:[#allocation23_spill] sm:$0xff] }
 0x298   : > { %v8182_v34 = vld [vmem:[#allocation83_spill] sm:$0xff] }
 0x299   : > { %8172 = vst [vmem:[#allocation49_spill] sm:$0xff] %v5948_v33  ;;  %v1194_v0 = vrot.slane %v5948_v33, 1  ;;  %v1195_v60 = vrot.slane %v5948_v33, 2  ;;  %v1196_v21 = vrot.slane %v5948_v33, 3  ;;  %1331 = vmatmul.f32.vlgmr.msrb.gmra.mxu1 %v5948_v33  ;;  %1351 = vmatmul.f32.vlgmr.msrb.gmra.mxu2 %v5948_v33  ;;  %v1197_v23 = vrot.slane %v5948_v33, 4 }
 0x29a   : > { %1208 = vst [vmem:[%s5051_s13 + $0x2] sm:$0x1] %v5948_v33  ;;  %1371 = vmatmul.f32.vlgmr.msrb.gmra.mxu3 %v5948_v33  ;;  %1585 = vmatpush.msrb.mxu1 %v8176_v56  ;;  %v1198_v28 = vrot.slane %v5948_v33, 5  ;;  %v1199_v31 = vrot.slane %v5948_v33, 6  ;;  %v1200_v20 = vrot.slane %v5948_v33, 7 }
 0x29b   : > { %1209 = vst [vmem:[%s5051_s13 + $0x12] sm:$0x1] %v1194_v0  ;;  %1715 = vmatpush.msrb.mxu2 %v8177_v2  ;;  %1735 = vmatpush.msrb.mxu3 %v8178_v41  ;;  %v8183_v0 = vld [vmem:[#allocation27_spill] sm:$0xff]  ;;  %v8184_v2 = vld [vmem:[#allocation29_spill] sm:$0xff] }
 0x29c   : > { %1210 = vst [vmem:[%s5051_s13 + $0x22] sm:$0x1] %v1195_v60  ;;  %1586 = vmatpush.msrb.mxu1 %v8179_v55  ;;  %v8185_v41 = vld [vmem:[#allocation85_spill] sm:$0xff]  ;;  %v8186_v60 = vld [vmem:[#allocation30_spill] sm:$0xff]  ;;  %v8187_v55 = vld [vmem:[#allocation32_spill] sm:$0xff] }
 0x29d   : > { %1211 = vst [vmem:[%s5051_s13 + $0x32] sm:$0x1] %v1196_v21  ;;  %1716 = vmatpush.msrb.mxu2 %v8180_v44  ;;  %1736 = vmatpush.msrb.mxu3 %v8181_v25  ;;  %v8188_v21 = vld [vmem:[#allocation86_spill] sm:$0xff]  ;;  %v8189_v44 = vld [vmem:[#allocation33_spill] sm:$0xff]  ;;  %v1448_v25 = vld [vmem:[%s5036_s26 + $0x10] sm:$0x4] }
 0x29e   : > { %1212 = vst [vmem:[%s5051_s13 + $0x42] sm:$0x1] %v1197_v23  ;;  %1587 = vmatpush.msrb.mxu1 %v8182_v34  ;;  %v8190_v23 = vld [vmem:[#allocation35_spill] sm:$0xff]  ;;  %v8191_v34 = vld [vmem:[#allocation88_spill] sm:$0xff]  ;;  %v1456_v5 = vunpack.c.l.bf16 %v1448_v25  ;;  %v1450_v33 = vld [vmem:[%s5036_s26 + $0x20] sm:$0x4] }
 0x29f   : > { %1213 = vst [vmem:[%s5051_s13 + $0x52] sm:$0x1] %v1198_v28  ;;  %1717 = vmatpush.msrb.mxu2 %v8183_v0  ;;  %1737 = vmatpush.msrb.mxu3 %v8184_v2  ;;  %v8192_v28 = vld [vmem:[#allocation36_spill] sm:$0xff]  ;;  %v8193_v0 = vld [vmem:[#allocation38_spill] sm:$0xff]  ;;  %v1446_v2 = vld [vmem:[%s5036_s26] sm:$0x4]  ;;  %v1458_v32 = vunpack.c.l.bf16 %v1450_v33 }
 0x2a0   : > { %1214 = vst [vmem:[%s5051_s13 + $0x62] sm:$0x1] %v1199_v31  ;;  %1588 = vmatpush.msrb.mxu1 %v8185_v41  ;;  %v8194_v31 = vld [vmem:[#allocation90_spill] sm:$0xff]  ;;  %v8195_v41 = vld [vmem:[#allocation39_spill] sm:$0xff]  ;;  %v1454_v56 = vunpack.c.l.bf16 %v1446_v2  ;;  %v1473_v47 = vrot.slane %v1456_v5, 2 }
 0x2a1   : > { %1215 = vst [vmem:[%s5051_s13 + $0x72] sm:$0x1] %v1200_v20  ;;  %1718 = vmatpush.msrb.mxu2 %v8186_v60  ;;  %1738 = vmatpush.msrb.mxu3 %v8187_v55  ;;  %v8196_v20 = vld [vmem:[#allocation41_spill] sm:$0xff]  ;;  %v8197_v60 = vld [vmem:[#allocation92_spill] sm:$0xff]  ;;  %v8198_v55 = vld [vmem:[#allocation42_spill] sm:$0xff] }
 0x2a2   : > { %1589 = vmatpush.msrb.mxu1 %v8188_v21  ;;  %v8199_v21 = vld [vmem:[#allocation46_spill] sm:$0xff]  ;;  %v1470_v43 = vrot.slane %v1454_v56, 4 }
 0x2a3   : > { %1719 = vmatpush.msrb.mxu2 %v8189_v44  ;;  %1739 = vmatpush.msrb.mxu3 %v8190_v23  ;;  %v8200_v44 = vld [vmem:[#allocation94_spill] sm:$0xff]  ;;  %v8201_v23 = vld [vmem:[#allocation44_spill] sm:$0xff] }
 0x2a4   : > { %1590 = vmatpush.msrb.mxu1 %v8191_v34  ;;  %v8202_v34 = vld [vmem:[#allocation50_spill] sm:$0xff] }
 0x2a5   : > { %1720 = vmatpush.msrb.mxu2 %v8192_v28  ;;  %1740 = vmatpush.msrb.mxu3 %v8193_v0  ;;  %v8203_v28 = vld [vmem:[#allocation95_spill] sm:$0xff]  ;;  %v8204_v0 = vld [vmem:[#allocation48_spill] sm:$0xff] }
 0x2a6   : > { %1591 = vmatpush.msrb.mxu1 %v8194_v31  ;;  %v8205_v31 = vld [vmem:[#allocation51_spill] sm:$0xff] }
 0x2a7   : > { %1721 = vmatpush.msrb.mxu2 %v8195_v41  ;;  %1741 = vmatpush.msrb.mxu3 %v8196_v20  ;;  %v8206_v41 = vld [vmem:[#allocation96_spill] sm:$0xff] }
 0x2a8   : > { %1592 = vmatpush.msrb.mxu1 %v8197_v60  ;;  %v8207_v20 = vld [vmem:[#allocation52_spill] sm:$0xff]  ;;  %v8208_v60 = vld [vmem:[#allocation55_spill] sm:$0xff] }
 0x2a9   : > { %1722 = vmatpush.msrb.mxu2 %v8198_v55  ;;  %1742 = vmatpush.msrb.mxu3 %v8199_v21  ;;  %v8209_v55 = vld [vmem:[#allocation97_spill] sm:$0xff]  ;;  %v8210_v21 = vld [vmem:[#allocation54_spill] sm:$0xff] }
 0x2aa   : > { %1593 = vmatpush.msrb.mxu1 %v8200_v44  ;;  %v8211_v44 = vld [vmem:[#allocation58_spill] sm:$0xff] }
 0x2ab   : > { %1723 = vmatpush.msrb.mxu2 %v8201_v23  ;;  %1743 = vmatpush.msrb.mxu3 %v8202_v34  ;;  %v8212_v23 = vld [vmem:[#allocation99_spill] sm:$0xff] }
 0x2ac   : > { %1594 = vmatpush.msrb.mxu1 %v8203_v28  ;;  %v8213_v28 = vld [vmem:[#allocation60_spill] sm:$0xff] }
 0x2ad   : > { %1724 = vmatpush.msrb.mxu2 %v8204_v0  ;;  %1744 = vmatpush.msrb.mxu3 %v8205_v31  ;;  %v8214_v0 = vld [vmem:[#allocation62_spill] sm:$0xff]  ;;  %v8215_v31 = vld [vmem:[#allocation101_spill] sm:$0xff] }
 0x2ae   : > { %1595 = vmatpush.msrb.mxu1 %v8206_v41  ;;  %v8216_v41 = vld [vmem:[#allocation64_spill] sm:$0xff] }
 0x2af   : > { %1725 = vmatpush.msrb.mxu2 %v8207_v20  ;;  %1745 = vmatpush.msrb.mxu3 %v8208_v60  ;;  %v8217_v60 = vld [vmem:[#allocation66_spill] sm:$0xff]  ;;  %v8222_v20 = vld [vmem:[#allocation72_spill] sm:$0xff] }
 0x2b0   : > { %1596 = vmatpush.msrb.mxu1 %v8209_v55  ;;  %v8218_v55 = vld [vmem:[#allocation103_spill] sm:$0xff] }
 0x2b1   : > { %1726 = vmatpush.msrb.mxu2 %v8210_v21  ;;  %1746 = vmatpush.msrb.mxu3 %v8211_v44  ;;  %v8219_v21 = vld [vmem:[#allocation68_spill] sm:$0xff]  ;;  %v8220_v44 = vld [vmem:[#allocation70_spill] sm:$0xff] }
 0x2b2   : > { %1597 = vmatpush.msrb.mxu1 %v8212_v23  ;;  %v8221_v23 = vld [vmem:[#allocation104_spill] sm:$0xff] }
 0x2b3   : > { %1727 = vmatpush.msrb.mxu2 %v8213_v28  ;;  %1747 = vmatpush.msrb.mxu3 %v8214_v0  ;;  %v8223_v28 = vld [vmem:[#allocation76_spill] sm:$0xff] }
 0x2b4   : > { %1598 = vmatpush.msrb.mxu1 %v8215_v31  ;;  %v8224_v31 = vld [vmem:[#allocation47_spill] sm:$0xff] }
 0x2b5   : > { %1728 = vmatpush.msrb.mxu2 %v8216_v41  ;;  %1748 = vmatpush.msrb.mxu3 %v8217_v60  ;;  %v1447_v60 = vld [vmem:[%s5036_s26 + $0x8] sm:$0x4] }
 0x2b6   : > { %1599 = vmatpush.msrb.mxu1 %v8218_v55 }
 0x2b7   : > { %1729 = vmatpush.msrb.mxu2 %v8219_v21  ;;  %1749 = vmatpush.msrb.mxu3 %v8220_v44  ;;  %v1455_v44 = vunpack.c.l.bf16 %v1447_v60  ;;  %v1453_v60 = vld [vmem:[%s5036_s26 + $0x38] sm:$0x4] }
 0x2b8   : > { %1600 = vmatpush.msrb.mxu1 %v8221_v23 }
 0x2b9   : > { %1730 = vmatpush.msrb.mxu2 %v8222_v20  ;;  %1750 = vmatpush.msrb.mxu3 %v8223_v28  ;;  %v1449_v20 = vld [vmem:[%s5036_s26 + $0x18] sm:$0x4] }
 0x2ba   : > { %v1457_v27 = vunpack.c.l.bf16 %v1449_v20 }
 0x2f7   : > { %v1272_v0 = vpop.f32.mrf.mxu2  ;;  %v1292_v55 = vpop.f32.mrf.mxu3 }
 0x2f8   : > { %v1273_v34 = vadd.f32 %v1272_v0, %v8224_v31  ;;  %v1293_v23 = vadd.f32 %v1292_v55, %v8225_v36  ;;  %v1471_v0 = vrot.slane %v1455_v44, 3  ;;  %v1451_v31 = vld [vmem:[%s5036_s26 + $0x28] sm:$0x4]  ;;  %v1460_v55 = vunpack.c.l.bf16 %v1452_v48 }
 0x2f9   : > { %v1459_v30 = vunpack.c.l.bf16 %v1451_v31 }
 0x2fb   : > { %v1478_v44 = vrot.slane %v1459_v30, 7 }
 0x316   : > { %v1332_v41 = vpop.f32.mrf.mxu1 }
 0x317   : > { %v1375_v21 = vadd.f32 %v1332_v41, %v1273_v34  ;;  %v1472_v41 = vsel %vm541_vm0, %v1471_v0, %v1470_v43  ;;  %v1475_v34 = vrot.slane %v1457_v27, 1 }
 0x318   : > { %v1474_v36 = vsel %vm544_vm1, %v1473_v47, %v1472_v41 }
 0x319   : > { %v4390_v28 = vmul.f32 -1.442695, %v1375_v21  ;;  %v1461_v21 = vunpack.c.l.bf16 %v1453_v60  ;;  %v1476_v56 = vsel %vm547_vm2, %v1475_v34, %v1474_v36  ;;  %v1312_v34 = vpop.f32.mrf.mxu0 }
 0x31a   : > { %v1477_v5 = vsel %vm550_vm3, %v1458_v32, %v1476_v56  ;;  %v1313_v56 = vadd.f32 %v1312_v34, %v5624_v63  ;;  %v8228_v34 = vld [vmem:[#allocation89_spill] sm:$0xff] }
 0x31b   : > { %4571 = vpow2.f32 %v4390_v28  ;;  %v1480_v28 = vrot.slane %v1460_v55, 6  ;;  %v1479_v31 = vsel %vm553_vm4, %v1478_v44, %v1477_v5  ;;  %v1482_v54 = vrot.slane %v1461_v21, 5 }
 0x31c   : > { %v1352_v2 = vpop.f32.mrf.mxu2 }
 0x31d   : > { %v1395_v25 = vadd.f32 %v1352_v2, %v1293_v23  ;;  %v1481_v43 = vsel %vm556_vm5, %v1480_v28, %v1479_v31  ;;  %v1372_v60 = vpop.f32.mrf.mxu3  ;;  %v6069_v28 = vld [vmem:[%s7700_s4] ss:$0 sm:$0xff] }
 0x31e   : > { %v1483_v48 = vsel %vm559_vm6, %v1482_v54, %v1481_v43 }
 0x31f   : > { %v4391_v20 = vmul.f32 -1.442695, %v1395_v25  ;;  %1501 = vmatmul.f32.vlgmr.msra.gmra.mxu0 %v1483_v48  ;;  %1521 = vmatmul.f32.vlgmr.msra.gmra.mxu1 %v1483_v48 }
 0x320   : > { %1541 = vmatmul.f32.vlgmr.msra.gmra.mxu2 %v1483_v48  ;;  %1775 = vmatpush.msra.mxu1 %v5061_v6 }
 0x321   : > { %v4572_v27 = vpop.eup %4571  ;;  %4573 = vpow2.f32 %v4391_v20  ;;  %1795 = vmatpush.msra.mxu2 %v8015_v22  ;;  %1755 = vmatpush.msra.mxu0 %v5138_v45  ;;  %v1415_v20 = vadd.f32 %v6069_v28, %v1372_v60  ;;  %v8229_v60 = vld [vmem:[#allocation69_spill] sm:$0xff] }
 0x322   : > { %v1379_v33 = vadd.f32 1.0, %v4572_v27  ;;  %1776 = vmatpush.msra.mxu1 %v8038_v15 }
 0x323   : > { %1796 = vmatpush.msra.mxu2 %v8018_v53  ;;  %1756 = vmatpush.msra.mxu0 %v5149_v50 }
 0x324   : > { %4575 = vrcp.f32 %v1379_v33  ;;  %1777 = vmatpush.msra.mxu1 %v8041_v37  ;;  %v1391_v23 = vand.u32 2147483648, %v1379_v33  ;;  %v1389_v41 = vand.u32 2147483647, %v1379_v33  ;;  %vm1385_vm14 = vweird.f32 %v1379_v33 }
 0x325   : > { %1797 = vmatpush.msra.mxu2 %v8020_v29  ;;  %1757 = vmatpush.msra.mxu0 %v8001_v62 }
 0x326   : > { %1778 = vmatpush.msra.mxu1 %v8042_v49  ;;  %v1392_v21 = vor.u32 1.1754944e-38, %v1391_v23  ;;  %vm1390_vm7 = vcmp.eq.f32.partialorder %v1389_v41, 8.507059e+37  ;;  %v8226_v23 = vld [vmem:[#allocation65_spill] sm:$0xff]  ;;  %v8227_v41 = vld [vmem:[#allocation98_spill] sm:$0xff] }
 0x327   : > { %v4574_v32 = vpop.eup %4573  ;;  %1798 = vmatpush.msra.mxu2 %v8022_v35  ;;  %1758 = vmatpush.msra.mxu0 %v8004_v10 }
 0x328   : > { %v6044_v54 = vadd.f32 1.0, %v4574_v32  ;;  %1779 = vmatpush.msra.mxu1 %v8043_v19 }
 0x329   : > { %1799 = vmatpush.msra.mxu2 %v8024_v59  ;;  %1759 = vmatpush.msra.mxu0 %v8044_v1 }
 0x32a   : > { %v4576_v30 = vpop.eup %4575  ;;  %4577 = vrcp.f32 %v6044_v54  ;;  %1780 = vmatpush.msra.mxu1 %v8045_v14  ;;  %v1411_v27 = vand.u32 2147483648, %v6044_v54  ;;  %vm1405_vm9 = vweird.f32 %v6044_v54 }
 0x32b   : > { %v1381_v47 = vmul.f32 %v4576_v30, %v1379_v33  ;;  %1800 = vmatpush.msra.mxu2 %v5333_v38  ;;  %1760 = vmatpush.msra.mxu0 %v8046_v46  ;;  %vm1386_vm13 = vweird.f32 %v4576_v30  ;;  %v1409_v33 = vand.u32 2147483647, %v6044_v54 }
 0x32c   : > { %1781 = vmatpush.msra.mxu1 %v8047_v11  ;;  %vm1387_vm15 = vmor %vm1385_vm14, %vm1386_vm13 }
 0x32d   : > { %v1382_v36 = vsub.f32 1.0, %v1381_v47  ;;  %1801 = vmatpush.msra.mxu2 %v5344_v12  ;;  %1761 = vmatpush.msra.mxu0 %v8048_v26  ;;  %v1412_v47 = vor.u32 1.1754944e-38, %v1411_v27  ;;  %vm1410_vm11 = vcmp.eq.f32.partialorder %v1409_v33, 8.507059e+37 }
 0x32e   : > { %1782 = vmatpush.msra.mxu1 %v8049_v3 }
 0x32f   : > { %v1383_v0 = vmul.f32 %v4576_v30, %v1382_v36  ;;  %1802 = vmatpush.msra.mxu2 %v5355_v52  ;;  %1762 = vmatpush.msra.mxu0 %v8013_v57 }
 0x330   : > { %v4578_v2 = vpop.eup %4577  ;;  %1783 = vmatpush.msra.mxu1 %v8050_v4 }
 0x331   : > { %v1401_v55 = vmul.f32 %v4578_v2, %v6044_v54  ;;  %v1384_v25 = vadd.f32 %v4576_v30, %v1383_v0  ;;  %1803 = vmatpush.msra.mxu2 %v5366_v8  ;;  %1763 = vmatpush.msra.mxu0 %v8017_v24  ;;  %vm1406_vm8 = vweird.f32 %v4578_v2 }
 0x332   : > { %1784 = vmatpush.msra.mxu1 %v8016_v51  ;;  %vm1407_vm10 = vmor %vm1405_vm9, %vm1406_vm8 }
 0x333   : > { %v1402_v44 = vsub.f32 1.0, %v1401_v55  ;;  %v1388_v5 = vsel %vm1387_vm15, %v4576_v30, %v1384_v25  ;;  %1804 = vmatpush.msra.mxu2 %v5377_v9  ;;  %1764 = vmatpush.msra.mxu0 %v5307_v42  ;;  %v8230_v25 = vld [vmem:[#allocation49_spill] sm:$0xff] }
 0x334   : > { %v1393_v31 = vsel %vm1390_vm7, %v1392_v21, %v1388_v5  ;;  %1785 = vmatpush.msra.mxu1 %v8051_v61  ;;  %v8233_v5 = vld [vmem:[#allocation73_spill] sm:$0xff] }
 0x335   : > { %v1403_v43 = vmul.f32 %v4578_v2, %v1402_v44  ;;  %v1416_v48 = vmul.f32 %v1415_v20, %v1393_v31  ;;  %1805 = vmatpush.msra.mxu2 %v5386_v13  ;;  %1765 = vmatpush.msra.mxu0 %v5317_v17  ;;  %v8232_v44 = vld [vmem:[#allocation91_spill] sm:$0xff]  ;;  %v8235_v31 = vld [vmem:[#allocation102_spill] sm:$0xff] }
 0x336   : > { %1786 = vmatpush.msra.mxu1 %v8021_v16 }
 0x337   : > { %v1404_v32 = vadd.f32 %v4578_v2, %v1403_v43  ;;  %v1417_v30 = vadd.f32 %v1416_v48, %v1313_v56  ;;  %1806 = vmatpush.msra.mxu2 %v5395_v58  ;;  %1766 = vmatpush.msra.mxu0 %v5328_v39  ;;  %v8231_v56 = vld [vmem:[#allocation100_spill] sm:$0xff]  ;;  %v8236_v43 = vld [vmem:[#allocation93_spill] sm:$0xff] }
 0x338   : > { %1787 = vmatpush.msra.mxu1 %v8023_v40 }
 0x339   : > { %v1408_v36 = vsel %vm1407_vm10, %v4578_v2, %v1404_v32  ;;  %4579 = vtanh.f32 %v1417_v30  ;;  %1807 = vmatpush.msra.mxu2 %v5404_v18  ;;  %1767 = vmatpush.msra.mxu0 %v8104_v7  ;;  %v8237_v30 = vld [vmem:[#allocation78_spill] sm:$0xff] }
 0x33a   : > { %v1413_v54 = vsel %vm1410_vm11, %v1412_v47, %v1408_v36  ;;  %1788 = vmatpush.msra.mxu1 %v8226_v23  ;;  %v8238_v36 = vld [vmem:[#allocation22_spill] sm:$0xff] }
 0x33b   : > { %v1419_v0 = vsub.f32 1.0, %v1413_v54  ;;  %1808 = vmatpush.msra.mxu2 %v8227_v41  ;;  %1768 = vmatpush.msra.mxu0 %v8228_v34  ;;  %v1421_v21 = vmul.f32 %v1413_v54, %v8230_v25  ;;  %v8239_v54 = vld [vmem:[#allocation24_spill] sm:$0xff]  ;;  %v8241_v25 = vld [vmem:[#allocation23_spill] sm:$0xff] }
 0x33c   : > { %1789 = vmatpush.msra.mxu1 %v8229_v60 }
 0x33d   : > { %1809 = vmatpush.msra.mxu2 %v8231_v56  ;;  %1769 = vmatpush.msra.mxu0 %v8232_v44  ;;  %v1679_v44 = vld [vmem:[%s5036_s26 + $0x18] sm:$0x4] }
 0x33e   : > { %1790 = vmatpush.msra.mxu1 %v8233_v5  ;;  %v1687_v60 = vunpack.c.l.bf16 %v1679_v44 }
 0x33f   : > { %v4580_v2 = vpop.eup %4579  ;;  %1810 = vmatpush.msra.mxu2 %v8235_v31  ;;  %1770 = vmatpush.msra.mxu0 %v8236_v43  ;;  %v1676_v43 = vld [vmem:[%s5036_s26] sm:$0x4]  ;;  %v1677_v31 = vld [vmem:[%s5036_s26 + $0x8] sm:$0x4] }
 0x340   : > { %v1420_v55 = vmul.f32 %v4580_v2, %v1419_v0  ;;  %v8240_v2 = vld [vmem:[#allocation81_spill] sm:$0xff]  ;;  %v1684_v5 = vunpack.c.l.bf16 %v1676_v43  ;;  %v1683_v43 = vld [vmem:[%s5036_s26 + $0x38] sm:$0x4] }
 0x341   : > { %v1691_v44 = vunpack.c.l.bf16 %v1683_v43 }
 0x342   : > { %v6098_v20 = vadd.f32 %v1421_v21, %v1420_v55  ;;  %v8242_v21 = vld [vmem:[#allocation26_spill] sm:$0xff] }
 0x344   : > { %8234 = vst [vmem:[#allocation79_spill] sm:$0xff] %v6098_v20  ;;  %v1424_v27 = vrot.slane %v6098_v20, 1  ;;  %v1425_v48 = vrot.slane %v6098_v20, 2  ;;  %v1426_v33 = vrot.slane %v6098_v20, 3  ;;  %1561 = vmatmul.f32.vlgmr.msra.gmra.mxu3 %v6098_v20  ;;  %1581 = vmatmul.f32.vlgmr.msrb.gmra.mxu0 %v6098_v20  ;;  %v1427_v32 = vrot.slane %v6098_v20, 4 }
 0x345   : > { %1438 = vst [vmem:[%s5051_s13 + $0x3] sm:$0x1] %v6098_v20  ;;  %1601 = vmatmul.f32.vlgmr.msrb.gmra.mxu1 %v6098_v20  ;;  %1815 = vmatpush.msra.mxu3 %v8237_v30  ;;  %v1428_v47 = vrot.slane %v6098_v20, 5  ;;  %v1429_v0 = vrot.slane %v6098_v20, 6  ;;  %v1430_v55 = vrot.slane %v6098_v20, 7  ;;  %v8243_v30 = vld [vmem:[#allocation83_spill] sm:$0xff] }
 0x346   : > { %1439 = vst [vmem:[%s5051_s13 + $0x13] sm:$0x1] %v1424_v27  ;;  %1945 = vmatpush.msrb.mxu0 %v8238_v36  ;;  %1965 = vmatpush.msrb.mxu1 %v8239_v54  ;;  %v8244_v27 = vld [vmem:[#allocation27_spill] sm:$0xff]  ;;  %v8245_v36 = vld [vmem:[#allocation29_spill] sm:$0xff] }
 0x347   : > { %1440 = vst [vmem:[%s5051_s13 + $0x23] sm:$0x1] %v1425_v48  ;;  %1816 = vmatpush.msra.mxu3 %v8240_v2  ;;  %v8246_v54 = vld [vmem:[#allocation85_spill] sm:$0xff]  ;;  %v8247_v48 = vld [vmem:[#allocation30_spill] sm:$0xff]  ;;  %v8248_v2 = vld [vmem:[#allocation32_spill] sm:$0xff] }
 0x348   : > { %1441 = vst [vmem:[%s5051_s13 + $0x33] sm:$0x1] %v1426_v33  ;;  %1946 = vmatpush.msrb.mxu0 %v8241_v25  ;;  %1966 = vmatpush.msrb.mxu1 %v8242_v21  ;;  %v8249_v33 = vld [vmem:[#allocation86_spill] sm:$0xff]  ;;  %v8250_v25 = vld [vmem:[#allocation33_spill] sm:$0xff] }
 0x349   : > { %1442 = vst [vmem:[%s5051_s13 + $0x43] sm:$0x1] %v1427_v32  ;;  %1817 = vmatpush.msra.mxu3 %v8243_v30  ;;  %v8251_v32 = vld [vmem:[#allocation35_spill] sm:$0xff]  ;;  %v8252_v30 = vld [vmem:[#allocation88_spill] sm:$0xff] }
 0x34a   : > { %1443 = vst [vmem:[%s5051_s13 + $0x53] sm:$0x1] %v1428_v47  ;;  %1947 = vmatpush.msrb.mxu0 %v8244_v27  ;;  %1967 = vmatpush.msrb.mxu1 %v8245_v36  ;;  %v8253_v47 = vld [vmem:[#allocation36_spill] sm:$0xff]  ;;  %v8254_v27 = vld [vmem:[#allocation38_spill] sm:$0xff]  ;;  %v8286_v36 = vld [vmem:[#allocation47_spill] sm:$0xff] }
 0x34b   : > { %1444 = vst [vmem:[%s5051_s13 + $0x63] sm:$0x1] %v1429_v0  ;;  %1818 = vmatpush.msra.mxu3 %v8246_v54  ;;  %v8255_v0 = vld [vmem:[#allocation90_spill] sm:$0xff]  ;;  %v8256_v54 = vld [vmem:[#allocation39_spill] sm:$0xff] }
 0x34c   : > { %1445 = vst [vmem:[%s5051_s13 + $0x73] sm:$0x1] %v1430_v55  ;;  %1948 = vmatpush.msrb.mxu0 %v8247_v48  ;;  %1968 = vmatpush.msrb.mxu1 %v8248_v2  ;;  %v8257_v55 = vld [vmem:[#allocation41_spill] sm:$0xff]  ;;  %v8258_v48 = vld [vmem:[#allocation92_spill] sm:$0xff]  ;;  %v8259_v2 = vld [vmem:[#allocation42_spill] sm:$0xff] }
 0x34d   : > { %1819 = vmatpush.msra.mxu3 %v8249_v33  ;;  %v8260_v33 = vld [vmem:[#allocation46_spill] sm:$0xff] }
 0x34e   : > { %1949 = vmatpush.msrb.mxu0 %v8250_v25  ;;  %1969 = vmatpush.msrb.mxu1 %v8251_v32  ;;  %v8261_v25 = vld [vmem:[#allocation94_spill] sm:$0xff]  ;;  %v8262_v32 = vld [vmem:[#allocation44_spill] sm:$0xff] }
 0x34f   : > { %1820 = vmatpush.msra.mxu3 %v8252_v30  ;;  %v8263_v30 = vld [vmem:[#allocation50_spill] sm:$0xff] }
 0x350   : > { %1950 = vmatpush.msrb.mxu0 %v8253_v47  ;;  %1970 = vmatpush.msrb.mxu1 %v8254_v27  ;;  %v8264_v47 = vld [vmem:[#allocation95_spill] sm:$0xff]  ;;  %v8265_v27 = vld [vmem:[#allocation48_spill] sm:$0xff] }
 0x351   : > { %1821 = vmatpush.msra.mxu3 %v8255_v0  ;;  %v8266_v0 = vld [vmem:[#allocation51_spill] sm:$0xff] }
 0x352   : > { %1951 = vmatpush.msrb.mxu0 %v8256_v54  ;;  %1971 = vmatpush.msrb.mxu1 %v8257_v55  ;;  %v8267_v54 = vld [vmem:[#allocation96_spill] sm:$0xff] }
 0x353   : > { %1822 = vmatpush.msra.mxu3 %v8258_v48  ;;  %v8268_v55 = vld [vmem:[#allocation52_spill] sm:$0xff]  ;;  %v8269_v48 = vld [vmem:[#allocation55_spill] sm:$0xff] }
 0x354   : > { %1952 = vmatpush.msrb.mxu0 %v8259_v2  ;;  %1972 = vmatpush.msrb.mxu1 %v8260_v33  ;;  %v8270_v2 = vld [vmem:[#allocation97_spill] sm:$0xff]  ;;  %v8271_v33 = vld [vmem:[#allocation54_spill] sm:$0xff] }
 0x355   : > { %1823 = vmatpush.msra.mxu3 %v8261_v25  ;;  %v8272_v25 = vld [vmem:[#allocation58_spill] sm:$0xff] }
 0x356   : > { %1953 = vmatpush.msrb.mxu0 %v8262_v32  ;;  %1973 = vmatpush.msrb.mxu1 %v8263_v30  ;;  %v8273_v32 = vld [vmem:[#allocation99_spill] sm:$0xff]  ;;  %v8274_v30 = vld [vmem:[#allocation60_spill] sm:$0xff] }
 0x357   : > { %1824 = vmatpush.msra.mxu3 %v8264_v47  ;;  %v8275_v47 = vld [vmem:[#allocation62_spill] sm:$0xff] }
 0x358   : > { %1954 = vmatpush.msrb.mxu0 %v8265_v27  ;;  %1974 = vmatpush.msrb.mxu1 %v8266_v0  ;;  %v8276_v27 = vld [vmem:[#allocation101_spill] sm:$0xff]  ;;  %v8277_v0 = vld [vmem:[#allocation64_spill] sm:$0xff] }
 0x359   : > { %1825 = vmatpush.msra.mxu3 %v8267_v54  ;;  %v8278_v54 = vld [vmem:[#allocation66_spill] sm:$0xff] }
 0x35a   : > { %1955 = vmatpush.msrb.mxu0 %v8268_v55  ;;  %1975 = vmatpush.msrb.mxu1 %v8269_v48  ;;  %v8279_v55 = vld [vmem:[#allocation103_spill] sm:$0xff] }
 0x35b   : > { %1826 = vmatpush.msra.mxu3 %v8270_v2  ;;  %v8280_v2 = vld [vmem:[#allocation68_spill] sm:$0xff] }
 0x35c   : > { %1956 = vmatpush.msrb.mxu0 %v8271_v33  ;;  %1976 = vmatpush.msrb.mxu1 %v8272_v25  ;;  %v8281_v33 = vld [vmem:[#allocation70_spill] sm:$0xff]  ;;  %v8282_v25 = vld [vmem:[#allocation104_spill] sm:$0xff] }
 0x35d   : > { %1827 = vmatpush.msra.mxu3 %v8273_v32  ;;  %v8285_v32 = vld [vmem:[#allocation57_spill] sm:$0xff] }
 0x35e   : > { %1957 = vmatpush.msrb.mxu0 %v8274_v30  ;;  %1977 = vmatpush.msrb.mxu1 %v8275_v47  ;;  %v8283_v30 = vld [vmem:[#allocation72_spill] sm:$0xff] }
 0x35f   : > { %1828 = vmatpush.msra.mxu3 %v8276_v27  ;;  %v8284_v47 = vld [vmem:[#allocation76_spill] sm:$0xff] }
 0x360   : > { %1958 = vmatpush.msrb.mxu0 %v8277_v0  ;;  %1978 = vmatpush.msrb.mxu1 %v8278_v54 }
 0x361   : > { %1829 = vmatpush.msra.mxu3 %v8279_v55 }
 0x362   : > { %1959 = vmatpush.msrb.mxu0 %v8280_v2  ;;  %1979 = vmatpush.msrb.mxu1 %v8281_v33 }
 0x363   : > { %1830 = vmatpush.msra.mxu3 %v8282_v25 }
 0x364   : > { %1960 = vmatpush.msrb.mxu0 %v8283_v30  ;;  %1980 = vmatpush.msrb.mxu1 %v8284_v47  ;;  %v1678_v30 = vld [vmem:[%s5036_s26 + $0x10] sm:$0x4]  ;;  %v1685_v47 = vunpack.c.l.bf16 %v1677_v31  ;;  %v1681_v31 = vld [vmem:[%s5036_s26 + $0x28] sm:$0x4] }
 0x365   : > { %v1686_v56 = vunpack.c.l.bf16 %v1678_v30  ;;  %v1689_v41 = vunpack.c.l.bf16 %v1681_v31 }
 0x39c   : > { %v1502_v27 = vpop.f32.mrf.mxu0  ;;  %v1522_v0 = vpop.f32.mrf.mxu1 }
 0x39d   : > { %v1523_v54 = vadd.f32 %v1522_v0, %v8285_v32  ;;  %v1503_v21 = vadd.f32 %v1502_v27, %v8286_v36  ;;  %v1680_v32 = vld [vmem:[%s5036_s26 + $0x20] sm:$0x4]  ;;  %v1682_v36 = vld [vmem:[%s5036_s26 + $0x30] sm:$0x4] }
 0x39e   : > { %v1688_v27 = vunpack.c.l.bf16 %v1680_v32  ;;  %v1690_v34 = vunpack.c.l.bf16 %v1682_v36 }
 0x3a0   : > { %v1710_v32 = vrot.slane %v1690_v34, 7 }
 0x3c1   : > { %v1582_v48 = vpop.f32.mrf.mxu0 }
 0x3c2   : > { %v1625_v55 = vadd.f32 %v1582_v48, %v1523_v54  ;;  %v1700_v54 = vrot.slane %v1684_v5, 5  ;;  %v1701_v48 = vrot.slane %v1685_v47, 4  ;;  %v1712_v47 = vrot.slane %v1691_v44, 6  ;;  %v1542_v44 = vpop.f32.mrf.mxu2 }
 0x3c4   : > { %v4393_v2 = vmul.f32 -1.442695, %v1625_v55  ;;  %v1703_v55 = vrot.slane %v1686_v56, 3  ;;  %v1702_v20 = vsel %vm541_vm0, %v1701_v48, %v1700_v54 }
 0x3c6   : > { %4581 = vpow2.f32 %v4393_v2  ;;  %v1704_v30 = vsel %vm544_vm1, %v1703_v55, %v1702_v20 }
 0x3c7   : > { %v1562_v33 = vpop.f32.mrf.mxu3 }
 0x3c8   : > { %v1605_v25 = vadd.f32 %v1562_v33, %v1503_v21  ;;  %v1705_v21 = vrot.slane %v1687_v60, 2 }
 0x3ca   : > { %v4392_v0 = vmul.f32 -1.442695, %v1605_v25  ;;  %v1707_v25 = vrot.slane %v1688_v27, 1  ;;  %v1706_v5 = vsel %vm547_vm2, %v1705_v21, %v1704_v30 }
 0x3cc   : > { %v4582_v2 = vpop.eup %4581  ;;  %4583 = vpow2.f32 %v4392_v0  ;;  %v1708_v56 = vsel %vm550_vm3, %v1707_v25, %v1706_v5  ;;  %v1602_v25 = vpop.f32.mrf.mxu1 }
 0x3cd   : > { %v6178_v33 = vadd.f32 1.0, %v4582_v2  ;;  %v1709_v60 = vsel %vm553_vm4, %v1689_v41, %v1708_v56 }
 0x3ce   : > { %v1711_v54 = vsel %vm556_vm5, %v1710_v32, %v1709_v60  ;;  %v1645_v32 = vadd.f32 %v6069_v28, %v1602_v25 }
 0x3cf   : > { %4585 = vrcp.f32 %v6178_v33  ;;  %v1713_v36 = vsel %vm559_vm6, %v1712_v47, %v1711_v54  ;;  %v1543_v47 = vadd.f32 %v1542_v44, %v5624_v63  ;;  %vm1635_vm8 = vweird.f32 %v6178_v33  ;;  %v8290_v44 = vld [vmem:[#allocation69_spill] sm:$0xff] }
 0x3d0   : > { %1731 = vmatmul.f32.vlgmr.msrb.gmra.mxu2 %v1713_v36  ;;  %1751 = vmatmul.f32.vlgmr.msrb.gmra.mxu3 %v1713_v36 }
 0x3d1   : > { %1771 = vmatmul.f32.vlgmr.msra.gmra.mxu0 %v1713_v36  ;;  %2005 = vmatpush.msrb.mxu3 %v5061_v6 }
 0x3d2   : > { %v4584_v0 = vpop.eup %4583  ;;  %2025 = vmatpush.msra.mxu0 %v8015_v22  ;;  %1985 = vmatpush.msrb.mxu2 %v5138_v45 }
 0x3d3   : > { %v1609_v48 = vadd.f32 1.0, %v4584_v0  ;;  %2006 = vmatpush.msrb.mxu3 %v8038_v15 }
 0x3d4   : > { %2026 = vmatpush.msra.mxu0 %v8018_v53  ;;  %1986 = vmatpush.msrb.mxu2 %v5149_v50 }
 0x3d5   : > { %4587 = vrcp.f32 %v1609_v48  ;;  %v6190_v20 = vpop.eup %4585  ;;  %2007 = vmatpush.msrb.mxu3 %v8041_v37  ;;  %v1621_v21 = vand.u32 2147483648, %v1609_v48  ;;  %v1619_v43 = vand.u32 2147483647, %v1609_v48  ;;  %vm1615_vm13 = vweird.f32 %v1609_v48 }
 0x3d6   : > { %v1631_v41 = vmul.f32 %v6190_v20, %v6178_v33  ;;  %2027 = vmatpush.msra.mxu0 %v8020_v29  ;;  %1987 = vmatpush.msrb.mxu2 %v8001_v62  ;;  %vm1636_vm7 = vweird.f32 %v6190_v20 }
 0x3d7   : > { %2008 = vmatpush.msrb.mxu3 %v8042_v49  ;;  %v1622_v56 = vor.u32 1.1754944e-38, %v1621_v21  ;;  %vm1620_vm15 = vcmp.eq.f32.partialorder %v1619_v43, 8.507059e+37  ;;  %vm1637_vm9 = vmor %vm1635_vm8, %vm1636_vm7  ;;  %v8287_v21 = vld [vmem:[#allocation98_spill] sm:$0xff] }
 0x3d8   : > { %2028 = vmatpush.msra.mxu0 %v8022_v35  ;;  %1988 = vmatpush.msrb.mxu2 %v8004_v10  ;;  %v1632_v55 = vsub.f32 1.0, %v1631_v41  ;;  %v1639_v41 = vand.u32 2147483647, %v6178_v33 }
 0x3d9   : > { %2009 = vmatpush.msrb.mxu3 %v8043_v19 }
 0x3da   : > { %2029 = vmatpush.msra.mxu0 %v8024_v59  ;;  %1989 = vmatpush.msrb.mxu2 %v8044_v1  ;;  %v1633_v30 = vmul.f32 %v6190_v20, %v1632_v55  ;;  %vm1640_vm10 = vcmp.eq.f32.partialorder %v1639_v41, 8.507059e+37 }
 0x3db   : > { %v4588_v34 = vpop.eup %4587  ;;  %2010 = vmatpush.msrb.mxu3 %v8045_v14 }
 0x3dc   : > { %v1611_v27 = vmul.f32 %v4588_v34, %v1609_v48  ;;  %vm1616_vm12 = vweird.f32 %v4588_v34  ;;  %2030 = vmatpush.msra.mxu0 %v5333_v38  ;;  %1990 = vmatpush.msrb.mxu2 %v8046_v46  ;;  %v1634_v54 = vadd.f32 %v6190_v20, %v1633_v30  ;;  %v1641_v48 = vand.u32 2147483648, %v6178_v33  ;;  %v8289_v30 = vld [vmem:[#allocation79_spill] sm:$0xff] }
 0x3dd   : > { %2011 = vmatpush.msrb.mxu3 %v8047_v11  ;;  %vm1617_vm14 = vmor %vm1615_vm13, %vm1616_vm12 }
 0x3de   : > { %v1612_v2 = vsub.f32 1.0, %v1611_v27  ;;  %2031 = vmatpush.msra.mxu0 %v5344_v12  ;;  %1991 = vmatpush.msrb.mxu2 %v8048_v26  ;;  %v1638_v27 = vsel %vm1637_vm9, %v6190_v20, %v1634_v54  ;;  %v1642_v55 = vor.u32 1.1754944e-38, %v1641_v48 }
 0x3df   : > { %2012 = vmatpush.msrb.mxu3 %v8049_v3 }
 0x3e0   : > { %v1613_v31 = vmul.f32 %v4588_v34, %v1612_v2  ;;  %2032 = vmatpush.msra.mxu0 %v5355_v52  ;;  %1992 = vmatpush.msrb.mxu2 %v8013_v57  ;;  %v1643_v33 = vsel %vm1640_vm10, %v1642_v55, %v1638_v27  ;;  %v8298_v55 = vld [vmem:[#allocation22_spill] sm:$0xff] }
 0x3e1   : > { %2013 = vmatpush.msrb.mxu3 %v8050_v4  ;;  %v1649_v20 = vsub.f32 1.0, %v1643_v33  ;;  %v1651_v25 = vmul.f32 %v1643_v33, %v8289_v30  ;;  %v8299_v33 = vld [vmem:[#allocation24_spill] sm:$0xff]  ;;  %v8301_v30 = vld [vmem:[#allocation23_spill] sm:$0xff] }
 0x3e2   : > { %v1614_v5 = vadd.f32 %v4588_v34, %v1613_v31  ;;  %2033 = vmatpush.msra.mxu0 %v5366_v8  ;;  %1993 = vmatpush.msrb.mxu2 %v8017_v24  ;;  %v8288_v31 = vld [vmem:[#allocation89_spill] sm:$0xff] }
 0x3e3   : > { %2014 = vmatpush.msrb.mxu3 %v8016_v51 }
 0x3e4   : > { %v1618_v60 = vsel %vm1617_vm14, %v4588_v34, %v1614_v5  ;;  %2034 = vmatpush.msra.mxu0 %v5377_v9  ;;  %1994 = vmatpush.msrb.mxu2 %v5307_v42  ;;  %v8291_v5 = vld [vmem:[#allocation100_spill] sm:$0xff] }
 0x3e5   : > { %v1623_v0 = vsel %vm1620_vm15, %v1622_v56, %v1618_v60  ;;  %2015 = vmatpush.msrb.mxu3 %v8051_v61  ;;  %v8292_v56 = vld [vmem:[#allocation91_spill] sm:$0xff]  ;;  %v8295_v60 = vld [vmem:[#allocation102_spill] sm:$0xff] }
 0x3e6   : > { %v1646_v36 = vmul.f32 %v1645_v32, %v1623_v0  ;;  %2035 = vmatpush.msra.mxu0 %v5386_v13  ;;  %1995 = vmatpush.msrb.mxu2 %v5317_v17  ;;  %v8296_v0 = vld [vmem:[#allocation93_spill] sm:$0xff] }
 0x3e7   : > { %2016 = vmatpush.msrb.mxu3 %v8021_v16 }
 0x3e8   : > { %v1647_v34 = vadd.f32 %v1646_v36, %v1543_v47  ;;  %2036 = vmatpush.msra.mxu0 %v5395_v58  ;;  %1996 = vmatpush.msrb.mxu2 %v5328_v39  ;;  %v8294_v47 = vld [vmem:[#allocation73_spill] sm:$0xff] }
 0x3e9   : > { %2017 = vmatpush.msrb.mxu3 %v8023_v40 }
 0x3ea   : > { %4589 = vtanh.f32 %v1647_v34  ;;  %2037 = vmatpush.msra.mxu0 %v5404_v18  ;;  %1997 = vmatpush.msrb.mxu2 %v8104_v7  ;;  %v8297_v34 = vld [vmem:[#allocation78_spill] sm:$0xff] }
 0x3eb   : > { %2018 = vmatpush.msrb.mxu3 %v8226_v23 }
 0x3ec   : > { %2038 = vmatpush.msra.mxu0 %v8287_v21  ;;  %1998 = vmatpush.msrb.mxu2 %v8288_v31 }
 0x3ed   : > { %2019 = vmatpush.msrb.mxu3 %v8290_v44 }
 0x3ee   : > { %2039 = vmatpush.msra.mxu0 %v8291_v5  ;;  %1999 = vmatpush.msrb.mxu2 %v8292_v56  ;;  %v1910_v5 = vld [vmem:[%s5036_s26 + $0x20] sm:$0x8] }
 0x3ef   : > { %2020 = vmatpush.msrb.mxu3 %v8294_v47  ;;  %v1918_v44 = vunpack.c.l.bf16 %v1910_v5 }
 0x3f0   : > { %v4590_v2 = vpop.eup %4589  ;;  %2040 = vmatpush.msra.mxu0 %v8295_v60  ;;  %2000 = vmatpush.msrb.mxu2 %v8296_v0 }
 0x3f1   : > { %v1650_v43 = vmul.f32 %v4590_v2, %v1649_v20  ;;  %v8300_v2 = vld [vmem:[#allocation81_spill] sm:$0xff] }
 0x3f3   : > { %v6248_v32 = vadd.f32 %v1651_v25, %v1650_v43  ;;  %v8302_v25 = vld [vmem:[#allocation26_spill] sm:$0xff] }
 0x3f5   : > { %8293 = vst [vmem:[#allocation77_spill] sm:$0xff] %v6248_v32  ;;  %v1654_v54 = vrot.slane %v6248_v32, 1  ;;  %v1655_v48 = vrot.slane %v6248_v32, 2  ;;  %v1656_v36 = vrot.slane %v6248_v32, 3  ;;  %1791 = vmatmul.f32.vlgmr.msra.gmra.mxu1 %v6248_v32  ;;  %1811 = vmatmul.f32.vlgmr.msra.gmra.mxu2 %v6248_v32  ;;  %v1657_v41 = vrot.slane %v6248_v32, 4 }
 0x3f6   : > { %1668 = vst [vmem:[%s5051_s13 + $0x4] sm:$0x1] %v6248_v32  ;;  %1831 = vmatmul.f32.vlgmr.msra.gmra.mxu3 %v6248_v32  ;;  %2045 = vmatpush.msra.mxu1 %v8297_v34  ;;  %v1658_v27 = vrot.slane %v6248_v32, 5  ;;  %v1659_v20 = vrot.slane %v6248_v32, 6  ;;  %v1660_v43 = vrot.slane %v6248_v32, 7  ;;  %v8303_v34 = vld [vmem:[#allocation83_spill] sm:$0xff] }
 0x3f7   : > { %1669 = vst [vmem:[%s5051_s13 + $0x14] sm:$0x1] %v1654_v54  ;;  %2175 = vmatpush.msra.mxu2 %v8298_v55  ;;  %2195 = vmatpush.msra.mxu3 %v8299_v33  ;;  %v8304_v54 = vld [vmem:[#allocation27_spill] sm:$0xff]  ;;  %v8305_v55 = vld [vmem:[#allocation29_spill] sm:$0xff] }
 0x3f8   : > { %1670 = vst [vmem:[%s5051_s13 + $0x24] sm:$0x1] %v1655_v48  ;;  %2046 = vmatpush.msra.mxu1 %v8300_v2  ;;  %v8306_v33 = vld [vmem:[#allocation85_spill] sm:$0xff]  ;;  %v8307_v48 = vld [vmem:[#allocation30_spill] sm:$0xff]  ;;  %v8308_v2 = vld [vmem:[#allocation32_spill] sm:$0xff] }
 0x3f9   : > { %1671 = vst [vmem:[%s5051_s13 + $0x34] sm:$0x1] %v1656_v36  ;;  %2176 = vmatpush.msra.mxu2 %v8301_v30  ;;  %2196 = vmatpush.msra.mxu3 %v8302_v25  ;;  %v8309_v36 = vld [vmem:[#allocation86_spill] sm:$0xff]  ;;  %v8310_v30 = vld [vmem:[#allocation33_spill] sm:$0xff] }
 0x3fa   : > { %1672 = vst [vmem:[%s5051_s13 + $0x44] sm:$0x1] %v1657_v41  ;;  %2047 = vmatpush.msra.mxu1 %v8303_v34  ;;  %v8311_v41 = vld [vmem:[#allocation35_spill] sm:$0xff]  ;;  %v8312_v34 = vld [vmem:[#allocation88_spill] sm:$0xff] }
 0x3fb   : > { %1673 = vst [vmem:[%s5051_s13 + $0x54] sm:$0x1] %v1658_v27  ;;  %2177 = vmatpush.msra.mxu2 %v8304_v54  ;;  %2197 = vmatpush.msra.mxu3 %v8305_v55  ;;  %v8313_v27 = vld [vmem:[#allocation36_spill] sm:$0xff]  ;;  %v8314_v54 = vld [vmem:[#allocation38_spill] sm:$0xff] }
 0x3fc   : > { %1674 = vst [vmem:[%s5051_s13 + $0x64] sm:$0x1] %v1659_v20  ;;  %2048 = vmatpush.msra.mxu1 %v8306_v33  ;;  %v8315_v20 = vld [vmem:[#allocation90_spill] sm:$0xff]  ;;  %v8316_v33 = vld [vmem:[#allocation39_spill] sm:$0xff] }
 0x3fd   : > { %1675 = vst [vmem:[%s5051_s13 + $0x74] sm:$0x1] %v1660_v43  ;;  %2178 = vmatpush.msra.mxu2 %v8307_v48  ;;  %2198 = vmatpush.msra.mxu3 %v8308_v2  ;;  %v8317_v43 = vld [vmem:[#allocation41_spill] sm:$0xff]  ;;  %v8318_v48 = vld [vmem:[#allocation92_spill] sm:$0xff]  ;;  %v8319_v2 = vld [vmem:[#allocation42_spill] sm:$0xff] }
 0x3fe   : > { %2049 = vmatpush.msra.mxu1 %v8309_v36  ;;  %v8320_v36 = vld [vmem:[#allocation46_spill] sm:$0xff] }
 0x3ff   : > { %2179 = vmatpush.msra.mxu2 %v8310_v30  ;;  %2199 = vmatpush.msra.mxu3 %v8311_v41  ;;  %v8321_v30 = vld [vmem:[#allocation94_spill] sm:$0xff]  ;;  %v8322_v41 = vld [vmem:[#allocation44_spill] sm:$0xff] }
 0x400   : > { %2050 = vmatpush.msra.mxu1 %v8312_v34  ;;  %v8323_v34 = vld [vmem:[#allocation50_spill] sm:$0xff] }
 0x401   : > { %2180 = vmatpush.msra.mxu2 %v8313_v27  ;;  %2200 = vmatpush.msra.mxu3 %v8314_v54  ;;  %v8324_v27 = vld [vmem:[#allocation95_spill] sm:$0xff]  ;;  %v8325_v54 = vld [vmem:[#allocation48_spill] sm:$0xff]  ;;  %v1907_v55 = vld [vmem:[%s5036_s26 + $0x8] sm:$0x8] }
 0x402   : > { %2051 = vmatpush.msra.mxu1 %v8315_v20  ;;  %v8326_v20 = vld [vmem:[#allocation51_spill] sm:$0xff]  ;;  %v1915_v60 = vunpack.c.l.bf16 %v1907_v55 }
 0x403   : > { %2181 = vmatpush.msra.mxu2 %v8316_v33  ;;  %2201 = vmatpush.msra.mxu3 %v8317_v43  ;;  %v8327_v33 = vld [vmem:[#allocation96_spill] sm:$0xff] }
 0x404   : > { %2052 = vmatpush.msra.mxu1 %v8318_v48  ;;  %v8328_v43 = vld [vmem:[#allocation52_spill] sm:$0xff]  ;;  %v8329_v48 = vld [vmem:[#allocation55_spill] sm:$0xff] }
 0x405   : > { %2182 = vmatpush.msra.mxu2 %v8319_v2  ;;  %2202 = vmatpush.msra.mxu3 %v8320_v36  ;;  %v8330_v2 = vld [vmem:[#allocation97_spill] sm:$0xff]  ;;  %v8331_v36 = vld [vmem:[#allocation54_spill] sm:$0xff] }
 0x406   : > { %2053 = vmatpush.msra.mxu1 %v8321_v30  ;;  %v8332_v30 = vld [vmem:[#allocation58_spill] sm:$0xff] }
 0x407   : > { %2183 = vmatpush.msra.mxu2 %v8322_v41  ;;  %2203 = vmatpush.msra.mxu3 %v8323_v34  ;;  %v8333_v41 = vld [vmem:[#allocation99_spill] sm:$0xff] }
 0x408   : > { %2054 = vmatpush.msra.mxu1 %v8324_v27  ;;  %v8334_v27 = vld [vmem:[#allocation60_spill] sm:$0xff] }
 0x409   : > { %2184 = vmatpush.msra.mxu2 %v8325_v54  ;;  %2204 = vmatpush.msra.mxu3 %v8326_v20  ;;  %v8335_v54 = vld [vmem:[#allocation62_spill] sm:$0xff]  ;;  %v8336_v20 = vld [vmem:[#allocation101_spill] sm:$0xff] }
 0x40a   : > { %2055 = vmatpush.msra.mxu1 %v8327_v33  ;;  %v8337_v33 = vld [vmem:[#allocation64_spill] sm:$0xff] }
 0x40b   : > { %2185 = vmatpush.msra.mxu2 %v8328_v43  ;;  %2205 = vmatpush.msra.mxu3 %v8329_v48  ;;  %v8338_v48 = vld [vmem:[#allocation66_spill] sm:$0xff]  ;;  %v8343_v43 = vld [vmem:[#allocation72_spill] sm:$0xff] }
 0x40c   : > { %2056 = vmatpush.msra.mxu1 %v8330_v2  ;;  %v8339_v2 = vld [vmem:[#allocation103_spill] sm:$0xff] }
 0x40d   : > { %2186 = vmatpush.msra.mxu2 %v8331_v36  ;;  %2206 = vmatpush.msra.mxu3 %v8332_v30  ;;  %v8340_v36 = vld [vmem:[#allocation68_spill] sm:$0xff]  ;;  %v8341_v30 = vld [vmem:[#allocation70_spill] sm:$0xff] }
 0x40e   : > { %2057 = vmatpush.msra.mxu1 %v8333_v41  ;;  %v8342_v41 = vld [vmem:[#allocation104_spill] sm:$0xff] }
 0x40f   : > { %2187 = vmatpush.msra.mxu2 %v8334_v27  ;;  %2207 = vmatpush.msra.mxu3 %v8335_v54  ;;  %v8344_v27 = vld [vmem:[#allocation76_spill] sm:$0xff]  ;;  %v8345_v54 = vld [vmem:[#allocation47_spill] sm:$0xff] }
 0x410   : > { %2058 = vmatpush.msra.mxu1 %v8336_v20 }
 0x411   : > { %2188 = vmatpush.msra.mxu2 %v8337_v33  ;;  %2208 = vmatpush.msra.mxu3 %v8338_v48  ;;  %v1906_v48 = vld [vmem:[%s5036_s26] sm:$0x8] }
 0x412   : > { %2059 = vmatpush.msra.mxu1 %v8339_v2  ;;  %v1914_v0 = vunpack.c.l.bf16 %v1906_v48  ;;  %v1913_v48 = vld [vmem:[%s5036_s26 + $0x38] sm:$0x8] }
 0x413   : > { %2189 = vmatpush.msra.mxu2 %v8340_v36  ;;  %2209 = vmatpush.msra.mxu3 %v8341_v30  ;;  %v1908_v36 = vld [vmem:[%s5036_s26 + $0x10] sm:$0x8]  ;;  %v8346_v30 = vld [vmem:[#allocation57_spill] sm:$0xff]  ;;  %v1921_v23 = vunpack.c.l.bf16 %v1913_v48 }
 0x414   : > { %2060 = vmatpush.msra.mxu1 %v8342_v41  ;;  %v1909_v41 = vld [vmem:[%s5036_s26 + $0x18] sm:$0x8]  ;;  %v1930_v32 = vrot.slane %v1914_v0, 6 }
 0x415   : > { %2190 = vmatpush.msra.mxu2 %v8343_v43  ;;  %2210 = vmatpush.msra.mxu3 %v8344_v27  ;;  %v1916_v43 = vunpack.c.l.bf16 %v1908_v36  ;;  %v1917_v27 = vunpack.c.l.bf16 %v1909_v41 }
 0x417   : > { %v1933_v31 = vrot.slane %v1916_v43, 4 }
 0x44e   : > { %v1772_v48 = vpop.f32.mrf.mxu0 }
 0x453   : > { %v1732_v20 = vpop.f32.mrf.mxu2  ;;  %v1752_v2 = vpop.f32.mrf.mxu3 }
 0x454   : > { %v1733_v34 = vadd.f32 %v1732_v20, %v8345_v54  ;;  %v1753_v47 = vadd.f32 %v1752_v2, %v8346_v30  ;;  %v1931_v20 = vrot.slane %v1915_v60, 5  ;;  %v1911_v54 = vld [vmem:[%s5036_s26 + $0x28] sm:$0x8]  ;;  %v1937_v30 = vrot.slane %v1918_v44, 2 }
 0x455   : > { %v1919_v21 = vunpack.c.l.bf16 %v1911_v54  ;;  %v1942_v54 = vrot.slane %v1921_v23, 7 }
 0x457   : > { %v1939_v0 = vrot.slane %v1919_v21, 1 }
 0x472   : > { %v1792_v33 = vpop.f32.mrf.mxu1 }
 0x473   : > { %v1835_v25 = vadd.f32 %v1792_v33, %v1733_v34  ;;  %v1932_v34 = vsel %vm541_vm0, %v1931_v20, %v1930_v32  ;;  %v1935_v33 = vrot.slane %v1917_v27, 3 }
 0x474   : > { %v1934_v2 = vsel %vm544_vm1, %v1933_v31, %v1932_v34 }
 0x475   : > { %v4394_v56 = vmul.f32 -1.442695, %v1835_v25  ;;  %v1912_v25 = vld [vmem:[%s5036_s26 + $0x30] sm:$0x8]  ;;  %v1936_v41 = vsel %vm547_vm2, %v1935_v33, %v1934_v2 }
 0x476   : > { %v1920_v60 = vunpack.c.l.bf16 %v1912_v25  ;;  %v1938_v5 = vsel %vm550_vm3, %v1937_v30, %v1936_v41 }
 0x477   : > { %4591 = vpow2.f32 %v4394_v56  ;;  %v1940_v56 = vsel %vm553_vm4, %v1939_v0, %v1938_v5 }
 0x478   : > { %v1812_v55 = vpop.f32.mrf.mxu2  ;;  %v1941_v32 = vsel %vm556_vm5, %v1920_v60, %v1940_v56  ;;  %v1773_v60 = vadd.f32 %v1772_v48, %v5624_v63 }
 0x479   : > { %v1855_v36 = vadd.f32 %v1812_v55, %v1753_v47  ;;  %v1943_v31 = vsel %vm559_vm6, %v1942_v54, %v1941_v32 }
 0x47a   : > { %1961 = vmatmul.f32.vlgmr.msrb.gmra.mxu0 %v1943_v31  ;;  %1981 = vmatmul.f32.vlgmr.msrb.gmra.mxu1 %v1943_v31 }
 0x47b   : > { %v4395_v43 = vmul.f32 -1.442695, %v1855_v36  ;;  %2001 = vmatmul.f32.vlgmr.msrb.gmra.mxu2 %v1943_v31  ;;  %2235 = vmatpush.msrb.mxu1 %v5061_v6  ;;  %v1832_v36 = vpop.f32.mrf.mxu3 }
 0x47c   : > { %2255 = vmatpush.msrb.mxu2 %v8015_v22  ;;  %2215 = vmatpush.msrb.mxu0 %v5138_v45  ;;  %v1875_v56 = vadd.f32 %v6069_v28, %v1832_v36 }
 0x47d   : > { %v4592_v27 = vpop.eup %4591  ;;  %4593 = vpow2.f32 %v4395_v43  ;;  %2236 = vmatpush.msrb.mxu1 %v8038_v15 }
 0x47e   : > { %v1839_v44 = vadd.f32 1.0, %v4592_v27  ;;  %2256 = vmatpush.msrb.mxu2 %v8018_v53  ;;  %2216 = vmatpush.msrb.mxu0 %v5149_v50 }
 0x47f   : > { %2237 = vmatpush.msrb.mxu1 %v8041_v37 }
 0x480   : > { %4595 = vrcp.f32 %v1839_v44  ;;  %2257 = vmatpush.msrb.mxu2 %v8020_v29  ;;  %2217 = vmatpush.msrb.mxu0 %v8001_v62  ;;  %v1851_v34 = vand.u32 2147483648, %v1839_v44  ;;  %v1849_v55 = vand.u32 2147483647, %v1839_v44  ;;  %vm1845_vm12 = vweird.f32 %v1839_v44 }
 0x481   : > { %2238 = vmatpush.msrb.mxu1 %v8042_v49 }
 0x482   : > { %2258 = vmatpush.msrb.mxu2 %v8022_v35  ;;  %2218 = vmatpush.msrb.mxu0 %v8004_v10  ;;  %v1852_v0 = vor.u32 1.1754944e-38, %v1851_v34  ;;  %vm1850_vm14 = vcmp.eq.f32.partialorder %v1849_v55, 8.507059e+37  ;;  %v8349_v55 = vld [vmem:[#allocation89_spill] sm:$0xff] }
 0x483   : > { %v4594_v23 = vpop.eup %4593  ;;  %2239 = vmatpush.msrb.mxu1 %v8043_v19 }
 0x484   : > { %v1859_v21 = vadd.f32 1.0, %v4594_v23  ;;  %2259 = vmatpush.msrb.mxu2 %v8024_v59  ;;  %2219 = vmatpush.msrb.mxu0 %v8044_v1 }
 0x485   : > { %2240 = vmatpush.msrb.mxu1 %v8045_v14 }
 0x486   : > { %v4596_v47 = vpop.eup %4595  ;;  %4597 = vrcp.f32 %v1859_v21  ;;  %2260 = vmatpush.msrb.mxu2 %v5333_v38  ;;  %2220 = vmatpush.msrb.mxu0 %v8046_v46  ;;  %v1871_v27 = vand.u32 2147483648, %v1859_v21  ;;  %vm1865_vm7 = vweird.f32 %v1859_v21 }
 0x487   : > { %v1841_v30 = vmul.f32 %v4596_v47, %v1839_v44  ;;  %vm1846_vm11 = vweird.f32 %v4596_v47  ;;  %2241 = vmatpush.msrb.mxu1 %v8047_v11  ;;  %v1869_v44 = vand.u32 2147483647, %v1859_v21 }
 0x488   : > { %2261 = vmatpush.msrb.mxu2 %v5344_v12  ;;  %2221 = vmatpush.msrb.mxu0 %v8048_v26  ;;  %vm1847_vm13 = vmor %vm1845_vm12, %vm1846_vm11 }
 0x489   : > { %v1842_v20 = vsub.f32 1.0, %v1841_v30  ;;  %2242 = vmatpush.msrb.mxu1 %v8049_v3  ;;  %vm1870_vm9 = vcmp.eq.f32.partialorder %v1869_v44, 8.507059e+37 }
 0x48a   : > { %2262 = vmatpush.msrb.mxu2 %v5355_v52  ;;  %2222 = vmatpush.msrb.mxu0 %v8013_v57 }
 0x48b   : > { %v1843_v33 = vmul.f32 %v4596_v47, %v1842_v20  ;;  %2243 = vmatpush.msrb.mxu1 %v8050_v4  ;;  %v8347_v20 = vld [vmem:[#allocation65_spill] sm:$0xff] }
 0x48c   : > { %v4598_v2 = vpop.eup %4597  ;;  %2263 = vmatpush.msrb.mxu2 %v5366_v8  ;;  %2223 = vmatpush.msrb.mxu0 %v8017_v24 }
 0x48d   : > { %v1861_v25 = vmul.f32 %v4598_v2, %v1859_v21  ;;  %v1844_v41 = vadd.f32 %v4596_v47, %v1843_v33  ;;  %vm1866_vm15 = vweird.f32 %v4598_v2  ;;  %2244 = vmatpush.msrb.mxu1 %v8016_v51  ;;  %v8348_v33 = vld [vmem:[#allocation98_spill] sm:$0xff] }
 0x48e   : > { %2264 = vmatpush.msrb.mxu2 %v5377_v9  ;;  %2224 = vmatpush.msrb.mxu0 %v5307_v42  ;;  %vm1867_vm8 = vmor %vm1865_vm7, %vm1866_vm15 }
 0x48f   : > { %v1862_v5 = vsub.f32 1.0, %v1861_v25  ;;  %v1848_v43 = vsel %vm1847_vm13, %v4596_v47, %v1844_v41  ;;  %2245 = vmatpush.msrb.mxu1 %v8051_v61  ;;  %v1872_v47 = vor.u32 1.1754944e-38, %v1871_v27  ;;  %v8351_v25 = vld [vmem:[#allocation77_spill] sm:$0xff] }
 0x490   : > { %v1853_v54 = vsel %vm1850_vm14, %v1852_v0, %v1848_v43  ;;  %2265 = vmatpush.msrb.mxu2 %v5386_v13  ;;  %2225 = vmatpush.msrb.mxu0 %v5317_v17  ;;  %v8352_v0 = vld [vmem:[#allocation100_spill] sm:$0xff] }
 0x491   : > { %v1863_v32 = vmul.f32 %v4598_v2, %v1862_v5  ;;  %v1876_v31 = vmul.f32 %v1875_v56, %v1853_v54  ;;  %2246 = vmatpush.msrb.mxu1 %v8021_v16  ;;  %v8354_v5 = vld [vmem:[#allocation73_spill] sm:$0xff]  ;;  %v8356_v56 = vld [vmem:[#allocation102_spill] sm:$0xff] }
 0x492   : > { %2266 = vmatpush.msrb.mxu2 %v5395_v58  ;;  %2226 = vmatpush.msrb.mxu0 %v5328_v39  ;;  %v8357_v54 = vld [vmem:[#allocation93_spill] sm:$0xff] }
 0x493   : > { %v1864_v28 = vadd.f32 %v4598_v2, %v1863_v32  ;;  %v1877_v23 = vadd.f32 %v1876_v31, %v1773_v60  ;;  %2247 = vmatpush.msrb.mxu1 %v8023_v40  ;;  %v8353_v60 = vld [vmem:[#allocation91_spill] sm:$0xff] }
 0x494   : > { %2267 = vmatpush.msrb.mxu2 %v5404_v18  ;;  %2227 = vmatpush.msrb.mxu0 %v8104_v7 }
 0x495   : > { %v1868_v30 = vsel %vm1867_vm8, %v4598_v2, %v1864_v28  ;;  %4599 = vtanh.f32 %v1877_v23  ;;  %2248 = vmatpush.msrb.mxu1 %v8347_v20  ;;  %v8350_v2 = vld [vmem:[#allocation69_spill] sm:$0xff]  ;;  %v8358_v28 = vld [vmem:[#allocation78_spill] sm:$0xff] }
 0x496   : > { %v1873_v21 = vsel %vm1870_vm9, %v1872_v47, %v1868_v30  ;;  %2268 = vmatpush.msrb.mxu2 %v8348_v33  ;;  %2228 = vmatpush.msrb.mxu0 %v8349_v55  ;;  %v8359_v47 = vld [vmem:[#allocation22_spill] sm:$0xff]  ;;  %v8360_v30 = vld [vmem:[#allocation24_spill] sm:$0xff] }
 0x497   : > { %v1879_v34 = vsub.f32 1.0, %v1873_v21  ;;  %2249 = vmatpush.msrb.mxu1 %v8350_v2  ;;  %v1881_v41 = vmul.f32 %v1873_v21, %v8351_v25  ;;  %v8363_v25 = vld [vmem:[#allocation26_spill] sm:$0xff] }
 0x498   : > { %2269 = vmatpush.msrb.mxu2 %v8352_v0  ;;  %2229 = vmatpush.msrb.mxu0 %v8353_v60 }
 0x499   : > { %2250 = vmatpush.msrb.mxu1 %v8354_v5  ;;  %v2139_v5 = vld [vmem:[%s5036_s26 + $0x18] sm:$0x8] }
 0x49a   : > { %2270 = vmatpush.msrb.mxu2 %v8356_v56  ;;  %2230 = vmatpush.msrb.mxu0 %v8357_v54 }
 0x49b   : > { %v4600_v48 = vpop.eup %4599 }
 0x49c   : > { %v1880_v36 = vmul.f32 %v4600_v48, %v1879_v34  ;;  %v8361_v34 = vld [vmem:[#allocation81_spill] sm:$0xff] }
 0x49e   : > { %v6386_v43 = vadd.f32 %v1881_v41, %v1880_v36  ;;  %v8362_v36 = vld [vmem:[#allocation23_spill] sm:$0xff] }
 0x49f   : > { %v8364_v41 = vld [vmem:[#allocation83_spill] sm:$0xff] }
 0x4a0   : > { %8355 = vst [vmem:[#allocation80_spill] sm:$0xff] %v6386_v43  ;;  %v1884_v32 = vrot.slane %v6386_v43, 1  ;;  %v1885_v27 = vrot.slane %v6386_v43, 2  ;;  %v1886_v31 = vrot.slane %v6386_v43, 3  ;;  %2021 = vmatmul.f32.vlgmr.msrb.gmra.mxu3 %v6386_v43  ;;  %2041 = vmatmul.f32.vlgmr.msra.gmra.mxu0 %v6386_v43  ;;  %v1887_v44 = vrot.slane %v6386_v43, 4 }
 0x4a1   : > { %1898 = vst [vmem:[%s5051_s13 + $0x5] sm:$0x1] %v6386_v43  ;;  %2061 = vmatmul.f32.vlgmr.msra.gmra.mxu1 %v6386_v43  ;;  %2275 = vmatpush.msrb.mxu3 %v8358_v28  ;;  %v1888_v23 = vrot.slane %v6386_v43, 5  ;;  %v1889_v21 = vrot.slane %v6386_v43, 6  ;;  %v1890_v48 = vrot.slane %v6386_v43, 7 }
 0x4a2   : > { %1899 = vst [vmem:[%s5051_s13 + $0x15] sm:$0x1] %v1884_v32  ;;  %2405 = vmatpush.msra.mxu0 %v8359_v47  ;;  %2425 = vmatpush.msra.mxu1 %v8360_v30  ;;  %v8365_v32 = vld [vmem:[#allocation27_spill] sm:$0xff]  ;;  %v8366_v47 = vld [vmem:[#allocation29_spill] sm:$0xff] }
 0x4a3   : > { %1900 = vst [vmem:[%s5051_s13 + $0x25] sm:$0x1] %v1885_v27  ;;  %2276 = vmatpush.msrb.mxu3 %v8361_v34  ;;  %v8367_v30 = vld [vmem:[#allocation85_spill] sm:$0xff]  ;;  %v8368_v27 = vld [vmem:[#allocation30_spill] sm:$0xff]  ;;  %v8369_v34 = vld [vmem:[#allocation32_spill] sm:$0xff] }
 0x4a4   : > { %1901 = vst [vmem:[%s5051_s13 + $0x35] sm:$0x1] %v1886_v31  ;;  %2406 = vmatpush.msra.mxu0 %v8362_v36  ;;  %2426 = vmatpush.msra.mxu1 %v8363_v25  ;;  %v8370_v31 = vld [vmem:[#allocation86_spill] sm:$0xff]  ;;  %v8371_v36 = vld [vmem:[#allocation33_spill] sm:$0xff] }
 0x4a5   : > { %1902 = vst [vmem:[%s5051_s13 + $0x45] sm:$0x1] %v1887_v44  ;;  %2277 = vmatpush.msrb.mxu3 %v8364_v41  ;;  %v8372_v44 = vld [vmem:[#allocation35_spill] sm:$0xff]  ;;  %v8373_v41 = vld [vmem:[#allocation88_spill] sm:$0xff]  ;;  %v2136_v28 = vld [vmem:[%s5036_s26] sm:$0x8] }
 0x4a6   : > { %1903 = vst [vmem:[%s5051_s13 + $0x55] sm:$0x1] %v1888_v23  ;;  %2407 = vmatpush.msra.mxu0 %v8365_v32  ;;  %2427 = vmatpush.msra.mxu1 %v8366_v47  ;;  %v8374_v23 = vld [vmem:[#allocation36_spill] sm:$0xff]  ;;  %v8375_v32 = vld [vmem:[#allocation38_spill] sm:$0xff]  ;;  %v8407_v47 = vld [vmem:[#allocation47_spill] sm:$0xff] }
 0x4a7   : > { %1904 = vst [vmem:[%s5051_s13 + $0x65] sm:$0x1] %v1889_v21  ;;  %2278 = vmatpush.msrb.mxu3 %v8367_v30  ;;  %v8376_v21 = vld [vmem:[#allocation90_spill] sm:$0xff]  ;;  %v8377_v30 = vld [vmem:[#allocation39_spill] sm:$0xff] }
 0x4a8   : > { %1905 = vst [vmem:[%s5051_s13 + $0x75] sm:$0x1] %v1890_v48  ;;  %2408 = vmatpush.msra.mxu0 %v8368_v27  ;;  %2428 = vmatpush.msra.mxu1 %v8369_v34  ;;  %v8378_v48 = vld [vmem:[#allocation41_spill] sm:$0xff]  ;;  %v8379_v27 = vld [vmem:[#allocation92_spill] sm:$0xff]  ;;  %v8380_v34 = vld [vmem:[#allocation42_spill] sm:$0xff] }
 0x4a9   : > { %2279 = vmatpush.msrb.mxu3 %v8370_v31  ;;  %v8381_v31 = vld [vmem:[#allocation46_spill] sm:$0xff] }
 0x4aa   : > { %2409 = vmatpush.msra.mxu0 %v8371_v36  ;;  %2429 = vmatpush.msra.mxu1 %v8372_v44  ;;  %v8382_v36 = vld [vmem:[#allocation94_spill] sm:$0xff]  ;;  %v8383_v44 = vld [vmem:[#allocation44_spill] sm:$0xff] }
 0x4ab   : > { %2280 = vmatpush.msrb.mxu3 %v8373_v41  ;;  %v8384_v41 = vld [vmem:[#allocation50_spill] sm:$0xff] }
 0x4ac   : > { %2410 = vmatpush.msra.mxu0 %v8374_v23  ;;  %2430 = vmatpush.msra.mxu1 %v8375_v32  ;;  %v8385_v23 = vld [vmem:[#allocation95_spill] sm:$0xff]  ;;  %v8386_v32 = vld [vmem:[#allocation48_spill] sm:$0xff] }
 0x4ad   : > { %2281 = vmatpush.msrb.mxu3 %v8376_v21  ;;  %v8387_v21 = vld [vmem:[#allocation51_spill] sm:$0xff] }
 0x4ae   : > { %2411 = vmatpush.msra.mxu0 %v8377_v30  ;;  %2431 = vmatpush.msra.mxu1 %v8378_v48  ;;  %v8388_v30 = vld [vmem:[#allocation96_spill] sm:$0xff] }
 0x4af   : > { %2282 = vmatpush.msrb.mxu3 %v8379_v27  ;;  %v8389_v48 = vld [vmem:[#allocation52_spill] sm:$0xff]  ;;  %v8390_v27 = vld [vmem:[#allocation55_spill] sm:$0xff] }
 0x4b0   : > { %2412 = vmatpush.msra.mxu0 %v8380_v34  ;;  %2432 = vmatpush.msra.mxu1 %v8381_v31  ;;  %v8391_v34 = vld [vmem:[#allocation97_spill] sm:$0xff]  ;;  %v8392_v31 = vld [vmem:[#allocation54_spill] sm:$0xff] }
 0x4b1   : > { %2283 = vmatpush.msrb.mxu3 %v8382_v36  ;;  %v8393_v36 = vld [vmem:[#allocation58_spill] sm:$0xff] }
 0x4b2   : > { %2413 = vmatpush.msra.mxu0 %v8383_v44  ;;  %2433 = vmatpush.msra.mxu1 %v8384_v41  ;;  %v8394_v44 = vld [vmem:[#allocation99_spill] sm:$0xff]  ;;  %v8395_v41 = vld [vmem:[#allocation60_spill] sm:$0xff] }
 0x4b3   : > { %2284 = vmatpush.msrb.mxu3 %v8385_v23  ;;  %v8396_v23 = vld [vmem:[#allocation62_spill] sm:$0xff] }
 0x4b4   : > { %2414 = vmatpush.msra.mxu0 %v8386_v32  ;;  %2434 = vmatpush.msra.mxu1 %v8387_v21  ;;  %v8397_v32 = vld [vmem:[#allocation101_spill] sm:$0xff]  ;;  %v8398_v21 = vld [vmem:[#allocation64_spill] sm:$0xff] }
 0x4b5   : > { %2285 = vmatpush.msrb.mxu3 %v8388_v30  ;;  %v8399_v30 = vld [vmem:[#allocation66_spill] sm:$0xff] }
 0x4b6   : > { %2415 = vmatpush.msra.mxu0 %v8389_v48  ;;  %2435 = vmatpush.msra.mxu1 %v8390_v27  ;;  %v8400_v48 = vld [vmem:[#allocation103_spill] sm:$0xff] }
 0x4b7   : > { %2286 = vmatpush.msrb.mxu3 %v8391_v34  ;;  %v8401_v34 = vld [vmem:[#allocation68_spill] sm:$0xff] }
 0x4b8   : > { %2416 = vmatpush.msra.mxu0 %v8392_v31  ;;  %2436 = vmatpush.msra.mxu1 %v8393_v36  ;;  %v8402_v31 = vld [vmem:[#allocation70_spill] sm:$0xff]  ;;  %v8403_v36 = vld [vmem:[#allocation104_spill] sm:$0xff] }
 0x4b9   : > { %2287 = vmatpush.msrb.mxu3 %v8394_v44  ;;  %v8406_v44 = vld [vmem:[#allocation57_spill] sm:$0xff] }
 0x4ba   : > { %2417 = vmatpush.msra.mxu0 %v8395_v41  ;;  %2437 = vmatpush.msra.mxu1 %v8396_v23  ;;  %v8404_v41 = vld [vmem:[#allocation72_spill] sm:$0xff] }
 0x4bb   : > { %2288 = vmatpush.msrb.mxu3 %v8397_v32  ;;  %v8405_v23 = vld [vmem:[#allocation76_spill] sm:$0xff] }
 0x4bc   : > { %2418 = vmatpush.msra.mxu0 %v8398_v21  ;;  %2438 = vmatpush.msra.mxu1 %v8399_v30 }
 0x4bd   : > { %2289 = vmatpush.msrb.mxu3 %v8400_v48 }
 0x4be   : > { %2419 = vmatpush.msra.mxu0 %v8401_v34  ;;  %2439 = vmatpush.msra.mxu1 %v8402_v31 }
 0x4bf   : > { %2290 = vmatpush.msrb.mxu3 %v8403_v36  ;;  %v2137_v36 = vld [vmem:[%s5036_s26 + $0x8] sm:$0x8] }
 0x4c0   : > { %2420 = vmatpush.msra.mxu0 %v8404_v41  ;;  %2440 = vmatpush.msra.mxu1 %v8405_v23  ;;  %v2138_v41 = vld [vmem:[%s5036_s26 + $0x10] sm:$0x8]  ;;  %v2144_v23 = vunpack.c.l.bf16 %v2136_v28  ;;  %v2145_v56 = vunpack.c.l.bf16 %v2137_v36 }
 0x4c1   : > { %v2146_v60 = vunpack.c.l.bf16 %v2138_v41 }
 0x4c2   : > { %v2160_v2 = vrot.slane %v2144_v23, 7  ;;  %v2143_v23 = vld [vmem:[%s5036_s26 + $0x38] sm:$0x8] }
 0x4f7   : > { %v1962_v32 = vpop.f32.mrf.mxu0  ;;  %v1982_v21 = vpop.f32.mrf.mxu1 }
 0x4f8   : > { %v1983_v30 = vadd.f32 %v1982_v21, %v8406_v44  ;;  %v1963_v25 = vadd.f32 %v1962_v32, %v8407_v47  ;;  %v2140_v21 = vld [vmem:[%s5036_s26 + $0x20] sm:$0x8]  ;;  %v2147_v44 = vunpack.c.l.bf16 %v2139_v5  ;;  %v2141_v32 = vld [vmem:[%s5036_s26 + $0x28] sm:$0x8]  ;;  %v2142_v47 = vld [vmem:[%s5036_s26 + $0x30] sm:$0x8] }
 0x4f9   : > { %v2149_v43 = vunpack.c.l.bf16 %v2141_v32  ;;  %v2150_v36 = vunpack.c.l.bf16 %v2142_v47 }
 0x51d   : > { %v2042_v27 = vpop.f32.mrf.mxu0 }
 0x51e   : > { %v2085_v48 = vadd.f32 %v2042_v27, %v1983_v30  ;;  %v2161_v30 = vrot.slane %v2145_v56, 6  ;;  %v2148_v27 = vunpack.c.l.bf16 %v2140_v21  ;;  %v2169_v56 = vrot.slane %v2149_v43, 2 }
 0x51f   : > { %v2171_v21 = vrot.slane %v2150_v36, 1 }
 0x520   : > { %v4397_v34 = vmul.f32 -1.442695, %v2085_v48  ;;  %v2163_v48 = vrot.slane %v2146_v60, 5  ;;  %v2167_v41 = vrot.slane %v2148_v27, 3  ;;  %v2151_v60 = vunpack.c.l.bf16 %v2143_v23  ;;  %v2002_v23 = vpop.f32.mrf.mxu2 }
 0x522   : > { %4601 = vpow2.f32 %v4397_v34 }
 0x523   : > { %v2022_v31 = vpop.f32.mrf.mxu3 }
 0x524   : > { %v2065_v54 = vadd.f32 %v2022_v31, %v1963_v25  ;;  %v2162_v25 = vsel %vm541_vm0, %v2161_v30, %v2160_v2  ;;  %v2165_v31 = vrot.slane %v2147_v44, 4 }
 0x526   : > { %v4396_v0 = vmul.f32 -1.442695, %v2065_v54  ;;  %v2164_v54 = vsel %vm544_vm1, %v2163_v48, %v2162_v25 }
 0x527   : > { %v2166_v5 = vsel %vm547_vm2, %v2165_v31, %v2164_v54 }
 0x528   : > { %v4602_v34 = vpop.eup %4601  ;;  %4603 = vpow2.f32 %v4396_v0  ;;  %v2168_v0 = vsel %vm550_vm3, %v2167_v41, %v2166_v5 }
 0x529   : > { %v6467_v28 = vadd.f32 1.0, %v4602_v34  ;;  %v2170_v32 = vsel %vm553_vm4, %v2169_v56, %v2168_v0  ;;  %v2062_v56 = vpop.f32.mrf.mxu1 }
 0x52a   : > { %v2172_v44 = vsel %vm556_vm5, %v2171_v21, %v2170_v32  ;;  %v6507_v21 = vld [vmem:[%s7700_s4] ss:$0 sm:$0xff] }
 0x52b   : > { %4605 = vrcp.f32 %v6467_v28  ;;  %v2173_v47 = vsel %vm559_vm6, %v2151_v60, %v2172_v44  ;;  %v2105_v32 = vadd.f32 %v6507_v21, %v2062_v56  ;;  %vm2095_vm15 = vweird.f32 %v6467_v28 }
 0x52c   : > { %2191 = vmatmul.f32.vlgmr.msra.gmra.mxu2 %v2173_v47  ;;  %2211 = vmatmul.f32.vlgmr.msra.gmra.mxu3 %v2173_v47 }
 0x52d   : > { %2231 = vmatmul.f32.vlgmr.msrb.gmra.mxu0 %v2173_v47  ;;  %2465 = vmatpush.msra.mxu3 %v5061_v6 }
 0x52e   : > { %v4604_v2 = vpop.eup %4603  ;;  %2485 = vmatpush.msrb.mxu0 %v8015_v22  ;;  %2445 = vmatpush.msra.mxu2 %v5138_v45 }
 0x52f   : > { %v2069_v30 = vadd.f32 1.0, %v4604_v2  ;;  %2466 = vmatpush.msra.mxu3 %v8038_v15  ;;  %v2003_v2 = vadd.f32 %v2002_v23, %v5624_v63  ;;  %v8409_v23 = vld [vmem:[#allocation69_spill] sm:$0xff] }
 0x530   : > { %2486 = vmatpush.msrb.mxu0 %v8018_v53  ;;  %2446 = vmatpush.msra.mxu2 %v5149_v50 }
 0x531   : > { %4607 = vrcp.f32 %v2069_v30  ;;  %v6478_v43 = vpop.eup %4605  ;;  %2467 = vmatpush.msra.mxu3 %v8041_v37  ;;  %v2081_v36 = vand.u32 2147483648, %v2069_v30  ;;  %v2079_v41 = vand.u32 2147483647, %v2069_v30  ;;  %vm2075_vm11 = vweird.f32 %v2069_v30 }
 0x532   : > { %v2091_v27 = vmul.f32 %v6478_v43, %v6467_v28  ;;  %2487 = vmatpush.msrb.mxu0 %v8020_v29  ;;  %2447 = vmatpush.msra.mxu2 %v8001_v62  ;;  %vm2096_vm14 = vweird.f32 %v6478_v43 }
 0x533   : > { %2468 = vmatpush.msra.mxu3 %v8042_v49  ;;  %v2082_v0 = vor.u32 1.1754944e-38, %v2081_v36  ;;  %vm2080_vm13 = vcmp.eq.f32.partialorder %v2079_v41, 8.507059e+37  ;;  %vm2097_vm7 = vmor %vm2095_vm15, %vm2096_vm14 }
 0x534   : > { %2488 = vmatpush.msrb.mxu0 %v8022_v35  ;;  %2448 = vmatpush.msra.mxu2 %v8004_v10  ;;  %v2092_v25 = vsub.f32 1.0, %v2091_v27  ;;  %v2101_v27 = vand.u32 2147483648, %v6467_v28 }
 0x535   : > { %2469 = vmatpush.msra.mxu3 %v8043_v19 }
 0x536   : > { %2489 = vmatpush.msrb.mxu0 %v8024_v59  ;;  %2449 = vmatpush.msra.mxu2 %v8044_v1  ;;  %v2093_v5 = vmul.f32 %v6478_v43, %v2092_v25  ;;  %v2102_v36 = vor.u32 1.1754944e-38, %v2101_v27 }
 0x537   : > { %v4608_v48 = vpop.eup %4607  ;;  %2470 = vmatpush.msra.mxu3 %v8045_v14 }
 0x538   : > { %v2071_v34 = vmul.f32 %v4608_v48, %v2069_v30  ;;  %vm2076_vm10 = vweird.f32 %v4608_v48  ;;  %2490 = vmatpush.msrb.mxu0 %v5333_v38  ;;  %2450 = vmatpush.msra.mxu2 %v8046_v46  ;;  %v2094_v47 = vadd.f32 %v6478_v43, %v2093_v5  ;;  %v8408_v5 = vld [vmem:[#allocation80_spill] sm:$0xff] }
 0x539   : > { %2471 = vmatpush.msra.mxu3 %v8047_v11  ;;  %vm2077_vm12 = vmor %vm2075_vm11, %vm2076_vm10 }
 0x53a   : > { %v2072_v31 = vsub.f32 1.0, %v2071_v34  ;;  %2491 = vmatpush.msrb.mxu0 %v5344_v12  ;;  %2451 = vmatpush.msra.mxu2 %v8048_v26 }
 0x53b   : > { %2472 = vmatpush.msra.mxu3 %v8049_v3 }
 0x53c   : > { %v2073_v54 = vmul.f32 %v4608_v48, %v2072_v31  ;;  %2492 = vmatpush.msrb.mxu0 %v5355_v52  ;;  %2452 = vmatpush.msra.mxu2 %v8013_v57  ;;  %v2098_v31 = vsel %vm2097_vm7, %v6478_v43, %v2094_v47 }
 0x53d   : > { %2473 = vmatpush.msra.mxu3 %v8050_v4 }
 0x53e   : > { %v2074_v60 = vadd.f32 %v4608_v48, %v2073_v54  ;;  %2493 = vmatpush.msrb.mxu0 %v5366_v8  ;;  %2453 = vmatpush.msra.mxu2 %v8017_v24 }
 0x53f   : > { %2474 = vmatpush.msra.mxu3 %v8016_v51 }
 0x540   : > { %v2078_v44 = vsel %vm2077_vm12, %v4608_v48, %v2074_v60  ;;  %v2099_v48 = vand.u32 2147483647, %v6467_v28  ;;  %2494 = vmatpush.msrb.mxu0 %v5377_v9  ;;  %2454 = vmatpush.msra.mxu2 %v5307_v42  ;;  %v8410_v60 = vld [vmem:[#allocation100_spill] sm:$0xff] }
 0x541   : > { %v2083_v30 = vsel %vm2080_vm13, %v2082_v0, %v2078_v44  ;;  %2475 = vmatpush.msra.mxu3 %v8051_v61  ;;  %v8411_v0 = vld [vmem:[#allocation91_spill] sm:$0xff]  ;;  %v8414_v44 = vld [vmem:[#allocation102_spill] sm:$0xff] }
 0x542   : > { %v2106_v34 = vmul.f32 %v2105_v32, %v2083_v30  ;;  %2495 = vmatpush.msrb.mxu0 %v5386_v13  ;;  %2455 = vmatpush.msra.mxu2 %v5317_v17  ;;  %vm2100_vm8 = vcmp.eq.f32.partialorder %v2099_v48, 8.507059e+37  ;;  %v8415_v30 = vld [vmem:[#allocation93_spill] sm:$0xff] }
 0x543   : > { %2476 = vmatpush.msra.mxu3 %v8021_v16  ;;  %v2103_v28 = vsel %vm2100_vm8, %v2102_v36, %v2098_v31  ;;  %v8417_v36 = vld [vmem:[#allocation22_spill] sm:$0xff] }
 0x544   : > { %v2107_v25 = vadd.f32 %v2106_v34, %v2003_v2  ;;  %2496 = vmatpush.msrb.mxu0 %v5395_v58  ;;  %2456 = vmatpush.msra.mxu2 %v5328_v39  ;;  %v2109_v43 = vsub.f32 1.0, %v2103_v28  ;;  %v2111_v56 = vmul.f32 %v2103_v28, %v8408_v5  ;;  %v8413_v2 = vld [vmem:[#allocation73_spill] sm:$0xff]  ;;  %v8418_v28 = vld [vmem:[#allocation24_spill] sm:$0xff]  ;;  %v8420_v5 = vld [vmem:[#allocation23_spill] sm:$0xff] }
 0x545   : > { %2477 = vmatpush.msra.mxu3 %v8023_v40 }
 0x546   : > { %4609 = vtanh.f32 %v2107_v25  ;;  %2497 = vmatpush.msrb.mxu0 %v5404_v18  ;;  %2457 = vmatpush.msra.mxu2 %v8104_v7  ;;  %v8416_v25 = vld [vmem:[#allocation78_spill] sm:$0xff] }
 0x547   : > { %2478 = vmatpush.msra.mxu3 %v8347_v20 }
 0x548   : > { %2498 = vmatpush.msrb.mxu0 %v8348_v33  ;;  %2458 = vmatpush.msra.mxu2 %v8349_v55  ;;  %v2372_v55 = vld [vmem:[%s5036_s26 + $0x34] sm:$0x1] }
 0x549   : > { %2479 = vmatpush.msra.mxu3 %v8409_v23 }
 0x54a   : > { %2499 = vmatpush.msrb.mxu0 %v8410_v60  ;;  %2459 = vmatpush.msra.mxu2 %v8411_v0  ;;  %v2370_v0 = vld [vmem:[%s5036_s26 + $0x24] sm:$0x1] }
 0x54b   : > { %2480 = vmatpush.msra.mxu3 %v8413_v2 }
 0x54c   : > { %v4610_v54 = vpop.eup %4609  ;;  %2500 = vmatpush.msrb.mxu0 %v8414_v44  ;;  %2460 = vmatpush.msra.mxu2 %v8415_v30  ;;  %v8465_v30 = vld [vmem:[#allocation57_spill] sm:$0xff]  ;;  %v2366_v44 = vld [vmem:[%s5036_s26 + $0x4] sm:$0x1] }
 0x54d   : > { %v2110_v41 = vmul.f32 %v4610_v54, %v2109_v43  ;;  %v8419_v54 = vld [vmem:[#allocation81_spill] sm:$0xff] }
 0x54f   : > { %v6541_v32 = vadd.f32 %v2111_v56, %v2110_v41  ;;  %v8421_v56 = vld [vmem:[#allocation26_spill] sm:$0xff] }
 0x551   : > { %8412 = vst [vmem:[#allocation56_spill] sm:$0xff] %v6541_v32  ;;  %v2114_v47 = vrot.slane %v6541_v32, 1  ;;  %v2115_v27 = vrot.slane %v6541_v32, 2  ;;  %v2116_v34 = vrot.slane %v6541_v32, 3  ;;  %2251 = vmatmul.f32.vlgmr.msrb.gmra.mxu1 %v6541_v32  ;;  %2271 = vmatmul.f32.vlgmr.msrb.gmra.mxu2 %v6541_v32  ;;  %v2117_v48 = vrot.slane %v6541_v32, 4 }
 0x552   : > { %2128 = vst [vmem:[%s5051_s13 + $0x6] sm:$0x1] %v6541_v32  ;;  %2291 = vmatmul.f32.vlgmr.msrb.gmra.mxu3 %v6541_v32  ;;  %2505 = vmatpush.msrb.mxu1 %v8416_v25  ;;  %v2118_v31 = vrot.slane %v6541_v32, 5  ;;  %v2119_v43 = vrot.slane %v6541_v32, 6  ;;  %v2120_v41 = vrot.slane %v6541_v32, 7  ;;  %v8422_v25 = vld [vmem:[#allocation83_spill] sm:$0xff] }
 0x553   : > { %2129 = vst [vmem:[%s5051_s13 + $0x16] sm:$0x1] %v2114_v47  ;;  %2635 = vmatpush.msrb.mxu2 %v8417_v36  ;;  %2655 = vmatpush.msrb.mxu3 %v8418_v28  ;;  %v8423_v47 = vld [vmem:[#allocation27_spill] sm:$0xff]  ;;  %v8424_v36 = vld [vmem:[#allocation29_spill] sm:$0xff] }
 0x554   : > { %2130 = vst [vmem:[%s5051_s13 + $0x26] sm:$0x1] %v2115_v27  ;;  %2506 = vmatpush.msrb.mxu1 %v8419_v54  ;;  %v8425_v28 = vld [vmem:[#allocation85_spill] sm:$0xff]  ;;  %v8426_v27 = vld [vmem:[#allocation30_spill] sm:$0xff]  ;;  %v8427_v54 = vld [vmem:[#allocation32_spill] sm:$0xff] }
 0x555   : > { %2131 = vst [vmem:[%s5051_s13 + $0x36] sm:$0x1] %v2116_v34  ;;  %2636 = vmatpush.msrb.mxu2 %v8420_v5  ;;  %2656 = vmatpush.msrb.mxu3 %v8421_v56  ;;  %v8428_v34 = vld [vmem:[#allocation86_spill] sm:$0xff]  ;;  %v8429_v5 = vld [vmem:[#allocation33_spill] sm:$0xff]  ;;  %v2368_v56 = vld [vmem:[%s5036_s26 + $0x14] sm:$0x1] }
 0x556   : > { %2132 = vst [vmem:[%s5051_s13 + $0x46] sm:$0x1] %v2117_v48  ;;  %2507 = vmatpush.msrb.mxu1 %v8422_v25  ;;  %v8430_v48 = vld [vmem:[#allocation35_spill] sm:$0xff]  ;;  %v8431_v25 = vld [vmem:[#allocation88_spill] sm:$0xff]  ;;  %v2376_v2 = vunpack.c.l.bf16 %v2368_v56 }
 0x557   : > { %2133 = vst [vmem:[%s5051_s13 + $0x56] sm:$0x1] %v2118_v31  ;;  %2637 = vmatpush.msrb.mxu2 %v8423_v47  ;;  %2657 = vmatpush.msrb.mxu3 %v8424_v36  ;;  %v8432_v31 = vld [vmem:[#allocation36_spill] sm:$0xff]  ;;  %v8433_v47 = vld [vmem:[#allocation38_spill] sm:$0xff] }
 0x558   : > { %2134 = vst [vmem:[%s5051_s13 + $0x66] sm:$0x1] %v2119_v43  ;;  %2508 = vmatpush.msrb.mxu1 %v8425_v28  ;;  %v8434_v43 = vld [vmem:[#allocation90_spill] sm:$0xff]  ;;  %v8435_v28 = vld [vmem:[#allocation39_spill] sm:$0xff]  ;;  %v2392_v23 = vrot.slane %v2376_v2, 6 }
 0x559   : > { %2135 = vst [vmem:[%s5051_s13 + $0x76] sm:$0x1] %v2120_v41  ;;  %2638 = vmatpush.msrb.mxu2 %v8426_v27  ;;  %2658 = vmatpush.msrb.mxu3 %v8427_v54  ;;  %v8436_v41 = vld [vmem:[#allocation41_spill] sm:$0xff]  ;;  %v8437_v27 = vld [vmem:[#allocation92_spill] sm:$0xff]  ;;  %v8438_v54 = vld [vmem:[#allocation42_spill] sm:$0xff] }
 0x55a   : > { %2509 = vmatpush.msrb.mxu1 %v8428_v34  ;;  %v8439_v34 = vld [vmem:[#allocation46_spill] sm:$0xff] }
 0x55b   : > { %2639 = vmatpush.msrb.mxu2 %v8429_v5  ;;  %2659 = vmatpush.msrb.mxu3 %v8430_v48  ;;  %v8440_v5 = vld [vmem:[#allocation94_spill] sm:$0xff]  ;;  %v8441_v48 = vld [vmem:[#allocation44_spill] sm:$0xff] }
 0x55c   : > { %2510 = vmatpush.msrb.mxu1 %v8431_v25  ;;  %v8442_v25 = vld [vmem:[#allocation50_spill] sm:$0xff] }
 0x55d   : > { %2640 = vmatpush.msrb.mxu2 %v8432_v31  ;;  %2660 = vmatpush.msrb.mxu3 %v8433_v47  ;;  %v8443_v31 = vld [vmem:[#allocation95_spill] sm:$0xff]  ;;  %v8444_v47 = vld [vmem:[#allocation48_spill] sm:$0xff] }
 0x55e   : > { %2511 = vmatpush.msrb.mxu1 %v8434_v43  ;;  %v8445_v43 = vld [vmem:[#allocation51_spill] sm:$0xff] }
 0x55f   : > { %2641 = vmatpush.msrb.mxu2 %v8435_v28  ;;  %2661 = vmatpush.msrb.mxu3 %v8436_v41  ;;  %v8446_v28 = vld [vmem:[#allocation96_spill] sm:$0xff] }
 0x560   : > { %2512 = vmatpush.msrb.mxu1 %v8437_v27  ;;  %v8447_v41 = vld [vmem:[#allocation52_spill] sm:$0xff]  ;;  %v8448_v27 = vld [vmem:[#allocation55_spill] sm:$0xff] }
 0x561   : > { %2642 = vmatpush.msrb.mxu2 %v8438_v54  ;;  %2662 = vmatpush.msrb.mxu3 %v8439_v34  ;;  %v8449_v54 = vld [vmem:[#allocation97_spill] sm:$0xff]  ;;  %v8450_v34 = vld [vmem:[#allocation54_spill] sm:$0xff] }
 0x562   : > { %2513 = vmatpush.msrb.mxu1 %v8440_v5  ;;  %v8451_v5 = vld [vmem:[#allocation58_spill] sm:$0xff] }
 0x563   : > { %2643 = vmatpush.msrb.mxu2 %v8441_v48  ;;  %2663 = vmatpush.msrb.mxu3 %v8442_v25  ;;  %v8452_v48 = vld [vmem:[#allocation99_spill] sm:$0xff] }
 0x564   : > { %2514 = vmatpush.msrb.mxu1 %v8443_v31  ;;  %v8453_v31 = vld [vmem:[#allocation60_spill] sm:$0xff]  ;;  %v2367_v25 = vld [vmem:[%s5036_s26 + $0xc] sm:$0x1] }
 0x565   : > { %2644 = vmatpush.msrb.mxu2 %v8444_v47  ;;  %2664 = vmatpush.msrb.mxu3 %v8445_v43  ;;  %v8454_v47 = vld [vmem:[#allocation62_spill] sm:$0xff]  ;;  %v8455_v43 = vld [vmem:[#allocation101_spill] sm:$0xff] }
 0x566   : > { %2515 = vmatpush.msrb.mxu1 %v8446_v28  ;;  %v8456_v28 = vld [vmem:[#allocation64_spill] sm:$0xff] }
 0x567   : > { %2645 = vmatpush.msrb.mxu2 %v8447_v41  ;;  %2665 = vmatpush.msrb.mxu3 %v8448_v27  ;;  %v8457_v41 = vld [vmem:[#allocation66_spill] sm:$0xff]  ;;  %v8458_v27 = vld [vmem:[#allocation103_spill] sm:$0xff] }
 0x568   : > { %2516 = vmatpush.msrb.mxu1 %v8449_v54  ;;  %v8464_v54 = vld [vmem:[#allocation47_spill] sm:$0xff] }
 0x569   : > { %2646 = vmatpush.msrb.mxu2 %v8450_v34  ;;  %2666 = vmatpush.msrb.mxu3 %v8451_v5  ;;  %v8459_v34 = vld [vmem:[#allocation68_spill] sm:$0xff]  ;;  %v8460_v5 = vld [vmem:[#allocation70_spill] sm:$0xff] }
 0x56a   : > { %2517 = vmatpush.msrb.mxu1 %v8452_v48  ;;  %v8461_v48 = vld [vmem:[#allocation104_spill] sm:$0xff] }
 0x56b   : > { %2647 = vmatpush.msrb.mxu2 %v8453_v31  ;;  %2667 = vmatpush.msrb.mxu3 %v8454_v47  ;;  %v8462_v31 = vld [vmem:[#allocation72_spill] sm:$0xff] }
 0x56c   : > { %2518 = vmatpush.msrb.mxu1 %v8455_v43  ;;  %v8463_v47 = vld [vmem:[#allocation76_spill] sm:$0xff] }
 0x56d   : > { %2648 = vmatpush.msrb.mxu2 %v8456_v28  ;;  %2668 = vmatpush.msrb.mxu3 %v8457_v41 }
 0x56e   : > { %2519 = vmatpush.msrb.mxu1 %v8458_v27 }
 0x56f   : > { %2649 = vmatpush.msrb.mxu2 %v8459_v34  ;;  %2669 = vmatpush.msrb.mxu3 %v8460_v5  ;;  %v2375_v34 = vunpack.c.l.bf16 %v2367_v25 }
 0x570   : > { %2520 = vmatpush.msrb.mxu1 %v8461_v48  ;;  %v2369_v48 = vld [vmem:[%s5036_s26 + $0x1c] sm:$0x1] }
 0x571   : > { %2650 = vmatpush.msrb.mxu2 %v8462_v31  ;;  %2670 = vmatpush.msrb.mxu3 %v8463_v47  ;;  %v2374_v47 = vunpack.c.l.bf16 %v2366_v44  ;;  %v2377_v60 = vunpack.c.l.bf16 %v2369_v48  ;;  %v2390_v32 = vrot.slane %v2375_v34, 7 }
 0x573   : > { %v2394_v25 = vrot.slane %v2377_v60, 5 }
 0x5af   : > { %v2192_v43 = vpop.f32.mrf.mxu2  ;;  %v2212_v36 = vpop.f32.mrf.mxu3 }
 0x5b0   : > { %v2193_v28 = vadd.f32 %v2192_v43, %v8464_v54  ;;  %v2213_v5 = vadd.f32 %v2212_v36, %v8465_v30  ;;  %v2371_v43 = vld [vmem:[%s5036_s26 + $0x2c] sm:$0x1]  ;;  %v2378_v54 = vunpack.c.l.bf16 %v2370_v0  ;;  %v2373_v36 = vld [vmem:[%s5036_s26 + $0x3c] sm:$0x1]  ;;  %v2380_v30 = vunpack.c.l.bf16 %v2372_v55 }
 0x5b1   : > { %v2381_v7 = vunpack.c.l.bf16 %v2373_v36 }
 0x5b2   : > { %v2396_v56 = vrot.slane %v2378_v54, 4  ;;  %v2400_v2 = vrot.slane %v2380_v30, 2 }
 0x5ce   : > { %v2252_v41 = vpop.f32.mrf.mxu1 }
 0x5cf   : > { %v2295_v27 = vadd.f32 %v2252_v41, %v2193_v28  ;;  %v2379_v28 = vunpack.c.l.bf16 %v2371_v43  ;;  %v2391_v41 = vsel %vm541_vm0, %v2390_v32, %v2374_v47  ;;  %v2402_v43 = vrot.slane %v2381_v7, 1 }
 0x5d0   : > { %v2393_v20 = vsel %vm544_vm1, %v2392_v23, %v2391_v41  ;;  %v2232_v41 = vpop.f32.mrf.mxu0 }
 0x5d1   : > { %v4398_v31 = vmul.f32 -1.442695, %v2295_v27  ;;  %v2395_v44 = vsel %vm547_vm2, %v2394_v25, %v2393_v20  ;;  %v2398_v34 = vrot.slane %v2379_v28, 3 }
 0x5d2   : > { %v2397_v0 = vsel %vm550_vm3, %v2396_v56, %v2395_v44 }
 0x5d3   : > { %4611 = vpow2.f32 %v4398_v31  ;;  %v2399_v31 = vsel %vm553_vm4, %v2398_v34, %v2397_v0  ;;  %v2233_v34 = vadd.f32 %v2232_v41, %v5624_v63  ;;  %v8469_v41 = vld [vmem:[#allocation89_spill] sm:$0xff] }
 0x5d4   : > { %v2272_v33 = vpop.f32.mrf.mxu2  ;;  %v2401_v60 = vsel %vm556_vm5, %v2400_v2, %v2399_v31 }
 0x5d5   : > { %v2315_v27 = vadd.f32 %v2272_v33, %v2213_v5  ;;  %v2403_v55 = vsel %vm559_vm6, %v2402_v43, %v2401_v60  ;;  %v2292_v36 = vpop.f32.mrf.mxu3 }
 0x5d6   : > { %2421 = vmatmul.f32.vlgmr.msra.gmra.mxu0 %v2403_v55  ;;  %2441 = vmatmul.f32.vlgmr.msra.gmra.mxu1 %v2403_v55 }
 0x5d7   : > { %v4399_v48 = vmul.f32 -1.442695, %v2315_v27  ;;  %2461 = vmatmul.f32.vlgmr.msra.gmra.mxu2 %v2403_v55  ;;  %2695 = vmatpush.msra.mxu1 %v5061_v6 }
 0x5d8   : > { %2715 = vmatpush.msra.mxu2 %v8015_v22  ;;  %2675 = vmatpush.msra.mxu0 %v5138_v45 }
 0x5d9   : > { %v4612_v32 = vpop.eup %4611  ;;  %4613 = vpow2.f32 %v4399_v48  ;;  %2696 = vmatpush.msra.mxu1 %v8038_v15  ;;  %v2335_v48 = vadd.f32 %v6507_v21, %v2292_v36  ;;  %v8470_v36 = vld [vmem:[#allocation69_spill] sm:$0xff] }
 0x5da   : > { %v2299_v23 = vadd.f32 1.0, %v4612_v32  ;;  %2716 = vmatpush.msra.mxu2 %v8018_v53  ;;  %2676 = vmatpush.msra.mxu0 %v5149_v50 }
 0x5db   : > { %2697 = vmatpush.msra.mxu1 %v8041_v37 }
 0x5dc   : > { %4615 = vrcp.f32 %v2299_v23  ;;  %2717 = vmatpush.msra.mxu2 %v8020_v29  ;;  %2677 = vmatpush.msra.mxu0 %v8001_v62  ;;  %v2311_v5 = vand.u32 2147483648, %v2299_v23  ;;  %v2309_v28 = vand.u32 2147483647, %v2299_v23  ;;  %vm2305_vm10 = vweird.f32 %v2299_v23 }
 0x5dd   : > { %2698 = vmatpush.msra.mxu1 %v8042_v49 }
 0x5de   : > { %2718 = vmatpush.msra.mxu2 %v8022_v35  ;;  %2678 = vmatpush.msra.mxu0 %v8004_v10  ;;  %v2312_v44 = vor.u32 1.1754944e-38, %v2311_v5  ;;  %vm2310_vm12 = vcmp.eq.f32.partialorder %v2309_v28, 8.507059e+37  ;;  %v8467_v5 = vld [vmem:[#allocation65_spill] sm:$0xff]  ;;  %v8468_v28 = vld [vmem:[#allocation98_spill] sm:$0xff] }
 0x5df   : > { %v4614_v7 = vpop.eup %4613  ;;  %2699 = vmatpush.msra.mxu1 %v8043_v19 }
 0x5e0   : > { %v2319_v20 = vadd.f32 1.0, %v4614_v7  ;;  %2719 = vmatpush.msra.mxu2 %v8024_v59  ;;  %2679 = vmatpush.msra.mxu0 %v8044_v1 }
 0x5e1   : > { %2700 = vmatpush.msra.mxu1 %v8045_v14 }
 0x5e2   : > { %v4616_v33 = vpop.eup %4615  ;;  %4617 = vrcp.f32 %v2319_v20  ;;  %2720 = vmatpush.msra.mxu2 %v5333_v38  ;;  %2680 = vmatpush.msra.mxu0 %v8046_v46  ;;  %v2331_v60 = vand.u32 2147483648, %v2319_v20  ;;  %v2329_v55 = vand.u32 2147483647, %v2319_v20  ;;  %vm2325_vm14 = vweird.f32 %v2319_v20 }
 0x5e3   : > { %v2301_v30 = vmul.f32 %v4616_v33, %v2299_v23  ;;  %vm2306_vm9 = vweird.f32 %v4616_v33  ;;  %2701 = vmatpush.msra.mxu1 %v8047_v11 }
 0x5e4   : > { %2721 = vmatpush.msra.mxu2 %v5344_v12  ;;  %2681 = vmatpush.msra.mxu0 %v8048_v26  ;;  %vm2307_vm11 = vmor %vm2305_vm10, %vm2306_vm9  ;;  %vm2330_vm7 = vcmp.eq.f32.partialorder %v2329_v55, 8.507059e+37 }
 0x5e5   : > { %v2302_v54 = vsub.f32 1.0, %v2301_v30  ;;  %2702 = vmatpush.msra.mxu1 %v8049_v3 }
 0x5e6   : > { %2722 = vmatpush.msra.mxu2 %v5355_v52  ;;  %2682 = vmatpush.msra.mxu0 %v8013_v57 }
 0x5e7   : > { %v2303_v47 = vmul.f32 %v4616_v33, %v2302_v54  ;;  %2703 = vmatpush.msra.mxu1 %v8050_v4  ;;  %v8466_v54 = vld [vmem:[#allocation87_spill] sm:$0xff] }
 0x5e8   : > { %v4618_v25 = vpop.eup %4617  ;;  %2723 = vmatpush.msra.mxu2 %v5366_v8  ;;  %2683 = vmatpush.msra.mxu0 %v8017_v24 }
 0x5e9   : > { %v2321_v56 = vmul.f32 %v4618_v25, %v2319_v20  ;;  %v2304_v27 = vadd.f32 %v4616_v33, %v2303_v47  ;;  %vm2326_vm13 = vweird.f32 %v4618_v25  ;;  %2704 = vmatpush.msra.mxu1 %v8016_v51 }
 0x5ea   : > { %2724 = vmatpush.msra.mxu2 %v5377_v9  ;;  %2684 = vmatpush.msra.mxu0 %v5307_v42  ;;  %vm2327_vm15 = vmor %vm2325_vm14, %vm2326_vm13 }
 0x5eb   : > { %v2322_v0 = vsub.f32 1.0, %v2321_v56  ;;  %v2308_v2 = vsel %vm2307_vm11, %v4616_v33, %v2304_v27  ;;  %2705 = vmatpush.msra.mxu1 %v8051_v61  ;;  %v2332_v33 = vor.u32 1.1754944e-38, %v2331_v60  ;;  %v8471_v27 = vld [vmem:[#allocation56_spill] sm:$0xff] }
 0x5ec   : > { %v2313_v31 = vsel %vm2310_vm12, %v2312_v44, %v2308_v2  ;;  %2725 = vmatpush.msra.mxu2 %v5386_v13  ;;  %2685 = vmatpush.msra.mxu0 %v5317_v17  ;;  %v8474_v2 = vld [vmem:[#allocation73_spill] sm:$0xff] }
 0x5ed   : > { %v2323_v43 = vmul.f32 %v4618_v25, %v2322_v0  ;;  %v2336_v32 = vmul.f32 %v2335_v48, %v2313_v31  ;;  %2706 = vmatpush.msra.mxu1 %v8021_v16  ;;  %v8473_v0 = vld [vmem:[#allocation91_spill] sm:$0xff]  ;;  %v8476_v31 = vld [vmem:[#allocation102_spill] sm:$0xff] }
 0x5ee   : > { %2726 = vmatpush.msra.mxu2 %v5395_v58  ;;  %2686 = vmatpush.msra.mxu0 %v5328_v39 }
 0x5ef   : > { %v2324_v23 = vadd.f32 %v4618_v25, %v2323_v43  ;;  %v2337_v7 = vadd.f32 %v2336_v32, %v2233_v34  ;;  %2707 = vmatpush.msra.mxu1 %v8023_v40  ;;  %v8472_v34 = vld [vmem:[#allocation100_spill] sm:$0xff]  ;;  %v8477_v43 = vld [vmem:[#allocation93_spill] sm:$0xff] }
 0x5f0   : > { %2727 = vmatpush.msra.mxu2 %v5404_v18  ;;  %2687 = vmatpush.msra.mxu0 %v8466_v54 }
 0x5f1   : > { %v2328_v30 = vsel %vm2327_vm15, %v4618_v25, %v2324_v23  ;;  %4619 = vtanh.f32 %v2337_v7  ;;  %2708 = vmatpush.msra.mxu1 %v8467_v5  ;;  %v8478_v7 = vld [vmem:[#allocation78_spill] sm:$0xff] }
 0x5f2   : > { %v2333_v20 = vsel %vm2330_vm7, %v2332_v33, %v2328_v30  ;;  %2728 = vmatpush.msra.mxu2 %v8468_v28  ;;  %2688 = vmatpush.msra.mxu0 %v8469_v41  ;;  %v8479_v30 = vld [vmem:[#allocation22_spill] sm:$0xff]  ;;  %v2603_v41 = vld [vmem:[%s5036_s26 + $0x3c] sm:$0x1] }
 0x5f3   : > { %v2339_v47 = vsub.f32 1.0, %v2333_v20  ;;  %2709 = vmatpush.msra.mxu1 %v8470_v36  ;;  %v2341_v44 = vmul.f32 %v2333_v20, %v8471_v27  ;;  %v8480_v20 = vld [vmem:[#allocation24_spill] sm:$0xff]  ;;  %v8482_v27 = vld [vmem:[#allocation23_spill] sm:$0xff]  ;;  %v2600_v36 = vld [vmem:[%s5036_s26 + $0x24] sm:$0x1] }
 0x5f4   : > { %2729 = vmatpush.msra.mxu2 %v8472_v34  ;;  %2689 = vmatpush.msra.mxu0 %v8473_v0 }
 0x5f5   : > { %2710 = vmatpush.msra.mxu1 %v8474_v2  ;;  %v2597_v2 = vld [vmem:[%s5036_s26 + $0xc] sm:$0x1] }
 0x5f6   : > { %2730 = vmatpush.msra.mxu2 %v8476_v31  ;;  %2690 = vmatpush.msra.mxu0 %v8477_v43 }
 0x5f7   : > { %v4620_v25 = vpop.eup %4619 }
 0x5f8   : > { %v2340_v56 = vmul.f32 %v4620_v25, %v2339_v47  ;;  %v8481_v25 = vld [vmem:[#allocation81_spill] sm:$0xff] }
 0x5fa   : > { %v6679_v48 = vadd.f32 %v2341_v44, %v2340_v56  ;;  %v8483_v44 = vld [vmem:[#allocation26_spill] sm:$0xff] }
 0x5fc   : > { %8475 = vst [vmem:[#allocation82_spill] sm:$0xff] %v6679_v48  ;;  %v2344_v60 = vrot.slane %v6679_v48, 1  ;;  %v2345_v32 = vrot.slane %v6679_v48, 2  ;;  %v2346_v55 = vrot.slane %v6679_v48, 3  ;;  %2481 = vmatmul.f32.vlgmr.msra.gmra.mxu3 %v6679_v48  ;;  %2501 = vmatmul.f32.vlgmr.msrb.gmra.mxu0 %v6679_v48  ;;  %v2347_v23 = vrot.slane %v6679_v48, 4 }
 0x5fd   : > { %2358 = vst [vmem:[%s5051_s13 + $0x7] sm:$0x1] %v6679_v48  ;;  %2521 = vmatmul.f32.vlgmr.msrb.gmra.mxu1 %v6679_v48  ;;  %2735 = vmatpush.msra.mxu3 %v8478_v7  ;;  %v2348_v33 = vrot.slane %v6679_v48, 5  ;;  %v2349_v47 = vrot.slane %v6679_v48, 6  ;;  %v2350_v56 = vrot.slane %v6679_v48, 7  ;;  %v8484_v7 = vld [vmem:[#allocation83_spill] sm:$0xff] }
 0x5fe   : > { %2359 = vst [vmem:[%s5051_s13 + $0x17] sm:$0x1] %v2344_v60  ;;  %2865 = vmatpush.msrb.mxu0 %v8479_v30  ;;  %2885 = vmatpush.msrb.mxu1 %v8480_v20  ;;  %v8485_v60 = vld [vmem:[#allocation27_spill] sm:$0xff]  ;;  %v8486_v30 = vld [vmem:[#allocation29_spill] sm:$0xff] }
 0x5ff   : > { %2360 = vst [vmem:[%s5051_s13 + $0x27] sm:$0x1] %v2345_v32  ;;  %2736 = vmatpush.msra.mxu3 %v8481_v25  ;;  %v8487_v20 = vld [vmem:[#allocation85_spill] sm:$0xff]  ;;  %v8488_v32 = vld [vmem:[#allocation30_spill] sm:$0xff]  ;;  %v8489_v25 = vld [vmem:[#allocation32_spill] sm:$0xff] }
 0x600   : > { %2361 = vst [vmem:[%s5051_s13 + $0x37] sm:$0x1] %v2346_v55  ;;  %2866 = vmatpush.msrb.mxu0 %v8482_v27  ;;  %2886 = vmatpush.msrb.mxu1 %v8483_v44  ;;  %v8490_v55 = vld [vmem:[#allocation86_spill] sm:$0xff]  ;;  %v8491_v27 = vld [vmem:[#allocation33_spill] sm:$0xff] }
 0x601   : > { %2362 = vst [vmem:[%s5051_s13 + $0x47] sm:$0x1] %v2347_v23  ;;  %2737 = vmatpush.msra.mxu3 %v8484_v7  ;;  %v8492_v23 = vld [vmem:[#allocation35_spill] sm:$0xff]  ;;  %v8493_v7 = vld [vmem:[#allocation88_spill] sm:$0xff] }
 0x602   : > { %2363 = vst [vmem:[%s5051_s13 + $0x57] sm:$0x1] %v2348_v33  ;;  %2867 = vmatpush.msrb.mxu0 %v8485_v60  ;;  %2887 = vmatpush.msrb.mxu1 %v8486_v30  ;;  %v8494_v33 = vld [vmem:[#allocation36_spill] sm:$0xff]  ;;  %v8495_v60 = vld [vmem:[#allocation38_spill] sm:$0xff]  ;;  %v8527_v30 = vld [vmem:[#allocation47_spill] sm:$0xff] }
 0x603   : > { %2364 = vst [vmem:[%s5051_s13 + $0x67] sm:$0x1] %v2349_v47  ;;  %2738 = vmatpush.msra.mxu3 %v8487_v20  ;;  %v8496_v47 = vld [vmem:[#allocation90_spill] sm:$0xff]  ;;  %v8497_v20 = vld [vmem:[#allocation39_spill] sm:$0xff] }
 0x604   : > { %2365 = vst [vmem:[%s5051_s13 + $0x77] sm:$0x1] %v2350_v56  ;;  %2868 = vmatpush.msrb.mxu0 %v8488_v32  ;;  %2888 = vmatpush.msrb.mxu1 %v8489_v25  ;;  %v8498_v56 = vld [vmem:[#allocation41_spill] sm:$0xff]  ;;  %v8499_v32 = vld [vmem:[#allocation92_spill] sm:$0xff]  ;;  %v8500_v25 = vld [vmem:[#allocation42_spill] sm:$0xff] }
 0x605   : > { %2739 = vmatpush.msra.mxu3 %v8490_v55  ;;  %v8501_v55 = vld [vmem:[#allocation46_spill] sm:$0xff] }
 0x606   : > { %2869 = vmatpush.msrb.mxu0 %v8491_v27  ;;  %2889 = vmatpush.msrb.mxu1 %v8492_v23  ;;  %v8502_v27 = vld [vmem:[#allocation94_spill] sm:$0xff]  ;;  %v8503_v23 = vld [vmem:[#allocation44_spill] sm:$0xff] }
 0x607   : > { %2740 = vmatpush.msra.mxu3 %v8493_v7  ;;  %v8504_v7 = vld [vmem:[#allocation50_spill] sm:$0xff] }
 0x608   : > { %2870 = vmatpush.msrb.mxu0 %v8494_v33  ;;  %2890 = vmatpush.msrb.mxu1 %v8495_v60  ;;  %v8505_v33 = vld [vmem:[#allocation95_spill] sm:$0xff]  ;;  %v8506_v60 = vld [vmem:[#allocation48_spill] sm:$0xff] }
 0x609   : > { %2741 = vmatpush.msra.mxu3 %v8496_v47  ;;  %v8507_v47 = vld [vmem:[#allocation51_spill] sm:$0xff] }
 0x60a   : > { %2871 = vmatpush.msrb.mxu0 %v8497_v20  ;;  %2891 = vmatpush.msrb.mxu1 %v8498_v56  ;;  %v8508_v20 = vld [vmem:[#allocation96_spill] sm:$0xff] }
 0x60b   : > { %2742 = vmatpush.msra.mxu3 %v8499_v32  ;;  %v8509_v56 = vld [vmem:[#allocation52_spill] sm:$0xff]  ;;  %v8510_v32 = vld [vmem:[#allocation55_spill] sm:$0xff] }
 0x60c   : > { %2872 = vmatpush.msrb.mxu0 %v8500_v25  ;;  %2892 = vmatpush.msrb.mxu1 %v8501_v55  ;;  %v8511_v25 = vld [vmem:[#allocation97_spill] sm:$0xff]  ;;  %v8512_v55 = vld [vmem:[#allocation54_spill] sm:$0xff] }
 0x60d   : > { %2743 = vmatpush.msra.mxu3 %v8502_v27  ;;  %v8513_v27 = vld [vmem:[#allocation58_spill] sm:$0xff] }
 0x60e   : > { %2873 = vmatpush.msrb.mxu0 %v8503_v23  ;;  %2893 = vmatpush.msrb.mxu1 %v8504_v7  ;;  %v8514_v23 = vld [vmem:[#allocation99_spill] sm:$0xff]  ;;  %v8515_v7 = vld [vmem:[#allocation60_spill] sm:$0xff] }
 0x60f   : > { %2744 = vmatpush.msra.mxu3 %v8505_v33  ;;  %v8516_v33 = vld [vmem:[#allocation62_spill] sm:$0xff] }
 0x610   : > { %2874 = vmatpush.msrb.mxu0 %v8506_v60  ;;  %2894 = vmatpush.msrb.mxu1 %v8507_v47  ;;  %v8517_v60 = vld [vmem:[#allocation101_spill] sm:$0xff]  ;;  %v8518_v47 = vld [vmem:[#allocation64_spill] sm:$0xff] }
 0x611   : > { %2745 = vmatpush.msra.mxu3 %v8508_v20  ;;  %v8519_v20 = vld [vmem:[#allocation66_spill] sm:$0xff] }
 0x612   : > { %2875 = vmatpush.msrb.mxu0 %v8509_v56  ;;  %2895 = vmatpush.msrb.mxu1 %v8510_v32  ;;  %v8520_v56 = vld [vmem:[#allocation103_spill] sm:$0xff] }
 0x613   : > { %2746 = vmatpush.msra.mxu3 %v8511_v25  ;;  %v8521_v25 = vld [vmem:[#allocation68_spill] sm:$0xff] }
 0x614   : > { %2876 = vmatpush.msrb.mxu0 %v8512_v55  ;;  %2896 = vmatpush.msrb.mxu1 %v8513_v27  ;;  %v8522_v55 = vld [vmem:[#allocation70_spill] sm:$0xff]  ;;  %v8523_v27 = vld [vmem:[#allocation104_spill] sm:$0xff] }
 0x615   : > { %2747 = vmatpush.msra.mxu3 %v8514_v23  ;;  %v8524_v23 = vld [vmem:[#allocation72_spill] sm:$0xff] }
 0x616   : > { %2877 = vmatpush.msrb.mxu0 %v8515_v7  ;;  %2897 = vmatpush.msrb.mxu1 %v8516_v33  ;;  %v8525_v33 = vld [vmem:[#allocation76_spill] sm:$0xff]  ;;  %v8526_v7 = vld [vmem:[#allocation57_spill] sm:$0xff] }
 0x617   : > { %2748 = vmatpush.msra.mxu3 %v8517_v60 }
 0x618   : > { %2878 = vmatpush.msrb.mxu0 %v8518_v47  ;;  %2898 = vmatpush.msrb.mxu1 %v8519_v20 }
 0x619   : > { %2749 = vmatpush.msra.mxu3 %v8520_v56 }
 0x61a   : > { %2879 = vmatpush.msrb.mxu0 %v8521_v25  ;;  %2899 = vmatpush.msrb.mxu1 %v8522_v55 }
 0x61b   : > { %2750 = vmatpush.msra.mxu3 %v8523_v27  ;;  %v2596_v27 = vld [vmem:[%s5036_s26 + $0x4] sm:$0x1] }
 0x61c   : > { %2880 = vmatpush.msrb.mxu0 %v8524_v23  ;;  %2900 = vmatpush.msrb.mxu1 %v8525_v33  ;;  %v2598_v23 = vld [vmem:[%s5036_s26 + $0x14] sm:$0x1]  ;;  %v2604_v31 = vunpack.c.l.bf16 %v2596_v27  ;;  %v2599_v33 = vld [vmem:[%s5036_s26 + $0x1c] sm:$0x1] }
 0x61d   : > { %v2606_v0 = vunpack.c.l.bf16 %v2598_v23 }
 0x653   : > { %v2422_v60 = vpop.f32.mrf.mxu0  ;;  %v2442_v47 = vpop.f32.mrf.mxu1 }
 0x654   : > { %v2443_v20 = vadd.f32 %v2442_v47, %v8526_v7  ;;  %v2423_v25 = vadd.f32 %v2422_v60, %v8527_v30  ;;  %v2605_v47 = vunpack.c.l.bf16 %v2597_v2  ;;  %v2607_v7 = vunpack.c.l.bf16 %v2599_v33 }
 0x655   : > { %v2608_v60 = vunpack.c.l.bf16 %v2600_v36  ;;  %v2622_v30 = vrot.slane %v2606_v0, 7  ;;  %v2611_v2 = vunpack.c.l.bf16 %v2603_v41 }
 0x657   : > { %v2626_v28 = vrot.slane %v2608_v60, 5  ;;  %v2632_v0 = vrot.slane %v2611_v2, 2 }
 0x679   : > { %v2502_v32 = vpop.f32.mrf.mxu0 }
 0x67a   : > { %v2545_v56 = vadd.f32 %v2502_v32, %v2443_v20  ;;  %v2620_v20 = vrot.slane %v2604_v31, 1  ;;  %v2601_v32 = vld [vmem:[%s5036_s26 + $0x2c] sm:$0x1]  ;;  %v2522_v2 = vpop.f32.mrf.mxu1 }
 0x67b   : > { %v2609_v48 = vunpack.c.l.bf16 %v2601_v32 }
 0x67c   : > { %v4401_v44 = vmul.f32 -1.442695, %v2545_v56 }
 0x67d   : > { %v2628_v33 = vrot.slane %v2609_v48, 4 }
 0x67e   : > { %4621 = vpow2.f32 %v4401_v44  ;;  %v2602_v44 = vld [vmem:[%s5036_s26 + $0x34] sm:$0x1] }
 0x67f   : > { %v2482_v55 = vpop.f32.mrf.mxu3  ;;  %v2610_v23 = vunpack.c.l.bf16 %v2602_v44 }
 0x680   : > { %v2525_v43 = vadd.f32 %v2482_v55, %v2423_v25  ;;  %v2621_v25 = vsel %vm541_vm0, %v2605_v47, %v2620_v20  ;;  %v2624_v55 = vrot.slane %v2607_v7, 6 }
 0x682   : > { %v4400_v34 = vmul.f32 -1.442695, %v2525_v43  ;;  %v2623_v43 = vsel %vm544_vm1, %v2622_v30, %v2621_v25 }
 0x683   : > { %v2625_v31 = vsel %vm547_vm2, %v2624_v55, %v2623_v43 }
 0x684   : > { %v4622_v56 = vpop.eup %4621  ;;  %4623 = vpow2.f32 %v4400_v34  ;;  %v2627_v36 = vsel %vm550_vm3, %v2626_v28, %v2625_v31  ;;  %v2630_v34 = vrot.slane %v2610_v23, 3  ;;  %v2462_v31 = vpop.f32.mrf.mxu2 }
 0x685   : > { %v6760_v27 = vadd.f32 1.0, %v4622_v56  ;;  %v2629_v47 = vsel %vm553_vm4, %v2628_v33, %v2627_v36 }
 0x686   : > { %v2631_v20 = vsel %vm556_vm5, %v2630_v34, %v2629_v47  ;;  %v2565_v34 = vadd.f32 %v6507_v21, %v2522_v2  ;;  %v8531_v2 = vld [vmem:[#allocation69_spill] sm:$0xff] }
 0x687   : > { %4625 = vrcp.f32 %v6760_v27  ;;  %v2633_v56 = vsel %vm559_vm6, %v2632_v0, %v2631_v20  ;;  %v2463_v0 = vadd.f32 %v2462_v31, %v5624_v63  ;;  %vm2555_vm13 = vweird.f32 %v6760_v27  ;;  %v8532_v31 = vld [vmem:[#allocation100_spill] sm:$0xff] }
 0x688   : > { %2651 = vmatmul.f32.vlgmr.msrb.gmra.mxu2 %v2633_v56  ;;  %2671 = vmatmul.f32.vlgmr.msrb.gmra.mxu3 %v2633_v56  ;;  %v2559_v21 = vand.u32 2147483647, %v6760_v27 }
 0x689   : > { %2691 = vmatmul.f32.vlgmr.msra.gmra.mxu0 %v2633_v56  ;;  %2925 = vmatpush.msrb.mxu3 %v5061_v6 }
 0x68a   : > { %v4624_v7 = vpop.eup %4623  ;;  %2945 = vmatpush.msra.mxu0 %v8015_v22  ;;  %2905 = vmatpush.msrb.mxu2 %v5138_v45  ;;  %vm2560_vm15 = vcmp.eq.f32.partialorder %v2559_v21, 8.507059e+37  ;;  %v8538_v21 = vld [vmem:[#allocation78_spill] sm:$0xff] }
 0x68b   : > { %v2529_v32 = vadd.f32 1.0, %v4624_v7  ;;  %2926 = vmatpush.msrb.mxu3 %v8038_v15 }
 0x68c   : > { %2946 = vmatpush.msra.mxu0 %v8018_v53  ;;  %2906 = vmatpush.msrb.mxu2 %v5149_v50 }
 0x68d   : > { %4627 = vrcp.f32 %v2529_v32  ;;  %v6771_v41 = vpop.eup %4625  ;;  %2927 = vmatpush.msrb.mxu3 %v8041_v37  ;;  %v2541_v25 = vand.u32 2147483648, %v2529_v32  ;;  %v2539_v23 = vand.u32 2147483647, %v2529_v32  ;;  %vm2535_vm9 = vweird.f32 %v2529_v32 }
 0x68e   : > { %v2551_v28 = vmul.f32 %v6771_v41, %v6760_v27  ;;  %2947 = vmatpush.msra.mxu0 %v8020_v29  ;;  %2907 = vmatpush.msrb.mxu2 %v8001_v62  ;;  %vm2556_vm12 = vweird.f32 %v6771_v41 }
 0x68f   : > { %2928 = vmatpush.msrb.mxu3 %v8042_v49  ;;  %v2542_v36 = vor.u32 1.1754944e-38, %v2541_v25  ;;  %vm2540_vm11 = vcmp.eq.f32.partialorder %v2539_v23, 8.507059e+37  ;;  %vm2557_vm14 = vmor %vm2555_vm13, %vm2556_vm12  ;;  %v8529_v25 = vld [vmem:[#allocation89_spill] sm:$0xff]  ;;  %v8530_v23 = vld [vmem:[#allocation82_spill] sm:$0xff] }
 0x690   : > { %2948 = vmatpush.msra.mxu0 %v8022_v35  ;;  %2908 = vmatpush.msrb.mxu2 %v8004_v10  ;;  %v2552_v60 = vsub.f32 1.0, %v2551_v28 }
 0x691   : > { %2929 = vmatpush.msrb.mxu3 %v8043_v19 }
 0x692   : > { %2949 = vmatpush.msra.mxu0 %v8024_v59  ;;  %2909 = vmatpush.msrb.mxu2 %v8044_v1  ;;  %v2553_v43 = vmul.f32 %v6771_v41, %v2552_v60 }
 0x693   : > { %v4628_v48 = vpop.eup %4627  ;;  %2930 = vmatpush.msrb.mxu3 %v8045_v14 }
 0x694   : > { %v2531_v30 = vmul.f32 %v4628_v48, %v2529_v32  ;;  %vm2536_vm8 = vweird.f32 %v4628_v48  ;;  %2950 = vmatpush.msra.mxu0 %v5333_v38  ;;  %2910 = vmatpush.msrb.mxu2 %v8046_v46  ;;  %v2554_v20 = vadd.f32 %v6771_v41, %v2553_v43  ;;  %v2561_v32 = vand.u32 2147483648, %v6760_v27 }
 0x695   : > { %2931 = vmatpush.msrb.mxu3 %v8047_v11  ;;  %vm2537_vm10 = vmor %vm2535_vm9, %vm2536_vm8 }
 0x696   : > { %v2532_v44 = vsub.f32 1.0, %v2531_v30  ;;  %2951 = vmatpush.msra.mxu0 %v5344_v12  ;;  %2911 = vmatpush.msrb.mxu2 %v8048_v26  ;;  %v2562_v30 = vor.u32 1.1754944e-38, %v2561_v32 }
 0x697   : > { %2932 = vmatpush.msrb.mxu3 %v8049_v3 }
 0x698   : > { %v2533_v55 = vmul.f32 %v4628_v48, %v2532_v44  ;;  %2952 = vmatpush.msra.mxu0 %v5355_v52  ;;  %2912 = vmatpush.msrb.mxu2 %v8013_v57  ;;  %v8528_v44 = vld [vmem:[#allocation98_spill] sm:$0xff] }
 0x699   : > { %2933 = vmatpush.msrb.mxu3 %v8050_v4 }
 0x69a   : > { %v2534_v33 = vadd.f32 %v4628_v48, %v2533_v55  ;;  %2953 = vmatpush.msra.mxu0 %v5366_v8  ;;  %2913 = vmatpush.msrb.mxu2 %v8017_v24 }
 0x69b   : > { %2934 = vmatpush.msrb.mxu3 %v8016_v51 }
 0x69c   : > { %v2538_v47 = vsel %vm2537_vm10, %v4628_v48, %v2534_v33  ;;  %2954 = vmatpush.msra.mxu0 %v5377_v9  ;;  %2914 = vmatpush.msrb.mxu2 %v5307_v42  ;;  %v2558_v48 = vsel %vm2557_vm14, %v6771_v41, %v2554_v20  ;;  %v8533_v33 = vld [vmem:[#allocation91_spill] sm:$0xff] }
 0x69d   : > { %v2543_v7 = vsel %vm2540_vm11, %v2542_v36, %v2538_v47  ;;  %2935 = vmatpush.msrb.mxu3 %v8051_v61  ;;  %v2563_v27 = vsel %vm2560_vm15, %v2562_v30, %v2558_v48  ;;  %v8537_v47 = vld [vmem:[#allocation93_spill] sm:$0xff]  ;;  %v8539_v48 = vld [vmem:[#allocation22_spill] sm:$0xff]  ;;  %v8540_v30 = vld [vmem:[#allocation24_spill] sm:$0xff] }
 0x69e   : > { %v2566_v56 = vmul.f32 %v2565_v34, %v2543_v7  ;;  %2955 = vmatpush.msra.mxu0 %v5386_v13  ;;  %2915 = vmatpush.msrb.mxu2 %v5317_v17  ;;  %v2569_v41 = vsub.f32 1.0, %v2563_v27  ;;  %v2571_v43 = vmul.f32 %v2563_v27, %v8530_v23  ;;  %v8535_v34 = vld [vmem:[#allocation73_spill] sm:$0xff]  ;;  %v8543_v23 = vld [vmem:[#allocation26_spill] sm:$0xff] }
 0x69f   : > { %2936 = vmatpush.msrb.mxu3 %v8021_v16 }
 0x6a0   : > { %v2567_v28 = vadd.f32 %v2566_v56, %v2463_v0  ;;  %2956 = vmatpush.msra.mxu0 %v5395_v58  ;;  %2916 = vmatpush.msrb.mxu2 %v5328_v39  ;;  %v8536_v0 = vld [vmem:[#allocation102_spill] sm:$0xff] }
 0x6a1   : > { %2937 = vmatpush.msrb.mxu3 %v8023_v40 }
 0x6a2   : > { %4629 = vtanh.f32 %v2567_v28  ;;  %2957 = vmatpush.msra.mxu0 %v5404_v18  ;;  %2917 = vmatpush.msrb.mxu2 %v8466_v54 }
 0x6a3   : > { %2938 = vmatpush.msrb.mxu3 %v8467_v5 }
 0x6a4   : > { %2958 = vmatpush.msra.mxu0 %v8528_v44  ;;  %2918 = vmatpush.msrb.mxu2 %v8529_v25 }
 0x6a5   : > { %2939 = vmatpush.msrb.mxu3 %v8531_v2 }
 0x6a6   : > { %2959 = vmatpush.msra.mxu0 %v8532_v31  ;;  %2919 = vmatpush.msrb.mxu2 %v8533_v33  ;;  %v2831_v33 = vld [vmem:[%s5036_s26 + $0x2c] sm:$0x2] }
 0x6a7   : > { %2940 = vmatpush.msrb.mxu3 %v8535_v34  ;;  %v2830_v34 = vld [vmem:[%s5036_s26 + $0x24] sm:$0x2] }
 0x6a8   : > { %v4630_v60 = vpop.eup %4629  ;;  %2960 = vmatpush.msra.mxu0 %v8536_v0  ;;  %2920 = vmatpush.msrb.mxu2 %v8537_v47  ;;  %v8587_v47 = vld [vmem:[#allocation57_spill] sm:$0xff]  ;;  %v2838_v2 = vunpack.c.l.bf16 %v2830_v34 }
 0x6a9   : > { %v2570_v55 = vmul.f32 %v4630_v60, %v2569_v41  ;;  %v8541_v41 = vld [vmem:[#allocation81_spill] sm:$0xff] }
 0x6aa   : > { %v2856_v5 = vrot.slane %v2838_v2, 6 }
 0x6ab   : > { %v6829_v36 = vadd.f32 %v2571_v43, %v2570_v55  ;;  %v8542_v55 = vld [vmem:[#allocation23_spill] sm:$0xff] }
 0x6ac   : > { %v8544_v43 = vld [vmem:[#allocation83_spill] sm:$0xff] }
 0x6ad   : > { %8534 = vst [vmem:[#allocation61_spill] sm:$0xff] %v6829_v36  ;;  %v2574_v7 = vrot.slane %v6829_v36, 1  ;;  %v2575_v20 = vrot.slane %v6829_v36, 2  ;;  %v2576_v32 = vrot.slane %v6829_v36, 3  ;;  %2711 = vmatmul.f32.vlgmr.msra.gmra.mxu1 %v6829_v36  ;;  %2731 = vmatmul.f32.vlgmr.msra.gmra.mxu2 %v6829_v36  ;;  %v2577_v56 = vrot.slane %v6829_v36, 4 }
 0x6ae   : > { %2588 = vst [vmem:[%s5051_s13 + $0x8] sm:$0x1] %v6829_v36  ;;  %2751 = vmatmul.f32.vlgmr.msra.gmra.mxu3 %v6829_v36  ;;  %2965 = vmatpush.msra.mxu1 %v8538_v21  ;;  %v2578_v28 = vrot.slane %v6829_v36, 5  ;;  %v2579_v27 = vrot.slane %v6829_v36, 6  ;;  %v2580_v60 = vrot.slane %v6829_v36, 7 }
 0x6af   : > { %2589 = vst [vmem:[%s5051_s13 + $0x18] sm:$0x1] %v2574_v7  ;;  %3095 = vmatpush.msra.mxu2 %v8539_v48  ;;  %3115 = vmatpush.msra.mxu3 %v8540_v30  ;;  %v8545_v7 = vld [vmem:[#allocation27_spill] sm:$0xff]  ;;  %v8546_v48 = vld [vmem:[#allocation29_spill] sm:$0xff]  ;;  %v2832_v36 = vld [vmem:[%s5036_s26 + $0x34] sm:$0x2] }
 0x6b0   : > { %2590 = vst [vmem:[%s5051_s13 + $0x28] sm:$0x1] %v2575_v20  ;;  %2966 = vmatpush.msra.mxu1 %v8541_v41  ;;  %v8547_v30 = vld [vmem:[#allocation85_spill] sm:$0xff]  ;;  %v8548_v20 = vld [vmem:[#allocation30_spill] sm:$0xff]  ;;  %v8549_v41 = vld [vmem:[#allocation32_spill] sm:$0xff]  ;;  %v2840_v25 = vunpack.c.l.bf16 %v2832_v36 }
 0x6b1   : > { %2591 = vst [vmem:[%s5051_s13 + $0x38] sm:$0x1] %v2576_v32  ;;  %3096 = vmatpush.msra.mxu2 %v8542_v55  ;;  %3116 = vmatpush.msra.mxu3 %v8543_v23  ;;  %v8550_v32 = vld [vmem:[#allocation86_spill] sm:$0xff]  ;;  %v8551_v55 = vld [vmem:[#allocation33_spill] sm:$0xff] }
 0x6b2   : > { %2592 = vst [vmem:[%s5051_s13 + $0x48] sm:$0x1] %v2577_v56  ;;  %2967 = vmatpush.msra.mxu1 %v8544_v43  ;;  %v8552_v56 = vld [vmem:[#allocation35_spill] sm:$0xff]  ;;  %v8553_v43 = vld [vmem:[#allocation88_spill] sm:$0xff]  ;;  %v2829_v21 = vld [vmem:[%s5036_s26 + $0x1c] sm:$0x2] }
 0x6b3   : > { %2593 = vst [vmem:[%s5051_s13 + $0x58] sm:$0x1] %v2578_v28  ;;  %3097 = vmatpush.msra.mxu2 %v8545_v7  ;;  %3117 = vmatpush.msra.mxu3 %v8546_v48  ;;  %v8554_v28 = vld [vmem:[#allocation36_spill] sm:$0xff]  ;;  %v8555_v7 = vld [vmem:[#allocation38_spill] sm:$0xff]  ;;  %v2827_v48 = vld [vmem:[%s5036_s26 + $0xc] sm:$0x2] }
 0x6b4   : > { %2594 = vst [vmem:[%s5051_s13 + $0x68] sm:$0x1] %v2579_v27  ;;  %2968 = vmatpush.msra.mxu1 %v8547_v30  ;;  %v8556_v27 = vld [vmem:[#allocation90_spill] sm:$0xff]  ;;  %v8557_v30 = vld [vmem:[#allocation39_spill] sm:$0xff]  ;;  %v2835_v23 = vunpack.c.l.bf16 %v2827_v48  ;;  %v2833_v48 = vld [vmem:[%s5036_s26 + $0x3c] sm:$0x2] }
 0x6b5   : > { %2595 = vst [vmem:[%s5051_s13 + $0x78] sm:$0x1] %v2580_v60  ;;  %3098 = vmatpush.msra.mxu2 %v8548_v20  ;;  %3118 = vmatpush.msra.mxu3 %v8549_v41  ;;  %v8558_v60 = vld [vmem:[#allocation41_spill] sm:$0xff]  ;;  %v8559_v20 = vld [vmem:[#allocation92_spill] sm:$0xff]  ;;  %v8560_v41 = vld [vmem:[#allocation42_spill] sm:$0xff]  ;;  %v2860_v34 = vrot.slane %v2840_v25, 4 }
 0x6b6   : > { %2969 = vmatpush.msra.mxu1 %v8550_v32  ;;  %v8561_v32 = vld [vmem:[#allocation46_spill] sm:$0xff] }
 0x6b7   : > { %3099 = vmatpush.msra.mxu2 %v8551_v55  ;;  %3119 = vmatpush.msra.mxu3 %v8552_v56  ;;  %v8562_v55 = vld [vmem:[#allocation94_spill] sm:$0xff]  ;;  %v8563_v56 = vld [vmem:[#allocation44_spill] sm:$0xff] }
 0x6b8   : > { %2970 = vmatpush.msra.mxu1 %v8553_v43  ;;  %v8564_v43 = vld [vmem:[#allocation50_spill] sm:$0xff] }
 0x6b9   : > { %3100 = vmatpush.msra.mxu2 %v8554_v28  ;;  %3120 = vmatpush.msra.mxu3 %v8555_v7  ;;  %v8565_v28 = vld [vmem:[#allocation95_spill] sm:$0xff]  ;;  %v8566_v7 = vld [vmem:[#allocation48_spill] sm:$0xff] }
 0x6ba   : > { %2971 = vmatpush.msra.mxu1 %v8556_v27  ;;  %v8567_v27 = vld [vmem:[#allocation51_spill] sm:$0xff] }
 0x6bb   : > { %3101 = vmatpush.msra.mxu2 %v8557_v30  ;;  %3121 = vmatpush.msra.mxu3 %v8558_v60  ;;  %v8568_v30 = vld [vmem:[#allocation96_spill] sm:$0xff] }
 0x6bc   : > { %2972 = vmatpush.msra.mxu1 %v8559_v20  ;;  %v8569_v60 = vld [vmem:[#allocation52_spill] sm:$0xff]  ;;  %v8570_v20 = vld [vmem:[#allocation55_spill] sm:$0xff] }
 0x6bd   : > { %3102 = vmatpush.msra.mxu2 %v8560_v41  ;;  %3122 = vmatpush.msra.mxu3 %v8561_v32  ;;  %v8571_v41 = vld [vmem:[#allocation97_spill] sm:$0xff]  ;;  %v8572_v32 = vld [vmem:[#allocation54_spill] sm:$0xff] }
 0x6be   : > { %2973 = vmatpush.msra.mxu1 %v8562_v55  ;;  %v8573_v55 = vld [vmem:[#allocation58_spill] sm:$0xff] }
 0x6bf   : > { %3103 = vmatpush.msra.mxu2 %v8563_v56  ;;  %3123 = vmatpush.msra.mxu3 %v8564_v43  ;;  %v8574_v56 = vld [vmem:[#allocation99_spill] sm:$0xff]  ;;  %v2826_v43 = vld [vmem:[%s5036_s26 + $0x4] sm:$0x2] }
 0x6c0   : > { %2974 = vmatpush.msra.mxu1 %v8565_v28  ;;  %v8575_v28 = vld [vmem:[#allocation60_spill] sm:$0xff] }
 0x6c1   : > { %3104 = vmatpush.msra.mxu2 %v8566_v7  ;;  %3124 = vmatpush.msra.mxu3 %v8567_v27  ;;  %v8576_v7 = vld [vmem:[#allocation62_spill] sm:$0xff]  ;;  %v8577_v27 = vld [vmem:[#allocation101_spill] sm:$0xff] }
 0x6c2   : > { %2975 = vmatpush.msra.mxu1 %v8568_v30  ;;  %v8578_v30 = vld [vmem:[#allocation64_spill] sm:$0xff] }
 0x6c3   : > { %3105 = vmatpush.msra.mxu2 %v8569_v60  ;;  %3125 = vmatpush.msra.mxu3 %v8570_v20  ;;  %v8579_v60 = vld [vmem:[#allocation66_spill] sm:$0xff]  ;;  %v8580_v20 = vld [vmem:[#allocation103_spill] sm:$0xff] }
 0x6c4   : > { %2976 = vmatpush.msra.mxu1 %v8571_v41  ;;  %v8583_v41 = vld [vmem:[#allocation104_spill] sm:$0xff] }
 0x6c5   : > { %3106 = vmatpush.msra.mxu2 %v8572_v32  ;;  %3126 = vmatpush.msra.mxu3 %v8573_v55  ;;  %v8581_v32 = vld [vmem:[#allocation68_spill] sm:$0xff]  ;;  %v8582_v55 = vld [vmem:[#allocation70_spill] sm:$0xff] }
 0x6c6   : > { %2977 = vmatpush.msra.mxu1 %v8574_v56  ;;  %v8584_v56 = vld [vmem:[#allocation72_spill] sm:$0xff] }
 0x6c7   : > { %3107 = vmatpush.msra.mxu2 %v8575_v28  ;;  %3127 = vmatpush.msra.mxu3 %v8576_v7  ;;  %v8585_v7 = vld [vmem:[#allocation76_spill] sm:$0xff] }
 0x6c8   : > { %2978 = vmatpush.msra.mxu1 %v8577_v27 }
 0x6c9   : > { %3108 = vmatpush.msra.mxu2 %v8578_v30  ;;  %3128 = vmatpush.msra.mxu3 %v8579_v60  ;;  %v8586_v30 = vld [vmem:[#allocation47_spill] sm:$0xff] }
 0x6ca   : > { %2979 = vmatpush.msra.mxu1 %v8580_v20 }
 0x6cb   : > { %3109 = vmatpush.msra.mxu2 %v8581_v32  ;;  %3129 = vmatpush.msra.mxu3 %v8582_v55  ;;  %v2834_v32 = vunpack.c.l.bf16 %v2826_v43 }
 0x6cc   : > { %2980 = vmatpush.msra.mxu1 %v8583_v41 }
 0x6cd   : > { %3110 = vmatpush.msra.mxu2 %v8584_v56  ;;  %3130 = vmatpush.msra.mxu3 %v8585_v7  ;;  %v2828_v56 = vld [vmem:[%s5036_s26 + $0x14] sm:$0x2]  ;;  %v2837_v7 = vunpack.c.l.bf16 %v2829_v21 }
 0x6ce   : > { %v2836_v31 = vunpack.c.l.bf16 %v2828_v56 }
 0x70b   : > { %v2652_v27 = vpop.f32.mrf.mxu2  ;;  %v2672_v55 = vpop.f32.mrf.mxu3 }
 0x70c   : > { %v2653_v28 = vadd.f32 %v2652_v27, %v8586_v30  ;;  %v2673_v41 = vadd.f32 %v2672_v55, %v8587_v47  ;;  %v2850_v27 = vrot.slane %v2834_v32, 2  ;;  %v2851_v30 = vrot.slane %v2835_v23, 1 }
 0x70e   : > { %v2852_v44 = vsel %vm541_vm0, %v2851_v30, %v2850_v27 }
 0x70f   : > { %v2853_v47 = vsel %vm544_vm1, %v2836_v31, %v2852_v44 }
 0x72a   : > { %v2712_v60 = vpop.f32.mrf.mxu1 }
 0x72b   : > { %v2755_v20 = vadd.f32 %v2712_v60, %v2653_v28  ;;  %v2839_v28 = vunpack.c.l.bf16 %v2831_v33  ;;  %v2854_v60 = vrot.slane %v2837_v7, 7 }
 0x72d   : > { %v4402_v0 = vmul.f32 -1.442695, %v2755_v20  ;;  %v2841_v20 = vunpack.c.l.bf16 %v2833_v48  ;;  %v2858_v21 = vrot.slane %v2839_v28, 5  ;;  %v2855_v56 = vsel %vm547_vm2, %v2854_v60, %v2853_v47  ;;  %v2692_v60 = vpop.f32.mrf.mxu0 }
 0x72f   : > { %4631 = vpow2.f32 %v4402_v0  ;;  %v2857_v0 = vsel %vm550_vm3, %v2856_v5, %v2855_v56  ;;  %v2862_v23 = vrot.slane %v2841_v20, 3  ;;  %v2693_v56 = vadd.f32 %v2692_v60, %v5624_v63  ;;  %v8589_v60 = vld [vmem:[#allocation98_spill] sm:$0xff] }
 0x730   : > { %v2732_v43 = vpop.f32.mrf.mxu2  ;;  %v2859_v33 = vsel %vm553_vm4, %v2858_v21, %v2857_v0  ;;  %v6948_v0 = vld [vmem:[%s7700_s4] ss:$0 sm:$0xff] }
 0x731   : > { %v2775_v55 = vadd.f32 %v2732_v43, %v2673_v41  ;;  %v2861_v36 = vsel %vm556_vm5, %v2860_v34, %v2859_v33  ;;  %v2752_v48 = vpop.f32.mrf.mxu3 }
 0x732   : > { %v2863_v2 = vsel %vm559_vm6, %v2862_v23, %v2861_v36  ;;  %v2795_v23 = vadd.f32 %v6948_v0, %v2752_v48 }
 0x733   : > { %v4403_v32 = vmul.f32 -1.442695, %v2775_v55  ;;  %2881 = vmatmul.f32.vlgmr.msrb.gmra.mxu0 %v2863_v2  ;;  %2901 = vmatmul.f32.vlgmr.msrb.gmra.mxu1 %v2863_v2 }
 0x734   : > { %2921 = vmatmul.f32.vlgmr.msrb.gmra.mxu2 %v2863_v2  ;;  %3155 = vmatpush.msrb.mxu1 %v5061_v6 }
 0x735   : > { %v4632_v7 = vpop.eup %4631  ;;  %4633 = vpow2.f32 %v4403_v32  ;;  %3175 = vmatpush.msrb.mxu2 %v8015_v22  ;;  %3135 = vmatpush.msrb.mxu0 %v5138_v45 }
 0x736   : > { %v2759_v30 = vadd.f32 1.0, %v4632_v7  ;;  %3156 = vmatpush.msrb.mxu1 %v8038_v15 }
 0x737   : > { %3176 = vmatpush.msrb.mxu2 %v8018_v53  ;;  %3136 = vmatpush.msrb.mxu0 %v5149_v50 }
 0x738   : > { %4635 = vrcp.f32 %v2759_v30  ;;  %3157 = vmatpush.msrb.mxu1 %v8041_v37  ;;  %v2771_v41 = vand.u32 2147483648, %v2759_v30  ;;  %v2769_v28 = vand.u32 2147483647, %v2759_v30  ;;  %vm2765_vm8 = vweird.f32 %v2759_v30 }
 0x739   : > { %3177 = vmatpush.msrb.mxu2 %v8020_v29  ;;  %3137 = vmatpush.msrb.mxu0 %v8001_v62 }
 0x73a   : > { %3158 = vmatpush.msrb.mxu1 %v8042_v49  ;;  %v2772_v21 = vor.u32 1.1754944e-38, %v2771_v41  ;;  %vm2770_vm10 = vcmp.eq.f32.partialorder %v2769_v28, 8.507059e+37 }
 0x73b   : > { %v4634_v5 = vpop.eup %4633  ;;  %3178 = vmatpush.msrb.mxu2 %v8022_v35  ;;  %3138 = vmatpush.msrb.mxu0 %v8004_v10 }
 0x73c   : > { %v6924_v44 = vadd.f32 1.0, %v4634_v5  ;;  %3159 = vmatpush.msrb.mxu1 %v8043_v19 }
 0x73d   : > { %3179 = vmatpush.msrb.mxu2 %v8024_v59  ;;  %3139 = vmatpush.msrb.mxu0 %v8044_v1 }
 0x73e   : > { %v4636_v25 = vpop.eup %4635  ;;  %4637 = vrcp.f32 %v6924_v44  ;;  %3160 = vmatpush.msrb.mxu1 %v8045_v14  ;;  %v2791_v36 = vand.u32 2147483648, %v6924_v44  ;;  %v2789_v2 = vand.u32 2147483647, %v6924_v44  ;;  %vm2785_vm12 = vweird.f32 %v6924_v44 }
 0x73f   : > { %v2761_v31 = vmul.f32 %v4636_v25, %v2759_v30  ;;  %vm2766_vm7 = vweird.f32 %v4636_v25  ;;  %3180 = vmatpush.msrb.mxu2 %v5333_v38  ;;  %3140 = vmatpush.msrb.mxu0 %v8046_v46 }
 0x740   : > { %3161 = vmatpush.msrb.mxu1 %v8047_v11  ;;  %vm2767_vm9 = vmor %vm2765_vm8, %vm2766_vm7  ;;  %vm2790_vm14 = vcmp.eq.f32.partialorder %v2789_v2, 8.507059e+37 }
 0x741   : > { %v2762_v47 = vsub.f32 1.0, %v2761_v31  ;;  %3181 = vmatpush.msrb.mxu2 %v5344_v12  ;;  %3141 = vmatpush.msrb.mxu0 %v8048_v26  ;;  %v2792_v31 = vor.u32 1.1754944e-38, %v2791_v36 }
 0x742   : > { %3162 = vmatpush.msrb.mxu1 %v8049_v3 }
 0x743   : > { %v2763_v27 = vmul.f32 %v4636_v25, %v2762_v47  ;;  %3182 = vmatpush.msrb.mxu2 %v5355_v52  ;;  %3142 = vmatpush.msrb.mxu0 %v8013_v57 }
 0x744   : > { %v4638_v43 = vpop.eup %4637  ;;  %3163 = vmatpush.msrb.mxu1 %v8050_v4 }
 0x745   : > { %v2781_v55 = vmul.f32 %v4638_v43, %v6924_v44  ;;  %v2764_v20 = vadd.f32 %v4636_v25, %v2763_v27  ;;  %vm2786_vm11 = vweird.f32 %v4638_v43  ;;  %3183 = vmatpush.msrb.mxu2 %v5366_v8  ;;  %3143 = vmatpush.msrb.mxu0 %v8017_v24  ;;  %v8588_v27 = vld [vmem:[#allocation65_spill] sm:$0xff] }
 0x746   : > { %3164 = vmatpush.msrb.mxu1 %v8016_v51  ;;  %vm2787_vm13 = vmor %vm2785_vm12, %vm2786_vm11 }
 0x747   : > { %v2782_v34 = vsub.f32 1.0, %v2781_v55  ;;  %v2768_v32 = vsel %vm2767_vm9, %v4636_v25, %v2764_v20  ;;  %3184 = vmatpush.msrb.mxu2 %v5377_v9  ;;  %3144 = vmatpush.msrb.mxu0 %v5307_v42  ;;  %v8591_v55 = vld [vmem:[#allocation61_spill] sm:$0xff] }
 0x748   : > { %v2773_v33 = vsel %vm2770_vm10, %v2772_v21, %v2768_v32  ;;  %3165 = vmatpush.msrb.mxu1 %v8051_v61  ;;  %v8592_v21 = vld [vmem:[#allocation69_spill] sm:$0xff] }
 0x749   : > { %v2783_v7 = vmul.f32 %v4638_v43, %v2782_v34  ;;  %v2796_v30 = vmul.f32 %v2795_v23, %v2773_v33  ;;  %3185 = vmatpush.msrb.mxu2 %v5386_v13  ;;  %3145 = vmatpush.msrb.mxu0 %v5317_v17  ;;  %v8594_v34 = vld [vmem:[#allocation91_spill] sm:$0xff]  ;;  %v8596_v23 = vld [vmem:[#allocation73_spill] sm:$0xff]  ;;  %v8597_v33 = vld [vmem:[#allocation102_spill] sm:$0xff] }
 0x74a   : > { %3166 = vmatpush.msrb.mxu1 %v8021_v16 }
 0x74b   : > { %v2784_v5 = vadd.f32 %v4638_v43, %v2783_v7  ;;  %v2797_v25 = vadd.f32 %v2796_v30, %v2693_v56  ;;  %3186 = vmatpush.msrb.mxu2 %v5395_v58  ;;  %3146 = vmatpush.msrb.mxu0 %v5328_v39  ;;  %v8593_v56 = vld [vmem:[#allocation100_spill] sm:$0xff]  ;;  %v8598_v7 = vld [vmem:[#allocation93_spill] sm:$0xff] }
 0x74c   : > { %3167 = vmatpush.msrb.mxu1 %v8023_v40 }
 0x74d   : > { %v2788_v47 = vsel %vm2787_vm13, %v4638_v43, %v2784_v5  ;;  %4639 = vtanh.f32 %v2797_v25  ;;  %3187 = vmatpush.msrb.mxu2 %v5404_v18  ;;  %3147 = vmatpush.msrb.mxu0 %v8466_v54  ;;  %v8590_v43 = vld [vmem:[#allocation89_spill] sm:$0xff]  ;;  %v8599_v25 = vld [vmem:[#allocation78_spill] sm:$0xff] }
 0x74e   : > { %v2793_v44 = vsel %vm2790_vm14, %v2792_v31, %v2788_v47  ;;  %3168 = vmatpush.msrb.mxu1 %v8588_v27  ;;  %v8600_v47 = vld [vmem:[#allocation22_spill] sm:$0xff] }
 0x74f   : > { %v2799_v41 = vsub.f32 1.0, %v2793_v44  ;;  %3188 = vmatpush.msrb.mxu2 %v8589_v60  ;;  %3148 = vmatpush.msrb.mxu0 %v8590_v43  ;;  %v2801_v20 = vmul.f32 %v2793_v44, %v8591_v55  ;;  %v8601_v44 = vld [vmem:[#allocation24_spill] sm:$0xff]  ;;  %v8603_v55 = vld [vmem:[#allocation23_spill] sm:$0xff] }
 0x750   : > { %3169 = vmatpush.msrb.mxu1 %v8592_v21  ;;  %v3061_v21 = vld [vmem:[%s5036_s26 + $0x2c] sm:$0x2] }
 0x751   : > { %3189 = vmatpush.msrb.mxu2 %v8593_v56  ;;  %3149 = vmatpush.msrb.mxu0 %v8594_v34  ;;  %v3069_v43 = vunpack.c.l.bf16 %v3061_v21 }
 0x752   : > { %3170 = vmatpush.msrb.mxu1 %v8596_v23 }
 0x753   : > { %v4640_v28 = vpop.eup %4639  ;;  %3190 = vmatpush.msrb.mxu2 %v8597_v33  ;;  %3150 = vmatpush.msrb.mxu0 %v8598_v7  ;;  %v3056_v7 = vld [vmem:[%s5036_s26 + $0x4] sm:$0x2]  ;;  %v3058_v33 = vld [vmem:[%s5036_s26 + $0x14] sm:$0x2]  ;;  %v3088_v60 = vrot.slane %v3069_v43, 6 }
 0x754   : > { %v2800_v48 = vmul.f32 %v4640_v28, %v2799_v41  ;;  %v8602_v28 = vld [vmem:[#allocation81_spill] sm:$0xff]  ;;  %v3066_v34 = vunpack.c.l.bf16 %v3058_v33 }
 0x756   : > { %v6978_v32 = vadd.f32 %v2801_v20, %v2800_v48  ;;  %v8604_v20 = vld [vmem:[#allocation26_spill] sm:$0xff] }
 0x758   : > { %8595 = vst [vmem:[#allocation84_spill] sm:$0xff] %v6978_v32  ;;  %v2804_v36 = vrot.slane %v6978_v32, 1  ;;  %v2805_v30 = vrot.slane %v6978_v32, 2  ;;  %v2806_v2 = vrot.slane %v6978_v32, 3  ;;  %2941 = vmatmul.f32.vlgmr.msrb.gmra.mxu3 %v6978_v32  ;;  %2961 = vmatmul.f32.vlgmr.msra.gmra.mxu0 %v6978_v32  ;;  %v2807_v5 = vrot.slane %v6978_v32, 4 }
 0x759   : > { %2818 = vst [vmem:[%s5051_s13 + $0x9] sm:$0x1] %v6978_v32  ;;  %2981 = vmatmul.f32.vlgmr.msra.gmra.mxu1 %v6978_v32  ;;  %3195 = vmatpush.msrb.mxu3 %v8599_v25  ;;  %v2808_v31 = vrot.slane %v6978_v32, 5  ;;  %v2809_v41 = vrot.slane %v6978_v32, 6  ;;  %v2810_v48 = vrot.slane %v6978_v32, 7  ;;  %v8605_v25 = vld [vmem:[#allocation83_spill] sm:$0xff] }
 0x75a   : > { %2819 = vst [vmem:[%s5051_s13 + $0x19] sm:$0x1] %v2804_v36  ;;  %3325 = vmatpush.msra.mxu0 %v8600_v47  ;;  %3345 = vmatpush.msra.mxu1 %v8601_v44  ;;  %v8606_v36 = vld [vmem:[#allocation27_spill] sm:$0xff]  ;;  %v8607_v47 = vld [vmem:[#allocation29_spill] sm:$0xff] }
 0x75b   : > { %2820 = vst [vmem:[%s5051_s13 + $0x29] sm:$0x1] %v2805_v30  ;;  %3196 = vmatpush.msrb.mxu3 %v8602_v28  ;;  %v8608_v44 = vld [vmem:[#allocation85_spill] sm:$0xff]  ;;  %v8609_v30 = vld [vmem:[#allocation30_spill] sm:$0xff]  ;;  %v8610_v28 = vld [vmem:[#allocation32_spill] sm:$0xff] }
 0x75c   : > { %2821 = vst [vmem:[%s5051_s13 + $0x39] sm:$0x1] %v2806_v2  ;;  %3326 = vmatpush.msra.mxu0 %v8603_v55  ;;  %3346 = vmatpush.msra.mxu1 %v8604_v20  ;;  %v8611_v2 = vld [vmem:[#allocation86_spill] sm:$0xff]  ;;  %v8612_v55 = vld [vmem:[#allocation33_spill] sm:$0xff] }
 0x75d   : > { %2822 = vst [vmem:[%s5051_s13 + $0x49] sm:$0x1] %v2807_v5  ;;  %3197 = vmatpush.msrb.mxu3 %v8605_v25  ;;  %v8613_v5 = vld [vmem:[#allocation35_spill] sm:$0xff]  ;;  %v8614_v25 = vld [vmem:[#allocation88_spill] sm:$0xff] }
 0x75e   : > { %2823 = vst [vmem:[%s5051_s13 + $0x59] sm:$0x1] %v2808_v31  ;;  %3327 = vmatpush.msra.mxu0 %v8606_v36  ;;  %3347 = vmatpush.msra.mxu1 %v8607_v47  ;;  %v8615_v31 = vld [vmem:[#allocation36_spill] sm:$0xff]  ;;  %v8616_v36 = vld [vmem:[#allocation38_spill] sm:$0xff] }
 0x75f   : > { %2824 = vst [vmem:[%s5051_s13 + $0x69] sm:$0x1] %v2809_v41  ;;  %3198 = vmatpush.msrb.mxu3 %v8608_v44  ;;  %v8617_v41 = vld [vmem:[#allocation90_spill] sm:$0xff]  ;;  %v8618_v44 = vld [vmem:[#allocation39_spill] sm:$0xff] }
 0x760   : > { %2825 = vst [vmem:[%s5051_s13 + $0x79] sm:$0x1] %v2810_v48  ;;  %3328 = vmatpush.msra.mxu0 %v8609_v30  ;;  %3348 = vmatpush.msra.mxu1 %v8610_v28  ;;  %v8619_v48 = vld [vmem:[#allocation41_spill] sm:$0xff]  ;;  %v8620_v30 = vld [vmem:[#allocation92_spill] sm:$0xff]  ;;  %v8621_v28 = vld [vmem:[#allocation42_spill] sm:$0xff] }
 0x761   : > { %3199 = vmatpush.msrb.mxu3 %v8611_v2  ;;  %v8622_v2 = vld [vmem:[#allocation46_spill] sm:$0xff] }
 0x762   : > { %3329 = vmatpush.msra.mxu0 %v8612_v55  ;;  %3349 = vmatpush.msra.mxu1 %v8613_v5  ;;  %v8623_v55 = vld [vmem:[#allocation94_spill] sm:$0xff]  ;;  %v8624_v5 = vld [vmem:[#allocation44_spill] sm:$0xff] }
 0x763   : > { %3200 = vmatpush.msrb.mxu3 %v8614_v25  ;;  %v8625_v25 = vld [vmem:[#allocation50_spill] sm:$0xff] }
 0x764   : > { %3330 = vmatpush.msra.mxu0 %v8615_v31  ;;  %3350 = vmatpush.msra.mxu1 %v8616_v36  ;;  %v8626_v31 = vld [vmem:[#allocation95_spill] sm:$0xff]  ;;  %v8627_v36 = vld [vmem:[#allocation48_spill] sm:$0xff] }
 0x765   : > { %3201 = vmatpush.msrb.mxu3 %v8617_v41  ;;  %v8628_v41 = vld [vmem:[#allocation51_spill] sm:$0xff] }
 0x766   : > { %3331 = vmatpush.msra.mxu0 %v8618_v44  ;;  %3351 = vmatpush.msra.mxu1 %v8619_v48  ;;  %v8629_v44 = vld [vmem:[#allocation96_spill] sm:$0xff] }
 0x767   : > { %3202 = vmatpush.msrb.mxu3 %v8620_v30  ;;  %v8630_v48 = vld [vmem:[#allocation52_spill] sm:$0xff]  ;;  %v8631_v30 = vld [vmem:[#allocation55_spill] sm:$0xff] }
 0x768   : > { %3332 = vmatpush.msra.mxu0 %v8621_v28  ;;  %3352 = vmatpush.msra.mxu1 %v8622_v2  ;;  %v8632_v28 = vld [vmem:[#allocation97_spill] sm:$0xff]  ;;  %v8633_v2 = vld [vmem:[#allocation54_spill] sm:$0xff] }
 0x769   : > { %3203 = vmatpush.msrb.mxu3 %v8623_v55  ;;  %v8634_v55 = vld [vmem:[#allocation58_spill] sm:$0xff] }
 0x76a   : > { %3333 = vmatpush.msra.mxu0 %v8624_v5  ;;  %3353 = vmatpush.msra.mxu1 %v8625_v25  ;;  %v8635_v5 = vld [vmem:[#allocation99_spill] sm:$0xff]  ;;  %v8636_v25 = vld [vmem:[#allocation60_spill] sm:$0xff] }
 0x76b   : > { %3204 = vmatpush.msrb.mxu3 %v8626_v31  ;;  %v8637_v31 = vld [vmem:[#allocation62_spill] sm:$0xff] }
 0x76c   : > { %3334 = vmatpush.msra.mxu0 %v8627_v36  ;;  %3354 = vmatpush.msra.mxu1 %v8628_v41  ;;  %v8638_v36 = vld [vmem:[#allocation101_spill] sm:$0xff]  ;;  %v8639_v41 = vld [vmem:[#allocation64_spill] sm:$0xff] }
 0x76d   : > { %3205 = vmatpush.msrb.mxu3 %v8629_v44  ;;  %v8640_v44 = vld [vmem:[#allocation66_spill] sm:$0xff] }
 0x76e   : > { %3335 = vmatpush.msra.mxu0 %v8630_v48  ;;  %3355 = vmatpush.msra.mxu1 %v8631_v30  ;;  %v8641_v48 = vld [vmem:[#allocation103_spill] sm:$0xff] }
 0x76f   : > { %3206 = vmatpush.msrb.mxu3 %v8632_v28  ;;  %v8642_v28 = vld [vmem:[#allocation68_spill] sm:$0xff] }
 0x770   : > { %3336 = vmatpush.msra.mxu0 %v8633_v2  ;;  %3356 = vmatpush.msra.mxu1 %v8634_v55  ;;  %v8643_v2 = vld [vmem:[#allocation70_spill] sm:$0xff]  ;;  %v8644_v55 = vld [vmem:[#allocation104_spill] sm:$0xff] }
 0x771   : > { %3207 = vmatpush.msrb.mxu3 %v8635_v5 }
 0x772   : > { %3337 = vmatpush.msra.mxu0 %v8636_v25  ;;  %3357 = vmatpush.msra.mxu1 %v8637_v31  ;;  %v8645_v25 = vld [vmem:[#allocation72_spill] sm:$0xff] }
 0x773   : > { %3208 = vmatpush.msrb.mxu3 %v8638_v36  ;;  %v8646_v31 = vld [vmem:[#allocation76_spill] sm:$0xff] }
 0x774   : > { %3338 = vmatpush.msra.mxu0 %v8639_v41  ;;  %3358 = vmatpush.msra.mxu1 %v8640_v44  ;;  %v8647_v41 = vld [vmem:[#allocation57_spill] sm:$0xff] }
 0x775   : > { %3209 = vmatpush.msrb.mxu3 %v8641_v48  ;;  %v8648_v48 = vld [vmem:[#allocation47_spill] sm:$0xff] }
 0x776   : > { %3339 = vmatpush.msra.mxu0 %v8642_v28  ;;  %3359 = vmatpush.msra.mxu1 %v8643_v2 }
 0x777   : > { %3210 = vmatpush.msrb.mxu3 %v8644_v55  ;;  %v3057_v55 = vld [vmem:[%s5036_s26 + $0xc] sm:$0x2] }
 0x778   : > { %3340 = vmatpush.msra.mxu0 %v8645_v25  ;;  %3360 = vmatpush.msra.mxu1 %v8646_v31  ;;  %v3064_v31 = vunpack.c.l.bf16 %v3056_v7  ;;  %v3065_v23 = vunpack.c.l.bf16 %v3057_v55  ;;  %v3063_v7 = vld [vmem:[%s5036_s26 + $0x3c] sm:$0x2] }
 0x7b0   : > { %v2882_v36 = vpop.f32.mrf.mxu0  ;;  %v2902_v5 = vpop.f32.mrf.mxu1 }
 0x7b1   : > { %v2903_v44 = vadd.f32 %v2902_v5, %v8647_v41  ;;  %v2883_v20 = vadd.f32 %v2882_v36, %v8648_v48  ;;  %v3060_v5 = vld [vmem:[%s5036_s26 + $0x24] sm:$0x2]  ;;  %v3080_v41 = vrot.slane %v3064_v31, 3  ;;  %v3083_v48 = vrot.slane %v3066_v34, 1 }
 0x7b2   : > { %v3068_v36 = vunpack.c.l.bf16 %v3060_v5  ;;  %v3071_v31 = vunpack.c.l.bf16 %v3063_v7 }
 0x7b4   : > { %v3086_v55 = vrot.slane %v3068_v36, 7  ;;  %v3092_v5 = vrot.slane %v3071_v31, 4 }
 0x7b7   : > { %v2922_v31 = vpop.f32.mrf.mxu2 }
 0x7d5   : > { %v2962_v30 = vpop.f32.mrf.mxu0 }
 0x7d6   : > { %v3005_v47 = vadd.f32 %v2962_v30, %v2903_v44  ;;  %v3081_v44 = vrot.slane %v3065_v23, 2  ;;  %v3059_v30 = vld [vmem:[%s5036_s26 + $0x1c] sm:$0x2] }
 0x7d7   : > { %v3067_v32 = vunpack.c.l.bf16 %v3059_v30 }
 0x7d8   : > { %v4405_v28 = vmul.f32 -1.442695, %v3005_v47 }
 0x7da   : > { %4641 = vpow2.f32 %v4405_v28  ;;  %v3062_v28 = vld [vmem:[%s5036_s26 + $0x34] sm:$0x2] }
 0x7db   : > { %v2942_v2 = vpop.f32.mrf.mxu3  ;;  %v3070_v33 = vunpack.c.l.bf16 %v3062_v28 }
 0x7dc   : > { %v2985_v25 = vadd.f32 %v2942_v2, %v2883_v20  ;;  %v3082_v20 = vsel %vm541_vm0, %v3081_v44, %v3080_v41 }
 0x7dd   : > { %v3090_v34 = vrot.slane %v3070_v33, 5 }
 0x7de   : > { %v4404_v56 = vmul.f32 -1.442695, %v2985_v25  ;;  %v3084_v25 = vsel %vm544_vm1, %v3083_v48, %v3082_v20 }
 0x7df   : > { %v3085_v23 = vsel %vm547_vm2, %v3067_v32, %v3084_v25 }
 0x7e0   : > { %v4642_v47 = vpop.eup %4641  ;;  %4643 = vpow2.f32 %v4404_v56  ;;  %v3087_v56 = vsel %vm550_vm3, %v3086_v55, %v3085_v23  ;;  %v2982_v55 = vpop.f32.mrf.mxu1 }
 0x7e1   : > { %v7060_v2 = vadd.f32 1.0, %v4642_v47  ;;  %v3089_v21 = vsel %vm553_vm4, %v3088_v60, %v3087_v56 }
 0x7e2   : > { %v3091_v44 = vsel %vm556_vm5, %v3090_v34, %v3089_v21  ;;  %v3025_v34 = vadd.f32 %v6948_v0, %v2982_v55 }
 0x7e3   : > { %4645 = vrcp.f32 %v7060_v2  ;;  %v3093_v47 = vsel %vm559_vm6, %v3092_v5, %v3091_v44  ;;  %v2923_v5 = vadd.f32 %v2922_v31, %v5624_v63  ;;  %vm3015_vm11 = vweird.f32 %v7060_v2  ;;  %v8652_v31 = vld [vmem:[#allocation69_spill] sm:$0xff] }
 0x7e4   : > { %3111 = vmatmul.f32.vlgmr.msra.gmra.mxu2 %v3093_v47  ;;  %3131 = vmatmul.f32.vlgmr.msra.gmra.mxu3 %v3093_v47 }
 0x7e5   : > { %3151 = vmatmul.f32.vlgmr.msrb.gmra.mxu0 %v3093_v47  ;;  %3385 = vmatpush.msra.mxu3 %v5061_v6 }
 0x7e6   : > { %v4644_v41 = vpop.eup %4643  ;;  %3405 = vmatpush.msrb.mxu0 %v8015_v22  ;;  %3365 = vmatpush.msra.mxu2 %v5138_v45 }
 0x7e7   : > { %v2989_v30 = vadd.f32 1.0, %v4644_v41  ;;  %3386 = vmatpush.msra.mxu3 %v8038_v15 }
 0x7e8   : > { %3406 = vmatpush.msrb.mxu0 %v8018_v53  ;;  %3366 = vmatpush.msra.mxu2 %v5149_v50 }
 0x7e9   : > { %4647 = vrcp.f32 %v2989_v30  ;;  %v7071_v43 = vpop.eup %4645  ;;  %3387 = vmatpush.msra.mxu3 %v8041_v37  ;;  %v3001_v20 = vand.u32 2147483648, %v2989_v30  ;;  %v2999_v33 = vand.u32 2147483647, %v2989_v30  ;;  %vm2995_vm7 = vweird.f32 %v2989_v30 }
 0x7ea   : > { %v3011_v60 = vmul.f32 %v7071_v43, %v7060_v2  ;;  %3407 = vmatpush.msrb.mxu0 %v8020_v29  ;;  %3367 = vmatpush.msra.mxu2 %v8001_v62  ;;  %vm3016_vm10 = vweird.f32 %v7071_v43 }
 0x7eb   : > { %3388 = vmatpush.msra.mxu3 %v8042_v49  ;;  %v3002_v56 = vor.u32 1.1754944e-38, %v3001_v20  ;;  %vm3000_vm9 = vcmp.eq.f32.partialorder %v2999_v33, 8.507059e+37  ;;  %vm3017_vm12 = vmor %vm3015_vm11, %vm3016_vm10  ;;  %v8649_v20 = vld [vmem:[#allocation98_spill] sm:$0xff] }
 0x7ec   : > { %3408 = vmatpush.msrb.mxu0 %v8022_v35  ;;  %3368 = vmatpush.msra.mxu2 %v8004_v10  ;;  %v3012_v36 = vsub.f32 1.0, %v3011_v60  ;;  %v3019_v60 = vand.u32 2147483647, %v7060_v2 }
 0x7ed   : > { %3389 = vmatpush.msra.mxu3 %v8043_v19 }
 0x7ee   : > { %3409 = vmatpush.msrb.mxu0 %v8024_v59  ;;  %3369 = vmatpush.msra.mxu2 %v8044_v1  ;;  %v3013_v25 = vmul.f32 %v7071_v43, %v3012_v36  ;;  %vm3020_vm13 = vcmp.eq.f32.partialorder %v3019_v60, 8.507059e+37 }
 0x7ef   : > { %v4648_v32 = vpop.eup %4647  ;;  %3390 = vmatpush.msra.mxu3 %v8045_v14 }
 0x7f0   : > { %v2991_v48 = vmul.f32 %v4648_v32, %v2989_v30  ;;  %vm2996_vm15 = vweird.f32 %v4648_v32  ;;  %3410 = vmatpush.msrb.mxu0 %v5333_v38  ;;  %3370 = vmatpush.msra.mxu2 %v8046_v46  ;;  %v3014_v44 = vadd.f32 %v7071_v43, %v3013_v25  ;;  %v3021_v30 = vand.u32 2147483648, %v7060_v2  ;;  %v8651_v25 = vld [vmem:[#allocation84_spill] sm:$0xff] }
 0x7f1   : > { %3391 = vmatpush.msra.mxu3 %v8047_v11  ;;  %vm2997_vm8 = vmor %vm2995_vm7, %vm2996_vm15 }
 0x7f2   : > { %v2992_v28 = vsub.f32 1.0, %v2991_v48  ;;  %3411 = vmatpush.msrb.mxu0 %v5344_v12  ;;  %3371 = vmatpush.msra.mxu2 %v8048_v26  ;;  %v3018_v48 = vsel %vm3017_vm12, %v7071_v43, %v3014_v44  ;;  %v3022_v36 = vor.u32 1.1754944e-38, %v3021_v30 }
 0x7f3   : > { %3392 = vmatpush.msra.mxu3 %v8049_v3 }
 0x7f4   : > { %v2993_v7 = vmul.f32 %v4648_v32, %v2992_v28  ;;  %3412 = vmatpush.msrb.mxu0 %v5355_v52  ;;  %3372 = vmatpush.msra.mxu2 %v8013_v57  ;;  %v3023_v2 = vsel %vm3020_vm13, %v3022_v36, %v3018_v48  ;;  %v8660_v36 = vld [vmem:[#allocation22_spill] sm:$0xff] }
 0x7f5   : > { %3393 = vmatpush.msra.mxu3 %v8050_v4  ;;  %v3029_v43 = vsub.f32 1.0, %v3023_v2  ;;  %v3031_v55 = vmul.f32 %v3023_v2, %v8651_v25  ;;  %v8661_v2 = vld [vmem:[#allocation24_spill] sm:$0xff]  ;;  %v8663_v25 = vld [vmem:[#allocation23_spill] sm:$0xff] }
 0x7f6   : > { %v2994_v23 = vadd.f32 %v4648_v32, %v2993_v7  ;;  %3413 = vmatpush.msrb.mxu0 %v5366_v8  ;;  %3373 = vmatpush.msra.mxu2 %v8017_v24  ;;  %v8650_v7 = vld [vmem:[#allocation89_spill] sm:$0xff] }
 0x7f7   : > { %3394 = vmatpush.msra.mxu3 %v8016_v51 }
 0x7f8   : > { %v2998_v21 = vsel %vm2997_vm8, %v4648_v32, %v2994_v23  ;;  %3414 = vmatpush.msrb.mxu0 %v5377_v9  ;;  %3374 = vmatpush.msra.mxu2 %v5307_v42  ;;  %v8653_v23 = vld [vmem:[#allocation100_spill] sm:$0xff] }
 0x7f9   : > { %v3003_v41 = vsel %vm3000_vm9, %v3002_v56, %v2998_v21  ;;  %3395 = vmatpush.msra.mxu3 %v8051_v61  ;;  %v8654_v56 = vld [vmem:[#allocation91_spill] sm:$0xff]  ;;  %v8657_v21 = vld [vmem:[#allocation102_spill] sm:$0xff] }
 0x7fa   : > { %v3026_v47 = vmul.f32 %v3025_v34, %v3003_v41  ;;  %3415 = vmatpush.msrb.mxu0 %v5386_v13  ;;  %3375 = vmatpush.msra.mxu2 %v5317_v17  ;;  %v8658_v41 = vld [vmem:[#allocation93_spill] sm:$0xff] }
 0x7fb   : > { %3396 = vmatpush.msra.mxu3 %v8021_v16 }
 0x7fc   : > { %v3027_v32 = vadd.f32 %v3026_v47, %v2923_v5  ;;  %3416 = vmatpush.msrb.mxu0 %v5395_v58  ;;  %3376 = vmatpush.msra.mxu2 %v5328_v39  ;;  %v8656_v5 = vld [vmem:[#allocation73_spill] sm:$0xff] }
 0x7fd   : > { %3397 = vmatpush.msra.mxu3 %v8023_v40 }
 0x7fe   : > { %4649 = vtanh.f32 %v3027_v32  ;;  %3417 = vmatpush.msrb.mxu0 %v5404_v18  ;;  %3377 = vmatpush.msra.mxu2 %v8466_v54  ;;  %v8659_v32 = vld [vmem:[#allocation78_spill] sm:$0xff] }
 0x7ff   : > { %3398 = vmatpush.msra.mxu3 %v8588_v27 }
 0x800   : > { %3418 = vmatpush.msrb.mxu0 %v8649_v20  ;;  %3378 = vmatpush.msra.mxu2 %v8650_v7  ;;  %v3292_v7 = vld [vmem:[%s5036_s26 + $0x34] sm:$0x4] }
 0x801   : > { %3399 = vmatpush.msra.mxu3 %v8652_v31  ;;  %v3290_v31 = vld [vmem:[%s5036_s26 + $0x24] sm:$0x4] }
 0x802   : > { %3419 = vmatpush.msrb.mxu0 %v8653_v23  ;;  %3379 = vmatpush.msra.mxu2 %v8654_v56  ;;  %v3298_v27 = vunpack.c.l.bf16 %v3290_v31 }
 0x803   : > { %3400 = vmatpush.msra.mxu3 %v8656_v5 }
 0x804   : > { %v4650_v28 = vpop.eup %4649  ;;  %3420 = vmatpush.msrb.mxu0 %v8657_v21  ;;  %3380 = vmatpush.msra.mxu2 %v8658_v41  ;;  %v8708_v21 = vld [vmem:[#allocation57_spill] sm:$0xff] }
 0x805   : > { %v3030_v33 = vmul.f32 %v4650_v28, %v3029_v43  ;;  %v8662_v28 = vld [vmem:[#allocation81_spill] sm:$0xff] }
 0x807   : > { %v7129_v34 = vadd.f32 %v3031_v55, %v3030_v33  ;;  %v8664_v55 = vld [vmem:[#allocation26_spill] sm:$0xff] }
 0x809   : > { %8655 = vst [vmem:[#allocation25_spill] sm:$0xff] %v7129_v34  ;;  %v3034_v44 = vrot.slane %v7129_v34, 1  ;;  %v3035_v30 = vrot.slane %v7129_v34, 2  ;;  %v3036_v47 = vrot.slane %v7129_v34, 3  ;;  %3171 = vmatmul.f32.vlgmr.msrb.gmra.mxu1 %v7129_v34  ;;  %3191 = vmatmul.f32.vlgmr.msrb.gmra.mxu2 %v7129_v34  ;;  %v3037_v60 = vrot.slane %v7129_v34, 4 }
 0x80a   : > { %3048 = vst [vmem:[%s5051_s13 + $0xa] sm:$0x1] %v7129_v34  ;;  %3211 = vmatmul.f32.vlgmr.msrb.gmra.mxu3 %v7129_v34  ;;  %3425 = vmatpush.msrb.mxu1 %v8659_v32  ;;  %v3038_v48 = vrot.slane %v7129_v34, 5  ;;  %v3039_v43 = vrot.slane %v7129_v34, 6  ;;  %v3040_v33 = vrot.slane %v7129_v34, 7  ;;  %v8665_v32 = vld [vmem:[#allocation83_spill] sm:$0xff] }
 0x80b   : > { %3049 = vst [vmem:[%s5051_s13 + $0x1a] sm:$0x1] %v3034_v44  ;;  %3555 = vmatpush.msrb.mxu2 %v8660_v36  ;;  %3575 = vmatpush.msrb.mxu3 %v8661_v2  ;;  %v8666_v44 = vld [vmem:[#allocation27_spill] sm:$0xff]  ;;  %v8667_v36 = vld [vmem:[#allocation29_spill] sm:$0xff] }
 0x80c   : > { %3050 = vst [vmem:[%s5051_s13 + $0x2a] sm:$0x1] %v3035_v30  ;;  %3426 = vmatpush.msrb.mxu1 %v8662_v28  ;;  %v8668_v2 = vld [vmem:[#allocation85_spill] sm:$0xff]  ;;  %v8669_v30 = vld [vmem:[#allocation30_spill] sm:$0xff]  ;;  %v8670_v28 = vld [vmem:[#allocation32_spill] sm:$0xff] }
 0x80d   : > { %3051 = vst [vmem:[%s5051_s13 + $0x3a] sm:$0x1] %v3036_v47  ;;  %3556 = vmatpush.msrb.mxu2 %v8663_v25  ;;  %3576 = vmatpush.msrb.mxu3 %v8664_v55  ;;  %v8671_v47 = vld [vmem:[#allocation86_spill] sm:$0xff]  ;;  %v8672_v25 = vld [vmem:[#allocation33_spill] sm:$0xff]  ;;  %v3288_v55 = vld [vmem:[%s5036_s26 + $0x14] sm:$0x4] }
 0x80e   : > { %3052 = vst [vmem:[%s5051_s13 + $0x4a] sm:$0x1] %v3037_v60  ;;  %3427 = vmatpush.msrb.mxu1 %v8665_v32  ;;  %v8673_v60 = vld [vmem:[#allocation35_spill] sm:$0xff]  ;;  %v8674_v32 = vld [vmem:[#allocation88_spill] sm:$0xff]  ;;  %v3296_v5 = vunpack.c.l.bf16 %v3288_v55 }
 0x80f   : > { %3053 = vst [vmem:[%s5051_s13 + $0x5a] sm:$0x1] %v3038_v48  ;;  %3557 = vmatpush.msrb.mxu2 %v8666_v44  ;;  %3577 = vmatpush.msrb.mxu3 %v8667_v36  ;;  %v8675_v48 = vld [vmem:[#allocation36_spill] sm:$0xff]  ;;  %v8676_v44 = vld [vmem:[#allocation38_spill] sm:$0xff] }
 0x810   : > { %3054 = vst [vmem:[%s5051_s13 + $0x6a] sm:$0x1] %v3039_v43  ;;  %3428 = vmatpush.msrb.mxu1 %v8668_v2  ;;  %v8677_v43 = vld [vmem:[#allocation90_spill] sm:$0xff]  ;;  %v8678_v2 = vld [vmem:[#allocation39_spill] sm:$0xff]  ;;  %v3313_v34 = vrot.slane %v3296_v5, 2 }
 0x811   : > { %3055 = vst [vmem:[%s5051_s13 + $0x7a] sm:$0x1] %v3040_v33  ;;  %3558 = vmatpush.msrb.mxu2 %v8669_v30  ;;  %3578 = vmatpush.msrb.mxu3 %v8670_v28  ;;  %v8679_v33 = vld [vmem:[#allocation41_spill] sm:$0xff]  ;;  %v8680_v30 = vld [vmem:[#allocation92_spill] sm:$0xff]  ;;  %v8681_v28 = vld [vmem:[#allocation42_spill] sm:$0xff] }
 0x812   : > { %3429 = vmatpush.msrb.mxu1 %v8671_v47  ;;  %v8682_v47 = vld [vmem:[#allocation46_spill] sm:$0xff] }
 0x813   : > { %3559 = vmatpush.msrb.mxu2 %v8672_v25  ;;  %3579 = vmatpush.msrb.mxu3 %v8673_v60  ;;  %v8683_v25 = vld [vmem:[#allocation94_spill] sm:$0xff]  ;;  %v8684_v60 = vld [vmem:[#allocation44_spill] sm:$0xff] }
 0x814   : > { %3430 = vmatpush.msrb.mxu1 %v8674_v32  ;;  %v8685_v32 = vld [vmem:[#allocation50_spill] sm:$0xff] }
 0x815   : > { %3560 = vmatpush.msrb.mxu2 %v8675_v48  ;;  %3580 = vmatpush.msrb.mxu3 %v8676_v44  ;;  %v8686_v48 = vld [vmem:[#allocation95_spill] sm:$0xff]  ;;  %v8687_v44 = vld [vmem:[#allocation48_spill] sm:$0xff]  ;;  %v3286_v36 = vld [vmem:[%s5036_s26 + $0x4] sm:$0x4] }
 0x816   : > { %3431 = vmatpush.msrb.mxu1 %v8677_v43  ;;  %v8688_v43 = vld [vmem:[#allocation51_spill] sm:$0xff]  ;;  %v3294_v41 = vunpack.c.l.bf16 %v3286_v36 }
 0x817   : > { %3561 = vmatpush.msrb.mxu2 %v8678_v2  ;;  %3581 = vmatpush.msrb.mxu3 %v8679_v33  ;;  %v8689_v2 = vld [vmem:[#allocation96_spill] sm:$0xff] }
 0x818   : > { %3432 = vmatpush.msrb.mxu1 %v8680_v30  ;;  %v8690_v33 = vld [vmem:[#allocation52_spill] sm:$0xff]  ;;  %v8691_v30 = vld [vmem:[#allocation55_spill] sm:$0xff]  ;;  %v3310_v23 = vrot.slane %v3294_v41, 4 }
 0x819   : > { %3562 = vmatpush.msrb.mxu2 %v8681_v28  ;;  %3582 = vmatpush.msrb.mxu3 %v8682_v47  ;;  %v8692_v28 = vld [vmem:[#allocation97_spill] sm:$0xff]  ;;  %v8693_v47 = vld [vmem:[#allocation54_spill] sm:$0xff] }
 0x81a   : > { %3433 = vmatpush.msrb.mxu1 %v8683_v25  ;;  %v8694_v25 = vld [vmem:[#allocation58_spill] sm:$0xff] }
 0x81b   : > { %3563 = vmatpush.msrb.mxu2 %v8684_v60  ;;  %3583 = vmatpush.msrb.mxu3 %v8685_v32  ;;  %v8695_v60 = vld [vmem:[#allocation99_spill] sm:$0xff] }
 0x81c   : > { %3434 = vmatpush.msrb.mxu1 %v8686_v48  ;;  %v8696_v48 = vld [vmem:[#allocation60_spill] sm:$0xff] }
 0x81d   : > { %3564 = vmatpush.msrb.mxu2 %v8687_v44  ;;  %3584 = vmatpush.msrb.mxu3 %v8688_v43  ;;  %v8697_v44 = vld [vmem:[#allocation62_spill] sm:$0xff]  ;;  %v8698_v43 = vld [vmem:[#allocation101_spill] sm:$0xff] }
 0x81e   : > { %3435 = vmatpush.msrb.mxu1 %v8689_v2  ;;  %v8699_v2 = vld [vmem:[#allocation64_spill] sm:$0xff] }
 0x81f   : > { %3565 = vmatpush.msrb.mxu2 %v8690_v33  ;;  %3585 = vmatpush.msrb.mxu3 %v8691_v30  ;;  %v8700_v30 = vld [vmem:[#allocation66_spill] sm:$0xff]  ;;  %v8705_v33 = vld [vmem:[#allocation72_spill] sm:$0xff] }
 0x820   : > { %3436 = vmatpush.msrb.mxu1 %v8692_v28  ;;  %v8701_v28 = vld [vmem:[#allocation103_spill] sm:$0xff] }
 0x821   : > { %3566 = vmatpush.msrb.mxu2 %v8693_v47  ;;  %3586 = vmatpush.msrb.mxu3 %v8694_v25  ;;  %v8702_v47 = vld [vmem:[#allocation68_spill] sm:$0xff]  ;;  %v8703_v25 = vld [vmem:[#allocation70_spill] sm:$0xff] }
 0x822   : > { %3437 = vmatpush.msrb.mxu1 %v8695_v60  ;;  %v8704_v60 = vld [vmem:[#allocation104_spill] sm:$0xff] }
 0x823   : > { %3567 = vmatpush.msrb.mxu2 %v8696_v48  ;;  %3587 = vmatpush.msrb.mxu3 %v8697_v44  ;;  %v8706_v48 = vld [vmem:[#allocation76_spill] sm:$0xff] }
 0x824   : > { %3438 = vmatpush.msrb.mxu1 %v8698_v43  ;;  %v8707_v43 = vld [vmem:[#allocation47_spill] sm:$0xff] }
 0x825   : > { %3568 = vmatpush.msrb.mxu2 %v8699_v2  ;;  %3588 = vmatpush.msrb.mxu3 %v8700_v30  ;;  %v3287_v30 = vld [vmem:[%s5036_s26 + $0xc] sm:$0x4] }
 0x826   : > { %3439 = vmatpush.msrb.mxu1 %v8701_v28 }
 0x827   : > { %3569 = vmatpush.msrb.mxu2 %v8702_v47  ;;  %3589 = vmatpush.msrb.mxu3 %v8703_v25  ;;  %v3295_v25 = vunpack.c.l.bf16 %v3287_v30  ;;  %v3293_v30 = vld [vmem:[%s5036_s26 + $0x3c] sm:$0x4] }
 0x828   : > { %3440 = vmatpush.msrb.mxu1 %v8704_v60 }
 0x829   : > { %3570 = vmatpush.msrb.mxu2 %v8705_v33  ;;  %3590 = vmatpush.msrb.mxu3 %v8706_v48  ;;  %v3289_v33 = vld [vmem:[%s5036_s26 + $0x1c] sm:$0x4] }
 0x82a   : > { %v3297_v56 = vunpack.c.l.bf16 %v3289_v33 }
 0x867   : > { %v3112_v44 = vpop.f32.mrf.mxu2  ;;  %v3132_v28 = vpop.f32.mrf.mxu3 }
 0x868   : > { %v3113_v32 = vadd.f32 %v3112_v44, %v8707_v43  ;;  %v3133_v60 = vadd.f32 %v3132_v28, %v8708_v21  ;;  %v3311_v44 = vrot.slane %v3295_v25, 3  ;;  %v3291_v43 = vld [vmem:[%s5036_s26 + $0x2c] sm:$0x4]  ;;  %v3300_v28 = vunpack.c.l.bf16 %v3292_v7 }
 0x869   : > { %v3299_v20 = vunpack.c.l.bf16 %v3291_v43 }
 0x86b   : > { %v3318_v25 = vrot.slane %v3299_v20, 7 }
 0x886   : > { %v3172_v2 = vpop.f32.mrf.mxu1 }
 0x887   : > { %v3215_v47 = vadd.f32 %v3172_v2, %v3113_v32  ;;  %v3312_v32 = vsel %vm541_vm0, %v3311_v44, %v3310_v23  ;;  %v3315_v2 = vrot.slane %v3297_v56, 1 }
 0x888   : > { %v3314_v21 = vsel %vm544_vm1, %v3313_v34, %v3312_v32 }
 0x889   : > { %v4406_v48 = vmul.f32 -1.442695, %v3215_v47  ;;  %v3301_v47 = vunpack.c.l.bf16 %v3293_v30  ;;  %v3316_v41 = vsel %vm547_vm2, %v3315_v2, %v3314_v21  ;;  %v3152_v2 = vpop.f32.mrf.mxu0 }
 0x88a   : > { %v3317_v5 = vsel %vm550_vm3, %v3298_v27, %v3316_v41  ;;  %v3153_v41 = vadd.f32 %v3152_v2, %v5624_v63 }
 0x88b   : > { %4651 = vpow2.f32 %v4406_v48  ;;  %v3320_v48 = vrot.slane %v3300_v28, 6  ;;  %v3319_v43 = vsel %vm553_vm4, %v3318_v25, %v3317_v5  ;;  %v3322_v54 = vrot.slane %v3301_v47, 5 }
 0x88c   : > { %v3192_v36 = vpop.f32.mrf.mxu2 }
 0x88d   : > { %v3235_v55 = vadd.f32 %v3192_v36, %v3133_v60  ;;  %v3321_v23 = vsel %vm556_vm5, %v3320_v48, %v3319_v43  ;;  %v3212_v30 = vpop.f32.mrf.mxu3 }
 0x88e   : > { %v3323_v7 = vsel %vm559_vm6, %v3322_v54, %v3321_v23  ;;  %v3255_v48 = vadd.f32 %v6948_v0, %v3212_v30 }
 0x88f   : > { %v4407_v33 = vmul.f32 -1.442695, %v3235_v55  ;;  %3341 = vmatmul.f32.vlgmr.msra.gmra.mxu0 %v3323_v7  ;;  %3361 = vmatmul.f32.vlgmr.msra.gmra.mxu1 %v3323_v7 }
 0x890   : > { %3381 = vmatmul.f32.vlgmr.msra.gmra.mxu2 %v3323_v7  ;;  %3615 = vmatpush.msra.mxu1 %v5061_v6 }
 0x891   : > { %v4652_v56 = vpop.eup %4651  ;;  %4653 = vpow2.f32 %v4407_v33  ;;  %3635 = vmatpush.msra.mxu2 %v8015_v22  ;;  %3595 = vmatpush.msra.mxu0 %v5138_v45 }
 0x892   : > { %v3219_v31 = vadd.f32 1.0, %v4652_v56  ;;  %3616 = vmatpush.msra.mxu1 %v8038_v15 }
 0x893   : > { %3636 = vmatpush.msra.mxu2 %v8018_v53  ;;  %3596 = vmatpush.msra.mxu0 %v5149_v50 }
 0x894   : > { %4655 = vrcp.f32 %v3219_v31  ;;  %3617 = vmatpush.msra.mxu1 %v8041_v37  ;;  %v3231_v60 = vand.u32 2147483648, %v3219_v31  ;;  %v3229_v32 = vand.u32 2147483647, %v3219_v31  ;;  %vm3225_vm15 = vweird.f32 %v3219_v31 }
 0x895   : > { %3637 = vmatpush.msra.mxu2 %v8020_v29  ;;  %3597 = vmatpush.msra.mxu0 %v8001_v62 }
 0x896   : > { %3618 = vmatpush.msra.mxu1 %v8042_v49  ;;  %v3232_v47 = vor.u32 1.1754944e-38, %v3231_v60  ;;  %vm3230_vm8 = vcmp.eq.f32.partialorder %v3229_v32, 8.507059e+37  ;;  %v8712_v32 = vld [vmem:[#allocation89_spill] sm:$0xff] }
 0x897   : > { %v4654_v27 = vpop.eup %4653  ;;  %3638 = vmatpush.msra.mxu2 %v8022_v35  ;;  %3598 = vmatpush.msra.mxu0 %v8004_v10 }
 0x898   : > { %v3239_v54 = vadd.f32 1.0, %v4654_v27  ;;  %3619 = vmatpush.msra.mxu1 %v8043_v19 }
 0x899   : > { %3639 = vmatpush.msra.mxu2 %v8024_v59  ;;  %3599 = vmatpush.msra.mxu0 %v8044_v1 }
 0x89a   : > { %v4656_v20 = vpop.eup %4655  ;;  %4657 = vrcp.f32 %v3239_v54  ;;  %3620 = vmatpush.msra.mxu1 %v8045_v14  ;;  %v3251_v23 = vand.u32 2147483648, %v3239_v54  ;;  %v3249_v7 = vand.u32 2147483647, %v3239_v54  ;;  %vm3245_vm10 = vweird.f32 %v3239_v54 }
 0x89b   : > { %v3221_v34 = vmul.f32 %v4656_v20, %v3219_v31  ;;  %3640 = vmatpush.msra.mxu2 %v5333_v38  ;;  %3600 = vmatpush.msra.mxu0 %v8046_v46  ;;  %vm3226_vm14 = vweird.f32 %v4656_v20 }
 0x89c   : > { %3621 = vmatpush.msra.mxu1 %v8047_v11  ;;  %vm3227_vm7 = vmor %vm3225_vm15, %vm3226_vm14  ;;  %v3252_v27 = vor.u32 1.1754944e-38, %v3251_v23  ;;  %vm3250_vm12 = vcmp.eq.f32.partialorder %v3249_v7, 8.507059e+37 }
 0x89d   : > { %v3222_v21 = vsub.f32 1.0, %v3221_v34  ;;  %3641 = vmatpush.msra.mxu2 %v5344_v12  ;;  %3601 = vmatpush.msra.mxu0 %v8048_v26  ;;  %v8709_v34 = vld [vmem:[#allocation87_spill] sm:$0xff] }
 0x89e   : > { %3622 = vmatpush.msra.mxu1 %v8049_v3 }
 0x89f   : > { %v3223_v44 = vmul.f32 %v4656_v20, %v3222_v21  ;;  %3642 = vmatpush.msra.mxu2 %v5355_v52  ;;  %3602 = vmatpush.msra.mxu0 %v8013_v57  ;;  %v8710_v21 = vld [vmem:[#allocation65_spill] sm:$0xff] }
 0x8a0   : > { %v4658_v36 = vpop.eup %4657  ;;  %3623 = vmatpush.msra.mxu1 %v8050_v4 }
 0x8a1   : > { %v3241_v28 = vmul.f32 %v4658_v36, %v3239_v54  ;;  %v3224_v55 = vadd.f32 %v4656_v20, %v3223_v44  ;;  %3643 = vmatpush.msra.mxu2 %v5366_v8  ;;  %3603 = vmatpush.msra.mxu0 %v8017_v24  ;;  %vm3246_vm9 = vweird.f32 %v4658_v36  ;;  %v8711_v44 = vld [vmem:[#allocation98_spill] sm:$0xff] }
 0x8a2   : > { %3624 = vmatpush.msra.mxu1 %v8016_v51  ;;  %vm3247_vm11 = vmor %vm3245_vm10, %vm3246_vm9 }
 0x8a3   : > { %v3242_v25 = vsub.f32 1.0, %v3241_v28  ;;  %v3228_v5 = vsel %vm3227_vm7, %v4656_v20, %v3224_v55  ;;  %3644 = vmatpush.msra.mxu2 %v5377_v9  ;;  %3604 = vmatpush.msra.mxu0 %v5307_v42  ;;  %v8714_v28 = vld [vmem:[#allocation25_spill] sm:$0xff] }
 0x8a4   : > { %v3233_v33 = vsel %vm3230_vm8, %v3232_v47, %v3228_v5  ;;  %3625 = vmatpush.msra.mxu1 %v8051_v61  ;;  %v8715_v47 = vld [vmem:[#allocation100_spill] sm:$0xff] }
 0x8a5   : > { %v3243_v43 = vmul.f32 %v4658_v36, %v3242_v25  ;;  %v3256_v56 = vmul.f32 %v3255_v48, %v3233_v33  ;;  %3645 = vmatpush.msra.mxu2 %v5386_v13  ;;  %3605 = vmatpush.msra.mxu0 %v5317_v17  ;;  %v8717_v25 = vld [vmem:[#allocation73_spill] sm:$0xff]  ;;  %v8719_v48 = vld [vmem:[#allocation102_spill] sm:$0xff] }
 0x8a6   : > { %3626 = vmatpush.msra.mxu1 %v8021_v16  ;;  %v8720_v33 = vld [vmem:[#allocation93_spill] sm:$0xff] }
 0x8a7   : > { %v3244_v0 = vadd.f32 %v4658_v36, %v3243_v43  ;;  %v3257_v31 = vadd.f32 %v3256_v56, %v3153_v41  ;;  %3646 = vmatpush.msra.mxu2 %v5395_v58  ;;  %3606 = vmatpush.msra.mxu0 %v5328_v39  ;;  %v8716_v41 = vld [vmem:[#allocation91_spill] sm:$0xff] }
 0x8a8   : > { %3627 = vmatpush.msra.mxu1 %v8023_v40 }
 0x8a9   : > { %v3248_v20 = vsel %vm3247_vm11, %v4658_v36, %v3244_v0  ;;  %4659 = vtanh.f32 %v3257_v31  ;;  %3647 = vmatpush.msra.mxu2 %v5404_v18  ;;  %3607 = vmatpush.msra.mxu0 %v8709_v34  ;;  %v8713_v36 = vld [vmem:[#allocation69_spill] sm:$0xff]  ;;  %v8721_v0 = vld [vmem:[#allocation78_spill] sm:$0xff] }
 0x8aa   : > { %v3253_v54 = vsel %vm3250_vm12, %v3252_v27, %v3248_v20  ;;  %3628 = vmatpush.msra.mxu1 %v8710_v21  ;;  %v8722_v27 = vld [vmem:[#allocation22_spill] sm:$0xff]  ;;  %v8723_v20 = vld [vmem:[#allocation24_spill] sm:$0xff] }
 0x8ab   : > { %v3259_v60 = vsub.f32 1.0, %v3253_v54  ;;  %3648 = vmatpush.msra.mxu2 %v8711_v44  ;;  %3608 = vmatpush.msra.mxu0 %v8712_v32  ;;  %v3261_v55 = vmul.f32 %v3253_v54, %v8714_v28  ;;  %v8726_v28 = vld [vmem:[#allocation26_spill] sm:$0xff] }
 0x8ac   : > { %3629 = vmatpush.msra.mxu1 %v8713_v36 }
 0x8ad   : > { %3649 = vmatpush.msra.mxu2 %v8715_v47  ;;  %3609 = vmatpush.msra.mxu0 %v8716_v41 }
 0x8ae   : > { %3630 = vmatpush.msra.mxu1 %v8717_v25  ;;  %v3519_v25 = vld [vmem:[%s5036_s26 + $0x1c] sm:$0x4] }
 0x8af   : > { %v4660_v2 = vpop.eup %4659  ;;  %3650 = vmatpush.msra.mxu2 %v8719_v48  ;;  %3610 = vmatpush.msra.mxu0 %v8720_v33  ;;  %v3517_v33 = vld [vmem:[%s5036_s26 + $0xc] sm:$0x4]  ;;  %v3527_v47 = vunpack.c.l.bf16 %v3519_v25 }
 0x8b0   : > { %v3260_v30 = vmul.f32 %v4660_v2, %v3259_v60  ;;  %v8724_v60 = vld [vmem:[#allocation81_spill] sm:$0xff] }
 0x8b2   : > { %v7267_v5 = vadd.f32 %v3261_v55, %v3260_v30  ;;  %v8725_v30 = vld [vmem:[#allocation23_spill] sm:$0xff] }
 0x8b3   : > { %v8727_v55 = vld [vmem:[#allocation83_spill] sm:$0xff] }
 0x8b4   : > { %8718 = vst [vmem:[#allocation28_spill] sm:$0xff] %v7267_v5  ;;  %v3264_v43 = vrot.slane %v7267_v5, 1  ;;  %v3265_v23 = vrot.slane %v7267_v5, 2  ;;  %v3266_v56 = vrot.slane %v7267_v5, 3  ;;  %3401 = vmatmul.f32.vlgmr.msra.gmra.mxu3 %v7267_v5  ;;  %3421 = vmatmul.f32.vlgmr.msrb.gmra.mxu0 %v7267_v5  ;;  %v3267_v7 = vrot.slane %v7267_v5, 4 }
 0x8b5   : > { %3278 = vst [vmem:[%s5051_s13 + $0xb] sm:$0x1] %v7267_v5  ;;  %3441 = vmatmul.f32.vlgmr.msrb.gmra.mxu1 %v7267_v5  ;;  %3655 = vmatpush.msra.mxu3 %v8721_v0  ;;  %v3268_v31 = vrot.slane %v7267_v5, 5  ;;  %v3269_v54 = vrot.slane %v7267_v5, 6  ;;  %v3270_v2 = vrot.slane %v7267_v5, 7 }
 0x8b6   : > { %3279 = vst [vmem:[%s5051_s13 + $0x1b] sm:$0x1] %v3264_v43  ;;  %3785 = vmatpush.msrb.mxu0 %v8722_v27  ;;  %3805 = vmatpush.msrb.mxu1 %v8723_v20  ;;  %v8728_v43 = vld [vmem:[#allocation27_spill] sm:$0xff]  ;;  %v8729_v27 = vld [vmem:[#allocation29_spill] sm:$0xff]  ;;  %v3516_v0 = vld [vmem:[%s5036_s26 + $0x4] sm:$0x4] }
 0x8b7   : > { %3280 = vst [vmem:[%s5051_s13 + $0x2b] sm:$0x1] %v3265_v23  ;;  %3656 = vmatpush.msra.mxu3 %v8724_v60  ;;  %v8730_v20 = vld [vmem:[#allocation85_spill] sm:$0xff]  ;;  %v8731_v23 = vld [vmem:[#allocation30_spill] sm:$0xff]  ;;  %v8732_v60 = vld [vmem:[#allocation32_spill] sm:$0xff]  ;;  %v3524_v48 = vunpack.c.l.bf16 %v3516_v0 }
 0x8b8   : > { %3281 = vst [vmem:[%s5051_s13 + $0x3b] sm:$0x1] %v3266_v56  ;;  %3786 = vmatpush.msrb.mxu0 %v8725_v30  ;;  %3806 = vmatpush.msrb.mxu1 %v8726_v28  ;;  %v8733_v56 = vld [vmem:[#allocation86_spill] sm:$0xff]  ;;  %v8734_v30 = vld [vmem:[#allocation33_spill] sm:$0xff] }
 0x8b9   : > { %3282 = vst [vmem:[%s5051_s13 + $0x4b] sm:$0x1] %v3267_v7  ;;  %3657 = vmatpush.msra.mxu3 %v8727_v55  ;;  %v8735_v7 = vld [vmem:[#allocation35_spill] sm:$0xff]  ;;  %v8736_v55 = vld [vmem:[#allocation88_spill] sm:$0xff]  ;;  %v3523_v0 = vld [vmem:[%s5036_s26 + $0x3c] sm:$0x4] }
 0x8ba   : > { %3283 = vst [vmem:[%s5051_s13 + $0x5b] sm:$0x1] %v3268_v31  ;;  %3787 = vmatpush.msrb.mxu0 %v8728_v43  ;;  %3807 = vmatpush.msrb.mxu1 %v8729_v27  ;;  %v8737_v31 = vld [vmem:[#allocation36_spill] sm:$0xff]  ;;  %v8738_v43 = vld [vmem:[#allocation38_spill] sm:$0xff]  ;;  %v8770_v27 = vld [vmem:[#allocation47_spill] sm:$0xff]  ;;  %v3531_v25 = vunpack.c.l.bf16 %v3523_v0 }
 0x8bb   : > { %3284 = vst [vmem:[%s5051_s13 + $0x6b] sm:$0x1] %v3269_v54  ;;  %3658 = vmatpush.msra.mxu3 %v8730_v20  ;;  %v8739_v54 = vld [vmem:[#allocation90_spill] sm:$0xff]  ;;  %v8740_v20 = vld [vmem:[#allocation39_spill] sm:$0xff] }
 0x8bc   : > { %3285 = vst [vmem:[%s5051_s13 + $0x7b] sm:$0x1] %v3270_v2  ;;  %3788 = vmatpush.msrb.mxu0 %v8731_v23  ;;  %3808 = vmatpush.msrb.mxu1 %v8732_v60  ;;  %v8741_v2 = vld [vmem:[#allocation41_spill] sm:$0xff]  ;;  %v8742_v23 = vld [vmem:[#allocation92_spill] sm:$0xff]  ;;  %v8743_v60 = vld [vmem:[#allocation42_spill] sm:$0xff] }
 0x8bd   : > { %3659 = vmatpush.msra.mxu3 %v8733_v56  ;;  %v8744_v56 = vld [vmem:[#allocation46_spill] sm:$0xff] }
 0x8be   : > { %3789 = vmatpush.msrb.mxu0 %v8734_v30  ;;  %3809 = vmatpush.msrb.mxu1 %v8735_v7  ;;  %v8745_v30 = vld [vmem:[#allocation94_spill] sm:$0xff]  ;;  %v8746_v7 = vld [vmem:[#allocation44_spill] sm:$0xff] }
 0x8bf   : > { %3660 = vmatpush.msra.mxu3 %v8736_v55  ;;  %v8747_v55 = vld [vmem:[#allocation50_spill] sm:$0xff] }
 0x8c0   : > { %3790 = vmatpush.msrb.mxu0 %v8737_v31  ;;  %3810 = vmatpush.msrb.mxu1 %v8738_v43  ;;  %v8748_v31 = vld [vmem:[#allocation95_spill] sm:$0xff]  ;;  %v8749_v43 = vld [vmem:[#allocation48_spill] sm:$0xff] }
 0x8c1   : > { %3661 = vmatpush.msra.mxu3 %v8739_v54  ;;  %v8750_v54 = vld [vmem:[#allocation51_spill] sm:$0xff] }
 0x8c2   : > { %3791 = vmatpush.msrb.mxu0 %v8740_v20  ;;  %3811 = vmatpush.msrb.mxu1 %v8741_v2  ;;  %v8751_v20 = vld [vmem:[#allocation96_spill] sm:$0xff] }
 0x8c3   : > { %3662 = vmatpush.msra.mxu3 %v8742_v23  ;;  %v8752_v2 = vld [vmem:[#allocation52_spill] sm:$0xff]  ;;  %v8753_v23 = vld [vmem:[#allocation55_spill] sm:$0xff] }
 0x8c4   : > { %3792 = vmatpush.msrb.mxu0 %v8743_v60  ;;  %3812 = vmatpush.msrb.mxu1 %v8744_v56  ;;  %v8754_v60 = vld [vmem:[#allocation97_spill] sm:$0xff]  ;;  %v8755_v56 = vld [vmem:[#allocation54_spill] sm:$0xff] }
 0x8c5   : > { %3663 = vmatpush.msra.mxu3 %v8745_v30  ;;  %v8756_v30 = vld [vmem:[#allocation58_spill] sm:$0xff] }
 0x8c6   : > { %3793 = vmatpush.msrb.mxu0 %v8746_v7  ;;  %3813 = vmatpush.msrb.mxu1 %v8747_v55  ;;  %v8757_v7 = vld [vmem:[#allocation99_spill] sm:$0xff]  ;;  %v8758_v55 = vld [vmem:[#allocation60_spill] sm:$0xff] }
 0x8c7   : > { %3664 = vmatpush.msra.mxu3 %v8748_v31  ;;  %v8759_v31 = vld [vmem:[#allocation62_spill] sm:$0xff] }
 0x8c8   : > { %3794 = vmatpush.msrb.mxu0 %v8749_v43  ;;  %3814 = vmatpush.msrb.mxu1 %v8750_v54  ;;  %v8760_v43 = vld [vmem:[#allocation101_spill] sm:$0xff]  ;;  %v8761_v54 = vld [vmem:[#allocation64_spill] sm:$0xff] }
 0x8c9   : > { %3665 = vmatpush.msra.mxu3 %v8751_v20  ;;  %v8762_v20 = vld [vmem:[#allocation66_spill] sm:$0xff] }
 0x8ca   : > { %3795 = vmatpush.msrb.mxu0 %v8752_v2  ;;  %3815 = vmatpush.msrb.mxu1 %v8753_v23  ;;  %v8763_v2 = vld [vmem:[#allocation103_spill] sm:$0xff] }
 0x8cb   : > { %3666 = vmatpush.msra.mxu3 %v8754_v60  ;;  %v8764_v60 = vld [vmem:[#allocation68_spill] sm:$0xff] }
 0x8cc   : > { %3796 = vmatpush.msrb.mxu0 %v8755_v56  ;;  %3816 = vmatpush.msrb.mxu1 %v8756_v30  ;;  %v8765_v56 = vld [vmem:[#allocation70_spill] sm:$0xff]  ;;  %v8766_v30 = vld [vmem:[#allocation104_spill] sm:$0xff] }
 0x8cd   : > { %3667 = vmatpush.msra.mxu3 %v8757_v7  ;;  %v8769_v7 = vld [vmem:[#allocation57_spill] sm:$0xff] }
 0x8ce   : > { %3797 = vmatpush.msrb.mxu0 %v8758_v55  ;;  %3817 = vmatpush.msrb.mxu1 %v8759_v31  ;;  %v8767_v55 = vld [vmem:[#allocation72_spill] sm:$0xff] }
 0x8cf   : > { %3668 = vmatpush.msra.mxu3 %v8760_v43  ;;  %v8768_v31 = vld [vmem:[#allocation76_spill] sm:$0xff] }
 0x8d0   : > { %3798 = vmatpush.msrb.mxu0 %v8761_v54  ;;  %3818 = vmatpush.msrb.mxu1 %v8762_v20 }
 0x8d1   : > { %3669 = vmatpush.msra.mxu3 %v8763_v2 }
 0x8d2   : > { %3799 = vmatpush.msrb.mxu0 %v8764_v60  ;;  %3819 = vmatpush.msrb.mxu1 %v8765_v56 }
 0x8d3   : > { %3670 = vmatpush.msra.mxu3 %v8766_v30 }
 0x8d4   : > { %3800 = vmatpush.msrb.mxu0 %v8767_v55  ;;  %3820 = vmatpush.msrb.mxu1 %v8768_v31  ;;  %v3518_v55 = vld [vmem:[%s5036_s26 + $0x14] sm:$0x4]  ;;  %v3525_v31 = vunpack.c.l.bf16 %v3517_v33  ;;  %v3521_v33 = vld [vmem:[%s5036_s26 + $0x2c] sm:$0x4] }
 0x8d5   : > { %v3526_v41 = vunpack.c.l.bf16 %v3518_v55  ;;  %v3529_v32 = vunpack.c.l.bf16 %v3521_v33 }
 0x90c   : > { %v3342_v43 = vpop.f32.mrf.mxu0  ;;  %v3362_v54 = vpop.f32.mrf.mxu1 }
 0x90d   : > { %v3363_v20 = vadd.f32 %v3362_v54, %v8769_v7  ;;  %v3343_v28 = vadd.f32 %v3342_v43, %v8770_v27  ;;  %v3520_v7 = vld [vmem:[%s5036_s26 + $0x24] sm:$0x4]  ;;  %v3522_v27 = vld [vmem:[%s5036_s26 + $0x34] sm:$0x4] }
 0x90e   : > { %v3528_v43 = vunpack.c.l.bf16 %v3520_v7  ;;  %v3530_v5 = vunpack.c.l.bf16 %v3522_v27 }
 0x910   : > { %v3550_v7 = vrot.slane %v3530_v5, 7 }
 0x931   : > { %v3422_v23 = vpop.f32.mrf.mxu0 }
 0x932   : > { %v3465_v2 = vadd.f32 %v3422_v23, %v3363_v20  ;;  %v3540_v20 = vrot.slane %v3524_v48, 5  ;;  %v3541_v23 = vrot.slane %v3525_v31, 4  ;;  %v3552_v31 = vrot.slane %v3531_v25, 6  ;;  %v3382_v25 = vpop.f32.mrf.mxu2 }
 0x934   : > { %v4409_v60 = vmul.f32 -1.442695, %v3465_v2  ;;  %v3543_v2 = vrot.slane %v3526_v41, 3  ;;  %v3542_v36 = vsel %vm541_vm0, %v3541_v23, %v3540_v20 }
 0x936   : > { %4661 = vpow2.f32 %v4409_v60  ;;  %v3544_v55 = vsel %vm544_vm1, %v3543_v2, %v3542_v36 }
 0x937   : > { %v3402_v56 = vpop.f32.mrf.mxu3 }
 0x938   : > { %v3445_v30 = vadd.f32 %v3402_v56, %v3343_v28  ;;  %v3545_v28 = vrot.slane %v3527_v47, 2 }
 0x93a   : > { %v4408_v54 = vmul.f32 -1.442695, %v3445_v30  ;;  %v3547_v30 = vrot.slane %v3528_v43, 1  ;;  %v3546_v48 = vsel %vm547_vm2, %v3545_v28, %v3544_v55 }
 0x93c   : > { %v4662_v60 = vpop.eup %4661  ;;  %4663 = vpow2.f32 %v4408_v54  ;;  %v3548_v41 = vsel %vm550_vm3, %v3547_v30, %v3546_v48  ;;  %v3442_v30 = vpop.f32.mrf.mxu1 }
 0x93d   : > { %v7347_v56 = vadd.f32 1.0, %v4662_v60  ;;  %v3549_v47 = vsel %vm553_vm4, %v3529_v32, %v3548_v41 }
 0x93e   : > { %v3551_v20 = vsel %vm556_vm5, %v3550_v7, %v3549_v47  ;;  %v7388_v7 = vld [vmem:[%s7700_s4] ss:$0 sm:$0xff]  ;;  %v3383_v47 = vadd.f32 %v3382_v25, %v5624_v63  ;;  %v8773_v25 = vld [vmem:[#allocation69_spill] sm:$0xff] }
 0x93f   : > { %4665 = vrcp.f32 %v7347_v56  ;;  %v3553_v27 = vsel %vm559_vm6, %v3552_v31, %v3551_v20  ;;  %v3485_v31 = vadd.f32 %v7388_v7, %v3442_v30  ;;  %vm3475_vm9 = vweird.f32 %v7347_v56 }
 0x940   : > { %3571 = vmatmul.f32.vlgmr.msrb.gmra.mxu2 %v3553_v27  ;;  %3591 = vmatmul.f32.vlgmr.msrb.gmra.mxu3 %v3553_v27 }
 0x941   : > { %3611 = vmatmul.f32.vlgmr.msra.gmra.mxu0 %v3553_v27  ;;  %3845 = vmatpush.msrb.mxu3 %v5061_v6  ;;  %v3481_v27 = vand.u32 2147483648, %v7347_v56 }
 0x942   : > { %v4664_v54 = vpop.eup %4663  ;;  %3865 = vmatpush.msra.mxu0 %v8015_v22  ;;  %3825 = vmatpush.msrb.mxu2 %v5138_v45 }
 0x943   : > { %v3449_v23 = vadd.f32 1.0, %v4664_v54  ;;  %3846 = vmatpush.msrb.mxu3 %v8038_v15 }
 0x944   : > { %3866 = vmatpush.msra.mxu0 %v8018_v53  ;;  %3826 = vmatpush.msrb.mxu2 %v5149_v50 }
 0x945   : > { %4667 = vrcp.f32 %v3449_v23  ;;  %v7359_v36 = vpop.eup %4665  ;;  %3847 = vmatpush.msrb.mxu3 %v8041_v37  ;;  %v3461_v28 = vand.u32 2147483648, %v3449_v23  ;;  %v3459_v0 = vand.u32 2147483647, %v3449_v23  ;;  %vm3455_vm14 = vweird.f32 %v3449_v23 }
 0x946   : > { %v3471_v32 = vmul.f32 %v7359_v36, %v7347_v56  ;;  %3867 = vmatpush.msra.mxu0 %v8020_v29  ;;  %3827 = vmatpush.msrb.mxu2 %v8001_v62  ;;  %vm3476_vm8 = vweird.f32 %v7359_v36 }
 0x947   : > { %3848 = vmatpush.msrb.mxu3 %v8042_v49  ;;  %v3462_v41 = vor.u32 1.1754944e-38, %v3461_v28  ;;  %vm3460_vm7 = vcmp.eq.f32.partialorder %v3459_v0, 8.507059e+37  ;;  %vm3477_vm10 = vmor %vm3475_vm9, %vm3476_vm8 }
 0x948   : > { %3868 = vmatpush.msra.mxu0 %v8022_v35  ;;  %3828 = vmatpush.msrb.mxu2 %v8004_v10  ;;  %v3472_v2 = vsub.f32 1.0, %v3471_v32 }
 0x949   : > { %3849 = vmatpush.msrb.mxu3 %v8043_v19 }
 0x94a   : > { %3869 = vmatpush.msra.mxu0 %v8024_v59  ;;  %3829 = vmatpush.msrb.mxu2 %v8044_v1  ;;  %v3473_v55 = vmul.f32 %v7359_v36, %v3472_v2 }
 0x94b   : > { %v4668_v5 = vpop.eup %4667  ;;  %3850 = vmatpush.msrb.mxu3 %v8045_v14 }
 0x94c   : > { %v3451_v43 = vmul.f32 %v4668_v5, %v3449_v23  ;;  %vm3456_vm13 = vweird.f32 %v4668_v5  ;;  %3870 = vmatpush.msra.mxu0 %v5333_v38  ;;  %3830 = vmatpush.msrb.mxu2 %v8046_v46  ;;  %v3474_v23 = vadd.f32 %v7359_v36, %v3473_v55  ;;  %v8772_v55 = vld [vmem:[#allocation28_spill] sm:$0xff] }
 0x94d   : > { %3851 = vmatpush.msrb.mxu3 %v8047_v11  ;;  %vm3457_vm15 = vmor %vm3455_vm14, %vm3456_vm13 }
 0x94e   : > { %v3452_v60 = vsub.f32 1.0, %v3451_v43  ;;  %3871 = vmatpush.msra.mxu0 %v5344_v12  ;;  %3831 = vmatpush.msrb.mxu2 %v8048_v26  ;;  %v3478_v2 = vsel %vm3477_vm10, %v7359_v36, %v3474_v23 }
 0x94f   : > { %3852 = vmatpush.msrb.mxu3 %v8049_v3 }
 0x950   : > { %v3453_v33 = vmul.f32 %v4668_v5, %v3452_v60  ;;  %3872 = vmatpush.msra.mxu0 %v5355_v52  ;;  %3832 = vmatpush.msrb.mxu2 %v8013_v57  ;;  %v3482_v60 = vor.u32 1.1754944e-38, %v3481_v27 }
 0x951   : > { %3853 = vmatpush.msrb.mxu3 %v8050_v4 }
 0x952   : > { %v3454_v48 = vadd.f32 %v4668_v5, %v3453_v33  ;;  %3873 = vmatpush.msra.mxu0 %v5366_v8  ;;  %3833 = vmatpush.msrb.mxu2 %v8017_v24  ;;  %v8771_v33 = vld [vmem:[#allocation89_spill] sm:$0xff] }
 0x953   : > { %3854 = vmatpush.msrb.mxu3 %v8016_v51 }
 0x954   : > { %v3458_v54 = vsel %vm3457_vm15, %v4668_v5, %v3454_v48  ;;  %v3479_v5 = vand.u32 2147483647, %v7347_v56  ;;  %3874 = vmatpush.msra.mxu0 %v5377_v9  ;;  %3834 = vmatpush.msrb.mxu2 %v5307_v42  ;;  %v8774_v48 = vld [vmem:[#allocation100_spill] sm:$0xff] }
 0x955   : > { %v3463_v20 = vsel %vm3460_vm7, %v3462_v41, %v3458_v54  ;;  %3855 = vmatpush.msrb.mxu3 %v8051_v61  ;;  %v8775_v41 = vld [vmem:[#allocation91_spill] sm:$0xff]  ;;  %v8778_v54 = vld [vmem:[#allocation102_spill] sm:$0xff] }
 0x956   : > { %v3486_v32 = vmul.f32 %v3485_v31, %v3463_v20  ;;  %3875 = vmatpush.msra.mxu0 %v5386_v13  ;;  %3835 = vmatpush.msrb.mxu2 %v5317_v17  ;;  %vm3480_vm11 = vcmp.eq.f32.partialorder %v3479_v5, 8.507059e+37  ;;  %v8779_v20 = vld [vmem:[#allocation93_spill] sm:$0xff] }
 0x957   : > { %3856 = vmatpush.msrb.mxu3 %v8021_v16  ;;  %v3483_v56 = vsel %vm3480_vm11, %v3482_v60, %v3478_v2  ;;  %v8781_v60 = vld [vmem:[#allocation22_spill] sm:$0xff] }
 0x958   : > { %v3487_v43 = vadd.f32 %v3486_v32, %v3383_v47  ;;  %3876 = vmatpush.msra.mxu0 %v5395_v58  ;;  %3836 = vmatpush.msrb.mxu2 %v5328_v39  ;;  %v3489_v36 = vsub.f32 1.0, %v3483_v56  ;;  %v3491_v30 = vmul.f32 %v3483_v56, %v8772_v55  ;;  %v8777_v47 = vld [vmem:[#allocation73_spill] sm:$0xff]  ;;  %v8782_v56 = vld [vmem:[#allocation24_spill] sm:$0xff]  ;;  %v8784_v55 = vld [vmem:[#allocation23_spill] sm:$0xff] }
 0x959   : > { %3857 = vmatpush.msrb.mxu3 %v8023_v40 }
 0x95a   : > { %4669 = vtanh.f32 %v3487_v43  ;;  %3877 = vmatpush.msra.mxu0 %v5404_v18  ;;  %3837 = vmatpush.msrb.mxu2 %v8709_v34  ;;  %v8780_v43 = vld [vmem:[#allocation78_spill] sm:$0xff] }
 0x95b   : > { %3858 = vmatpush.msrb.mxu3 %v8710_v21 }
 0x95c   : > { %3878 = vmatpush.msra.mxu0 %v8711_v44  ;;  %3838 = vmatpush.msrb.mxu2 %v8771_v33 }
 0x95d   : > { %3859 = vmatpush.msrb.mxu3 %v8773_v25 }
 0x95e   : > { %3879 = vmatpush.msra.mxu0 %v8774_v48  ;;  %3839 = vmatpush.msrb.mxu2 %v8775_v41  ;;  %v3750_v48 = vld [vmem:[%s5036_s26 + $0x24] sm:$0x8] }
 0x95f   : > { %3860 = vmatpush.msrb.mxu3 %v8777_v47  ;;  %v3758_v25 = vunpack.c.l.bf16 %v3750_v48 }
 0x960   : > { %v4670_v28 = vpop.eup %4669  ;;  %3880 = vmatpush.msra.mxu0 %v8778_v54  ;;  %3840 = vmatpush.msrb.mxu2 %v8779_v20 }
 0x961   : > { %v3490_v0 = vmul.f32 %v4670_v28, %v3489_v36  ;;  %v8783_v28 = vld [vmem:[#allocation81_spill] sm:$0xff] }
 0x963   : > { %v7422_v31 = vadd.f32 %v3491_v30, %v3490_v0  ;;  %v8785_v30 = vld [vmem:[#allocation26_spill] sm:$0xff] }
 0x965   : > { %8776 = vst [vmem:[#allocation31_spill] sm:$0xff] %v7422_v31  ;;  %v3494_v23 = vrot.slane %v7422_v31, 1  ;;  %v3495_v27 = vrot.slane %v7422_v31, 2  ;;  %v3496_v32 = vrot.slane %v7422_v31, 3  ;;  %3631 = vmatmul.f32.vlgmr.msra.gmra.mxu1 %v7422_v31  ;;  %3651 = vmatmul.f32.vlgmr.msra.gmra.mxu2 %v7422_v31  ;;  %v3497_v5 = vrot.slane %v7422_v31, 4 }
 0x966   : > { %3508 = vst [vmem:[%s5051_s13 + $0xc] sm:$0x1] %v7422_v31  ;;  %3671 = vmatmul.f32.vlgmr.msra.gmra.mxu3 %v7422_v31  ;;  %3885 = vmatpush.msra.mxu1 %v8780_v43  ;;  %v3498_v2 = vrot.slane %v7422_v31, 5  ;;  %v3499_v36 = vrot.slane %v7422_v31, 6  ;;  %v3500_v0 = vrot.slane %v7422_v31, 7  ;;  %v8786_v43 = vld [vmem:[#allocation83_spill] sm:$0xff] }
 0x967   : > { %3509 = vst [vmem:[%s5051_s13 + $0x1c] sm:$0x1] %v3494_v23  ;;  %4015 = vmatpush.msra.mxu2 %v8781_v60  ;;  %4035 = vmatpush.msra.mxu3 %v8782_v56  ;;  %v8787_v23 = vld [vmem:[#allocation27_spill] sm:$0xff]  ;;  %v8788_v60 = vld [vmem:[#allocation29_spill] sm:$0xff] }
 0x968   : > { %3510 = vst [vmem:[%s5051_s13 + $0x2c] sm:$0x1] %v3495_v27  ;;  %3886 = vmatpush.msra.mxu1 %v8783_v28  ;;  %v8789_v56 = vld [vmem:[#allocation85_spill] sm:$0xff]  ;;  %v8790_v27 = vld [vmem:[#allocation30_spill] sm:$0xff]  ;;  %v8791_v28 = vld [vmem:[#allocation32_spill] sm:$0xff] }
 0x969   : > { %3511 = vst [vmem:[%s5051_s13 + $0x3c] sm:$0x1] %v3496_v32  ;;  %4016 = vmatpush.msra.mxu2 %v8784_v55  ;;  %4036 = vmatpush.msra.mxu3 %v8785_v30  ;;  %v8792_v32 = vld [vmem:[#allocation86_spill] sm:$0xff]  ;;  %v8793_v55 = vld [vmem:[#allocation33_spill] sm:$0xff]  ;;  %v8795_v30 = vld [vmem:[#allocation88_spill] sm:$0xff] }
 0x96a   : > { %3512 = vst [vmem:[%s5051_s13 + $0x4c] sm:$0x1] %v3497_v5  ;;  %3887 = vmatpush.msra.mxu1 %v8786_v43  ;;  %v8794_v5 = vld [vmem:[#allocation35_spill] sm:$0xff] }
 0x96b   : > { %3513 = vst [vmem:[%s5051_s13 + $0x5c] sm:$0x1] %v3498_v2  ;;  %4017 = vmatpush.msra.mxu2 %v8787_v23  ;;  %4037 = vmatpush.msra.mxu3 %v8788_v60  ;;  %v8796_v2 = vld [vmem:[#allocation36_spill] sm:$0xff]  ;;  %v8797_v23 = vld [vmem:[#allocation38_spill] sm:$0xff]  ;;  %v8799_v60 = vld [vmem:[#allocation39_spill] sm:$0xff] }
 0x96c   : > { %3514 = vst [vmem:[%s5051_s13 + $0x6c] sm:$0x1] %v3499_v36  ;;  %3888 = vmatpush.msra.mxu1 %v8789_v56  ;;  %v8798_v36 = vld [vmem:[#allocation90_spill] sm:$0xff]  ;;  %v3747_v56 = vld [vmem:[%s5036_s26 + $0xc] sm:$0x8] }
 0x96d   : > { %3515 = vst [vmem:[%s5051_s13 + $0x7c] sm:$0x1] %v3500_v0  ;;  %4018 = vmatpush.msra.mxu2 %v8790_v27  ;;  %4038 = vmatpush.msra.mxu3 %v8791_v28  ;;  %v8800_v0 = vld [vmem:[#allocation41_spill] sm:$0xff]  ;;  %v8801_v27 = vld [vmem:[#allocation92_spill] sm:$0xff]  ;;  %v8802_v28 = vld [vmem:[#allocation42_spill] sm:$0xff]  ;;  %v3755_v54 = vunpack.c.l.bf16 %v3747_v56 }
 0x96e   : > { %3889 = vmatpush.msra.mxu1 %v8792_v32  ;;  %v8803_v32 = vld [vmem:[#allocation46_spill] sm:$0xff] }
 0x96f   : > { %4019 = vmatpush.msra.mxu2 %v8793_v55  ;;  %4039 = vmatpush.msra.mxu3 %v8794_v5  ;;  %v8804_v55 = vld [vmem:[#allocation94_spill] sm:$0xff]  ;;  %v8805_v5 = vld [vmem:[#allocation44_spill] sm:$0xff] }
 0x970   : > { %3890 = vmatpush.msra.mxu1 %v8795_v30  ;;  %v8806_v30 = vld [vmem:[#allocation50_spill] sm:$0xff] }
 0x971   : > { %4020 = vmatpush.msra.mxu2 %v8796_v2  ;;  %4040 = vmatpush.msra.mxu3 %v8797_v23  ;;  %v8807_v2 = vld [vmem:[#allocation95_spill] sm:$0xff]  ;;  %v8808_v23 = vld [vmem:[#allocation48_spill] sm:$0xff] }
 0x972   : > { %3891 = vmatpush.msra.mxu1 %v8798_v36  ;;  %v8809_v36 = vld [vmem:[#allocation51_spill] sm:$0xff] }
 0x973   : > { %4021 = vmatpush.msra.mxu2 %v8799_v60  ;;  %4041 = vmatpush.msra.mxu3 %v8800_v0  ;;  %v8810_v60 = vld [vmem:[#allocation96_spill] sm:$0xff] }
 0x974   : > { %3892 = vmatpush.msra.mxu1 %v8801_v27  ;;  %v8811_v0 = vld [vmem:[#allocation52_spill] sm:$0xff]  ;;  %v8812_v27 = vld [vmem:[#allocation55_spill] sm:$0xff] }
 0x975   : > { %4022 = vmatpush.msra.mxu2 %v8802_v28  ;;  %4042 = vmatpush.msra.mxu3 %v8803_v32  ;;  %v8813_v28 = vld [vmem:[#allocation97_spill] sm:$0xff]  ;;  %v8814_v32 = vld [vmem:[#allocation54_spill] sm:$0xff] }
 0x976   : > { %3893 = vmatpush.msra.mxu1 %v8804_v55  ;;  %v8815_v55 = vld [vmem:[#allocation58_spill] sm:$0xff] }
 0x977   : > { %4023 = vmatpush.msra.mxu2 %v8805_v5  ;;  %4043 = vmatpush.msra.mxu3 %v8806_v30  ;;  %v8816_v5 = vld [vmem:[#allocation99_spill] sm:$0xff]  ;;  %v8817_v30 = vld [vmem:[#allocation60_spill] sm:$0xff] }
 0x978   : > { %3894 = vmatpush.msra.mxu1 %v8807_v2 }
 0x979   : > { %4024 = vmatpush.msra.mxu2 %v8808_v23  ;;  %4044 = vmatpush.msra.mxu3 %v8809_v36  ;;  %v8818_v23 = vld [vmem:[#allocation62_spill] sm:$0xff]  ;;  %v8819_v36 = vld [vmem:[#allocation101_spill] sm:$0xff] }
 0x97a   : > { %3895 = vmatpush.msra.mxu1 %v8810_v60  ;;  %v8820_v60 = vld [vmem:[#allocation64_spill] sm:$0xff] }
 0x97b   : > { %4025 = vmatpush.msra.mxu2 %v8811_v0  ;;  %4045 = vmatpush.msra.mxu3 %v8812_v27  ;;  %v8821_v27 = vld [vmem:[#allocation66_spill] sm:$0xff]  ;;  %v8822_v0 = vld [vmem:[#allocation103_spill] sm:$0xff] }
 0x97c   : > { %3896 = vmatpush.msra.mxu1 %v8813_v28  ;;  %v8826_v28 = vld [vmem:[#allocation72_spill] sm:$0xff] }
 0x97d   : > { %4026 = vmatpush.msra.mxu2 %v8814_v32  ;;  %4046 = vmatpush.msra.mxu3 %v8815_v55  ;;  %v8823_v32 = vld [vmem:[#allocation68_spill] sm:$0xff]  ;;  %v8824_v55 = vld [vmem:[#allocation70_spill] sm:$0xff] }
 0x97e   : > { %3897 = vmatpush.msra.mxu1 %v8816_v5  ;;  %v8825_v5 = vld [vmem:[#allocation104_spill] sm:$0xff] }
 0x97f   : > { %4027 = vmatpush.msra.mxu2 %v8817_v30  ;;  %4047 = vmatpush.msra.mxu3 %v8818_v23  ;;  %v8827_v30 = vld [vmem:[#allocation76_spill] sm:$0xff] }
 0x980   : > { %3898 = vmatpush.msra.mxu1 %v8819_v36  ;;  %v8828_v36 = vld [vmem:[#allocation47_spill] sm:$0xff] }
 0x981   : > { %4028 = vmatpush.msra.mxu2 %v8820_v60  ;;  %4048 = vmatpush.msra.mxu3 %v8821_v27  ;;  %v3746_v27 = vld [vmem:[%s5036_s26 + $0x4] sm:$0x8] }
 0x982   : > { %3899 = vmatpush.msra.mxu1 %v8822_v0  ;;  %v3754_v20 = vunpack.c.l.bf16 %v3746_v27  ;;  %v3753_v27 = vld [vmem:[%s5036_s26 + $0x3c] sm:$0x8] }
 0x983   : > { %4029 = vmatpush.msra.mxu2 %v8823_v32  ;;  %4049 = vmatpush.msra.mxu3 %v8824_v55  ;;  %v3748_v32 = vld [vmem:[%s5036_s26 + $0x14] sm:$0x8]  ;;  %v8829_v55 = vld [vmem:[#allocation57_spill] sm:$0xff]  ;;  %v3761_v21 = vunpack.c.l.bf16 %v3753_v27  ;;  %v8840_v27 = vld [vmem:[#allocation78_spill] sm:$0xff] }
 0x984   : > { %3900 = vmatpush.msra.mxu1 %v8825_v5  ;;  %v3749_v5 = vld [vmem:[%s5036_s26 + $0x1c] sm:$0x8]  ;;  %v3770_v31 = vrot.slane %v3754_v20, 6 }
 0x985   : > { %4030 = vmatpush.msra.mxu2 %v8826_v28  ;;  %4050 = vmatpush.msra.mxu3 %v8827_v30  ;;  %v3756_v28 = vunpack.c.l.bf16 %v3748_v32  ;;  %v3757_v30 = vunpack.c.l.bf16 %v3749_v5 }
 0x987   : > { %v3773_v33 = vrot.slane %v3756_v28, 4 }
 0x9c3   : > { %v3572_v23 = vpop.f32.mrf.mxu2  ;;  %v3592_v0 = vpop.f32.mrf.mxu3 }
 0x9c4   : > { %v3573_v2 = vadd.f32 %v3572_v23, %v8828_v36  ;;  %v3593_v47 = vadd.f32 %v3592_v0, %v8829_v55  ;;  %v3771_v23 = vrot.slane %v3755_v54, 5  ;;  %v3751_v36 = vld [vmem:[%s5036_s26 + $0x2c] sm:$0x8]  ;;  %v3777_v55 = vrot.slane %v3758_v25, 2 }
 0x9c5   : > { %v3759_v44 = vunpack.c.l.bf16 %v3751_v36  ;;  %v3782_v36 = vrot.slane %v3761_v21, 7 }
 0x9c7   : > { %v3779_v20 = vrot.slane %v3759_v44, 1 }
 0x9e2   : > { %v3632_v60 = vpop.f32.mrf.mxu1 }
 0x9e3   : > { %v3675_v43 = vadd.f32 %v3632_v60, %v3573_v2  ;;  %v3772_v2 = vsel %vm541_vm0, %v3771_v23, %v3770_v31  ;;  %v3775_v60 = vrot.slane %v3757_v30, 3 }
 0x9e4   : > { %v3774_v0 = vsel %vm544_vm1, %v3773_v33, %v3772_v2 }
 0x9e5   : > { %v4410_v41 = vmul.f32 -1.442695, %v3675_v43  ;;  %v3752_v43 = vld [vmem:[%s5036_s26 + $0x34] sm:$0x8]  ;;  %v3776_v5 = vsel %vm547_vm2, %v3775_v60, %v3774_v0 }
 0x9e6   : > { %v3760_v54 = vunpack.c.l.bf16 %v3752_v43  ;;  %v3778_v48 = vsel %vm550_vm3, %v3777_v55, %v3776_v5  ;;  %v8839_v55 = vld [vmem:[#allocation93_spill] sm:$0xff] }
 0x9e7   : > { %4671 = vpow2.f32 %v4410_v41  ;;  %v3780_v41 = vsel %vm553_vm4, %v3779_v20, %v3778_v48  ;;  %v8841_v43 = vld [vmem:[#allocation81_spill] sm:$0xff]  ;;  %v8842_v20 = vld [vmem:[#allocation83_spill] sm:$0xff]  ;;  %v8844_v48 = vld [vmem:[#allocation86_spill] sm:$0xff] }
 0x9e8   : > { %v3652_v56 = vpop.f32.mrf.mxu2  ;;  %v3781_v31 = vsel %vm556_vm5, %v3760_v54, %v3780_v41  ;;  %v8843_v54 = vld [vmem:[#allocation85_spill] sm:$0xff]  ;;  %v8846_v41 = vld [vmem:[#allocation90_spill] sm:$0xff] }
 0x9e9   : > { %v3695_v32 = vadd.f32 %v3652_v56, %v3593_v47  ;;  %v3783_v33 = vsel %vm559_vm6, %v3782_v36, %v3781_v31  ;;  %v8838_v47 = vld [vmem:[#allocation102_spill] sm:$0xff]  ;;  %v8847_v36 = vld [vmem:[#allocation92_spill] sm:$0xff] }
 0x9ea   : > { %3801 = vmatmul.f32.vlgmr.msrb.gmra.mxu0 %v3783_v33  ;;  %3821 = vmatmul.f32.vlgmr.msrb.gmra.mxu1 %v3783_v33  ;;  %v8848_v31 = vld [vmem:[#allocation94_spill] sm:$0xff] }
 0x9eb   : > { %v4411_v28 = vmul.f32 -1.442695, %v3695_v32  ;;  %3841 = vmatmul.f32.vlgmr.msrb.gmra.mxu2 %v3783_v33  ;;  %4075 = vmatpush.msrb.mxu1 %v5061_v6  ;;  %v8850_v33 = vld [vmem:[#allocation96_spill] sm:$0xff] }
 0x9ec   : > { %4095 = vmatpush.msrb.mxu2 %v8015_v22  ;;  %4055 = vmatpush.msrb.mxu0 %v5138_v45  ;;  %v3612_v22 = vpop.f32.mrf.mxu0 }
 0x9ed   : > { %v4672_v30 = vpop.eup %4671  ;;  %4673 = vpow2.f32 %v4411_v28  ;;  %4076 = vmatpush.msrb.mxu1 %v8038_v15  ;;  %v8845_v28 = vld [vmem:[#allocation88_spill] sm:$0xff] }
 0x9ee   : > { %v3679_v25 = vadd.f32 1.0, %v4672_v30  ;;  %4096 = vmatpush.msrb.mxu2 %v8018_v53  ;;  %4056 = vmatpush.msrb.mxu0 %v5149_v50  ;;  %v8849_v30 = vld [vmem:[#allocation95_spill] sm:$0xff] }
 0x9ef   : > { %4077 = vmatpush.msrb.mxu1 %v8041_v37  ;;  %v3613_v37 = vadd.f32 %v3612_v22, %v5624_v63 }
 0x9f0   : > { %4675 = vrcp.f32 %v3679_v25  ;;  %4097 = vmatpush.msrb.mxu2 %v8020_v29  ;;  %4057 = vmatpush.msrb.mxu0 %v8001_v62  ;;  %v3691_v53 = vand.u32 2147483648, %v3679_v25  ;;  %v3672_v62 = vpop.f32.mrf.mxu3  ;;  %vm3685_vm13 = vweird.f32 %v3679_v25 }
 0x9f1   : > { %4078 = vmatpush.msrb.mxu1 %v8042_v49 }
 0x9f2   : > { %4098 = vmatpush.msrb.mxu2 %v8022_v35  ;;  %4058 = vmatpush.msrb.mxu0 %v8004_v10  ;;  %v3689_v35 = vand.u32 2147483647, %v3679_v25 }
 0x9f3   : > { %v4674_v21 = vpop.eup %4673  ;;  %4079 = vmatpush.msrb.mxu1 %v8043_v19 }
 0x9f4   : > { %v3699_v44 = vadd.f32 1.0, %v4674_v21  ;;  %4099 = vmatpush.msrb.mxu2 %v8024_v59  ;;  %4059 = vmatpush.msrb.mxu0 %v8044_v1  ;;  %vm3690_vm15 = vcmp.eq.f32.partialorder %v3689_v35, 8.507059e+37  ;;  %v8852_v21 = vld [vmem:[#allocation99_spill] sm:$0xff] }
 0x9f5   : > { %4080 = vmatpush.msrb.mxu1 %v8045_v14 }
 0x9f6   : > { %v4676_v6 = vpop.eup %4675  ;;  %4677 = vrcp.f32 %v3699_v44  ;;  %4100 = vmatpush.msrb.mxu2 %v5333_v38  ;;  %4060 = vmatpush.msrb.mxu0 %v8046_v46  ;;  %v3692_v38 = vor.u32 1.1754944e-38, %v3691_v53  ;;  %v3711_v46 = vand.u32 2147483648, %v3699_v44  ;;  %vm3705_vm8 = vweird.f32 %v3699_v44 }
 0x9f7   : > { %v3681_v45 = vmul.f32 %v4676_v6, %v3679_v25  ;;  %vm3686_vm12 = vweird.f32 %v4676_v6  ;;  %4081 = vmatpush.msrb.mxu1 %v8047_v11  ;;  %v8851_v25 = vld [vmem:[#allocation97_spill] sm:$0xff] }
 0x9f8   : > { %4101 = vmatpush.msrb.mxu2 %v5344_v12  ;;  %4061 = vmatpush.msrb.mxu0 %v8048_v26  ;;  %vm3687_vm14 = vmor %vm3685_vm13, %vm3686_vm12  ;;  %v3715_v12 = vadd.f32 %v7388_v7, %v3672_v62  ;;  %v8857_v62 = vld [vmem:[#allocation47_spill] sm:$0xff] }
 0x9f9   : > { %v3682_v50 = vsub.f32 1.0, %v3681_v45  ;;  %4082 = vmatpush.msrb.mxu1 %v8049_v3  ;;  %v8833_v3 = vld [vmem:[#allocation69_spill] sm:$0xff]  ;;  %v8855_v45 = vld [vmem:[#allocation104_spill] sm:$0xff] }
 0x9fa   : > { %4102 = vmatpush.msrb.mxu2 %v5355_v52  ;;  %4062 = vmatpush.msrb.mxu0 %v8013_v57  ;;  %v3709_v52 = vand.u32 2147483647, %v3699_v44 }
 0x9fb   : > { %v3683_v29 = vmul.f32 %v4676_v6, %v3682_v50  ;;  %4083 = vmatpush.msrb.mxu1 %v8050_v4 }
 0x9fc   : > { %v4678_v10 = vpop.eup %4677  ;;  %4103 = vmatpush.msrb.mxu2 %v5366_v8  ;;  %4063 = vmatpush.msrb.mxu0 %v8017_v24  ;;  %v3712_v24 = vor.u32 1.1754944e-38, %v3711_v46  ;;  %vm3710_vm10 = vcmp.eq.f32.partialorder %v3709_v52, 8.507059e+37  ;;  %v3979_v46 = vld [vmem:[%s5036_s26 + $0x1c] sm:$0x8] }
 0x9fd   : > { %v3701_v59 = vmul.f32 %v4678_v10, %v3699_v44  ;;  %v3684_v15 = vadd.f32 %v4676_v6, %v3683_v29  ;;  %vm3706_vm7 = vweird.f32 %v4678_v10  ;;  %4084 = vmatpush.msrb.mxu1 %v8016_v51  ;;  %v8853_v44 = vld [vmem:[#allocation101_spill] sm:$0xff] }
 0x9fe   : > { %4104 = vmatpush.msrb.mxu2 %v5377_v9  ;;  %4064 = vmatpush.msrb.mxu0 %v5307_v42  ;;  %vm3707_vm9 = vmor %vm3705_vm8, %vm3706_vm7  ;;  %v8830_v42 = vld [vmem:[#allocation65_spill] sm:$0xff]  ;;  %v8831_v9 = vld [vmem:[#allocation98_spill] sm:$0xff] }
 0x9ff   : > { %v3702_v49 = vsub.f32 1.0, %v3701_v59  ;;  %v3688_v19 = vsel %vm3687_vm14, %v4676_v6, %v3684_v15  ;;  %4085 = vmatpush.msrb.mxu1 %v8051_v61  ;;  %v8835_v61 = vld [vmem:[#allocation100_spill] sm:$0xff]  ;;  %v8854_v6 = vld [vmem:[#allocation103_spill] sm:$0xff]  ;;  %v8856_v29 = vld [vmem:[#allocation57_spill] sm:$0xff] }
 0xa00   : > { %v3693_v1 = vsel %vm3690_vm15, %v3692_v38, %v3688_v19  ;;  %4105 = vmatpush.msrb.mxu2 %v5386_v13  ;;  %4065 = vmatpush.msrb.mxu0 %v5317_v17  ;;  %v8832_v13 = vld [vmem:[#allocation89_spill] sm:$0xff] }
 0xa01   : > { %v3703_v14 = vmul.f32 %v4678_v10, %v3702_v49  ;;  %v3716_v11 = vmul.f32 %v3715_v12, %v3693_v1  ;;  %4086 = vmatpush.msrb.mxu1 %v8021_v16  ;;  %v3977_v49 = vld [vmem:[%s5036_s26 + $0xc] sm:$0x8]  ;;  %v3978_v12 = vld [vmem:[%s5036_s26 + $0x14] sm:$0x8] }
 0xa02   : > { %4106 = vmatpush.msrb.mxu2 %v5395_v58  ;;  %4066 = vmatpush.msrb.mxu0 %v5328_v39  ;;  %v8834_v39 = vld [vmem:[#allocation31_spill] sm:$0xff] }
 0xa03   : > { %v3704_v57 = vadd.f32 %v4678_v10, %v3703_v14  ;;  %v3717_v26 = vadd.f32 %v3716_v11, %v3613_v37  ;;  %4087 = vmatpush.msrb.mxu1 %v8023_v40  ;;  %v8836_v40 = vld [vmem:[#allocation91_spill] sm:$0xff]  ;;  %v3976_v37 = vld [vmem:[%s5036_s26 + $0x4] sm:$0x8]  ;;  %v3985_v14 = vunpack.c.l.bf16 %v3977_v49  ;;  %v3986_v11 = vunpack.c.l.bf16 %v3978_v12 }
 0xa04   : > { %4107 = vmatpush.msrb.mxu2 %v5404_v18  ;;  %4067 = vmatpush.msrb.mxu0 %v8709_v34  ;;  %v8837_v18 = vld [vmem:[#allocation73_spill] sm:$0xff]  ;;  %v3984_v1 = vunpack.c.l.bf16 %v3976_v37 }
 0xa05   : > { %v3708_v8 = vsel %vm3707_vm9, %v4678_v10, %v3704_v57  ;;  %4679 = vtanh.f32 %v3717_v26  ;;  %4088 = vmatpush.msrb.mxu1 %v8830_v42  ;;  %v3980_v57 = vld [vmem:[%s5036_s26 + $0x24] sm:$0x8]  ;;  %v3987_v26 = vunpack.c.l.bf16 %v3979_v46 }
 0xa06   : > { %v3713_v51 = vsel %vm3710_vm10, %v3712_v24, %v3708_v8  ;;  %4108 = vmatpush.msrb.mxu2 %v8831_v9  ;;  %4068 = vmatpush.msrb.mxu0 %v8832_v13  ;;  %v4000_v24 = vrot.slane %v3984_v1, 7  ;;  %v4001_v8 = vrot.slane %v3985_v14, 6  ;;  %v3988_v42 = vunpack.c.l.bf16 %v3980_v57  ;;  %v3982_v13 = vld [vmem:[%s5036_s26 + $0x34] sm:$0x8] }
 0xa07   : > { %v3719_v17 = vsub.f32 1.0, %v3713_v51  ;;  %4089 = vmatpush.msrb.mxu1 %v8833_v3  ;;  %v3721_v4 = vmul.f32 %v3713_v51, %v8834_v39  ;;  %v3981_v51 = vld [vmem:[%s5036_s26 + $0x2c] sm:$0x8] }
 0xa08   : > { %4109 = vmatpush.msrb.mxu2 %v8835_v61  ;;  %4069 = vmatpush.msrb.mxu0 %v8836_v40  ;;  %v4002_v3 = vsel %vm541_vm0, %v4001_v8, %v4000_v24  ;;  %v4007_v40 = vrot.slane %v3988_v42, 3 }
 0xa09   : > { %4090 = vmatpush.msrb.mxu1 %v8837_v18 }
 0xa0a   : > { %4110 = vmatpush.msrb.mxu2 %v8838_v47  ;;  %4070 = vmatpush.msrb.mxu0 %v8839_v55  ;;  %v3983_v55 = vld [vmem:[%s5036_s26 + $0x3c] sm:$0x8] }
 0xa0b   : > { %v4680_v16 = vpop.eup %4679 }
 0xa0c   : > { %v3720_v58 = vmul.f32 %v4680_v16, %v3719_v17  ;;  %v4003_v17 = vrot.slane %v3986_v11, 5  ;;  %v3989_v16 = vunpack.c.l.bf16 %v3981_v51 }
 0xa0e   : > { %v7560_v34 = vadd.f32 %v3721_v4, %v3720_v58  ;;  %v4005_v58 = vrot.slane %v3987_v26, 4  ;;  %v3990_v4 = vunpack.c.l.bf16 %v3982_v13  ;;  %v4004_v61 = vsel %vm544_vm1, %v4003_v17, %v4002_v3 }
 0xa0f   : > { %v4009_v47 = vrot.slane %v3989_v16, 2 }
 0xa10   : > { %v3724_v23 = vrot.slane %v7560_v34, 1  ;;  %v3725_v2 = vrot.slane %v7560_v34, 2  ;;  %v3726_v60 = vrot.slane %v7560_v34, 3  ;;  %3738 = vst [vmem:[%s5051_s13 + $0xd] sm:$0x1] %v7560_v34  ;;  %3861 = vmatmul.f32.vlgmr.msrb.gmra.mxu3 %v7560_v34  ;;  %3881 = vmatmul.f32.vlgmr.msra.gmra.mxu0 %v7560_v34  ;;  %v3727_v56 = vrot.slane %v7560_v34, 4 }
 0xa11   : > { %3901 = vmatmul.f32.vlgmr.msra.gmra.mxu1 %v7560_v34  ;;  %4115 = vmatpush.msrb.mxu3 %v8840_v27  ;;  %v3728_v0 = vrot.slane %v7560_v34, 5  ;;  %v3729_v32 = vrot.slane %v7560_v34, 6  ;;  %v3730_v5 = vrot.slane %v7560_v34, 7  ;;  %v4006_v18 = vsel %vm547_vm2, %v4005_v58, %v4004_v61 }
 0xa12   : > { %3739 = vst [vmem:[%s5051_s13 + $0x1d] sm:$0x1] %v3724_v23  ;;  %v3991_v23 = vunpack.c.l.bf16 %v3983_v55 }
 0xa13   : > { %3740 = vst [vmem:[%s5051_s13 + $0x2d] sm:$0x1] %v3725_v2  ;;  %4116 = vmatpush.msrb.mxu3 %v8841_v43  ;;  %v4008_v2 = vsel %vm550_vm3, %v4007_v40, %v4006_v18 }
 0xa14   : > { %3741 = vst [vmem:[%s5051_s13 + $0x3d] sm:$0x1] %v3726_v60  ;;  %v4011_v60 = vrot.slane %v3990_v4, 1 }
 0xa15   : > { %3742 = vst [vmem:[%s5051_s13 + $0x4d] sm:$0x1] %v3727_v56  ;;  %4117 = vmatpush.msrb.mxu3 %v8842_v20  ;;  %v4010_v56 = vsel %vm553_vm4, %v4009_v47, %v4008_v2 }
 0xa16   : > { %3743 = vst [vmem:[%s5051_s13 + $0x5d] sm:$0x1] %v3728_v0  ;;  %v4012_v0 = vsel %vm556_vm5, %v4011_v60, %v4010_v56 }
 0xa17   : > { %3744 = vst [vmem:[%s5051_s13 + $0x6d] sm:$0x1] %v3729_v32  ;;  %4118 = vmatpush.msrb.mxu3 %v8843_v54  ;;  %v4013_v43 = vsel %vm559_vm6, %v3991_v23, %v4012_v0 }
 0xa18   : > { %3745 = vst [vmem:[%s5051_s13 + $0x7d] sm:$0x1] %v3730_v5  ;;  %4031 = vmatmul.f32.vlgmr.msra.gmra.mxu2 %v4013_v43  ;;  %4051 = vmatmul.f32.vlgmr.msra.gmra.mxu3 %v4013_v43 }
 0xa19   : > { %4119 = vmatpush.msrb.mxu3 %v8844_v48  ;;  %4071 = vmatmul.f32.vlgmr.msrb.gmra.mxu0 %v4013_v43 }
 0xa1b   : > { %4120 = vmatpush.msrb.mxu3 %v8845_v28 }
 0xa1d   : > { %4121 = vmatpush.msrb.mxu3 %v8846_v41 }
 0xa1f   : > { %4122 = vmatpush.msrb.mxu3 %v8847_v36 }
 0xa21   : > { %4123 = vmatpush.msrb.mxu3 %v8848_v31 }
 0xa23   : > { %4124 = vmatpush.msrb.mxu3 %v8849_v30 }
 0xa25   : > { %4125 = vmatpush.msrb.mxu3 %v8850_v33 }
 0xa27   : > { %4126 = vmatpush.msrb.mxu3 %v8851_v25 }
 0xa29   : > { %4127 = vmatpush.msrb.mxu3 %v8852_v21 }
 0xa2b   : > { %4128 = vmatpush.msrb.mxu3 %v8853_v44 }
 0xa2d   : > { %4129 = vmatpush.msrb.mxu3 %v8854_v6 }
 0xa2f   : > { %4130 = vmatpush.msrb.mxu3 %v8855_v45 }
 0xa67   : > { %v3802_v50 = vpop.f32.mrf.mxu0  ;;  %v3822_v53 = vpop.f32.mrf.mxu1 }
 0xa68   : > { %v3823_v35 = vadd.f32 %v3822_v53, %v8856_v29  ;;  %v3803_v59 = vadd.f32 %v3802_v50, %v8857_v62 }
 0xa6e   : > { %v3842_v21 = vpop.f32.mrf.mxu2 }
 0xa6f   : > { %v3843_v50 = vadd.f32 %v3842_v21, %v5624_v63 }
 0xa8d   : > { %v3882_v22 = vpop.f32.mrf.mxu0 }
 0xa8e   : > { %v3925_v10 = vadd.f32 %v3882_v22, %v3823_v35  ;;  %v3902_v25 = vpop.f32.mrf.mxu1 }
 0xa8f   : > { %v3945_v45 = vadd.f32 %v7388_v7, %v3902_v25 }
 0xa90   : > { %v4413_v15 = vmul.f32 -1.442695, %v3925_v10 }
 0xa92   : > { %4681 = vpow2.f32 %v4413_v15 }
 0xa93   : > { %v3862_v38 = vpop.f32.mrf.mxu3 }
 0xa94   : > { %v3905_v19 = vadd.f32 %v3862_v38, %v3803_v59 }
 0xa96   : > { %v4412_v52 = vmul.f32 -1.442695, %v3905_v19 }
 0xa98   : > { %v4682_v9 = vpop.eup %4681  ;;  %4683 = vpow2.f32 %v4412_v52 }
 0xa99   : > { %v3929_v39 = vadd.f32 1.0, %v4682_v9 }
 0xa9b   : > { %4685 = vrcp.f32 %v3929_v39  ;;  %v3941_v10 = vand.u32 2147483648, %v3929_v39  ;;  %vm3935_vm5 = vweird.f32 %v3929_v39  ;;  %v3939_v15 = vand.u32 2147483647, %v3929_v39  ;;  %v4032_v42 = vpop.f32.mrf.mxu2  ;;  %v4052_v16 = vpop.f32.mrf.mxu3 }
 0xa9c   : > { %v4033_v17 = vadd.f32 %v4032_v42, %v8857_v62  ;;  %v4053_v3 = vadd.f32 %v4052_v16, %v8856_v29  ;;  %v4072_v29 = vpop.f32.mrf.mxu0 }
 0xa9d   : > { %v3942_v49 = vor.u32 1.1754944e-38, %v3941_v10  ;;  %vm3940_vm11 = vcmp.eq.f32.partialorder %v3939_v15, 8.507059e+37 }
 0xa9e   : > { %v4684_v27 = vpop.eup %4683 }
 0xa9f   : > { %v3909_v32 = vadd.f32 1.0, %v4684_v27 }
 0xaa1   : > { %4687 = vrcp.f32 %v3909_v32  ;;  %v4686_v5 = vpop.eup %4685  ;;  %v3921_v36 = vand.u32 2147483648, %v3909_v32  ;;  %v3919_v30 = vand.u32 2147483647, %v3909_v32  ;;  %vm3915_vm1 = vweird.f32 %v3909_v32 }
 0xaa2   : > { %v3931_v20 = vmul.f32 %v4686_v5, %v3929_v39  ;;  %vm3936_vm4 = vweird.f32 %v4686_v5 }
 0xaa3   : > { %v3922_v6 = vor.u32 1.1754944e-38, %v3921_v36  ;;  %vm3920_vm3 = vcmp.eq.f32.partialorder %v3919_v30, 8.507059e+37  ;;  %vm3937_vm6 = vmor %vm3935_vm5, %vm3936_vm4 }
 0xaa4   : > { %v3932_v28 = vsub.f32 1.0, %v3931_v20 }
 0xaa6   : > { %v3933_v33 = vmul.f32 %v4686_v5, %v3932_v28 }
 0xaa7   : > { %v4688_v54 = vpop.eup %4687 }
 0xaa8   : > { %v3911_v48 = vmul.f32 %v4688_v54, %v3909_v32  ;;  %vm3916_vm0 = vweird.f32 %v4688_v54  ;;  %v3934_v22 = vadd.f32 %v4686_v5, %v3933_v33 }
 0xaa9   : > { %vm3917_vm2 = vmor %vm3915_vm1, %vm3916_vm0 }
 0xaaa   : > { %v3912_v41 = vsub.f32 1.0, %v3911_v48  ;;  %v3938_v37 = vsel %vm3937_vm6, %v4686_v5, %v3934_v22 }
 0xaab   : > { %v3943_v19 = vsel %vm3940_vm11, %v3942_v49, %v3938_v37 }
 0xaac   : > { %v3913_v31 = vmul.f32 %v4688_v54, %v3912_v41  ;;  %v3949_v12 = vsub.f32 1.0, %v3943_v19  ;;  %v3951_v46 = vmul.f32 %v3943_v19, %v7560_v34 }
 0xaae   : > { %v3914_v44 = vadd.f32 %v4688_v54, %v3913_v31 }
 0xab0   : > { %v3918_v53 = vsel %vm3917_vm2, %v4688_v54, %v3914_v44  ;;  %v4073_v54 = vadd.f32 %v4072_v29, %v5624_v63 }
 0xab1   : > { %v3923_v35 = vsel %vm3920_vm3, %v3922_v6, %v3918_v53 }
 0xab2   : > { %v3946_v59 = vmul.f32 %v3945_v45, %v3923_v35 }
 0xab4   : > { %v3947_v38 = vadd.f32 %v3946_v59, %v3843_v50 }
 0xab6   : > { %4689 = vtanh.f32 %v3947_v38 }
 0xabc   : > { %v4690_v1 = vpop.eup %4689 }
 0xabd   : > { %v3950_v14 = vmul.f32 %v4690_v1, %v3949_v12 }
 0xabf   : > { %v7619_v11 = vadd.f32 %v3951_v46, %v3950_v14 }
 0xac1   : > { %v3954_v52 = vrot.slane %v7619_v11, 1  ;;  %v3955_v57 = vrot.slane %v7619_v11, 2  ;;  %v3956_v26 = vrot.slane %v7619_v11, 3  ;;  %3968 = vst [vmem:[%s5051_s13 + $0xe] sm:$0x1] %v7619_v11  ;;  %4091 = vmatmul.f32.vlgmr.msrb.gmra.mxu1 %v7619_v11  ;;  %4111 = vmatmul.f32.vlgmr.msrb.gmra.mxu2 %v7619_v11  ;;  %v3957_v34 = vrot.slane %v7619_v11, 4 }
 0xac2   : > { %4131 = vmatmul.f32.vlgmr.msrb.gmra.mxu3 %v7619_v11  ;;  %v3958_v24 = vrot.slane %v7619_v11, 5  ;;  %v3959_v8 = vrot.slane %v7619_v11, 6  ;;  %v3960_v51 = vrot.slane %v7619_v11, 7 }
 0xac3   : > { %3969 = vst [vmem:[%s5051_s13 + $0x1e] sm:$0x1] %v3954_v52 }
 0xac4   : > { %3970 = vst [vmem:[%s5051_s13 + $0x2e] sm:$0x1] %v3955_v57 }
 0xac5   : > { %3971 = vst [vmem:[%s5051_s13 + $0x3e] sm:$0x1] %v3956_v26 }
 0xac6   : > { %3972 = vst [vmem:[%s5051_s13 + $0x4e] sm:$0x1] %v3957_v34 }
 0xac7   : > { %3973 = vst [vmem:[%s5051_s13 + $0x5e] sm:$0x1] %v3958_v24 }
 0xac8   : > { %3974 = vst [vmem:[%s5051_s13 + $0x6e] sm:$0x1] %v3959_v8 }
 0xac9   : > { %3975 = vst [vmem:[%s5051_s13 + $0x7e] sm:$0x1] %v3960_v51 }
 0xb3e   : > { %v4092_v9 = vpop.f32.mrf.mxu1 }
 0xb3f   : > { %v4135_v13 = vadd.f32 %v4092_v9, %v4033_v17 }
 0xb41   : > { %v4414_v58 = vmul.f32 -1.442695, %v4135_v13 }
 0xb43   : > { %4691 = vpow2.f32 %v4414_v58 }
 0xb44   : > { %v4112_v39 = vpop.f32.mrf.mxu2 }
 0xb45   : > { %v4155_v4 = vadd.f32 %v4112_v39, %v4053_v3  ;;  %v4132_v32 = vpop.f32.mrf.mxu3 }
 0xb46   : > { %v4175_v41 = vadd.f32 %v7388_v7, %v4132_v32 }
 0xb47   : > { %v4415_v61 = vmul.f32 -1.442695, %v4155_v4 }
 0xb49   : > { %v4692_v40 = vpop.eup %4691  ;;  %4693 = vpow2.f32 %v4415_v61 }
 0xb4a   : > { %v4139_v18 = vadd.f32 1.0, %v4692_v40 }
 0xb4c   : > { %4695 = vrcp.f32 %v4139_v18  ;;  %v4151_v60 = vand.u32 2147483648, %v4139_v18  ;;  %v4149_v27 = vand.u32 2147483647, %v4139_v18  ;;  %vm4145_vm13 = vweird.f32 %v4139_v18 }
 0xb4e   : > { %v4152_v20 = vor.u32 1.1754944e-38, %v4151_v60  ;;  %vm4150_vm15 = vcmp.eq.f32.partialorder %v4149_v27, 8.507059e+37 }
 0xb4f   : > { %v4694_v47 = vpop.eup %4693 }
 0xb50   : > { %v4159_v55 = vadd.f32 1.0, %v4694_v47 }
 0xb52   : > { %v4696_v23 = vpop.eup %4695  ;;  %4697 = vrcp.f32 %v4159_v55  ;;  %v4171_v30 = vand.u32 2147483648, %v4159_v55  ;;  %v4169_v25 = vand.u32 2147483647, %v4159_v55  ;;  %vm4165_vm8 = vweird.f32 %v4159_v55 }
 0xb53   : > { %v4141_v2 = vmul.f32 %v4696_v23, %v4139_v18  ;;  %vm4146_vm12 = vweird.f32 %v4696_v23 }
 0xb54   : > { %vm4147_vm14 = vmor %vm4145_vm13, %vm4146_vm12  ;;  %v4172_v6 = vor.u32 1.1754944e-38, %v4171_v30  ;;  %vm4170_vm10 = vcmp.eq.f32.partialorder %v4169_v25, 8.507059e+37 }
 0xb55   : > { %v4142_v62 = vsub.f32 1.0, %v4141_v2 }
 0xb57   : > { %v4143_v56 = vmul.f32 %v4696_v23, %v4142_v62 }
 0xb58   : > { %v4698_v0 = vpop.eup %4697 }
 0xb59   : > { %v4161_v43 = vmul.f32 %v4698_v0, %v4159_v55  ;;  %v4144_v5 = vadd.f32 %v4696_v23, %v4143_v56  ;;  %vm4166_vm7 = vweird.f32 %v4698_v0 }
 0xb5a   : > { %vm4167_vm9 = vmor %vm4165_vm8, %vm4166_vm7 }
 0xb5b   : > { %v4162_v48 = vsub.f32 1.0, %v4161_v43  ;;  %v4148_v28 = vsel %vm4147_vm14, %v4696_v23, %v4144_v5 }
 0xb5c   : > { %v4153_v36 = vsel %vm4150_vm15, %v4152_v20, %v4148_v28 }
 0xb5d   : > { %v4163_v31 = vmul.f32 %v4698_v0, %v4162_v48  ;;  %v4176_v33 = vmul.f32 %v4175_v41, %v4153_v36 }
 0xb5f   : > { %v4164_v21 = vadd.f32 %v4698_v0, %v4163_v31  ;;  %v4177_v44 = vadd.f32 %v4176_v33, %v4073_v54 }
 0xb61   : > { %v4168_v45 = vsel %vm4167_vm9, %v4698_v0, %v4164_v21  ;;  %4699 = vtanh.f32 %v4177_v44 }
 0xb62   : > { %v4173_v63 = vsel %vm4170_vm10, %v4172_v6, %v4168_v45 }
 0xb63   : > { %v4179_v50 = vsub.f32 1.0, %v4173_v63  ;;  %v4181_v35 = vmul.f32 %v4173_v63, %v7619_v11 }
 0xb67   : > { %v4700_v7 = vpop.eup %4699 }
 0xb68   : > { %v4180_v53 = vmul.f32 %v4700_v7, %v4179_v50 }
 0xb6a   : > { %v4182_v22 = vadd.f32 %v4181_v35, %v4180_v53 }
 0xb6c   : > { %v4184_v10 = vrot.slane %v4182_v22, 1  ;;  %v4185_v59 = vrot.slane %v4182_v22, 2  ;;  %v4186_v15 = vrot.slane %v4182_v22, 3  ;;  %4198 = vst [vmem:[%s5051_s13 + $0xf] sm:$0x1] %v4182_v22  ;;  %v4187_v38 = vrot.slane %v4182_v22, 4 }
 0xb6d   : > { %4206 = vst [vmem:[#allocation2] sm:$0xff] %v4182_v22  ;;  %v4188_v37 = vrot.slane %v4182_v22, 5  ;;  %v4189_v49 = vrot.slane %v4182_v22, 6  ;;  %v4190_v19 = vrot.slane %v4182_v22, 7 }
 0xb6e   : > { %4199 = vst [vmem:[%s5051_s13 + $0x1f] sm:$0x1] %v4184_v10 }
 0xb6f   : > { %4200 = vst [vmem:[%s5051_s13 + $0x2f] sm:$0x1] %v4185_v59 }
 0xb70   : > { %4201 = vst [vmem:[%s5051_s13 + $0x3f] sm:$0x1] %v4186_v15 }
 0xb71   : > { %4202 = vst [vmem:[%s5051_s13 + $0x4f] sm:$0x1] %v4187_v38 }
 0xb72   : > { %4203 = vst [vmem:[%s5051_s13 + $0x5f] sm:$0x1] %v4188_v37 }
 0xb73   : > { %4204 = vst [vmem:[%s5051_s13 + $0x6f] sm:$0x1] %v4189_v49 }
 0xb74   : > { %4205 = vst [vmem:[%s5051_s13 + $0x7f] sm:$0x1] %v4190_v19 }
 0xb75   : > { %s4422_s14 = sshll.u32 %s4849_s21, 4  ;;  %s4233_s17 = sshll.u32 %s5051_s13, 4  ;;  %s4234_s17 = int_to_ptr.vmem [resolvable:$true] %s4233_s17 }
 0xb76   : > { %s4222_s29 = scalar_lea.hbm %s7701_s5, %s4422_s14  ;;  %s4871_s12 = smov 256  }
 0xb77   : > { %s4235_s6 = sshll.u32 %s4222_s29, 4  ;;  %4444 = sst [smem:[#allocation15]] (%p4965_p9), %s4871_s12  ;;  %s4236_s6 = int_to_ptr.hbm [resolvable:$true] %s4235_s6 }
 0xb78   : > { %s4872_s16 = smov 512   ;;  %s4873_s30 = smov 2  }
 0xb79   : > { %4445 = sst [smem:[#allocation15 + $0x1]] (%p4965_p9), %s4872_s16  ;;  %s4874_s21 = smov 128  }
 0xb7a   : > { %4446 = sst [smem:[#allocation15 + $0x2]] (%p4965_p9), %s4873_s30  ;;  %s4875_s13 = smov 8  }
 0xb7b   : > { %4447 = sst [smem:[#allocation15 + $0x3]] (%p4965_p9), %s4874_s21  ;;  %s4876_s11 = smov [#allocation14]  }
 0xb7c   : > { %4448 = sst [smem:[#allocation15 + $0x4]] (%p4965_p9), %s4874_s21  ;;  %s4877_s15 = smov 0  }
 0xb7d   : > { %4449 = sst [smem:[#allocation15 + $0x5]] (%p4965_p9), %s4875_s13 }
 0xb7e   : > { %4450 = dma.general (%p4965_p9), %s4234_s17, 2048, %s4236_s6, %s4208_s10, %s4876_s11, [#allocation15], %s4877_s15, 0  }
 0xb7f PF: > { %s4263_s24 = sand.u32 1, %s4837_s18   ;;  %p4463_p5 = pnand %p4371_p3, %p4972_p11 }
 0xb80   : > { %s4264_s1 = scalar_lea.sflag [#allocation5], %s4263_s24 }
 0xb81   : > { %p4464_p6 = pneg %p4463_p5 }
 0xb83   : > { %4832 = dma.done.wait (%p4464_p6), %s4264_s1, 2048  }
 0xb84   : > { %4834 = vsyncadd (%p4464_p6), %s4264_s1, 4294965248  ;;  %s23_s23 = sadd.s32 1, %s4857_s23   ;;  %s8858_s7 = sld [smem:[#allocation21_spill]] }
 0xb85   : > { %p20_p7 = scmp.ge.s32.totalorder %s23_s23, 4   ;;  %s8859_s18 = smov %s4841_s19 }
 0xb86   : > { %s8860_s19 = smov %s4845_s20  ;;  %s8861_s20 = smov %s4970_s8 }
 0xb87   : > { %s8862_s21 = smov %s4853_s22  ;;  %22 = sbr.rel (!%p20_p7) target bundleno = 10 (0xa), region = 111 }
 0xb8a   : > { %s8863_s22 = smov %s8858_s7 }
 0xb8c   :  { %4270 = vsyncpa [#allocation4], 1 }
 0xb8d   :  { %4272 = vsyncpa [#allocation4 + $0x1], 1 }
 0xb8e   :  { %4273 = vsyncpa [#allocation7], 1 }
 0xb8f   :  { %4274 = vsyncpa [#allocation10], 1 }
 0xb90   :  { %4275 = vsyncpa [#allocation5], 1 }
 0xb91   :  { %4277 = vsyncpa [#allocation5 + $0x1], 1 }

</bundles_post_ra>
